<compile_context>
chip_gen: v5e
topology: v5e:2x2
jax: 0.10.0
libtpu: 0.0.40
codegen_flags: <defaults>
</compile_context>

<pallas_src>
import functools

import jax
import jax.numpy as jnp
from jax import lax
from jax.experimental import pallas as pl
from jax.experimental.pallas import tpu as pltpu

EPS = 1e-5


def _cdiv(a, b):
    return -(-a // b)


def _pick_tile(total, cap, align=16):
    nb = max(1, _cdiv(total, cap))
    t = _cdiv(total, nb)
    return _cdiv(t, align) * align


_VMEM_LIMIT = None


def _vmem_limit_bytes():
    # Generation-aware scoped-VMEM budget: ~65% of physical VMEM, capped at 100 MiB.
    global _VMEM_LIMIT
    if _VMEM_LIMIT is None:
        cap = None
        try:
            info = pltpu.get_tpu_info()
            for name in ("vmem_capacity_bytes", "vmem_size_bytes"):
                cap = getattr(info, name, None)
                if cap:
                    break
        except Exception:
            cap = None
        if not cap:
            cap = 64 * 1024 * 1024  # conservative (v7x-sized VMEM)
        _VMEM_LIMIT = int(min(cap * 0.65, 100 * 1024 * 1024))
    return _VMEM_LIMIT


def _cp():
    return pltpu.CompilerParams(
        dimension_semantics=("parallel",),
        vmem_limit_bytes=_vmem_limit_bytes(),
    )


# ---------------------------------------------------------------------------
# Pallas kernels
# ---------------------------------------------------------------------------
def matmul_bias_act_kernel(nrelu, x_ref, w_ref, b_ref, o_ref):
    # x: (tm, Cin) bf16, w: (Cin, Cp) bf16, b: (1, Cp) f32 -> o: (tm, Cp) bf16
    acc = jnp.dot(x_ref[...], w_ref[...], preferred_element_type=jnp.float32)
    y = acc + b_ref[...]
    col = lax.broadcasted_iota(jnp.int32, y.shape, 1)
    # ReLU on the conv branches (leading nrelu cols); pool-branch 1x1 stays linear.
    y = jnp.where(col < nrelu, jnp.maximum(y, 0.0), y)
    o_ref[...] = y.astype(o_ref.dtype)


def _make_chain_kernel(H, W, axes):
    # Fused chain of 7-tap convs (alternating (1,7) along W / (7,1) along H),
    # one whole image per grid step; all intermediates live in VMEM scratch.
    n = len(axes)
    assert axes[0] == "W", "chains must start with a (1,7) conv"

    def kernel(*refs):
        x_ref = refs[0]
        o_ref = refs[1 + 2 * n]
        wrefs = [refs[1 + 2 * i] for i in range(n)]
        brefs = [refs[2 + 2 * i] for i in range(n)]
        scratches = list(refs[2 + 2 * n:])

        cur = x_ref[0]                       # (H, W+6, C0) bf16, W pre-padded 3|3
        si = 0
        for s, axis in enumerate(axes):
            w = wrefs[s]
            b = brefs[s]
            ci, co = w.shape[1], w.shape[2]

            if axis == "W":
                if s == 0:
                    src = cur                                # already W-padded
                else:
                    sc = scratches[si]; si += 1              # (H, W+6, ci)
                    sc[...] = jnp.zeros(sc.shape, sc.dtype)
                    sc[:, pl.ds(3, W), :] = cur
                    src = sc[...]

                def tap(k, src=src, ci=ci):
                    return src[:, k:k + W, :].reshape(H * W, ci)
            else:  # axis == "H"
                sc = scratches[si]; si += 1                  # (H+6, W, ci)
                sc[...] = jnp.zeros(sc.shape, sc.dtype)
                sc[pl.ds(3, H), :, :] = cur
                src = sc[...]

                def tap(k, src=src, ci=ci):
                    return src[k:k + H, :, :].reshape(H * W, ci)

            # Tap-slab matmuls, f32 accumulation, single epilogue.
            acc = jnp.dot(tap(0), w[0], preferred_element_type=jnp.float32)
            for k in range(1, 7):
                acc = acc + jnp.dot(tap(k), w[k], preferred_element_type=jnp.float32)
            y = jnp.maximum(acc + b[...], 0.0)
            cur = y.astype(jnp.bfloat16).reshape(H, W, co)

        o_ref[0] = cur

    return kernel


def avgpool_bias_relu_kernel(x_ref, b_ref, o_ref):
    # Separable 3x3 avg pool (count_include_pad) + bias + relu.
    # x: (tn, H+2, W+2, C) bf16, b: (1, C) f32, o: (tn, H, W, C) bf16
    H, W = o_ref.shape[1], o_ref.shape[2]
    x = x_ref[...].astype(jnp.float32)
    xw = x[:, :, 0:W, :] + x[:, :, 1:W + 1, :] + x[:, :, 2:W + 2, :]
    s = xw[:, 0:H, :, :] + xw[:, 1:H + 1, :, :] + xw[:, 2:H + 2, :, :]
    y = s * (1.0 / 9.0) + b_ref[...]
    o_ref[...] = jnp.maximum(y, 0.0).astype(o_ref.dtype)


# ---------------------------------------------------------------------------
# pallas_call wrappers
# ---------------------------------------------------------------------------
def fused_matmul_bias_act(xf, w, b, nrelu, *, row_cap=1024):
    # xf: (M, Cin) bf16, w: (Cin, Ctot) bf16, b: (1, Ctot) f32 -> (M, Ctot) bf16
    M, Cin = xf.shape
    Ctot = w.shape[1]
    Cp = _cdiv(Ctot, 128) * 128                 # lane-dense output stores
    if Cp != Ctot:
        w = jnp.pad(w, ((0, 0), (0, Cp - Ctot)))
        b = jnp.pad(b, ((0, 0), (0, Cp - Ctot)))
    tm = _pick_tile(M, row_cap, 16)             # bf16 packs 16 rows per vreg
    Mp = _cdiv(M, tm) * tm
    if Mp != M:
        xf = jnp.pad(xf, ((0, Mp - M), (0, 0)))
    out = pl.pallas_call(
        functools.partial(matmul_bias_act_kernel, nrelu),
        out_shape=jax.ShapeDtypeStruct((Mp, Cp), jnp.bfloat16),
        grid=(Mp // tm,),
        in_specs=[
            pl.BlockSpec((tm, Cin), lambda i: (i, 0)),
            pl.BlockSpec((Cin, Cp), lambda i: (0, 0)),
            pl.BlockSpec((1, Cp), lambda i: (0, 0)),
        ],
        out_specs=pl.BlockSpec((tm, Cp), lambda i: (i, 0)),
        compiler_params=_cp(),
    )(xf, w, b)
    return out[:M, :Ctot]


def conv7_chain(x, stages):
    """Fused chain of 7-tap convs.

    x: (N, H, W, C0) bf16.
    stages: list of (axis, w_bf16 (7, Ci, Co), bias_f32 (1, Co)) with axis "W"/"H".
    Returns (N, H, W, Cout_last) bf16.  BN scale is folded into w, bias+ReLU fused.
    """
    N, H, W, C0 = x.shape
    Cout = stages[-1][1].shape[2]
    xp = jnp.pad(x, ((0, 0), (0, 0), (3, 3), (0, 0)))   # W halo for the first (1,7)

    in_specs = [pl.BlockSpec((1, H, W + 6, C0), lambda i: (i, 0, 0, 0))]
    args = [xp]
    scratch = []
    for s, (axis, wk, bias) in enumerate(stages):
        ci, co = wk.shape[1], wk.shape[2]
        in_specs.append(pl.BlockSpec((7, ci, co), lambda i: (0, 0, 0)))
        in_specs.append(pl.BlockSpec((1, co), lambda i: (0, 0)))
        args += [wk, bias]
        if axis == "W":
            if s > 0:
                scratch.append(pltpu.VMEM((H, W + 6, ci), jnp.bfloat16))
        else:
            scratch.append(pltpu.VMEM((H + 6, W, ci), jnp.bfloat16))

    kernel = _make_chain_kernel(H, W, tuple(a for a, _, _ in stages))
    return pl.pallas_call(
        kernel,
        out_shape=jax.ShapeDtypeStruct((N, H, W, Cout), jnp.bfloat16),
        grid=(N,),
        in_specs=in_specs,
        out_specs=pl.BlockSpec((1, H, W, Cout), lambda i: (i, 0, 0, 0)),
        scratch_shapes=scratch,
        compiler_params=_cp(),
    )(*args)


def avgpool_bias_relu(z, bias, *, img_cap=2):
    # relu(avgpool3x3(z) + bias), z: (N, H, W, C) bf16
    N, H, W, C = z.shape
    zp = jnp.pad(z, ((0, 0), (1, 1), (1, 1), (0, 0)))
    tn = min(N, img_cap)
    Np = _cdiv(N, tn) * tn
    if Np != N:
        zp = jnp.pad(zp, ((0, Np - N), (0, 0), (0, 0), (0, 0)))
    out = pl.pallas_call(
        avgpool_bias_relu_kernel,
        out_shape=jax.ShapeDtypeStruct((Np, H, W, C), jnp.bfloat16),
        grid=(Np // tn,),
        in_specs=[
            pl.BlockSpec((tn, H + 2, W + 2, C), lambda i: (i, 0, 0, 0)),
            pl.BlockSpec((1, C), lambda i: (0, 0)),
        ],
        out_specs=pl.BlockSpec((tn, H, W, C), lambda i: (i, 0, 0, 0)),
        compiler_params=_cp(),
    )(zp, bias)
    return out[:N]


# ---------------------------------------------------------------------------
# Parameter init (deterministic, synthetic).  BN in eval mode, folded.
# ---------------------------------------------------------------------------
def make_conv_bn_params(key, cin, cout, k_taps):
    kw, kg, kb, km, kv = jax.random.split(key, 5)
    w = jax.random.normal(kw, (k_taps, cin, cout), jnp.float32) / jnp.sqrt(cin * k_taps)
    gamma = jax.random.uniform(kg, (cout,), jnp.float32, 0.5, 1.5)
    beta = jax.random.normal(kb, (cout,), jnp.float32) * 0.1
    mean = jax.random.normal(km, (cout,), jnp.float32) * 0.1
    var = jax.random.uniform(kv, (cout,), jnp.float32, 0.5, 1.5)
    scale = gamma / jnp.sqrt(var + EPS)
    bias = beta - mean * scale
    return {"w": w, "scale": scale, "bias": bias}


def init_inception_c(key, in_channels, c7):
    ks = jax.random.split(key, 10)
    return {
        "b1": make_conv_bn_params(ks[0], in_channels, 192, 1),
        "b7_1": make_conv_bn_params(ks[1], in_channels, c7, 1),
        "b7_2": make_conv_bn_params(ks[2], c7, c7, 7),     # (1,7)
        "b7_3": make_conv_bn_params(ks[3], c7, 192, 7),    # (7,1)
        "b7d_1": make_conv_bn_params(ks[4], in_channels, c7, 1),
        "b7d_2": make_conv_bn_params(ks[5], c7, c7, 7),    # (1,7)
        "b7d_3": make_conv_bn_params(ks[6], c7, c7, 7),    # (7,1)
        "b7d_4": make_conv_bn_params(ks[7], c7, c7, 7),    # (1,7)
        "b7d_5": make_conv_bn_params(ks[8], c7, 192, 7),   # (7,1)
        "bpool": make_conv_bn_params(ks[9], in_channels, 192, 1),
    }


def _fold_w(p):
    # BN scale folded into the weights, bf16 for the MXU.  (K, Cin, Cout)
    return (p["w"] * p["scale"]).astype(jnp.bfloat16)


def _fold_b(p):
    return p["bias"].astype(jnp.float32).reshape(1, -1)


# ---------------------------------------------------------------------------
# InceptionC forward (Pallas)
# ---------------------------------------------------------------------------
def inception_c_forward(x_nchw, params):
    x = jnp.transpose(x_nchw, (0, 2, 3, 1)).astype(jnp.float32)   # NHWC
    N, H, W, Cin = x.shape
    xb = x.astype(jnp.bfloat16)
    c7 = params["b7_1"]["w"].shape[-1]

    # ---- fused 1x1 quartet over x (reads x once): b1 | b7_1 | b7d_1 | bpool-1x1 ----
    # Pool branch uses linearity avgpool(conv1x1(x)) == conv1x1(avgpool(x)); requires
    # count_include_pad=True (nn.AvgPool2d default) and bias/ReLU applied after pooling.
    w_all = jnp.concatenate(
        [_fold_w(params["b1"])[0], _fold_w(params["b7_1"])[0],
         _fold_w(params["b7d_1"])[0], _fold_w(params["bpool"])[0]], axis=-1)
    b_all = jnp.concatenate(
        [_fold_b(params["b1"]), _fold_b(params["b7_1"]), _fold_b(params["b7d_1"]),
         jnp.zeros((1, 192), jnp.float32)], axis=-1)      # pool bias applied after pooling
    nrelu = 192 + 2 * c7                                   # pool columns stay linear

    y = fused_matmul_bias_act(xb.reshape(N * H * W, Cin), w_all, b_all, nrelu)
    branch1x1 = y[:, :192].reshape(N, H, W, 192)
    t7 = y[:, 192:192 + c7].reshape(N, H, W, c7)
    t7d = y[:, 192 + c7:192 + 2 * c7].reshape(N, H, W, c7)
    zpool = y[:, 192 + 2 * c7:192 + 2 * c7 + 192].reshape(N, H, W, 192)

    # ---- 7x7 branch: (1,7) -> (7,1), fused; intermediate stays in VMEM ----
    branch7x7 = conv7_chain(
        t7,
        [("W", _fold_w(params["b7_2"]), _fold_b(params["b7_2"])),
         ("H", _fold_w(params["b7_3"]), _fold_b(params["b7_3"]))])

    # ---- double 7x7 branch: (1,7)->(7,1)->(1,7)->(7,1), fused in one kernel ----
    branch7x7db = conv7_chain(
        t7d,
        [("W", _fold_w(params["b7d_2"]), _fold_b(params["b7d_2"])),
         ("H", _fold_w(params["b7d_3"]), _fold_b(params["b7d_3"])),
         ("W", _fold_w(params["b7d_4"]), _fold_b(params["b7d_4"])),
         ("H", _fold_w(params["b7d_5"]), _fold_b(params["b7d_5"]))])

    # ---- pool branch: relu(avgpool3x3(conv1x1(x)) + bias) ----
    branchpool = avgpool_bias_relu(zpool, _fold_b(params["bpool"]))

    out = jnp.concatenate([branch1x1, branch7x7, branch7x7db, branchpool],
                          axis=-1).astype(jnp.float32)
    return jnp.transpose(out, (0, 3, 1, 2))                # back to NCHW


# ---------------------------------------------------------------------------
# Pure-JAX reference (lax.conv, f32) for the correctness check
# ---------------------------------------------------------------------------
def _ref_conv(x, p, kind):
    K, Cin, Cout = p["w"].shape
    if kind == "1x1":
        w = p["w"].reshape(1, 1, Cin, Cout); pad = ((0, 0), (0, 0))
    elif kind == "1x7":
        w = p["w"].reshape(1, K, Cin, Cout); pad = ((0, 0), (3, 3))
    else:  # "7x1"
        w = p["w"].reshape(K, 1, Cin, Cout); pad = ((3, 3), (0, 0))
    y = lax.conv_general_dilated(x, w, (1, 1), pad,
                                 dimension_numbers=("NHWC", "HWIO", "NHWC"))
    return jnp.maximum(y * p["scale"] + p["bias"], 0.0)


def inception_c_reference(x_nchw, params):
    x = jnp.transpose(x_nchw, (0, 2, 3, 1)).astype(jnp.float32)
    b1 = _ref_conv(x, params["b1"], "1x1")
    b = _ref_conv(x, params["b7_1"], "1x1")
    b = _ref_conv(b, params["b7_2"], "1x7")
    b = _ref_conv(b, params["b7_3"], "7x1")
    d = _ref_conv(x, params["b7d_1"], "1x1")
    d = _ref_conv(d, params["b7d_2"], "1x7")
    d = _ref_conv(d, params["b7d_3"], "7x1")
    d = _ref_conv(d, params["b7d_4"], "1x7")
    d = _ref_conv(d, params["b7d_5"], "7x1")
    xp = jnp.pad(x, ((0, 0), (1, 1), (1, 1), (0, 0)))
    pool = lax.reduce_window(xp, 0.0, lax.add, (1, 3, 3, 1), (1, 1, 1, 1), "VALID") / 9.0
    bp = _ref_conv(pool, params["bpool"], "1x1")
    out = jnp.concatenate([b1, b, d, bp], axis=-1)
    return jnp.transpose(out, (0, 3, 1, 2))


if __name__ == "__main__":
    # Small shapes consistent with the module: NCHW input, 192-channel branches.
    batch, in_channels, c7, H, W = 2, 16, 16, 8, 8

    key = jax.random.PRNGKey(0)
    kx, kp = jax.random.split(key)
    x = jax.random.normal(kx, (batch, in_channels, H, W), jnp.float32)
    params = init_inception_c(kp, in_channels, c7)

    fwd = jax.jit(inception_c_forward)
    out = jax.block_until_ready(fwd(x, params))
    assert out.shape == (batch, 4 * 192, H, W), out.shape

    ref = jax.block_until_ready(inception_c_reference(x, params))
    # bf16 activations/weights -> relative tolerance (real bugs give O(1) errors).
    rel_err = float(jnp.max(jnp.abs(out - ref) / (jnp.abs(ref) + 1.0)))
    assert rel_err < 0.1, f"mismatch vs reference: rel_err={rel_err}"

    print("KERNEL_OK")
</pallas_src>

<mosaic_0001>
module attributes {stable_mosaic.version = 11 : i64} {
  func.func @matmul_bias_act_kernel(%arg0: i32, %arg1: memref<128x16xbf16, #tpu.memory_space<vmem>>, %arg2: memref<16x512xbf16, #tpu.memory_space<vmem>>, %arg3: memref<1x512xf32, #tpu.memory_space<vmem>>, %arg4: memref<128x512xbf16, #tpu.memory_space<vmem>>) attributes {dimension_semantics = [#tpu.dimension_semantics<parallel>], iteration_bounds = array<i64: 1>, scalar_prefetch = 0 : i64, scratch_operands = 0 : i64, tpu.core_type = #tpu.core_type<tc>, window_params = [{transform_indices = @transform_0, window_bounds = array<i64: 128, 16>}, {pipeline_mode = #tpu.pipeline_mode<synchronous>, transform_indices = @transform_1, window_bounds = array<i64: 16, 512>}, {pipeline_mode = #tpu.pipeline_mode<synchronous>, transform_indices = @transform_2, window_bounds = array<i64: 1, 512>}, {transform_indices = @transform_3, window_bounds = array<i64: 128, 512>}]} {
    %c0 = arith.constant 0 : index
    %c0_0 = arith.constant 0 : index
    %0 = vector.load %arg1[%c0, %c0_0] : memref<128x16xbf16, #tpu.memory_space<vmem>>, vector<128x16xbf16>
    %c0_1 = arith.constant 0 : index
    %c0_2 = arith.constant 0 : index
    %1 = vector.load %arg2[%c0_1, %c0_2] : memref<16x512xbf16, #tpu.memory_space<vmem>>, vector<16x512xbf16>
    %cst = arith.constant dense<0.000000e+00> : vector<128x512xf32>
    %2 = tpu.matmul %0, %1, %cst {dimension_numbers = #tpu.dot_dimension_numbers<[1], [0], [0], [1], [0, 0, 1, 1], [], []>} : vector<128x16xbf16>, vector<16x512xbf16>, vector<128x512xf32> -> vector<128x512xf32>
    %c0_3 = arith.constant 0 : index
    %c0_4 = arith.constant 0 : index
    %3 = vector.load %arg3[%c0_3, %c0_4] : memref<1x512xf32, #tpu.memory_space<vmem>>, vector<1x512xf32>
    %4 = vector.broadcast %3 : vector<1x512xf32> to vector<128x512xf32>
    %5 = arith.addf %2, %4 : vector<128x512xf32>
    %6 = tpu.iota {dimensions = array<i32: 1>} : vector<128x512xi32>
    %c224_i32 = arith.constant 224 : i32
    %7 = vector.broadcast %c224_i32 : i32 to vector<128x512xi32>
    %8 = arith.cmpi slt, %6, %7 : vector<128x512xi32>
    %cst_5 = arith.constant 0.000000e+00 : f32
    %9 = vector.broadcast %cst_5 : f32 to vector<128x512xf32>
    %10 = arith.maximumf %5, %9 : vector<128x512xf32>
    %11 = arith.select %8, %10, %5 : vector<128x512xi1>, vector<128x512xf32>
    %12 = arith.truncf %11 : vector<128x512xf32> to vector<128x512xbf16>
    %c0_6 = arith.constant 0 : index
    %c0_7 = arith.constant 0 : index
    %13 = vector.load %arg4[%c0_6, %c0_7] : memref<128x512xbf16, #tpu.memory_space<vmem>>, vector<128x512xbf16>
    tpu.vector_store %arg4[%c0_6, %c0_7], %12 {strides = array<i32>} : memref<128x512xbf16, #tpu.memory_space<vmem>>, vector<128x512xbf16>,
    return
  }
  func.func @transform_0(%arg0: i32) -> (i32, i32) {
    %c0_i32 = arith.constant 0 : i32
    %c0_i32_0 = arith.constant 0 : i32
    return %arg0, %c0_i32 : i32, i32
  }
  func.func @transform_1(%arg0: i32) -> (i32, i32) {
    %c0_i32 = arith.constant 0 : i32
    %c0_i32_0 = arith.constant 0 : i32
    %c0_i32_1 = arith.constant 0 : i32
    return %c0_i32, %c0_i32_0 : i32, i32
  }
  func.func @transform_2(%arg0: i32) -> (i32, i32) {
    %c0_i32 = arith.constant 0 : i32
    %c0_i32_0 = arith.constant 0 : i32
    %c0_i32_1 = arith.constant 0 : i32
    return %c0_i32, %c0_i32_0 : i32, i32
  }
  func.func @transform_3(%arg0: i32) -> (i32, i32) {
    %c0_i32 = arith.constant 0 : i32
    %c0_i32_0 = arith.constant 0 : i32
    return %arg0, %c0_i32 : i32, i32
  }
}

module attributes {stable_mosaic.version = 11 : i64} {
  func.func @kernel(%arg0: i32, %arg1: memref<1x8x14x16xbf16, #tpu.memory_space<vmem>>, %arg2: memref<7x16x16xbf16, #tpu.memory_space<vmem>>, %arg3: memref<1x16xf32, #tpu.memory_space<vmem>>, %arg4: memref<7x16x192xbf16, #tpu.memory_space<vmem>>, %arg5: memref<1x192xf32, #tpu.memory_space<vmem>>, %arg6: memref<1x8x8x192xbf16, #tpu.memory_space<vmem>>, %arg7: memref<14x8x16xbf16, #tpu.memory_space<vmem>>) attributes {dimension_semantics = [#tpu.dimension_semantics<parallel>], iteration_bounds = array<i64: 2>, scalar_prefetch = 0 : i64, scratch_operands = 1 : i64, tpu.core_type = #tpu.core_type<tc>, window_params = [{transform_indices = @transform_0, window_bounds = array<i64: 1, 8, 14, 16>}, {pipeline_mode = #tpu.pipeline_mode<synchronous>, transform_indices = @transform_1, window_bounds = array<i64: 7, 16, 16>}, {pipeline_mode = #tpu.pipeline_mode<synchronous>, transform_indices = @transform_2, window_bounds = array<i64: 1, 16>}, {pipeline_mode = #tpu.pipeline_mode<synchronous>, transform_indices = @transform_3, window_bounds = array<i64: 7, 16, 192>}, {pipeline_mode = #tpu.pipeline_mode<synchronous>, transform_indices = @transform_4, window_bounds = array<i64: 1, 192>}, {transform_indices = @transform_5, window_bounds = array<i64: 1, 8, 8, 192>}]} {
    %c0 = arith.constant 0 : index
    %c0_0 = arith.constant 0 : index
    %c0_1 = arith.constant 0 : index
    %c0_2 = arith.constant 0 : index
    %0 = vector.load %arg1[%c0, %c0_0, %c0_1, %c0_2] : memref<1x8x14x16xbf16, #tpu.memory_space<vmem>>, vector<1x8x14x16xbf16>
    %1 = vector.shape_cast %0 : vector<1x8x14x16xbf16> to vector<8x14x16xbf16>
    %2 = vector.extract_strided_slice %1 {offsets = [0, 0, 0], sizes = [8, 8, 16], strides = [1, 1, 1]} : vector<8x14x16xbf16> to vector<8x8x16xbf16>
    %3 = vector.shape_cast %2 : vector<8x8x16xbf16> to vector<64x16xbf16>
    %c0_3 = arith.constant 0 : index
    %c0_4 = arith.constant 0 : index
    %c0_5 = arith.constant 0 : index
    %4 = vector.load %arg2[%c0_3, %c0_4, %c0_5] : memref<7x16x16xbf16, #tpu.memory_space<vmem>>, vector<1x16x16xbf16>
    %5 = vector.shape_cast %4 : vector<1x16x16xbf16> to vector<16x16xbf16>
    %cst = arith.constant dense<0.000000e+00> : vector<64x16xf32>
    %6 = tpu.matmul %3, %5, %cst {dimension_numbers = #tpu.dot_dimension_numbers<[1], [0], [0], [1], [0, 0, 1, 1], [], []>} : vector<64x16xbf16>, vector<16x16xbf16>, vector<64x16xf32> -> vector<64x16xf32>
    %7 = vector.extract_strided_slice %1 {offsets = [0, 1, 0], sizes = [8, 8, 16], strides = [1, 1, 1]} : vector<8x14x16xbf16> to vector<8x8x16xbf16>
    %8 = vector.shape_cast %7 : vector<8x8x16xbf16> to vector<64x16xbf16>
    %c1 = arith.constant 1 : index
    %c0_6 = arith.constant 0 : index
    %c0_7 = arith.constant 0 : index
    %9 = vector.load %arg2[%c1, %c0_6, %c0_7] : memref<7x16x16xbf16, #tpu.memory_space<vmem>>, vector<1x16x16xbf16>
    %10 = vector.shape_cast %9 : vector<1x16x16xbf16> to vector<16x16xbf16>
    %cst_8 = arith.constant dense<0.000000e+00> : vector<64x16xf32>
    %11 = tpu.matmul %8, %10, %cst_8 {dimension_numbers = #tpu.dot_dimension_numbers<[1], [0], [0], [1], [0, 0, 1, 1], [], []>} : vector<64x16xbf16>, vector<16x16xbf16>, vector<64x16xf32> -> vector<64x16xf32>
    %12 = arith.addf %6, %11 : vector<64x16xf32>
    %13 = vector.extract_strided_slice %1 {offsets = [0, 2, 0], sizes = [8, 8, 16], strides = [1, 1, 1]} : vector<8x14x16xbf16> to vector<8x8x16xbf16>
    %14 = vector.shape_cast %13 : vector<8x8x16xbf16> to vector<64x16xbf16>
    %c2 = arith.constant 2 : index
    %c0_9 = arith.constant 0 : index
    %c0_10 = arith.constant 0 : index
    %15 = vector.load %arg2[%c2, %c0_9, %c0_10] : memref<7x16x16xbf16, #tpu.memory_space<vmem>>, vector<1x16x16xbf16>
    %16 = vector.shape_cast %15 : vector<1x16x16xbf16> to vector<16x16xbf16>
    %cst_11 = arith.constant dense<0.000000e+00> : vector<64x16xf32>
    %17 = tpu.matmul %14, %16, %cst_11 {dimension_numbers = #tpu.dot_dimension_numbers<[1], [0], [0], [1], [0, 0, 1, 1], [], []>} : vector<64x16xbf16>, vector<16x16xbf16>, vector<64x16xf32> -> vector<64x16xf32>
    %18 = arith.addf %12, %17 : vector<64x16xf32>
    %19 = vector.extract_strided_slice %1 {offsets = [0, 3, 0], sizes = [8, 8, 16], strides = [1, 1, 1]} : vector<8x14x16xbf16> to vector<8x8x16xbf16>
    %20 = vector.shape_cast %19 : vector<8x8x16xbf16> to vector<64x16xbf16>
    %c3 = arith.constant 3 : index
    %c0_12 = arith.constant 0 : index
    %c0_13 = arith.constant 0 : index
    %21 = vector.load %arg2[%c3, %c0_12, %c0_13] : memref<7x16x16xbf16, #tpu.memory_space<vmem>>, vector<1x16x16xbf16>
    %22 = vector.shape_cast %21 : vector<1x16x16xbf16> to vector<16x16xbf16>
    %cst_14 = arith.constant dense<0.000000e+00> : vector<64x16xf32>
    %23 = tpu.matmul %20, %22, %cst_14 {dimension_numbers = #tpu.dot_dimension_numbers<[1], [0], [0], [1], [0, 0, 1, 1], [], []>} : vector<64x16xbf16>, vector<16x16xbf16>, vector<64x16xf32> -> vector<64x16xf32>
    %24 = arith.addf %18, %23 : vector<64x16xf32>
    %25 = vector.extract_strided_slice %1 {offsets = [0, 4, 0], sizes = [8, 8, 16], strides = [1, 1, 1]} : vector<8x14x16xbf16> to vector<8x8x16xbf16>
    %26 = vector.shape_cast %25 : vector<8x8x16xbf16> to vector<64x16xbf16>
    %c4 = arith.constant 4 : index
    %c0_15 = arith.constant 0 : index
    %c0_16 = arith.constant 0 : index
    %27 = vector.load %arg2[%c4, %c0_15, %c0_16] : memref<7x16x16xbf16, #tpu.memory_space<vmem>>, vector<1x16x16xbf16>
    %28 = vector.shape_cast %27 : vector<1x16x16xbf16> to vector<16x16xbf16>
    %cst_17 = arith.constant dense<0.000000e+00> : vector<64x16xf32>
    %29 = tpu.matmul %26, %28, %cst_17 {dimension_numbers = #tpu.dot_dimension_numbers<[1], [0], [0], [1], [0, 0, 1, 1], [], []>} : vector<64x16xbf16>, vector<16x16xbf16>, vector<64x16xf32> -> vector<64x16xf32>
    %30 = arith.addf %24, %29 : vector<64x16xf32>
    %31 = vector.extract_strided_slice %1 {offsets = [0, 5, 0], sizes = [8, 8, 16], strides = [1, 1, 1]} : vector<8x14x16xbf16> to vector<8x8x16xbf16>
    %32 = vector.shape_cast %31 : vector<8x8x16xbf16> to vector<64x16xbf16>
    %c5 = arith.constant 5 : index
    %c0_18 = arith.constant 0 : index
    %c0_19 = arith.constant 0 : index
    %33 = vector.load %arg2[%c5, %c0_18, %c0_19] : memref<7x16x16xbf16, #tpu.memory_space<vmem>>, vector<1x16x16xbf16>
    %34 = vector.shape_cast %33 : vector<1x16x16xbf16> to vector<16x16xbf16>
    %cst_20 = arith.constant dense<0.000000e+00> : vector<64x16xf32>
    %35 = tpu.matmul %32, %34, %cst_20 {dimension_numbers = #tpu.dot_dimension_numbers<[1], [0], [0], [1], [0, 0, 1, 1], [], []>} : vector<64x16xbf16>, vector<16x16xbf16>, vector<64x16xf32> -> vector<64x16xf32>
    %36 = arith.addf %30, %35 : vector<64x16xf32>
    %37 = vector.extract_strided_slice %1 {offsets = [0, 6, 0], sizes = [8, 8, 16], strides = [1, 1, 1]} : vector<8x14x16xbf16> to vector<8x8x16xbf16>
    %38 = vector.shape_cast %37 : vector<8x8x16xbf16> to vector<64x16xbf16>
    %c6 = arith.constant 6 : index
    %c0_21 = arith.constant 0 : index
    %c0_22 = arith.constant 0 : index
    %39 = vector.load %arg2[%c6, %c0_21, %c0_22] : memref<7x16x16xbf16, #tpu.memory_space<vmem>>, vector<1x16x16xbf16>
    %40 = vector.shape_cast %39 : vector<1x16x16xbf16> to vector<16x16xbf16>
    %cst_23 = arith.constant dense<0.000000e+00> : vector<64x16xf32>
    %41 = tpu.matmul %38, %40, %cst_23 {dimension_numbers = #tpu.dot_dimension_numbers<[1], [0], [0], [1], [0, 0, 1, 1], [], []>} : vector<64x16xbf16>, vector<16x16xbf16>, vector<64x16xf32> -> vector<64x16xf32>
    %42 = arith.addf %36, %41 : vector<64x16xf32>
    %c0_24 = arith.constant 0 : index
    %c0_25 = arith.constant 0 : index
    %43 = vector.load %arg3[%c0_24, %c0_25] : memref<1x16xf32, #tpu.memory_space<vmem>>, vector<1x16xf32>
    %44 = vector.broadcast %43 : vector<1x16xf32> to vector<64x16xf32>
    %45 = arith.addf %42, %44 : vector<64x16xf32>
    %cst_26 = arith.constant 0.000000e+00 : f32
    %46 = vector.broadcast %cst_26 : f32 to vector<64x16xf32>
    %47 = arith.maximumf %45, %46 : vector<64x16xf32>
    %48 = arith.truncf %47 : vector<64x16xf32> to vector<64x16xbf16>
    %49 = vector.shape_cast %48 : vector<64x16xbf16> to vector<8x8x16xbf16>
    %cst_27 = arith.constant 0.000000e+00 : bf16
    %50 = vector.broadcast %cst_27 : bf16 to vector<14x8x16xbf16>
    %c0_28 = arith.constant 0 : index
    %c0_29 = arith.constant 0 : index
    %c0_30 = arith.constant 0 : index
    %51 = vector.load %arg7[%c0_28, %c0_29, %c0_30] : memref<14x8x16xbf16, #tpu.memory_space<vmem>>, vector<14x8x16xbf16>
    tpu.vector_store %arg7[%c0_28, %c0_29, %c0_30], %50 {strides = array<i32>} : memref<14x8x16xbf16, #tpu.memory_space<vmem>>, vector<14x8x16xbf16>,
    %c3_31 = arith.constant 3 : index
    %c0_32 = arith.constant 0 : index
    %c0_33 = arith.constant 0 : index
    %52 = vector.load %arg7[%c3_31, %c0_32, %c0_33] : memref<14x8x16xbf16, #tpu.memory_space<vmem>>, vector<8x8x16xbf16>
    tpu.vector_store %arg7[%c3_31, %c0_32, %c0_33], %49 {strides = array<i32>} : memref<14x8x16xbf16, #tpu.memory_space<vmem>>, vector<8x8x16xbf16>,
    %c0_34 = arith.constant 0 : index
    %c0_35 = arith.constant 0 : index
    %c0_36 = arith.constant 0 : index
    %53 = vector.load %arg7[%c0_34, %c0_35, %c0_36] : memref<14x8x16xbf16, #tpu.memory_space<vmem>>, vector<14x8x16xbf16>
    %54 = vector.extract_strided_slice %53 {offsets = [0, 0, 0], sizes = [8, 8, 16], strides = [1, 1, 1]} : vector<14x8x16xbf16> to vector<8x8x16xbf16>
    %55 = vector.shape_cast %54 : vector<8x8x16xbf16> to vector<64x16xbf16>
    %c0_37 = arith.constant 0 : index
    %c0_38 = arith.constant 0 : index
    %c0_39 = arith.constant 0 : index
    %56 = vector.load %arg4[%c0_37, %c0_38, %c0_39] : memref<7x16x192xbf16, #tpu.memory_space<vmem>>, vector<1x16x192xbf16>
    %57 = vector.shape_cast %56 : vector<1x16x192xbf16> to vector<16x192xbf16>
    %cst_40 = arith.constant dense<0.000000e+00> : vector<64x192xf32>
    %58 = tpu.matmul %55, %57, %cst_40 {dimension_numbers = #tpu.dot_dimension_numbers<[1], [0], [0], [1], [0, 0, 1, 1], [], []>} : vector<64x16xbf16>, vector<16x192xbf16>, vector<64x192xf32> -> vector<64x192xf32>
    %59 = vector.extract_strided_slice %53 {offsets = [1, 0, 0], sizes = [8, 8, 16], strides = [1, 1, 1]} : vector<14x8x16xbf16> to vector<8x8x16xbf16>
    %60 = vector.shape_cast %59 : vector<8x8x16xbf16> to vector<64x16xbf16>
    %c1_41 = arith.constant 1 : index
    %c0_42 = arith.constant 0 : index
    %c0_43 = arith.constant 0 : index
    %61 = vector.load %arg4[%c1_41, %c0_42, %c0_43] : memref<7x16x192xbf16, #tpu.memory_space<vmem>>, vector<1x16x192xbf16>
    %62 = vector.shape_cast %61 : vector<1x16x192xbf16> to vector<16x192xbf16>
    %cst_44 = arith.constant dense<0.000000e+00> : vector<64x192xf32>
    %63 = tpu.matmul %60, %62, %cst_44 {dimension_numbers = #tpu.dot_dimension_numbers<[1], [0], [0], [1], [0, 0, 1, 1], [], []>} : vector<64x16xbf16>, vector<16x192xbf16>, vector<64x192xf32> -> vector<64x192xf32>
    %64 = arith.addf %58, %63 : vector<64x192xf32>
    %65 = vector.extract_strided_slice %53 {offsets = [2, 0, 0], sizes = [8, 8, 16], strides = [1, 1, 1]} : vector<14x8x16xbf16> to vector<8x8x16xbf16>
    %66 = vector.shape_cast %65 : vector<8x8x16xbf16> to vector<64x16xbf16>
    %c2_45 = arith.constant 2 : index
    %c0_46 = arith.constant 0 : index
    %c0_47 = arith.constant 0 : index
    %67 = vector.load %arg4[%c2_45, %c0_46, %c0_47] : memref<7x16x192xbf16, #tpu.memory_space<vmem>>, vector<1x16x192xbf16>
    %68 = vector.shape_cast %67 : vector<1x16x192xbf16> to vector<16x192xbf16>
    %cst_48 = arith.constant dense<0.000000e+00> : vector<64x192xf32>
    %69 = tpu.matmul %66, %68, %cst_48 {dimension_numbers = #tpu.dot_dimension_numbers<[1], [0], [0], [1], [0, 0, 1, 1], [], []>} : vector<64x16xbf16>, vector<16x192xbf16>, vector<64x192xf32> -> vector<64x192xf32>
    %70 = arith.addf %64, %69 : vector<64x192xf32>
    %71 = vector.extract_strided_slice %53 {offsets = [3, 0, 0], sizes = [8, 8, 16], strides = [1, 1, 1]} : vector<14x8x16xbf16> to vector<8x8x16xbf16>
    %72 = vector.shape_cast %71 : vector<8x8x16xbf16> to vector<64x16xbf16>
    %c3_49 = arith.constant 3 : index
    %c0_50 = arith.constant 0 : index
    %c0_51 = arith.constant 0 : index
    %73 = vector.load %arg4[%c3_49, %c0_50, %c0_51] : memref<7x16x192xbf16, #tpu.memory_space<vmem>>, vector<1x16x192xbf16>
    %74 = vector.shape_cast %73 : vector<1x16x192xbf16> to vector<16x192xbf16>
    %cst_52 = arith.constant dense<0.000000e+00> : vector<64x192xf32>
    %75 = tpu.matmul %72, %74, %cst_52 {dimension_numbers = #tpu.dot_dimension_numbers<[1], [0], [0], [1], [0, 0, 1, 1], [], []>} : vector<64x16xbf16>, vector<16x192xbf16>, vector<64x192xf32> -> vector<64x192xf32>
    %76 = arith.addf %70, %75 : vector<64x192xf32>
    %77 = vector.extract_strided_slice %53 {offsets = [4, 0, 0], sizes = [8, 8, 16], strides = [1, 1, 1]} : vector<14x8x16xbf16> to vector<8x8x16xbf16>
    %78 = vector.shape_cast %77 : vector<8x8x16xbf16> to vector<64x16xbf16>
    %c4_53 = arith.constant 4 : index
    %c0_54 = arith.constant 0 : index
    %c0_55 = arith.constant 0 : index
    %79 = vector.load %arg4[%c4_53, %c0_54, %c0_55] : memref<7x16x192xbf16, #tpu.memory_space<vmem>>, vector<1x16x192xbf16>
    %80 = vector.shape_cast %79 : vector<1x16x192xbf16> to vector<16x192xbf16>
    %cst_56 = arith.constant dense<0.000000e+00> : vector<64x192xf32>
    %81 = tpu.matmul %78, %80, %cst_56 {dimension_numbers = #tpu.dot_dimension_numbers<[1], [0], [0], [1], [0, 0, 1, 1], [], []>} : vector<64x16xbf16>, vector<16x192xbf16>, vector<64x192xf32> -> vector<64x192xf32>
    %82 = arith.addf %76, %81 : vector<64x192xf32>
    %83 = vector.extract_strided_slice %53 {offsets = [5, 0, 0], sizes = [8, 8, 16], strides = [1, 1, 1]} : vector<14x8x16xbf16> to vector<8x8x16xbf16>
    %84 = vector.shape_cast %83 : vector<8x8x16xbf16> to vector<64x16xbf16>
    %c5_57 = arith.constant 5 : index
    %c0_58 = arith.constant 0 : index
    %c0_59 = arith.constant 0 : index
    %85 = vector.load %arg4[%c5_57, %c0_58, %c0_59] : memref<7x16x192xbf16, #tpu.memory_space<vmem>>, vector<1x16x192xbf16>
    %86 = vector.shape_cast %85 : vector<1x16x192xbf16> to vector<16x192xbf16>
    %cst_60 = arith.constant dense<0.000000e+00> : vector<64x192xf32>
    %87 = tpu.matmul %84, %86, %cst_60 {dimension_numbers = #tpu.dot_dimension_numbers<[1], [0], [0], [1], [0, 0, 1, 1], [], []>} : vector<64x16xbf16>, vector<16x192xbf16>, vector<64x192xf32> -> vector<64x192xf32>
    %88 = arith.addf %82, %87 : vector<64x192xf32>
    %89 = vector.extract_strided_slice %53 {offsets = [6, 0, 0], sizes = [8, 8, 16], strides = [1, 1, 1]} : vector<14x8x16xbf16> to vector<8x8x16xbf16>
    %90 = vector.shape_cast %89 : vector<8x8x16xbf16> to vector<64x16xbf16>
    %c6_61 = arith.constant 6 : index
    %c0_62 = arith.constant 0 : index
    %c0_63 = arith.constant 0 : index
    %91 = vector.load %arg4[%c6_61, %c0_62, %c0_63] : memref<7x16x192xbf16, #tpu.memory_space<vmem>>, vector<1x16x192xbf16>
    %92 = vector.shape_cast %91 : vector<1x16x192xbf16> to vector<16x192xbf16>
    %cst_64 = arith.constant dense<0.000000e+00> : vector<64x192xf32>
    %93 = tpu.matmul %90, %92, %cst_64 {dimension_numbers = #tpu.dot_dimension_numbers<[1], [0], [0], [1], [0, 0, 1, 1], [], []>} : vector<64x16xbf16>, vector<16x192xbf16>, vector<64x192xf32> -> vector<64x192xf32>
    %94 = arith.addf %88, %93 : vector<64x192xf32>
    %c0_65 = arith.constant 0 : index
    %c0_66 = arith.constant 0 : index
    %95 = vector.load %arg5[%c0_65, %c0_66] : memref<1x192xf32, #tpu.memory_space<vmem>>, vector<1x192xf32>
    %96 = vector.broadcast %95 : vector<1x192xf32> to vector<64x192xf32>
    %97 = arith.addf %94, %96 : vector<64x192xf32>
    %cst_67 = arith.constant 0.000000e+00 : f32
    %98 = vector.broadcast %cst_67 : f32 to vector<64x192xf32>
    %99 = arith.maximumf %97, %98 : vector<64x192xf32>
    %100 = arith.truncf %99 : vector<64x192xf32> to vector<64x192xbf16>
    %101 = vector.shape_cast %100 : vector<64x192xbf16> to vector<8x8x192xbf16>
    %c0_68 = arith.constant 0 : index
    %c0_69 = arith.constant 0 : index
    %c0_70 = arith.constant 0 : index
    %c0_71 = arith.constant 0 : index
    %102 = vector.load %arg6[%c0_68, %c0_69, %c0_70, %c0_71] : memref<1x8x8x192xbf16, #tpu.memory_space<vmem>>, vector<1x8x8x192xbf16>
    %103 = vector.shape_cast %102 : vector<1x8x8x192xbf16> to vector<8x8x192xbf16>
    %104 = vector.shape_cast %101 : vector<8x8x192xbf16> to vector<1x8x8x192xbf16>
    tpu.vector_store %arg6[%c0_68, %c0_69, %c0_70, %c0_71], %104 {strides = array<i32>} : memref<1x8x8x192xbf16, #tpu.memory_space<vmem>>, vector<1x8x8x192xbf16>,
    return
  }
  func.func @transform_0(%arg0: i32) -> (i32, i32, i32, i32) {
    %c0_i32 = arith.constant 0 : i32
    %c0_i32_0 = arith.constant 0 : i32
    %c0_i32_1 = arith.constant 0 : i32
    %c0_i32_2 = arith.constant 0 : i32
    return %arg0, %c0_i32, %c0_i32_0, %c0_i32_1 : i32, i32, i32, i32
  }
  func.func @transform_1(%arg0: i32) -> (i32, i32, i32) {
    %c0_i32 = arith.constant 0 : i32
    %c0_i32_0 = arith.constant 0 : i32
    %c0_i32_1 = arith.constant 0 : i32
    %c0_i32_2 = arith.constant 0 : i32
    return %c0_i32, %c0_i32_0, %c0_i32_1 : i32, i32, i32
  }
  func.func @transform_2(%arg0: i32) -> (i32, i32) {
    %c0_i32 = arith.constant 0 : i32
    %c0_i32_0 = arith.constant 0 : i32
    %c0_i32_1 = arith.constant 0 : i32
    return %c0_i32, %c0_i32_0 : i32, i32
  }
  func.func @transform_3(%arg0: i32) -> (i32, i32, i32) {
    %c0_i32 = arith.constant 0 : i32
    %c0_i32_0 = arith.constant 0 : i32
    %c0_i32_1 = arith.constant 0 : i32
    %c0_i32_2 = arith.constant 0 : i32
    return %c0_i32, %c0_i32_0, %c0_i32_1 : i32, i32, i32
  }
  func.func @transform_4(%arg0: i32) -> (i32, i32) {
    %c0_i32 = arith.constant 0 : i32
    %c0_i32_0 = arith.constant 0 : i32
    %c0_i32_1 = arith.constant 0 : i32
    return %c0_i32, %c0_i32_0 : i32, i32
  }
  func.func @transform_5(%arg0: i32) -> (i32, i32, i32, i32) {
    %c0_i32 = arith.constant 0 : i32
    %c0_i32_0 = arith.constant 0 : i32
    %c0_i32_1 = arith.constant 0 : i32
    %c0_i32_2 = arith.constant 0 : i32
    return %arg0, %c0_i32, %c0_i32_0, %c0_i32_1 : i32, i32, i32, i32
  }
}

module attributes {stable_mosaic.version = 11 : i64} {
  func.func @kernel(%arg0: i32, %arg1: memref<1x8x14x16xbf16, #tpu.memory_space<vmem>>, %arg2: memref<7x16x16xbf16, #tpu.memory_space<vmem>>, %arg3: memref<1x16xf32, #tpu.memory_space<vmem>>, %arg4: memref<7x16x16xbf16, #tpu.memory_space<vmem>>, %arg5: memref<1x16xf32, #tpu.memory_space<vmem>>, %arg6: memref<7x16x16xbf16, #tpu.memory_space<vmem>>, %arg7: memref<1x16xf32, #tpu.memory_space<vmem>>, %arg8: memref<7x16x192xbf16, #tpu.memory_space<vmem>>, %arg9: memref<1x192xf32, #tpu.memory_space<vmem>>, %arg10: memref<1x8x8x192xbf16, #tpu.memory_space<vmem>>, %arg11: memref<14x8x16xbf16, #tpu.memory_space<vmem>>, %arg12: memref<8x14x16xbf16, #tpu.memory_space<vmem>>, %arg13: memref<14x8x16xbf16, #tpu.memory_space<vmem>>) attributes {dimension_semantics = [#tpu.dimension_semantics<parallel>], iteration_bounds = array<i64: 2>, scalar_prefetch = 0 : i64, scratch_operands = 3 : i64, tpu.core_type = #tpu.core_type<tc>, window_params = [{transform_indices = @transform_0, window_bounds = array<i64: 1, 8, 14, 16>}, {pipeline_mode = #tpu.pipeline_mode<synchronous>, transform_indices = @transform_1, window_bounds = array<i64: 7, 16, 16>}, {pipeline_mode = #tpu.pipeline_mode<synchronous>, transform_indices = @transform_2, window_bounds = array<i64: 1, 16>}, {pipeline_mode = #tpu.pipeline_mode<synchronous>, transform_indices = @transform_3, window_bounds = array<i64: 7, 16, 16>}, {pipeline_mode = #tpu.pipeline_mode<synchronous>, transform_indices = @transform_4, window_bounds = array<i64: 1, 16>}, {pipeline_mode = #tpu.pipeline_mode<synchronous>, transform_indices = @transform_5, window_bounds = array<i64: 7, 16, 16>}, {pipeline_mode = #tpu.pipeline_mode<synchronous>, transform_indices = @transform_6, window_bounds = array<i64: 1, 16>}, {pipeline_mode = #tpu.pipeline_mode<synchronous>, transform_indices = @transform_7, window_bounds = array<i64: 7, 16, 192>}, {pipeline_mode = #tpu.pipeline_mode<synchronous>, transform_indices = @transform_8, window_bounds = array<i64: 1, 192>}, {transform_indices = @transform_9, window_bounds = array<i64: 1, 8, 8, 192>}]} {
    %c0 = arith.constant 0 : index
    %c0_0 = arith.constant 0 : index
    %c0_1 = arith.constant 0 : index
    %c0_2 = arith.constant 0 : index
    %0 = vector.load %arg1[%c0, %c0_0, %c0_1, %c0_2] : memref<1x8x14x16xbf16, #tpu.memory_space<vmem>>, vector<1x8x14x16xbf16>
    %1 = vector.shape_cast %0 : vector<1x8x14x16xbf16> to vector<8x14x16xbf16>
    %2 = vector.extract_strided_slice %1 {offsets = [0, 0, 0], sizes = [8, 8, 16], strides = [1, 1, 1]} : vector<8x14x16xbf16> to vector<8x8x16xbf16>
    %3 = vector.shape_cast %2 : vector<8x8x16xbf16> to vector<64x16xbf16>
    %c0_3 = arith.constant 0 : index
    %c0_4 = arith.constant 0 : index
    %c0_5 = arith.constant 0 : index
    %4 = vector.load %arg2[%c0_3, %c0_4, %c0_5] : memref<7x16x16xbf16, #tpu.memory_space<vmem>>, vector<1x16x16xbf16>
    %5 = vector.shape_cast %4 : vector<1x16x16xbf16> to vector<16x16xbf16>
    %cst = arith.constant dense<0.000000e+00> : vector<64x16xf32>
    %6 = tpu.matmul %3, %5, %cst {dimension_numbers = #tpu.dot_dimension_numbers<[1], [0], [0], [1], [0, 0, 1, 1], [], []>} : vector<64x16xbf16>, vector<16x16xbf16>, vector<64x16xf32> -> vector<64x16xf32>
    %7 = vector.extract_strided_slice %1 {offsets = [0, 1, 0], sizes = [8, 8, 16], strides = [1, 1, 1]} : vector<8x14x16xbf16> to vector<8x8x16xbf16>
    %8 = vector.shape_cast %7 : vector<8x8x16xbf16> to vector<64x16xbf16>
    %c1 = arith.constant 1 : index
    %c0_6 = arith.constant 0 : index
    %c0_7 = arith.constant 0 : index
    %9 = vector.load %arg2[%c1, %c0_6, %c0_7] : memref<7x16x16xbf16, #tpu.memory_space<vmem>>, vector<1x16x16xbf16>
    %10 = vector.shape_cast %9 : vector<1x16x16xbf16> to vector<16x16xbf16>
    %cst_8 = arith.constant dense<0.000000e+00> : vector<64x16xf32>
    %11 = tpu.matmul %8, %10, %cst_8 {dimension_numbers = #tpu.dot_dimension_numbers<[1], [0], [0], [1], [0, 0, 1, 1], [], []>} : vector<64x16xbf16>, vector<16x16xbf16>, vector<64x16xf32> -> vector<64x16xf32>
    %12 = arith.addf %6, %11 : vector<64x16xf32>
    %13 = vector.extract_strided_slice %1 {offsets = [0, 2, 0], sizes = [8, 8, 16], strides = [1, 1, 1]} : vector<8x14x16xbf16> to vector<8x8x16xbf16>
    %14 = vector.shape_cast %13 : vector<8x8x16xbf16> to vector<64x16xbf16>
    %c2 = arith.constant 2 : index
    %c0_9 = arith.constant 0 : index
    %c0_10 = arith.constant 0 : index
    %15 = vector.load %arg2[%c2, %c0_9, %c0_10] : memref<7x16x16xbf16, #tpu.memory_space<vmem>>, vector<1x16x16xbf16>
    %16 = vector.shape_cast %15 : vector<1x16x16xbf16> to vector<16x16xbf16>
    %cst_11 = arith.constant dense<0.000000e+00> : vector<64x16xf32>
    %17 = tpu.matmul %14, %16, %cst_11 {dimension_numbers = #tpu.dot_dimension_numbers<[1], [0], [0], [1], [0, 0, 1, 1], [], []>} : vector<64x16xbf16>, vector<16x16xbf16>, vector<64x16xf32> -> vector<64x16xf32>
    %18 = arith.addf %12, %17 : vector<64x16xf32>
    %19 = vector.extract_strided_slice %1 {offsets = [0, 3, 0], sizes = [8, 8, 16], strides = [1, 1, 1]} : vector<8x14x16xbf16> to vector<8x8x16xbf16>
    %20 = vector.shape_cast %19 : vector<8x8x16xbf16> to vector<64x16xbf16>
    %c3 = arith.constant 3 : index
    %c0_12 = arith.constant 0 : index
    %c0_13 = arith.constant 0 : index
    %21 = vector.load %arg2[%c3, %c0_12, %c0_13] : memref<7x16x16xbf16, #tpu.memory_space<vmem>>, vector<1x16x16xbf16>
    %22 = vector.shape_cast %21 : vector<1x16x16xbf16> to vector<16x16xbf16>
    %cst_14 = arith.constant dense<0.000000e+00> : vector<64x16xf32>
    %23 = tpu.matmul %20, %22, %cst_14 {dimension_numbers = #tpu.dot_dimension_numbers<[1], [0], [0], [1], [0, 0, 1, 1], [], []>} : vector<64x16xbf16>, vector<16x16xbf16>, vector<64x16xf32> -> vector<64x16xf32>
    %24 = arith.addf %18, %23 : vector<64x16xf32>
    %25 = vector.extract_strided_slice %1 {offsets = [0, 4, 0], sizes = [8, 8, 16], strides = [1, 1, 1]} : vector<8x14x16xbf16> to vector<8x8x16xbf16>
    %26 = vector.shape_cast %25 : vector<8x8x16xbf16> to vector<64x16xbf16>
    %c4 = arith.constant 4 : index
    %c0_15 = arith.constant 0 : index
    %c0_16 = arith.constant 0 : index
    %27 = vector.load %arg2[%c4, %c0_15, %c0_16] : memref<7x16x16xbf16, #tpu.memory_space<vmem>>, vector<1x16x16xbf16>
    %28 = vector.shape_cast %27 : vector<1x16x16xbf16> to vector<16x16xbf16>
    %cst_17 = arith.constant dense<0.000000e+00> : vector<64x16xf32>
    %29 = tpu.matmul %26, %28, %cst_17 {dimension_numbers = #tpu.dot_dimension_numbers<[1], [0], [0], [1], [0, 0, 1, 1], [], []>} : vector<64x16xbf16>, vector<16x16xbf16>, vector<64x16xf32> -> vector<64x16xf32>
    %30 = arith.addf %24, %29 : vector<64x16xf32>
    %31 = vector.extract_strided_slice %1 {offsets = [0, 5, 0], sizes = [8, 8, 16], strides = [1, 1, 1]} : vector<8x14x16xbf16> to vector<8x8x16xbf16>
    %32 = vector.shape_cast %31 : vector<8x8x16xbf16> to vector<64x16xbf16>
    %c5 = arith.constant 5 : index
    %c0_18 = arith.constant 0 : index
    %c0_19 = arith.constant 0 : index
    %33 = vector.load %arg2[%c5, %c0_18, %c0_19] : memref<7x16x16xbf16, #tpu.memory_space<vmem>>, vector<1x16x16xbf16>
    %34 = vector.shape_cast %33 : vector<1x16x16xbf16> to vector<16x16xbf16>
    %cst_20 = arith.constant dense<0.000000e+00> : vector<64x16xf32>
    %35 = tpu.matmul %32, %34, %cst_20 {dimension_numbers = #tpu.dot_dimension_numbers<[1], [0], [0], [1], [0, 0, 1, 1], [], []>} : vector<64x16xbf16>, vector<16x16xbf16>, vector<64x16xf32> -> vector<64x16xf32>
    %36 = arith.addf %30, %35 : vector<64x16xf32>
    %37 = vector.extract_strided_slice %1 {offsets = [0, 6, 0], sizes = [8, 8, 16], strides = [1, 1, 1]} : vector<8x14x16xbf16> to vector<8x8x16xbf16>
    %38 = vector.shape_cast %37 : vector<8x8x16xbf16> to vector<64x16xbf16>
    %c6 = arith.constant 6 : index
    %c0_21 = arith.constant 0 : index
    %c0_22 = arith.constant 0 : index
    %39 = vector.load %arg2[%c6, %c0_21, %c0_22] : memref<7x16x16xbf16, #tpu.memory_space<vmem>>, vector<1x16x16xbf16>
    %40 = vector.shape_cast %39 : vector<1x16x16xbf16> to vector<16x16xbf16>
    %cst_23 = arith.constant dense<0.000000e+00> : vector<64x16xf32>
    %41 = tpu.matmul %38, %40, %cst_23 {dimension_numbers = #tpu.dot_dimension_numbers<[1], [0], [0], [1], [0, 0, 1, 1], [], []>} : vector<64x16xbf16>, vector<16x16xbf16>, vector<64x16xf32> -> vector<64x16xf32>
    %42 = arith.addf %36, %41 : vector<64x16xf32>
    %c0_24 = arith.constant 0 : index
    %c0_25 = arith.constant 0 : index
    %43 = vector.load %arg3[%c0_24, %c0_25] : memref<1x16xf32, #tpu.memory_space<vmem>>, vector<1x16xf32>
    %44 = vector.broadcast %43 : vector<1x16xf32> to vector<64x16xf32>
    %45 = arith.addf %42, %44 : vector<64x16xf32>
    %cst_26 = arith.constant 0.000000e+00 : f32
    %46 = vector.broadcast %cst_26 : f32 to vector<64x16xf32>
    %47 = arith.maximumf %45, %46 : vector<64x16xf32>
    %48 = arith.truncf %47 : vector<64x16xf32> to vector<64x16xbf16>
    %49 = vector.shape_cast %48 : vector<64x16xbf16> to vector<8x8x16xbf16>
    %cst_27 = arith.constant 0.000000e+00 : bf16
    %50 = vector.broadcast %cst_27 : bf16 to vector<14x8x16xbf16>
    %c0_28 = arith.constant 0 : index
    %c0_29 = arith.constant 0 : index
    %c0_30 = arith.constant 0 : index
    %51 = vector.load %arg11[%c0_28, %c0_29, %c0_30] : memref<14x8x16xbf16, #tpu.memory_space<vmem>>, vector<14x8x16xbf16>
    tpu.vector_store %arg11[%c0_28, %c0_29, %c0_30], %50 {strides = array<i32>} : memref<14x8x16xbf16, #tpu.memory_space<vmem>>, vector<14x8x16xbf16>,
    %c3_31 = arith.constant 3 : index
    %c0_32 = arith.constant 0 : index
    %c0_33 = arith.constant 0 : index
    %52 = vector.load %arg11[%c3_31, %c0_32, %c0_33] : memref<14x8x16xbf16, #tpu.memory_space<vmem>>, vector<8x8x16xbf16>
    tpu.vector_store %arg11[%c3_31, %c0_32, %c0_33], %49 {strides = array<i32>} : memref<14x8x16xbf16, #tpu.memory_space<vmem>>, vector<8x8x16xbf16>,
    %c0_34 = arith.constant 0 : index
    %c0_35 = arith.constant 0 : index
    %c0_36 = arith.constant 0 : index
    %53 = vector.load %arg11[%c0_34, %c0_35, %c0_36] : memref<14x8x16xbf16, #tpu.memory_space<vmem>>, vector<14x8x16xbf16>
    %54 = vector.extract_strided_slice %53 {offsets = [0, 0, 0], sizes = [8, 8, 16], strides = [1, 1, 1]} : vector<14x8x16xbf16> to vector<8x8x16xbf16>
    %55 = vector.shape_cast %54 : vector<8x8x16xbf16> to vector<64x16xbf16>
    %c0_37 = arith.constant 0 : index
    %c0_38 = arith.constant 0 : index
    %c0_39 = arith.constant 0 : index
    %56 = vector.load %arg4[%c0_37, %c0_38, %c0_39] : memref<7x16x16xbf16, #tpu.memory_space<vmem>>, vector<1x16x16xbf16>
    %57 = vector.shape_cast %56 : vector<1x16x16xbf16> to vector<16x16xbf16>
    %cst_40 = arith.constant dense<0.000000e+00> : vector<64x16xf32>
    %58 = tpu.matmul %55, %57, %cst_40 {dimension_numbers = #tpu.dot_dimension_numbers<[1], [0], [0], [1], [0, 0, 1, 1], [], []>} : vector<64x16xbf16>, vector<16x16xbf16>, vector<64x16xf32> -> vector<64x16xf32>
    %59 = vector.extract_strided_slice %53 {offsets = [1, 0, 0], sizes = [8, 8, 16], strides = [1, 1, 1]} : vector<14x8x16xbf16> to vector<8x8x16xbf16>
    %60 = vector.shape_cast %59 : vector<8x8x16xbf16> to vector<64x16xbf16>
    %c1_41 = arith.constant 1 : index
    %c0_42 = arith.constant 0 : index
    %c0_43 = arith.constant 0 : index
    %61 = vector.load %arg4[%c1_41, %c0_42, %c0_43] : memref<7x16x16xbf16, #tpu.memory_space<vmem>>, vector<1x16x16xbf16>
    %62 = vector.shape_cast %61 : vector<1x16x16xbf16> to vector<16x16xbf16>
    %cst_44 = arith.constant dense<0.000000e+00> : vector<64x16xf32>
    %63 = tpu.matmul %60, %62, %cst_44 {dimension_numbers = #tpu.dot_dimension_numbers<[1], [0], [0], [1], [0, 0, 1, 1], [], []>} : vector<64x16xbf16>, vector<16x16xbf16>, vector<64x16xf32> -> vector<64x16xf32>
    %64 = arith.addf %58, %63 : vector<64x16xf32>
    %65 = vector.extract_strided_slice %53 {offsets = [2, 0, 0], sizes = [8, 8, 16], strides = [1, 1, 1]} : vector<14x8x16xbf16> to vector<8x8x16xbf16>
    %66 = vector.shape_cast %65 : vector<8x8x16xbf16> to vector<64x16xbf16>
    %c2_45 = arith.constant 2 : index
    %c0_46 = arith.constant 0 : index
    %c0_47 = arith.constant 0 : index
    %67 = vector.load %arg4[%c2_45, %c0_46, %c0_47] : memref<7x16x16xbf16, #tpu.memory_space<vmem>>, vector<1x16x16xbf16>
    %68 = vector.shape_cast %67 : vector<1x16x16xbf16> to vector<16x16xbf16>
    %cst_48 = arith.constant dense<0.000000e+00> : vector<64x16xf32>
    %69 = tpu.matmul %66, %68, %cst_48 {dimension_numbers = #tpu.dot_dimension_numbers<[1], [0], [0], [1], [0, 0, 1, 1], [], []>} : vector<64x16xbf16>, vector<16x16xbf16>, vector<64x16xf32> -> vector<64x16xf32>
    %70 = arith.addf %64, %69 : vector<64x16xf32>
    %71 = vector.extract_strided_slice %53 {offsets = [3, 0, 0], sizes = [8, 8, 16], strides = [1, 1, 1]} : vector<14x8x16xbf16> to vector<8x8x16xbf16>
    %72 = vector.shape_cast %71 : vector<8x8x16xbf16> to vector<64x16xbf16>
    %c3_49 = arith.constant 3 : index
    %c0_50 = arith.constant 0 : index
    %c0_51 = arith.constant 0 : index
    %73 = vector.load %arg4[%c3_49, %c0_50, %c0_51] : memref<7x16x16xbf16, #tpu.memory_space<vmem>>, vector<1x16x16xbf16>
    %74 = vector.shape_cast %73 : vector<1x16x16xbf16> to vector<16x16xbf16>
    %cst_52 = arith.constant dense<0.000000e+00> : vector<64x16xf32>
    %75 = tpu.matmul %72, %74, %cst_52 {dimension_numbers = #tpu.dot_dimension_numbers<[1], [0], [0], [1], [0, 0, 1, 1], [], []>} : vector<64x16xbf16>, vector<16x16xbf16>, vector<64x16xf32> -> vector<64x16xf32>
    %76 = arith.addf %70, %75 : vector<64x16xf32>
    %77 = vector.extract_strided_slice %53 {offsets = [4, 0, 0], sizes = [8, 8, 16], strides = [1, 1, 1]} : vector<14x8x16xbf16> to vector<8x8x16xbf16>
    %78 = vector.shape_cast %77 : vector<8x8x16xbf16> to vector<64x16xbf16>
    %c4_53 = arith.constant 4 : index
    %c0_54 = arith.constant 0 : index
    %c0_55 = arith.constant 0 : index
    %79 = vector.load %arg4[%c4_53, %c0_54, %c0_55] : memref<7x16x16xbf16, #tpu.memory_space<vmem>>, vector<1x16x16xbf16>
    %80 = vector.shape_cast %79 : vector<1x16x16xbf16> to vector<16x16xbf16>
    %cst_56 = arith.constant dense<0.000000e+00> : vector<64x16xf32>
    %81 = tpu.matmul %78, %80, %cst_56 {dimension_numbers = #tpu.dot_dimension_numbers<[1], [0], [0], [1], [0, 0, 1, 1], [], []>} : vector<64x16xbf16>, vector<16x16xbf16>, vector<64x16xf32> -> vector<64x16xf32>
    %82 = arith.addf %76, %81 : vector<64x16xf32>
    %83 = vector.extract_strided_slice %53 {offsets = [5, 0, 0], sizes = [8, 8, 16], strides = [1, 1, 1]} : vector<14x8x16xbf16> to vector<8x8x16xbf16>
    %84 = vector.shape_cast %83 : vector<8x8x16xbf16> to vector<64x16xbf16>
    %c5_57 = arith.constant 5 : index
    %c0_58 = arith.constant 0 : index
    %c0_59 = arith.constant 0 : index
    %85 = vector.load %arg4[%c5_57, %c0_58, %c0_59] : memref<7x16x16xbf16, #tpu.memory_space<vmem>>, vector<1x16x16xbf16>
    %86 = vector.shape_cast %85 : vector<1x16x16xbf16> to vector<16x16xbf16>
    %cst_60 = arith.constant dense<0.000000e+00> : vector<64x16xf32>
    %87 = tpu.matmul %84, %86, %cst_60 {dimension_numbers = #tpu.dot_dimension_numbers<[1], [0], [0], [1], [0, 0, 1, 1], [], []>} : vector<64x16xbf16>, vector<16x16xbf16>, vector<64x16xf32> -> vector<64x16xf32>
    %88 = arith.addf %82, %87 : vector<64x16xf32>
    %89 = vector.extract_strided_slice %53 {offsets = [6, 0, 0], sizes = [8, 8, 16], strides = [1, 1, 1]} : vector<14x8x16xbf16> to vector<8x8x16xbf16>
    %90 = vector.shape_cast %89 : vector<8x8x16xbf16> to vector<64x16xbf16>
    %c6_61 = arith.constant 6 : index
    %c0_62 = arith.constant 0 : index
    %c0_63 = arith.constant 0 : index
    %91 = vector.load %arg4[%c6_61, %c0_62, %c0_63] : memref<7x16x16xbf16, #tpu.memory_space<vmem>>, vector<1x16x16xbf16>
    %92 = vector.shape_cast %91 : vector<1x16x16xbf16> to vector<16x16xbf16>
    %cst_64 = arith.constant dense<0.000000e+00> : vector<64x16xf32>
    %93 = tpu.matmul %90, %92, %cst_64 {dimension_numbers = #tpu.dot_dimension_numbers<[1], [0], [0], [1], [0, 0, 1, 1], [], []>} : vector<64x16xbf16>, vector<16x16xbf16>, vector<64x16xf32> -> vector<64x16xf32>
    %94 = arith.addf %88, %93 : vector<64x16xf32>
    %c0_65 = arith.constant 0 : index
    %c0_66 = arith.constant 0 : index
    %95 = vector.load %arg5[%c0_65, %c0_66] : memref<1x16xf32, #tpu.memory_space<vmem>>, vector<1x16xf32>
    %96 = vector.broadcast %95 : vector<1x16xf32> to vector<64x16xf32>
    %97 = arith.addf %94, %96 : vector<64x16xf32>
    %cst_67 = arith.constant 0.000000e+00 : f32
    %98 = vector.broadcast %cst_67 : f32 to vector<64x16xf32>
    %99 = arith.maximumf %97, %98 : vector<64x16xf32>
    %100 = arith.truncf %99 : vector<64x16xf32> to vector<64x16xbf16>
    %101 = vector.shape_cast %100 : vector<64x16xbf16> to vector<8x8x16xbf16>
    %cst_68 = arith.constant 0.000000e+00 : bf16
    %102 = vector.broadcast %cst_68 : bf16 to vector<8x14x16xbf16>
    %c0_69 = arith.constant 0 : index
    %c0_70 = arith.constant 0 : index
    %c0_71 = arith.constant 0 : index
    %103 = vector.load %arg12[%c0_69, %c0_70, %c0_71] : memref<8x14x16xbf16, #tpu.memory_space<vmem>>, vector<8x14x16xbf16>
    tpu.vector_store %arg12[%c0_69, %c0_70, %c0_71], %102 {strides = array<i32>} : memref<8x14x16xbf16, #tpu.memory_space<vmem>>, vector<8x14x16xbf16>,
    %c0_72 = arith.constant 0 : index
    %c3_73 = arith.constant 3 : index
    %c0_74 = arith.constant 0 : index
    %104 = vector.load %arg12[%c0_72, %c3_73, %c0_74] : memref<8x14x16xbf16, #tpu.memory_space<vmem>>, vector<8x8x16xbf16>
    tpu.vector_store %arg12[%c0_72, %c3_73, %c0_74], %101 {strides = array<i32>} : memref<8x14x16xbf16, #tpu.memory_space<vmem>>, vector<8x8x16xbf16>,
    %c0_75 = arith.constant 0 : index
    %c0_76 = arith.constant 0 : index
    %c0_77 = arith.constant 0 : index
    %105 = vector.load %arg12[%c0_75, %c0_76, %c0_77] : memref<8x14x16xbf16, #tpu.memory_space<vmem>>, vector<8x14x16xbf16>
    %106 = vector.extract_strided_slice %105 {offsets = [0, 0, 0], sizes = [8, 8, 16], strides = [1, 1, 1]} : vector<8x14x16xbf16> to vector<8x8x16xbf16>
    %107 = vector.shape_cast %106 : vector<8x8x16xbf16> to vector<64x16xbf16>
    %c0_78 = arith.constant 0 : index
    %c0_79 = arith.constant 0 : index
    %c0_80 = arith.constant 0 : index
    %108 = vector.load %arg6[%c0_78, %c0_79, %c0_80] : memref<7x16x16xbf16, #tpu.memory_space<vmem>>, vector<1x16x16xbf16>
    %109 = vector.shape_cast %108 : vector<1x16x16xbf16> to vector<16x16xbf16>
    %cst_81 = arith.constant dense<0.000000e+00> : vector<64x16xf32>
    %110 = tpu.matmul %107, %109, %cst_81 {dimension_numbers = #tpu.dot_dimension_numbers<[1], [0], [0], [1], [0, 0, 1, 1], [], []>} : vector<64x16xbf16>, vector<16x16xbf16>, vector<64x16xf32> -> vector<64x16xf32>
    %111 = vector.extract_strided_slice %105 {offsets = [0, 1, 0], sizes = [8, 8, 16], strides = [1, 1, 1]} : vector<8x14x16xbf16> to vector<8x8x16xbf16>
    %112 = vector.shape_cast %111 : vector<8x8x16xbf16> to vector<64x16xbf16>
    %c1_82 = arith.constant 1 : index
    %c0_83 = arith.constant 0 : index
    %c0_84 = arith.constant 0 : index
    %113 = vector.load %arg6[%c1_82, %c0_83, %c0_84] : memref<7x16x16xbf16, #tpu.memory_space<vmem>>, vector<1x16x16xbf16>
    %114 = vector.shape_cast %113 : vector<1x16x16xbf16> to vector<16x16xbf16>
    %cst_85 = arith.constant dense<0.000000e+00> : vector<64x16xf32>
    %115 = tpu.matmul %112, %114, %cst_85 {dimension_numbers = #tpu.dot_dimension_numbers<[1], [0], [0], [1], [0, 0, 1, 1], [], []>} : vector<64x16xbf16>, vector<16x16xbf16>, vector<64x16xf32> -> vector<64x16xf32>
    %116 = arith.addf %110, %115 : vector<64x16xf32>
    %117 = vector.extract_strided_slice %105 {offsets = [0, 2, 0], sizes = [8, 8, 16], strides = [1, 1, 1]} : vector<8x14x16xbf16> to vector<8x8x16xbf16>
    %118 = vector.shape_cast %117 : vector<8x8x16xbf16> to vector<64x16xbf16>
    %c2_86 = arith.constant 2 : index
    %c0_87 = arith.constant 0 : index
    %c0_88 = arith.constant 0 : index
    %119 = vector.load %arg6[%c2_86, %c0_87, %c0_88] : memref<7x16x16xbf16, #tpu.memory_space<vmem>>, vector<1x16x16xbf16>
    %120 = vector.shape_cast %119 : vector<1x16x16xbf16> to vector<16x16xbf16>
    %cst_89 = arith.constant dense<0.000000e+00> : vector<64x16xf32>
    %121 = tpu.matmul %118, %120, %cst_89 {dimension_numbers = #tpu.dot_dimension_numbers<[1], [0], [0], [1], [0, 0, 1, 1], [], []>} : vector<64x16xbf16>, vector<16x16xbf16>, vector<64x16xf32> -> vector<64x16xf32>
    %122 = arith.addf %116, %121 : vector<64x16xf32>
    %123 = vector.extract_strided_slice %105 {offsets = [0, 3, 0], sizes = [8, 8, 16], strides = [1, 1, 1]} : vector<8x14x16xbf16> to vector<8x8x16xbf16>
    %124 = vector.shape_cast %123 : vector<8x8x16xbf16> to vector<64x16xbf16>
    %c3_90 = arith.constant 3 : index
    %c0_91 = arith.constant 0 : index
    %c0_92 = arith.constant 0 : index
    %125 = vector.load %arg6[%c3_90, %c0_91, %c0_92] : memref<7x16x16xbf16, #tpu.memory_space<vmem>>, vector<1x16x16xbf16>
    %126 = vector.shape_cast %125 : vector<1x16x16xbf16> to vector<16x16xbf16>
    %cst_93 = arith.constant dense<0.000000e+00> : vector<64x16xf32>
    %127 = tpu.matmul %124, %126, %cst_93 {dimension_numbers = #tpu.dot_dimension_numbers<[1], [0], [0], [1], [0, 0, 1, 1], [], []>} : vector<64x16xbf16>, vector<16x16xbf16>, vector<64x16xf32> -> vector<64x16xf32>
    %128 = arith.addf %122, %127 : vector<64x16xf32>
    %129 = vector.extract_strided_slice %105 {offsets = [0, 4, 0], sizes = [8, 8, 16], strides = [1, 1, 1]} : vector<8x14x16xbf16> to vector<8x8x16xbf16>
    %130 = vector.shape_cast %129 : vector<8x8x16xbf16> to vector<64x16xbf16>
    %c4_94 = arith.constant 4 : index
    %c0_95 = arith.constant 0 : index
    %c0_96 = arith.constant 0 : index
    %131 = vector.load %arg6[%c4_94, %c0_95, %c0_96] : memref<7x16x16xbf16, #tpu.memory_space<vmem>>, vector<1x16x16xbf16>
    %132 = vector.shape_cast %131 : vector<1x16x16xbf16> to vector<16x16xbf16>
    %cst_97 = arith.constant dense<0.000000e+00> : vector<64x16xf32>
    %133 = tpu.matmul %130, %132, %cst_97 {dimension_numbers = #tpu.dot_dimension_numbers<[1], [0], [0], [1], [0, 0, 1, 1], [], []>} : vector<64x16xbf16>, vector<16x16xbf16>, vector<64x16xf32> -> vector<64x16xf32>
    %134 = arith.addf %128, %133 : vector<64x16xf32>
    %135 = vector.extract_strided_slice %105 {offsets = [0, 5, 0], sizes = [8, 8, 16], strides = [1, 1, 1]} : vector<8x14x16xbf16> to vector<8x8x16xbf16>
    %136 = vector.shape_cast %135 : vector<8x8x16xbf16> to vector<64x16xbf16>
    %c5_98 = arith.constant 5 : index
    %c0_99 = arith.constant 0 : index
    %c0_100 = arith.constant 0 : index
    %137 = vector.load %arg6[%c5_98, %c0_99, %c0_100] : memref<7x16x16xbf16, #tpu.memory_space<vmem>>, vector<1x16x16xbf16>
    %138 = vector.shape_cast %137 : vector<1x16x16xbf16> to vector<16x16xbf16>
    %cst_101 = arith.constant dense<0.000000e+00> : vector<64x16xf32>
    %139 = tpu.matmul %136, %138, %cst_101 {dimension_numbers = #tpu.dot_dimension_numbers<[1], [0], [0], [1], [0, 0, 1, 1], [], []>} : vector<64x16xbf16>, vector<16x16xbf16>, vector<64x16xf32> -> vector<64x16xf32>
    %140 = arith.addf %134, %139 : vector<64x16xf32>
    %141 = vector.extract_strided_slice %105 {offsets = [0, 6, 0], sizes = [8, 8, 16], strides = [1, 1, 1]} : vector<8x14x16xbf16> to vector<8x8x16xbf16>
    %142 = vector.shape_cast %141 : vector<8x8x16xbf16> to vector<64x16xbf16>
    %c6_102 = arith.constant 6 : index
    %c0_103 = arith.constant 0 : index
    %c0_104 = arith.constant 0 : index
    %143 = vector.load %arg6[%c6_102, %c0_103, %c0_104] : memref<7x16x16xbf16, #tpu.memory_space<vmem>>, vector<1x16x16xbf16>
    %144 = vector.shape_cast %143 : vector<1x16x16xbf16> to vector<16x16xbf16>
    %cst_105 = arith.constant dense<0.000000e+00> : vector<64x16xf32>
    %145 = tpu.matmul %142, %144, %cst_105 {dimension_numbers = #tpu.dot_dimension_numbers<[1], [0], [0], [1], [0, 0, 1, 1], [], []>} : vector<64x16xbf16>, vector<16x16xbf16>, vector<64x16xf32> -> vector<64x16xf32>
    %146 = arith.addf %140, %145 : vector<64x16xf32>
    %c0_106 = arith.constant 0 : index
    %c0_107 = arith.constant 0 : index
    %147 = vector.load %arg7[%c0_106, %c0_107] : memref<1x16xf32, #tpu.memory_space<vmem>>, vector<1x16xf32>
    %148 = vector.broadcast %147 : vector<1x16xf32> to vector<64x16xf32>
    %149 = arith.addf %146, %148 : vector<64x16xf32>
    %cst_108 = arith.constant 0.000000e+00 : f32
    %150 = vector.broadcast %cst_108 : f32 to vector<64x16xf32>
    %151 = arith.maximumf %149, %150 : vector<64x16xf32>
    %152 = arith.truncf %151 : vector<64x16xf32> to vector<64x16xbf16>
    %153 = vector.shape_cast %152 : vector<64x16xbf16> to vector<8x8x16xbf16>
    %cst_109 = arith.constant 0.000000e+00 : bf16
    %154 = vector.broadcast %cst_109 : bf16 to vector<14x8x16xbf16>
    %c0_110 = arith.constant 0 : index
    %c0_111 = arith.constant 0 : index
    %c0_112 = arith.constant 0 : index
    %155 = vector.load %arg13[%c0_110, %c0_111, %c0_112] : memref<14x8x16xbf16, #tpu.memory_space<vmem>>, vector<14x8x16xbf16>
    tpu.vector_store %arg13[%c0_110, %c0_111, %c0_112], %154 {strides = array<i32>} : memref<14x8x16xbf16, #tpu.memory_space<vmem>>, vector<14x8x16xbf16>,
    %c3_113 = arith.constant 3 : index
    %c0_114 = arith.constant 0 : index
    %c0_115 = arith.constant 0 : index
    %156 = vector.load %arg13[%c3_113, %c0_114, %c0_115] : memref<14x8x16xbf16, #tpu.memory_space<vmem>>, vector<8x8x16xbf16>
    tpu.vector_store %arg13[%c3_113, %c0_114, %c0_115], %153 {strides = array<i32>} : memref<14x8x16xbf16, #tpu.memory_space<vmem>>, vector<8x8x16xbf16>,
    %c0_116 = arith.constant 0 : index
    %c0_117 = arith.constant 0 : index
    %c0_118 = arith.constant 0 : index
    %157 = vector.load %arg13[%c0_116, %c0_117, %c0_118] : memref<14x8x16xbf16, #tpu.memory_space<vmem>>, vector<14x8x16xbf16>
    %158 = vector.extract_strided_slice %157 {offsets = [0, 0, 0], sizes = [8, 8, 16], strides = [1, 1, 1]} : vector<14x8x16xbf16> to vector<8x8x16xbf16>
    %159 = vector.shape_cast %158 : vector<8x8x16xbf16> to vector<64x16xbf16>
    %c0_119 = arith.constant 0 : index
    %c0_120 = arith.constant 0 : index
    %c0_121 = arith.constant 0 : index
    %160 = vector.load %arg8[%c0_119, %c0_120, %c0_121] : memref<7x16x192xbf16, #tpu.memory_space<vmem>>, vector<1x16x192xbf16>
    %161 = vector.shape_cast %160 : vector<1x16x192xbf16> to vector<16x192xbf16>
    %cst_122 = arith.constant dense<0.000000e+00> : vector<64x192xf32>
    %162 = tpu.matmul %159, %161, %cst_122 {dimension_numbers = #tpu.dot_dimension_numbers<[1], [0], [0], [1], [0, 0, 1, 1], [], []>} : vector<64x16xbf16>, vector<16x192xbf16>, vector<64x192xf32> -> vector<64x192xf32>
    %163 = vector.extract_strided_slice %157 {offsets = [1, 0, 0], sizes = [8, 8, 16], strides = [1, 1, 1]} : vector<14x8x16xbf16> to vector<8x8x16xbf16>
    %164 = vector.shape_cast %163 : vector<8x8x16xbf16> to vector<64x16xbf16>
    %c1_123 = arith.constant 1 : index
    %c0_124 = arith.constant 0 : index
    %c0_125 = arith.constant 0 : index
    %165 = vector.load %arg8[%c1_123, %c0_124, %c0_125] : memref<7x16x192xbf16, #tpu.memory_space<vmem>>, vector<1x16x192xbf16>
    %166 = vector.shape_cast %165 : vector<1x16x192xbf16> to vector<16x192xbf16>
    %cst_126 = arith.constant dense<0.000000e+00> : vector<64x192xf32>
    %167 = tpu.matmul %164, %166, %cst_126 {dimension_numbers = #tpu.dot_dimension_numbers<[1], [0], [0], [1], [0, 0, 1, 1], [], []>} : vector<64x16xbf16>, vector<16x192xbf16>, vector<64x192xf32> -> vector<64x192xf32>
    %168 = arith.addf %162, %167 : vector<64x192xf32>
    %169 = vector.extract_strided_slice %157 {offsets = [2, 0, 0], sizes = [8, 8, 16], strides = [1, 1, 1]} : vector<14x8x16xbf16> to vector<8x8x16xbf16>
    %170 = vector.shape_cast %169 : vector<8x8x16xbf16> to vector<64x16xbf16>
    %c2_127 = arith.constant 2 : index
    %c0_128 = arith.constant 0 : index
    %c0_129 = arith.constant 0 : index
    %171 = vector.load %arg8[%c2_127, %c0_128, %c0_129] : memref<7x16x192xbf16, #tpu.memory_space<vmem>>, vector<1x16x192xbf16>
    %172 = vector.shape_cast %171 : vector<1x16x192xbf16> to vector<16x192xbf16>
    %cst_130 = arith.constant dense<0.000000e+00> : vector<64x192xf32>
    %173 = tpu.matmul %170, %172, %cst_130 {dimension_numbers = #tpu.dot_dimension_numbers<[1], [0], [0], [1], [0, 0, 1, 1], [], []>} : vector<64x16xbf16>, vector<16x192xbf16>, vector<64x192xf32> -> vector<64x192xf32>
    %174 = arith.addf %168, %173 : vector<64x192xf32>
    %175 = vector.extract_strided_slice %157 {offsets = [3, 0, 0], sizes = [8, 8, 16], strides = [1, 1, 1]} : vector<14x8x16xbf16> to vector<8x8x16xbf16>
    %176 = vector.shape_cast %175 : vector<8x8x16xbf16> to vector<64x16xbf16>
    %c3_131 = arith.constant 3 : index
    %c0_132 = arith.constant 0 : index
    %c0_133 = arith.constant 0 : index
    %177 = vector.load %arg8[%c3_131, %c0_132, %c0_133] : memref<7x16x192xbf16, #tpu.memory_space<vmem>>, vector<1x16x192xbf16>
    %178 = vector.shape_cast %177 : vector<1x16x192xbf16> to vector<16x192xbf16>
    %cst_134 = arith.constant dense<0.000000e+00> : vector<64x192xf32>
    %179 = tpu.matmul %176, %178, %cst_134 {dimension_numbers = #tpu.dot_dimension_numbers<[1], [0], [0], [1], [0, 0, 1, 1], [], []>} : vector<64x16xbf16>, vector<16x192xbf16>, vector<64x192xf32> -> vector<64x192xf32>
    %180 = arith.addf %174, %179 : vector<64x192xf32>
    %181 = vector.extract_strided_slice %157 {offsets = [4, 0, 0], sizes = [8, 8, 16], strides = [1, 1, 1]} : vector<14x8x16xbf16> to vector<8x8x16xbf16>
    %182 = vector.shape_cast %181 : vector<8x8x16xbf16> to vector<64x16xbf16>
    %c4_135 = arith.constant 4 : index
    %c0_136 = arith.constant 0 : index
    %c0_137 = arith.constant 0 : index
    %183 = vector.load %arg8[%c4_135, %c0_136, %c0_137] : memref<7x16x192xbf16, #tpu.memory_space<vmem>>, vector<1x16x192xbf16>
    %184 = vector.shape_cast %183 : vector<1x16x192xbf16> to vector<16x192xbf16>
    %cst_138 = arith.constant dense<0.000000e+00> : vector<64x192xf32>
    %185 = tpu.matmul %182, %184, %cst_138 {dimension_numbers = #tpu.dot_dimension_numbers<[1], [0], [0], [1], [0, 0, 1, 1], [], []>} : vector<64x16xbf16>, vector<16x192xbf16>, vector<64x192xf32> -> vector<64x192xf32>
    %186 = arith.addf %180, %185 : vector<64x192xf32>
    %187 = vector.extract_strided_slice %157 {offsets = [5, 0, 0], sizes = [8, 8, 16], strides = [1, 1, 1]} : vector<14x8x16xbf16> to vector<8x8x16xbf16>
    %188 = vector.shape_cast %187 : vector<8x8x16xbf16> to vector<64x16xbf16>
    %c5_139 = arith.constant 5 : index
    %c0_140 = arith.constant 0 : index
    %c0_141 = arith.constant 0 : index
    %189 = vector.load %arg8[%c5_139, %c0_140, %c0_141] : memref<7x16x192xbf16, #tpu.memory_space<vmem>>, vector<1x16x192xbf16>
    %190 = vector.shape_cast %189 : vector<1x16x192xbf16> to vector<16x192xbf16>
    %cst_142 = arith.constant dense<0.000000e+00> : vector<64x192xf32>
    %191 = tpu.matmul %188, %190, %cst_142 {dimension_numbers = #tpu.dot_dimension_numbers<[1], [0], [0], [1], [0, 0, 1, 1], [], []>} : vector<64x16xbf16>, vector<16x192xbf16>, vector<64x192xf32> -> vector<64x192xf32>
    %192 = arith.addf %186, %191 : vector<64x192xf32>
    %193 = vector.extract_strided_slice %157 {offsets = [6, 0, 0], sizes = [8, 8, 16], strides = [1, 1, 1]} : vector<14x8x16xbf16> to vector<8x8x16xbf16>
    %194 = vector.shape_cast %193 : vector<8x8x16xbf16> to vector<64x16xbf16>
    %c6_143 = arith.constant 6 : index
    %c0_144 = arith.constant 0 : index
    %c0_145 = arith.constant 0 : index
    %195 = vector.load %arg8[%c6_143, %c0_144, %c0_145] : memref<7x16x192xbf16, #tpu.memory_space<vmem>>, vector<1x16x192xbf16>
    %196 = vector.shape_cast %195 : vector<1x16x192xbf16> to vector<16x192xbf16>
    %cst_146 = arith.constant dense<0.000000e+00> : vector<64x192xf32>
    %197 = tpu.matmul %194, %196, %cst_146 {dimension_numbers = #tpu.dot_dimension_numbers<[1], [0], [0], [1], [0, 0, 1, 1], [], []>} : vector<64x16xbf16>, vector<16x192xbf16>, vector<64x192xf32> -> vector<64x192xf32>
    %198 = arith.addf %192, %197 : vector<64x192xf32>
    %c0_147 = arith.constant 0 : index
    %c0_148 = arith.constant 0 : index
    %199 = vector.load %arg9[%c0_147, %c0_148] : memref<1x192xf32, #tpu.memory_space<vmem>>, vector<1x192xf32>
    %200 = vector.broadcast %199 : vector<1x192xf32> to vector<64x192xf32>
    %201 = arith.addf %198, %200 : vector<64x192xf32>
    %cst_149 = arith.constant 0.000000e+00 : f32
    %202 = vector.broadcast %cst_149 : f32 to vector<64x192xf32>
    %203 = arith.maximumf %201, %202 : vector<64x192xf32>
    %204 = arith.truncf %203 : vector<64x192xf32> to vector<64x192xbf16>
    %205 = vector.shape_cast %204 : vector<64x192xbf16> to vector<8x8x192xbf16>
    %c0_150 = arith.constant 0 : index
    %c0_151 = arith.constant 0 : index
    %c0_152 = arith.constant 0 : index
    %c0_153 = arith.constant 0 : index
    %206 = vector.load %arg10[%c0_150, %c0_151, %c0_152, %c0_153] : memref<1x8x8x192xbf16, #tpu.memory_space<vmem>>, vector<1x8x8x192xbf16>
    %207 = vector.shape_cast %206 : vector<1x8x8x192xbf16> to vector<8x8x192xbf16>
    %208 = vector.shape_cast %205 : vector<8x8x192xbf16> to vector<1x8x8x192xbf16>
    tpu.vector_store %arg10[%c0_150, %c0_151, %c0_152, %c0_153], %208 {strides = array<i32>} : memref<1x8x8x192xbf16, #tpu.memory_space<vmem>>, vector<1x8x8x192xbf16>,
    return
  }
  func.func @transform_0(%arg0: i32) -> (i32, i32, i32, i32) {
    %c0_i32 = arith.constant 0 : i32
    %c0_i32_0 = arith.constant 0 : i32
    %c0_i32_1 = arith.constant 0 : i32
    %c0_i32_2 = arith.constant 0 : i32
    return %arg0, %c0_i32, %c0_i32_0, %c0_i32_1 : i32, i32, i32, i32
  }
  func.func @transform_1(%arg0: i32) -> (i32, i32, i32) {
    %c0_i32 = arith.constant 0 : i32
    %c0_i32_0 = arith.constant 0 : i32
    %c0_i32_1 = arith.constant 0 : i32
    %c0_i32_2 = arith.constant 0 : i32
    return %c0_i32, %c0_i32_0, %c0_i32_1 : i32, i32, i32
  }
  func.func @transform_2(%arg0: i32) -> (i32, i32) {
    %c0_i32 = arith.constant 0 : i32
    %c0_i32_0 = arith.constant 0 : i32
    %c0_i32_1 = arith.constant 0 : i32
    return %c0_i32, %c0_i32_0 : i32, i32
  }
  func.func @transform_3(%arg0: i32) -> (i32, i32, i32) {
    %c0_i32 = arith.constant 0 : i32
    %c0_i32_0 = arith.constant 0 : i32
    %c0_i32_1 = arith.constant 0 : i32
    %c0_i32_2 = arith.constant 0 : i32
    return %c0_i32, %c0_i32_0, %c0_i32_1 : i32, i32, i32
  }
  func.func @transform_4(%arg0: i32) -> (i32, i32) {
    %c0_i32 = arith.constant 0 : i32
    %c0_i32_0 = arith.constant 0 : i32
    %c0_i32_1 = arith.constant 0 : i32
    return %c0_i32, %c0_i32_0 : i32, i32
  }
  func.func @transform_5(%arg0: i32) -> (i32, i32, i32) {
    %c0_i32 = arith.constant 0 : i32
    %c0_i32_0 = arith.constant 0 : i32
    %c0_i32_1 = arith.constant 0 : i32
    %c0_i32_2 = arith.constant 0 : i32
    return %c0_i32, %c0_i32_0, %c0_i32_1 : i32, i32, i32
  }
  func.func @transform_6(%arg0: i32) -> (i32, i32) {
    %c0_i32 = arith.constant 0 : i32
    %c0_i32_0 = arith.constant 0 : i32
    %c0_i32_1 = arith.constant 0 : i32
    return %c0_i32, %c0_i32_0 : i32, i32
  }
  func.func @transform_7(%arg0: i32) -> (i32, i32, i32) {
    %c0_i32 = arith.constant 0 : i32
    %c0_i32_0 = arith.constant 0 : i32
    %c0_i32_1 = arith.constant 0 : i32
    %c0_i32_2 = arith.constant 0 : i32
    return %c0_i32, %c0_i32_0, %c0_i32_1 : i32, i32, i32
  }
  func.func @transform_8(%arg0: i32) -> (i32, i32) {
    %c0_i32 = arith.constant 0 : i32
    %c0_i32_0 = arith.constant 0 : i32
    %c0_i32_1 = arith.constant 0 : i32
    return %c0_i32, %c0_i32_0 : i32, i32
  }
  func.func @transform_9(%arg0: i32) -> (i32, i32, i32, i32) {
    %c0_i32 = arith.constant 0 : i32
    %c0_i32_0 = arith.constant 0 : i32
    %c0_i32_1 = arith.constant 0 : i32
    %c0_i32_2 = arith.constant 0 : i32
    return %arg0, %c0_i32, %c0_i32_0, %c0_i32_1 : i32, i32, i32, i32
  }
}

module attributes {stable_mosaic.version = 11 : i64} {
  func.func @avgpool_bias_relu_kernel(%arg0: i32, %arg1: memref<2x10x10x192xbf16, #tpu.memory_space<vmem>>, %arg2: memref<1x192xf32, #tpu.memory_space<vmem>>, %arg3: memref<2x8x8x192xbf16, #tpu.memory_space<vmem>>) attributes {dimension_semantics = [#tpu.dimension_semantics<parallel>], iteration_bounds = array<i64: 1>, scalar_prefetch = 0 : i64, scratch_operands = 0 : i64, tpu.core_type = #tpu.core_type<tc>, window_params = [{transform_indices = @transform_0, window_bounds = array<i64: 2, 10, 10, 192>}, {pipeline_mode = #tpu.pipeline_mode<synchronous>, transform_indices = @transform_1, window_bounds = array<i64: 1, 192>}, {transform_indices = @transform_2, window_bounds = array<i64: 2, 8, 8, 192>}]} {
    %c0 = arith.constant 0 : index
    %c0_0 = arith.constant 0 : index
    %c0_1 = arith.constant 0 : index
    %c0_2 = arith.constant 0 : index
    %0 = vector.load %arg1[%c0, %c0_0, %c0_1, %c0_2] : memref<2x10x10x192xbf16, #tpu.memory_space<vmem>>, vector<2x10x10x192xbf16>
    %1 = arith.extf %0 : vector<2x10x10x192xbf16> to vector<2x10x10x192xf32>
    %2 = vector.extract_strided_slice %1 {offsets = [0, 0, 0, 0], sizes = [2, 10, 8, 192], strides = [1, 1, 1, 1]} : vector<2x10x10x192xf32> to vector<2x10x8x192xf32>
    %3 = vector.extract_strided_slice %1 {offsets = [0, 0, 1, 0], sizes = [2, 10, 8, 192], strides = [1, 1, 1, 1]} : vector<2x10x10x192xf32> to vector<2x10x8x192xf32>
    %4 = arith.addf %2, %3 : vector<2x10x8x192xf32>
    %5 = vector.extract_strided_slice %1 {offsets = [0, 0, 2, 0], sizes = [2, 10, 8, 192], strides = [1, 1, 1, 1]} : vector<2x10x10x192xf32> to vector<2x10x8x192xf32>
    %6 = arith.addf %4, %5 : vector<2x10x8x192xf32>
    %7 = vector.extract_strided_slice %6 {offsets = [0, 0, 0, 0], sizes = [2, 8, 8, 192], strides = [1, 1, 1, 1]} : vector<2x10x8x192xf32> to vector<2x8x8x192xf32>
    %8 = vector.extract_strided_slice %6 {offsets = [0, 1, 0, 0], sizes = [2, 8, 8, 192], strides = [1, 1, 1, 1]} : vector<2x10x8x192xf32> to vector<2x8x8x192xf32>
    %9 = arith.addf %7, %8 : vector<2x8x8x192xf32>
    %10 = vector.extract_strided_slice %6 {offsets = [0, 2, 0, 0], sizes = [2, 8, 8, 192], strides = [1, 1, 1, 1]} : vector<2x10x8x192xf32> to vector<2x8x8x192xf32>
    %11 = arith.addf %9, %10 : vector<2x8x8x192xf32>
    %cst = arith.constant 0.111111112 : f32
    %12 = vector.broadcast %cst : f32 to vector<2x8x8x192xf32>
    %13 = arith.mulf %11, %12 : vector<2x8x8x192xf32>
    %c0_3 = arith.constant 0 : index
    %c0_4 = arith.constant 0 : index
    %14 = vector.load %arg2[%c0_3, %c0_4] : memref<1x192xf32, #tpu.memory_space<vmem>>, vector<1x192xf32>
    %15 = vector.shape_cast %14 : vector<1x192xf32> to vector<1x1x1x192xf32>
    %16 = vector.broadcast %15 : vector<1x1x1x192xf32> to vector<2x8x8x192xf32>
    %17 = arith.addf %13, %16 : vector<2x8x8x192xf32>
    %cst_5 = arith.constant 0.000000e+00 : f32
    %18 = vector.broadcast %cst_5 : f32 to vector<2x8x8x192xf32>
    %19 = arith.maximumf %17, %18 : vector<2x8x8x192xf32>
    %20 = arith.truncf %19 : vector<2x8x8x192xf32> to vector<2x8x8x192xbf16>
    %c0_6 = arith.constant 0 : index
    %c0_7 = arith.constant 0 : index
    %c0_8 = arith.constant 0 : index
    %c0_9 = arith.constant 0 : index
    %21 = vector.load %arg3[%c0_6, %c0_7, %c0_8, %c0_9] : memref<2x8x8x192xbf16, #tpu.memory_space<vmem>>, vector<2x8x8x192xbf16>
    tpu.vector_store %arg3[%c0_6, %c0_7, %c0_8, %c0_9], %20 {strides = array<i32>} : memref<2x8x8x192xbf16, #tpu.memory_space<vmem>>, vector<2x8x8x192xbf16>,
    return
  }
  func.func @transform_0(%arg0: i32) -> (i32, i32, i32, i32) {
    %c0_i32 = arith.constant 0 : i32
    %c0_i32_0 = arith.constant 0 : i32
    %c0_i32_1 = arith.constant 0 : i32
    %c0_i32_2 = arith.constant 0 : i32
    return %arg0, %c0_i32, %c0_i32_0, %c0_i32_1 : i32, i32, i32, i32
  }
  func.func @transform_1(%arg0: i32) -> (i32, i32) {
    %c0_i32 = arith.constant 0 : i32
    %c0_i32_0 = arith.constant 0 : i32
    %c0_i32_1 = arith.constant 0 : i32
    return %c0_i32, %c0_i32_0 : i32, i32
  }
  func.func @transform_2(%arg0: i32) -> (i32, i32, i32, i32) {
    %c0_i32 = arith.constant 0 : i32
    %c0_i32_0 = arith.constant 0 : i32
    %c0_i32_1 = arith.constant 0 : i32
    %c0_i32_2 = arith.constant 0 : i32
    return %arg0, %c0_i32, %c0_i32_0, %c0_i32_1 : i32, i32, i32, i32
  }
}

</mosaic_0001>

<bundles_post_ra>
// kernel: inception_c_forward.4
= control target key start
LH: loop header
LB: loop body
LE: loop exit
PB: predicated region body
PF: predicated region fallthrough
CT: control target
= control target key end

     0   :  { %vm105_vm0 = vcmask 130048   ;;  %v326_v20 = vlaneseq  ;;  %s929_s1 = inlined_call_operand.vmem [shape: bf16[16,512], index: 1, kind: input, shape index: {}]   ;;  %s930_s0 = inlined_call_operand.vmem [shape: bf16[128,16], index: 0, kind: input, shape index: {}]   ;;  %s931_s2 = inlined_call_operand.vmem [shape: f32[1,512], index: 2, kind: input, shape index: {}]   ;;  %s932_s3 = inlined_call_operand.vmem [shape: bf16[128,512], index: 3, kind: output, shape index: {}]  }
   0x1   :  { %v565_v0 = vld [vmem:[%s929_s1] sm:$0xf]  ;;  %v621_v1 = vld [vmem:[%s929_s1 + $0xc] sm:$0xf0]  ;;  %v619_v2 = vld [vmem:[%s929_s1 + $0x4] sm:$0xf] }
   0x2   :  { %v566_v3 = vor.u32 %v621_v1, %v565_v0  ;;  %v567_v4 = vld [vmem:[%s929_s1 + $0x10] sm:$0xf0]  ;;  %v573_v5 = vld [vmem:[%s929_s1 + $0x8] sm:$0xf]  ;;  %v622_v6 = vld [vmem:[%s929_s1 + $0x14] sm:$0xf0] }
   0x3   :  { %v570_v7 = vor.u32 %v619_v2, %v567_v4  ;;  %v574_v8 = vor.u32 %v622_v6, %v573_v5  ;;  %v620_v9 = vld [vmem:[%s929_s1 + $0xc] sm:$0xf]  ;;  %v575_v10 = vld [vmem:[%s929_s1 + $0x18] sm:$0xf0]  ;;  %v611_v11 = vld [vmem:[%s930_s0] sm:$0xff]  ;;  %v327_v22 = vand.u32 127, %v326_v20 }
   0x4   :  { %137 = vmatpush.bf16.msra.mxu0 %v566_v3  ;;  %v578_v12 = vor.u32 %v620_v9, %v575_v10  ;;  %v612_v13 = vld [vmem:[%s930_s0 + $0x8] sm:$0xff]  ;;  %v613_v14 = vld [vmem:[%s930_s0 + $0x10] sm:$0xff]  ;;  %v614_v15 = vld [vmem:[%s930_s0 + $0x18] sm:$0xff] }
   0x5   :  { %186 = vmatpush.bf16.msra.mxu1 %v570_v7  ;;  %235 = vmatpush.bf16.msra.mxu2 %v574_v8  ;;  %v615_v16 = vld [vmem:[%s930_s0 + $0x20] sm:$0xff]  ;;  %v616_v17 = vld [vmem:[%s930_s0 + $0x28] sm:$0xff]  ;;  %v617_v18 = vld [vmem:[%s930_s0 + $0x30] sm:$0xff]  ;;  %v730_v25 = vadd.s32 128, %v327_v22 }
   0x6   :  { %284 = vmatpush.bf16.msra.mxu3 %v578_v12  ;;  %v618_v19 = vld [vmem:[%s930_s0 + $0x38] sm:$0xff]  ;;  %v35_v21 = vld [vmem:[%s931_s2] sm:$0xf] }
   0x7   :  { %579 = vmatmul.msk.bf16.vlgmr.msra.gmra.mxu0 %vm105_vm0, %v611_v11  ;;  %v726_v23 = vperm.slane %v35_v21, 0  ;;  %v728_v24 = vperm.slane %v35_v21, 1  ;;  %vm332_vm1 = vcmp.lt.s32.totalorder %v730_v25, 224  ;;  %v735_v32 = vperm.slane %v35_v21, 2 }
   0x8   :  { %587 = vmatmul.msk.bf16.vlgmr.msra.gmra.mxu1 %vm105_vm0, %v611_v11  ;;  %595 = vmatmul.msk.bf16.vlgmr.msra.gmra.mxu2 %vm105_vm0, %v611_v11  ;;  %v737_v33 = vperm.slane %v35_v21, 3 }
   0x9   :  { %603 = vmatmul.msk.bf16.vlgmr.msra.gmra.mxu3 %vm105_vm0, %v611_v11 }
  0x17   :  { %580 = vmatmul.msk.bf16.gmra.mxu0 %vm105_vm0, %v612_v13 }
  0x18   :  { %588 = vmatmul.msk.bf16.gmra.mxu1 %vm105_vm0, %v612_v13  ;;  %596 = vmatmul.msk.bf16.gmra.mxu2 %vm105_vm0, %v612_v13 }
  0x19   :  { %604 = vmatmul.msk.bf16.gmra.mxu3 %vm105_vm0, %v612_v13 }
  0x27   :  { %581 = vmatmul.msk.bf16.gmra.mxu0 %vm105_vm0, %v613_v14 }
  0x28   :  { %589 = vmatmul.msk.bf16.gmra.mxu1 %vm105_vm0, %v613_v14  ;;  %597 = vmatmul.msk.bf16.gmra.mxu2 %vm105_vm0, %v613_v14 }
  0x29   :  { %605 = vmatmul.msk.bf16.gmra.mxu3 %vm105_vm0, %v613_v14 }
  0x37   :  { %582 = vmatmul.msk.bf16.gmra.mxu0 %vm105_vm0, %v614_v15 }
  0x38   :  { %590 = vmatmul.msk.bf16.gmra.mxu1 %vm105_vm0, %v614_v15  ;;  %598 = vmatmul.msk.bf16.gmra.mxu2 %vm105_vm0, %v614_v15 }
  0x39   :  { %606 = vmatmul.msk.bf16.gmra.mxu3 %vm105_vm0, %v614_v15 }
  0x47   :  { %583 = vmatmul.msk.bf16.gmra.mxu0 %vm105_vm0, %v615_v16 }
  0x48   :  { %591 = vmatmul.msk.bf16.gmra.mxu1 %vm105_vm0, %v615_v16  ;;  %599 = vmatmul.msk.bf16.gmra.mxu2 %vm105_vm0, %v615_v16 }
  0x49   :  { %607 = vmatmul.msk.bf16.gmra.mxu3 %vm105_vm0, %v615_v16 }
  0x57   :  { %584 = vmatmul.msk.bf16.gmra.mxu0 %vm105_vm0, %v616_v17 }
  0x58   :  { %592 = vmatmul.msk.bf16.gmra.mxu1 %vm105_vm0, %v616_v17  ;;  %600 = vmatmul.msk.bf16.gmra.mxu2 %vm105_vm0, %v616_v17 }
  0x59   :  { %608 = vmatmul.msk.bf16.gmra.mxu3 %vm105_vm0, %v616_v17 }
  0x67   :  { %585 = vmatmul.msk.bf16.gmra.mxu0 %vm105_vm0, %v617_v18 }
  0x68   :  { %593 = vmatmul.msk.bf16.gmra.mxu1 %vm105_vm0, %v617_v18  ;;  %601 = vmatmul.msk.bf16.gmra.mxu2 %vm105_vm0, %v617_v18 }
  0x69   :  { %609 = vmatmul.msk.bf16.gmra.mxu3 %vm105_vm0, %v617_v18 }
  0x77   :  { %586 = vmatmul.msk.bf16.gmra.mxu0 %vm105_vm0, %v618_v19 }
  0x78   :  { %594 = vmatmul.msk.bf16.gmra.mxu1 %vm105_vm0, %v618_v19  ;;  %602 = vmatmul.msk.bf16.gmra.mxu2 %vm105_vm0, %v618_v19 }
  0x79   :  { %610 = vmatmul.msk.bf16.gmra.mxu3 %vm105_vm0, %v618_v19 }
  0x84   :  { %v139_v26 = vpop.f32.mrf.mxu0 }
  0x85   :  { %v140_v27 = vadd.f32 %v139_v26, %v726_v23  ;;  %v188_v28 = vpop.f32.mrf.mxu1 }
  0x86   :  { %v189_v29 = vadd.f32 %v188_v28, %v728_v24 }
  0x87   :  { %v335_v30 = vmax.f32 %v140_v27, 0.0 }
  0x88   :  { %v336_v31 = vmax.f32 %v189_v29, 0.0 }
  0x8a   :  { %v400_v34 = vsel %vm332_vm1, %v336_v31, %v189_v29 }
  0x8b   :  { %v463_v35 = vpack.c.bf16 %v400_v34, %v335_v30  ;;  %v237_v36 = vpop.f32.mrf.mxu2 }
  0x8c   :  { %v238_v37 = vadd.f32 %v237_v36, %v735_v32  ;;  %v286_v38 = vpop.f32.mrf.mxu3  ;;  %v141_v39 = vpop.f32.mrf.mxu0 }
  0x8d   :  { %495 = vst [vmem:[%s932_s3] sm:$0xff] %v463_v35  ;;  %v287_v40 = vadd.f32 %v286_v38, %v737_v33  ;;  %v142_v41 = vadd.f32 %v141_v39, %v726_v23  ;;  %v190_v42 = vpop.f32.mrf.mxu1 }
  0x8e   :  { %v191_v43 = vadd.f32 %v190_v42, %v728_v24 }
  0x8f   :  { %v464_v44 = vpack.c.bf16 %v287_v40, %v238_v37  ;;  %v339_v45 = vmax.f32 %v142_v41, 0.0 }
  0x90   :  { %v340_v46 = vmax.f32 %v191_v43, 0.0 }
  0x91   :  { %496 = vst [vmem:[%s932_s3 + $0x8] sm:$0xff] %v464_v44 }
  0x92   :  { %v404_v47 = vsel %vm332_vm1, %v340_v46, %v191_v43 }
  0x93   :  { %v465_v48 = vpack.c.bf16 %v404_v47, %v339_v45  ;;  %v239_v49 = vpop.f32.mrf.mxu2 }
  0x94   :  { %v240_v50 = vadd.f32 %v239_v49, %v735_v32  ;;  %v288_v51 = vpop.f32.mrf.mxu3  ;;  %v144_v52 = vpop.f32.mrf.mxu0 }
  0x95   :  { %497 = vst [vmem:[%s932_s3 + $0x10] sm:$0xff] %v465_v48  ;;  %v289_v53 = vadd.f32 %v288_v51, %v737_v33  ;;  %v145_v54 = vadd.f32 %v144_v52, %v726_v23  ;;  %v193_v55 = vpop.f32.mrf.mxu1 }
  0x96   :  { %v194_v56 = vadd.f32 %v193_v55, %v728_v24 }
  0x97   :  { %v466_v57 = vpack.c.bf16 %v289_v53, %v240_v50  ;;  %v343_v58 = vmax.f32 %v145_v54, 0.0 }
  0x98   :  { %v344_v59 = vmax.f32 %v194_v56, 0.0 }
  0x99   :  { %498 = vst [vmem:[%s932_s3 + $0x18] sm:$0xff] %v466_v57 }
  0x9a   :  { %v408_v60 = vsel %vm332_vm1, %v344_v59, %v194_v56 }
  0x9b   :  { %v467_v61 = vpack.c.bf16 %v408_v60, %v343_v58  ;;  %v242_v62 = vpop.f32.mrf.mxu2 }
  0x9c   :  { %v243_v63 = vadd.f32 %v242_v62, %v735_v32  ;;  %v291_v0 = vpop.f32.mrf.mxu3  ;;  %v146_v1 = vpop.f32.mrf.mxu0 }
  0x9d   :  { %499 = vst [vmem:[%s932_s3 + $0x20] sm:$0xff] %v467_v61  ;;  %v292_v2 = vadd.f32 %v291_v0, %v737_v33  ;;  %v147_v3 = vadd.f32 %v146_v1, %v726_v23  ;;  %v195_v4 = vpop.f32.mrf.mxu1 }
  0x9e   :  { %v196_v5 = vadd.f32 %v195_v4, %v728_v24 }
  0x9f   :  { %v468_v6 = vpack.c.bf16 %v292_v2, %v243_v63  ;;  %v347_v7 = vmax.f32 %v147_v3, 0.0 }
  0xa0   :  { %v348_v8 = vmax.f32 %v196_v5, 0.0 }
  0xa1   :  { %500 = vst [vmem:[%s932_s3 + $0x28] sm:$0xff] %v468_v6 }
  0xa2   :  { %v412_v9 = vsel %vm332_vm1, %v348_v8, %v196_v5 }
  0xa3   :  { %v469_v10 = vpack.c.bf16 %v412_v9, %v347_v7  ;;  %v244_v11 = vpop.f32.mrf.mxu2 }
  0xa4   :  { %v245_v12 = vadd.f32 %v244_v11, %v735_v32  ;;  %v293_v13 = vpop.f32.mrf.mxu3  ;;  %v149_v14 = vpop.f32.mrf.mxu0 }
  0xa5   :  { %501 = vst [vmem:[%s932_s3 + $0x30] sm:$0xff] %v469_v10  ;;  %v294_v15 = vadd.f32 %v293_v13, %v737_v33  ;;  %v150_v16 = vadd.f32 %v149_v14, %v726_v23  ;;  %v198_v17 = vpop.f32.mrf.mxu1 }
  0xa6   :  { %v199_v18 = vadd.f32 %v198_v17, %v728_v24 }
  0xa7   :  { %v470_v19 = vpack.c.bf16 %v294_v15, %v245_v12  ;;  %v351_v20 = vmax.f32 %v150_v16, 0.0 }
  0xa8   :  { %v352_v21 = vmax.f32 %v199_v18, 0.0 }
  0xa9   :  { %502 = vst [vmem:[%s932_s3 + $0x38] sm:$0xff] %v470_v19 }
  0xaa   :  { %v416_v22 = vsel %vm332_vm1, %v352_v21, %v199_v18 }
  0xab   :  { %v471_v26 = vpack.c.bf16 %v416_v22, %v351_v20  ;;  %v247_v27 = vpop.f32.mrf.mxu2 }
  0xac   :  { %v248_v28 = vadd.f32 %v247_v27, %v735_v32  ;;  %v296_v29 = vpop.f32.mrf.mxu3  ;;  %v151_v30 = vpop.f32.mrf.mxu0 }
  0xad   :  { %503 = vst [vmem:[%s932_s3 + $0x40] sm:$0xff] %v471_v26  ;;  %v297_v31 = vadd.f32 %v296_v29, %v737_v33  ;;  %v152_v34 = vadd.f32 %v151_v30, %v726_v23  ;;  %v200_v35 = vpop.f32.mrf.mxu1 }
  0xae   :  { %v201_v36 = vadd.f32 %v200_v35, %v728_v24 }
  0xaf   :  { %v472_v37 = vpack.c.bf16 %v297_v31, %v248_v28  ;;  %v355_v38 = vmax.f32 %v152_v34, 0.0 }
  0xb0   :  { %v356_v39 = vmax.f32 %v201_v36, 0.0 }
  0xb1   :  { %504 = vst [vmem:[%s932_s3 + $0x48] sm:$0xff] %v472_v37 }
  0xb2   :  { %v420_v40 = vsel %vm332_vm1, %v356_v39, %v201_v36 }
  0xb3   :  { %v473_v41 = vpack.c.bf16 %v420_v40, %v355_v38  ;;  %v249_v42 = vpop.f32.mrf.mxu2 }
  0xb4   :  { %v250_v43 = vadd.f32 %v249_v42, %v735_v32  ;;  %v298_v44 = vpop.f32.mrf.mxu3  ;;  %v154_v45 = vpop.f32.mrf.mxu0 }
  0xb5   :  { %505 = vst [vmem:[%s932_s3 + $0x50] sm:$0xff] %v473_v41  ;;  %v299_v46 = vadd.f32 %v298_v44, %v737_v33  ;;  %v155_v47 = vadd.f32 %v154_v45, %v726_v23  ;;  %v203_v48 = vpop.f32.mrf.mxu1 }
  0xb6   :  { %v204_v49 = vadd.f32 %v203_v48, %v728_v24 }
  0xb7   :  { %v474_v50 = vpack.c.bf16 %v299_v46, %v250_v43  ;;  %v359_v51 = vmax.f32 %v155_v47, 0.0 }
  0xb8   :  { %v360_v52 = vmax.f32 %v204_v49, 0.0 }
  0xb9   :  { %506 = vst [vmem:[%s932_s3 + $0x58] sm:$0xff] %v474_v50 }
  0xba   :  { %v424_v53 = vsel %vm332_vm1, %v360_v52, %v204_v49 }
  0xbb   :  { %v475_v54 = vpack.c.bf16 %v424_v53, %v359_v51  ;;  %v252_v55 = vpop.f32.mrf.mxu2 }
  0xbc   :  { %v253_v56 = vadd.f32 %v252_v55, %v735_v32  ;;  %v301_v57 = vpop.f32.mrf.mxu3  ;;  %v156_v58 = vpop.f32.mrf.mxu0 }
  0xbd   :  { %507 = vst [vmem:[%s932_s3 + $0x60] sm:$0xff] %v475_v54  ;;  %v302_v59 = vadd.f32 %v301_v57, %v737_v33  ;;  %v157_v60 = vadd.f32 %v156_v58, %v726_v23  ;;  %v205_v61 = vpop.f32.mrf.mxu1 }
  0xbe   :  { %v206_v62 = vadd.f32 %v205_v61, %v728_v24 }
  0xbf   :  { %v476_v63 = vpack.c.bf16 %v302_v59, %v253_v56  ;;  %v363_v0 = vmax.f32 %v157_v60, 0.0 }
  0xc0   :  { %v364_v1 = vmax.f32 %v206_v62, 0.0 }
  0xc1   :  { %508 = vst [vmem:[%s932_s3 + $0x68] sm:$0xff] %v476_v63 }
  0xc2   :  { %v428_v2 = vsel %vm332_vm1, %v364_v1, %v206_v62 }
  0xc3   :  { %v477_v3 = vpack.c.bf16 %v428_v2, %v363_v0  ;;  %v254_v4 = vpop.f32.mrf.mxu2 }
  0xc4   :  { %v255_v5 = vadd.f32 %v254_v4, %v735_v32  ;;  %v303_v6 = vpop.f32.mrf.mxu3  ;;  %v159_v7 = vpop.f32.mrf.mxu0 }
  0xc5   :  { %509 = vst [vmem:[%s932_s3 + $0x70] sm:$0xff] %v477_v3  ;;  %v304_v8 = vadd.f32 %v303_v6, %v737_v33  ;;  %v160_v9 = vadd.f32 %v159_v7, %v726_v23  ;;  %v208_v10 = vpop.f32.mrf.mxu1 }
  0xc6   :  { %v209_v11 = vadd.f32 %v208_v10, %v728_v24 }
  0xc7   :  { %v478_v12 = vpack.c.bf16 %v304_v8, %v255_v5  ;;  %v367_v13 = vmax.f32 %v160_v9, 0.0 }
  0xc8   :  { %v368_v14 = vmax.f32 %v209_v11, 0.0 }
  0xc9   :  { %510 = vst [vmem:[%s932_s3 + $0x78] sm:$0xff] %v478_v12 }
  0xca   :  { %v432_v15 = vsel %vm332_vm1, %v368_v14, %v209_v11 }
  0xcb   :  { %v479_v16 = vpack.c.bf16 %v432_v15, %v367_v13  ;;  %v257_v17 = vpop.f32.mrf.mxu2 }
  0xcc   :  { %v258_v18 = vadd.f32 %v257_v17, %v735_v32  ;;  %v306_v19 = vpop.f32.mrf.mxu3  ;;  %v161_v20 = vpop.f32.mrf.mxu0 }
  0xcd   :  { %511 = vst [vmem:[%s932_s3 + $0x80] sm:$0xff] %v479_v16  ;;  %v307_v21 = vadd.f32 %v306_v19, %v737_v33  ;;  %v162_v22 = vadd.f32 %v161_v20, %v726_v23  ;;  %v210_v26 = vpop.f32.mrf.mxu1 }
  0xce   :  { %v211_v27 = vadd.f32 %v210_v26, %v728_v24 }
  0xcf   :  { %v480_v28 = vpack.c.bf16 %v307_v21, %v258_v18  ;;  %v371_v29 = vmax.f32 %v162_v22, 0.0 }
  0xd0   :  { %v372_v30 = vmax.f32 %v211_v27, 0.0 }
  0xd1   :  { %512 = vst [vmem:[%s932_s3 + $0x88] sm:$0xff] %v480_v28 }
  0xd2   :  { %v436_v31 = vsel %vm332_vm1, %v372_v30, %v211_v27 }
  0xd3   :  { %v481_v34 = vpack.c.bf16 %v436_v31, %v371_v29  ;;  %v259_v35 = vpop.f32.mrf.mxu2 }
  0xd4   :  { %v260_v36 = vadd.f32 %v259_v35, %v735_v32  ;;  %v308_v37 = vpop.f32.mrf.mxu3  ;;  %v164_v38 = vpop.f32.mrf.mxu0 }
  0xd5   :  { %513 = vst [vmem:[%s932_s3 + $0x90] sm:$0xff] %v481_v34  ;;  %v309_v39 = vadd.f32 %v308_v37, %v737_v33  ;;  %v165_v40 = vadd.f32 %v164_v38, %v726_v23  ;;  %v213_v41 = vpop.f32.mrf.mxu1 }
  0xd6   :  { %v214_v42 = vadd.f32 %v213_v41, %v728_v24 }
  0xd7   :  { %v482_v43 = vpack.c.bf16 %v309_v39, %v260_v36  ;;  %v375_v44 = vmax.f32 %v165_v40, 0.0 }
  0xd8   :  { %v376_v45 = vmax.f32 %v214_v42, 0.0 }
  0xd9   :  { %514 = vst [vmem:[%s932_s3 + $0x98] sm:$0xff] %v482_v43 }
  0xda   :  { %v440_v46 = vsel %vm332_vm1, %v376_v45, %v214_v42 }
  0xdb   :  { %v483_v47 = vpack.c.bf16 %v440_v46, %v375_v44  ;;  %v262_v48 = vpop.f32.mrf.mxu2 }
  0xdc   :  { %v263_v49 = vadd.f32 %v262_v48, %v735_v32  ;;  %v311_v50 = vpop.f32.mrf.mxu3  ;;  %v166_v51 = vpop.f32.mrf.mxu0 }
  0xdd   :  { %515 = vst [vmem:[%s932_s3 + $0xa0] sm:$0xff] %v483_v47  ;;  %v312_v52 = vadd.f32 %v311_v50, %v737_v33  ;;  %v167_v53 = vadd.f32 %v166_v51, %v726_v23  ;;  %v215_v54 = vpop.f32.mrf.mxu1 }
  0xde   :  { %v216_v55 = vadd.f32 %v215_v54, %v728_v24 }
  0xdf   :  { %v484_v56 = vpack.c.bf16 %v312_v52, %v263_v49  ;;  %v379_v57 = vmax.f32 %v167_v53, 0.0 }
  0xe0   :  { %v380_v58 = vmax.f32 %v216_v55, 0.0 }
  0xe1   :  { %516 = vst [vmem:[%s932_s3 + $0xa8] sm:$0xff] %v484_v56 }
  0xe2   :  { %v444_v59 = vsel %vm332_vm1, %v380_v58, %v216_v55 }
  0xe3   :  { %v485_v60 = vpack.c.bf16 %v444_v59, %v379_v57  ;;  %v264_v61 = vpop.f32.mrf.mxu2 }
  0xe4   :  { %v265_v62 = vadd.f32 %v264_v61, %v735_v32  ;;  %v313_v63 = vpop.f32.mrf.mxu3  ;;  %v169_v0 = vpop.f32.mrf.mxu0 }
  0xe5   :  { %517 = vst [vmem:[%s932_s3 + $0xb0] sm:$0xff] %v485_v60  ;;  %v314_v1 = vadd.f32 %v313_v63, %v737_v33  ;;  %v170_v2 = vadd.f32 %v169_v0, %v726_v23  ;;  %v218_v3 = vpop.f32.mrf.mxu1 }
  0xe6   :  { %v219_v4 = vadd.f32 %v218_v3, %v728_v24 }
  0xe7   :  { %v486_v5 = vpack.c.bf16 %v314_v1, %v265_v62  ;;  %v383_v6 = vmax.f32 %v170_v2, 0.0 }
  0xe8   :  { %v384_v7 = vmax.f32 %v219_v4, 0.0 }
  0xe9   :  { %518 = vst [vmem:[%s932_s3 + $0xb8] sm:$0xff] %v486_v5 }
  0xea   :  { %v448_v8 = vsel %vm332_vm1, %v384_v7, %v219_v4 }
  0xeb   :  { %v487_v9 = vpack.c.bf16 %v448_v8, %v383_v6  ;;  %v267_v10 = vpop.f32.mrf.mxu2 }
  0xec   :  { %v268_v11 = vadd.f32 %v267_v10, %v735_v32  ;;  %v316_v12 = vpop.f32.mrf.mxu3  ;;  %v171_v13 = vpop.f32.mrf.mxu0 }
  0xed   :  { %519 = vst [vmem:[%s932_s3 + $0xc0] sm:$0xff] %v487_v9  ;;  %v317_v14 = vadd.f32 %v316_v12, %v737_v33  ;;  %v172_v15 = vadd.f32 %v171_v13, %v726_v23  ;;  %v220_v16 = vpop.f32.mrf.mxu1 }
  0xee   :  { %v221_v17 = vadd.f32 %v220_v16, %v728_v24 }
  0xef   :  { %v488_v18 = vpack.c.bf16 %v317_v14, %v268_v11  ;;  %v387_v19 = vmax.f32 %v172_v15, 0.0 }
  0xf0   :  { %v388_v20 = vmax.f32 %v221_v17, 0.0 }
  0xf1   :  { %520 = vst [vmem:[%s932_s3 + $0xc8] sm:$0xff] %v488_v18 }
  0xf2   :  { %v452_v21 = vsel %vm332_vm1, %v388_v20, %v221_v17 }
  0xf3   :  { %v489_v22 = vpack.c.bf16 %v452_v21, %v387_v19  ;;  %v269_v26 = vpop.f32.mrf.mxu2 }
  0xf4   :  { %v270_v27 = vadd.f32 %v269_v26, %v735_v32  ;;  %v318_v28 = vpop.f32.mrf.mxu3  ;;  %v174_v29 = vpop.f32.mrf.mxu0 }
  0xf5   :  { %521 = vst [vmem:[%s932_s3 + $0xd0] sm:$0xff] %v489_v22  ;;  %v319_v30 = vadd.f32 %v318_v28, %v737_v33  ;;  %v175_v31 = vadd.f32 %v174_v29, %v726_v23  ;;  %v223_v34 = vpop.f32.mrf.mxu1 }
  0xf6   :  { %v224_v35 = vadd.f32 %v223_v34, %v728_v24 }
  0xf7   :  { %v490_v36 = vpack.c.bf16 %v319_v30, %v270_v27  ;;  %v391_v37 = vmax.f32 %v175_v31, 0.0 }
  0xf8   :  { %v392_v38 = vmax.f32 %v224_v35, 0.0 }
  0xf9   :  { %522 = vst [vmem:[%s932_s3 + $0xd8] sm:$0xff] %v490_v36 }
  0xfa   :  { %v456_v39 = vsel %vm332_vm1, %v392_v38, %v224_v35 }
  0xfb   :  { %v491_v40 = vpack.c.bf16 %v456_v39, %v391_v37  ;;  %v272_v41 = vpop.f32.mrf.mxu2 }
  0xfc   :  { %v273_v42 = vadd.f32 %v272_v41, %v735_v32  ;;  %v321_v43 = vpop.f32.mrf.mxu3  ;;  %v176_v44 = vpop.f32.mrf.mxu0 }
  0xfd   :  { %523 = vst [vmem:[%s932_s3 + $0xe0] sm:$0xff] %v491_v40  ;;  %v322_v45 = vadd.f32 %v321_v43, %v737_v33  ;;  %v177_v46 = vadd.f32 %v176_v44, %v726_v23  ;;  %v225_v47 = vpop.f32.mrf.mxu1 }
  0xfe   :  { %v226_v48 = vadd.f32 %v225_v47, %v728_v24 }
  0xff   :  { %v492_v49 = vpack.c.bf16 %v322_v45, %v273_v42  ;;  %v395_v50 = vmax.f32 %v177_v46, 0.0 }
 0x100   :  { %v396_v51 = vmax.f32 %v226_v48, 0.0 }
 0x101   :  { %524 = vst [vmem:[%s932_s3 + $0xe8] sm:$0xff] %v492_v49 }
 0x102   :  { %v460_v52 = vsel %vm332_vm1, %v396_v51, %v226_v48 }
 0x103   :  { %v493_v53 = vpack.c.bf16 %v460_v52, %v395_v50  ;;  %v274_v54 = vpop.f32.mrf.mxu2 }
 0x104   :  { %v275_v55 = vadd.f32 %v274_v54, %v735_v32  ;;  %v323_v56 = vpop.f32.mrf.mxu3 }
 0x105   :  { %525 = vst [vmem:[%s932_s3 + $0xf0] sm:$0xff] %v493_v53  ;;  %v324_v23 = vadd.f32 %v323_v56, %v737_v33 }
 0x107   :  { %v494_v24 = vpack.c.bf16 %v324_v23, %v275_v55 }
 0x109   :  { %526 = vst [vmem:[%s932_s3 + $0xf8] sm:$0xff] %v494_v24 }

// kernel: inception_c_forward.7
= control target key start
LH: loop header
LB: loop body
LE: loop exit
PB: predicated region body
PF: predicated region fallthrough
CT: control target
= control target key end

     0   :  { %vm211_vm0 = vcmask 1046528   ;;  %vm412_vm1 = vcmask 1045504   ;;  %vm795_vm2 = vcmask 1043456   ;;  %vm796_vm3 = vcmask 523268   ;;  %s1215_s0 = inlined_call_operand.vmem [shape: bf16[2,10,10,192], index: 0, kind: input, shape index: {}]   ;;  %s1216_s1 = inlined_call_operand.vmem [shape: f32[1,192], index: 1, kind: input, shape index: {}]   ;;  %s1217_s2 = inlined_call_operand.vmem [shape: bf16[2,8,8,192], index: 2, kind: output, shape index: {}]  }
   0x1   :  { %v11_v0 = vld [vmem:[%s1215_s0] sm:$0xff]  ;;  %v12_v1 = vld [vmem:[%s1215_s0 + $0x8] sm:$0x11]  ;;  %v13_v2 = vld [vmem:[%s1215_s0 + $0x10] sm:$0xff] }
   0x2   :  { %v14_v3 = vld [vmem:[%s1215_s0 + $0x18] sm:$0x11]  ;;  %v15_v4 = vld [vmem:[%s1215_s0 + $0x20] sm:$0xff]  ;;  %v16_v5 = vld [vmem:[%s1215_s0 + $0x28] sm:$0x11]  ;;  %v51_v6 = vunpack.c.l.bf16 %v11_v0  ;;  %v52_v7 = vunpack.c.h.bf16 %v11_v0  ;;  %v53_v8 = vunpack.c.l.bf16 %v12_v1  ;;  %v54_v9 = vunpack.c.h.bf16 %v12_v1 }
   0x3   :  { %v55_v10 = vunpack.c.l.bf16 %v13_v2  ;;  %v56_v11 = vunpack.c.h.bf16 %v13_v2  ;;  %v57_v12 = vunpack.c.l.bf16 %v14_v3  ;;  %v58_v13 = vunpack.c.h.bf16 %v14_v3  ;;  %v709_v54 = vld [vmem:[%s1216_s1] sm:$0x3]  ;;  %v17_v59 = vld [vmem:[%s1215_s0 + $0x30] sm:$0xff]  ;;  %v18_v0 = vld [vmem:[%s1215_s0 + $0x38] sm:$0x11] }
   0x4   :  { %v59_v14 = vunpack.c.l.bf16 %v15_v4  ;;  %v60_v15 = vunpack.c.h.bf16 %v15_v4  ;;  %v61_v16 = vunpack.c.l.bf16 %v16_v5  ;;  %v62_v17 = vunpack.c.h.bf16 %v16_v5  ;;  %vm900_vm4 = vmor %vm796_vm3, %vm795_vm2 }
   0x5   :  { %v212_v18 = vrot.slane %v51_v6, 1  ;;  %v213_v19 = vrot.slane %v53_v8, 1  ;;  %v215_v20 = vrot.slane %v52_v7, 1  ;;  %v216_v21 = vrot.slane %v54_v9, 1 }
   0x6   :  { %v218_v22 = vrot.slane %v55_v10, 1  ;;  %v219_v23 = vrot.slane %v57_v12, 1  ;;  %v221_v24 = vrot.slane %v56_v11, 1  ;;  %v222_v25 = vrot.slane %v58_v13, 1 }
   0x7   :  { %v214_v26 = vsel %vm211_vm0, %v212_v18, %v213_v19  ;;  %v217_v27 = vsel %vm211_vm0, %v215_v20, %v216_v21  ;;  %v224_v28 = vrot.slane %v59_v14, 1  ;;  %v225_v29 = vrot.slane %v61_v16, 1 }
   0x8   :  { %v220_v30 = vsel %vm211_vm0, %v218_v22, %v219_v23  ;;  %v223_v31 = vsel %vm211_vm0, %v221_v24, %v222_v25  ;;  %v227_v32 = vrot.slane %v60_v15, 1  ;;  %v228_v33 = vrot.slane %v62_v17, 1  ;;  %v19_v25 = vld [vmem:[%s1215_s0 + $0x40] sm:$0xff] }
   0x9   :  { %v226_v34 = vsel %vm211_vm0, %v224_v28, %v225_v29  ;;  %v372_v35 = vadd.f32 %v214_v26, %v51_v6  ;;  %v373_v36 = vadd.f32 %v217_v27, %v52_v7  ;;  %v374_v37 = vadd.f32 %v220_v30, %v55_v10  ;;  %v20_v30 = vld [vmem:[%s1215_s0 + $0x48] sm:$0x11] }
   0xa   :  { %v229_v38 = vsel %vm211_vm0, %v227_v32, %v228_v33  ;;  %v375_v39 = vadd.f32 %v223_v31, %v56_v11  ;;  %v376_v40 = vadd.f32 %v226_v34, %v59_v14  ;;  %v413_v41 = vrot.slane %v51_v6, 2 }
   0xb   :  { %v377_v42 = vadd.f32 %v229_v38, %v60_v15  ;;  %v414_v43 = vrot.slane %v53_v8, 2  ;;  %v416_v44 = vrot.slane %v52_v7, 2  ;;  %v417_v45 = vrot.slane %v54_v9, 2 }
   0xc   :  { %v419_v46 = vrot.slane %v55_v10, 2  ;;  %v420_v47 = vrot.slane %v57_v12, 2  ;;  %v422_v48 = vrot.slane %v56_v11, 2  ;;  %v423_v49 = vrot.slane %v58_v13, 2 }
   0xd   :  { %v415_v50 = vsel %vm412_vm1, %v413_v41, %v414_v43  ;;  %v418_v51 = vsel %vm412_vm1, %v416_v44, %v417_v45  ;;  %v425_v52 = vrot.slane %v59_v14, 2  ;;  %v426_v53 = vrot.slane %v61_v16, 2 }
   0xe   :  { %v421_v55 = vsel %vm412_vm1, %v419_v46, %v420_v47  ;;  %v424_v56 = vsel %vm412_vm1, %v422_v48, %v423_v49  ;;  %v428_v57 = vrot.slane %v60_v15, 2  ;;  %v429_v58 = vrot.slane %v62_v17, 2 }
   0xf   :  { %v427_v60 = vsel %vm412_vm1, %v425_v52, %v426_v53  ;;  %v573_v61 = vadd.f32 %v415_v50, %v372_v35  ;;  %v574_v62 = vadd.f32 %v418_v51, %v373_v36  ;;  %v575_v63 = vadd.f32 %v421_v55, %v374_v37 }
  0x10   :  { %v430_v1 = vsel %vm412_vm1, %v428_v57, %v429_v58  ;;  %v576_v2 = vadd.f32 %v424_v56, %v375_v39  ;;  %v872_v3 = vadd.f32 %v427_v60, %v376_v40  ;;  %v874_v4 = vperm.slane %v709_v54, 0  ;;  %v21_v60 = vld [vmem:[%s1215_s0 + $0x50] sm:$0xff] }
  0x11   :  { %v876_v5 = vadd.f32 %v430_v1, %v377_v42  ;;  %v613_v6 = vadd.f32 %v575_v63, %v573_v61  ;;  %v878_v7 = vperm.slane %v709_v54, 1  ;;  %v63_v8 = vunpack.c.l.bf16 %v17_v59  ;;  %v22_v1 = vld [vmem:[%s1215_s0 + $0x58] sm:$0x11] }
  0x12   :  { %v614_v9 = vadd.f32 %v576_v2, %v574_v62  ;;  %v64_v10 = vunpack.c.h.bf16 %v17_v59  ;;  %v65_v11 = vunpack.c.l.bf16 %v18_v0  ;;  %v66_v12 = vunpack.c.h.bf16 %v18_v0 }
  0x13   :  { %v645_v13 = vadd.f32 %v613_v6, %v872_v3  ;;  %v230_v14 = vrot.slane %v63_v8, 1  ;;  %v431_v15 = vrot.slane %v63_v8, 2  ;;  %v615_v16 = vadd.f32 %v872_v3, %v575_v63 }
  0x14   :  { %v646_v17 = vadd.f32 %v614_v9, %v876_v5  ;;  %v231_v18 = vrot.slane %v65_v11, 1  ;;  %v233_v19 = vrot.slane %v64_v10, 1  ;;  %v234_v20 = vrot.slane %v66_v12, 1 }
  0x15   :  { %v677_v21 = vmul.f32 0.11111111, %v645_v13  ;;  %v432_v22 = vrot.slane %v65_v11, 2  ;;  %v434_v23 = vrot.slane %v64_v10, 2  ;;  %v435_v24 = vrot.slane %v66_v12, 2 }
  0x16   :  { %v678_v26 = vmul.f32 0.11111111, %v646_v17  ;;  %v232_v27 = vsel %vm211_vm0, %v230_v14, %v231_v18  ;;  %v235_v28 = vsel %vm211_vm0, %v233_v19, %v234_v20  ;;  %v616_v29 = vadd.f32 %v876_v5, %v576_v2 }
  0x17   :  { %v715_v31 = vadd.f32 %v874_v4, %v677_v21  ;;  %v378_v32 = vadd.f32 %v232_v27, %v63_v8  ;;  %v379_v33 = vadd.f32 %v235_v28, %v64_v10  ;;  %v433_v34 = vsel %vm412_vm1, %v431_v15, %v432_v22 }
  0x18   :  { %v716_v35 = vadd.f32 %v878_v7, %v678_v26  ;;  %v436_v36 = vsel %vm412_vm1, %v434_v23, %v435_v24  ;;  %v67_v37 = vunpack.c.l.bf16 %v19_v25  ;;  %v68_v38 = vunpack.c.h.bf16 %v19_v25 }
  0x19   :  { %v747_v39 = vmax.f32 %v715_v31, 0.0  ;;  %v579_v40 = vadd.f32 %v433_v34, %v378_v32  ;;  %v896_v41 = vadd.f32 %v436_v36, %v379_v33  ;;  %v69_v42 = vunpack.c.l.bf16 %v20_v30  ;;  %v23_v32 = vld [vmem:[%s1215_s0 + $0x60] sm:$0xff] }
  0x1a   :  { %v748_v43 = vmax.f32 %v716_v35, 0.0  ;;  %v70_v44 = vunpack.c.h.bf16 %v20_v30  ;;  %v236_v45 = vrot.slane %v67_v37, 1  ;;  %v239_v46 = vrot.slane %v68_v38, 1 }
  0x1b   :  { %v647_v48 = vadd.f32 %v615_v16, %v579_v40  ;;  %v648_v49 = vadd.f32 %v616_v29, %v896_v41  ;;  %v237_v50 = vrot.slane %v69_v42, 1  ;;  %v437_v51 = vrot.slane %v67_v37, 2 }
  0x1c   :  { %v779_v52 = vpack.c.bf16 %v748_v43, %v747_v39  ;;  %v240_v53 = vrot.slane %v70_v44, 1  ;;  %v438_v54 = vrot.slane %v69_v42, 2  ;;  %v440_v55 = vrot.slane %v68_v38, 2 }
  0x1d   :  { %v679_v56 = vmul.f32 0.11111111, %v647_v48  ;;  %v680_v57 = vmul.f32 0.11111111, %v648_v49  ;;  %v238_v58 = vsel %vm211_vm0, %v236_v45, %v237_v50  ;;  %v441_v59 = vrot.slane %v70_v44, 2 }
  0x1e   :  { %798 = vst.msk [vmem:[%s1217_s2] sm:$0xff] %vm900_vm4, %v779_v52  ;;  %v241_v61 = vsel %vm211_vm0, %v239_v46, %v240_v53  ;;  %v380_v62 = vadd.f32 %v238_v58, %v67_v37  ;;  %v439_v63 = vsel %vm412_vm1, %v437_v51, %v438_v54  ;;  %v617_v0 = vadd.f32 %v579_v40, %v872_v3  ;;  %v24_v37 = vld [vmem:[%s1215_s0 + $0x68] sm:$0x11] }
  0x1f   :  { %v717_v2 = vadd.f32 %v874_v4, %v679_v56  ;;  %v718_v6 = vadd.f32 %v878_v7, %v680_v57  ;;  %v381_v8 = vadd.f32 %v241_v61, %v68_v38  ;;  %v442_v9 = vsel %vm412_vm1, %v440_v55, %v441_v59 }
  0x20   :  { %v581_v10 = vadd.f32 %v439_v63, %v380_v62  ;;  %v618_v11 = vadd.f32 %v896_v41, %v876_v5  ;;  %v71_v12 = vunpack.c.l.bf16 %v21_v60  ;;  %v72_v13 = vunpack.c.h.bf16 %v21_v60  ;;  %v25_v63 = vld [vmem:[%s1215_s0 + $0x70] sm:$0xff] }
  0x21   :  { %v749_v14 = vmax.f32 %v717_v2, 0.0  ;;  %v750_v15 = vmax.f32 %v718_v6, 0.0  ;;  %v925_v3 = vadd.f32 %v442_v9, %v381_v8  ;;  %v73_v16 = vunpack.c.l.bf16 %v22_v1 }
  0x22   :  { %v649_v17 = vadd.f32 %v617_v0, %v581_v10  ;;  %v74_v18 = vunpack.c.h.bf16 %v22_v1  ;;  %v242_v19 = vrot.slane %v71_v12, 1  ;;  %v245_v20 = vrot.slane %v72_v13, 1 }
  0x23   :  { %v780_v21 = vpack.c.bf16 %v750_v15, %v749_v14  ;;  %v650_v22 = vadd.f32 %v618_v11, %v925_v3  ;;  %v243_v23 = vrot.slane %v73_v16, 1  ;;  %v443_v24 = vrot.slane %v71_v12, 2 }
  0x24   :  { %v681_v25 = vmul.f32 0.11111111, %v649_v17  ;;  %v246_v26 = vrot.slane %v74_v18, 1  ;;  %v444_v27 = vrot.slane %v73_v16, 2  ;;  %v446_v5 = vrot.slane %v72_v13, 2 }
  0x25   :  { %799 = vst.msk [vmem:[%s1217_s2 + $0x8] sm:$0xff] %vm900_vm4, %v780_v21  ;;  %v682_v28 = vmul.f32 0.11111111, %v650_v22  ;;  %v244_v29 = vsel %vm211_vm0, %v242_v19, %v243_v23  ;;  %v447_v30 = vrot.slane %v74_v18, 2  ;;  %v619_v31 = vadd.f32 %v581_v10, %v579_v40 }
  0x26   :  { %v719_v33 = vadd.f32 %v874_v4, %v681_v25  ;;  %v247_v34 = vsel %vm211_vm0, %v245_v20, %v246_v26  ;;  %v382_v35 = vadd.f32 %v244_v29, %v71_v12  ;;  %v445_v36 = vsel %vm412_vm1, %v443_v24, %v444_v27 }
  0x27   :  { %v720_v38 = vadd.f32 %v878_v7, %v682_v28  ;;  %v383_v39 = vadd.f32 %v247_v34, %v72_v13  ;;  %v448_v40 = vsel %vm412_vm1, %v446_v5, %v447_v30  ;;  %v620_v42 = vadd.f32 %v925_v3, %v896_v41  ;;  %v26_v13 = vld [vmem:[%s1215_s0 + $0x78] sm:$0x11] }
  0x28   :  { %v751_v43 = vmax.f32 %v719_v33, 0.0  ;;  %v583_v44 = vadd.f32 %v445_v36, %v382_v35  ;;  %v75_v45 = vunpack.c.l.bf16 %v23_v32  ;;  %v76_v46 = vunpack.c.h.bf16 %v23_v32 }
  0x29   :  { %v752_v48 = vmax.f32 %v720_v38, 0.0  ;;  %v947_v49 = vadd.f32 %v448_v40, %v383_v39  ;;  %v77_v50 = vunpack.c.l.bf16 %v24_v37  ;;  %v78_v51 = vunpack.c.h.bf16 %v24_v37 }
  0x2a   :  { %v651_v52 = vadd.f32 %v619_v31, %v583_v44  ;;  %v248_v53 = vrot.slane %v75_v45, 1  ;;  %v251_v54 = vrot.slane %v76_v46, 1  ;;  %v449_v55 = vrot.slane %v75_v45, 2 }
  0x2b   :  { %v781_v56 = vpack.c.bf16 %v752_v48, %v751_v43  ;;  %v652_v57 = vadd.f32 %v620_v42, %v947_v49  ;;  %v249_v58 = vrot.slane %v77_v50, 1  ;;  %v252_v59 = vrot.slane %v78_v51, 1 }
  0x2c   :  { %v683_v60 = vmul.f32 0.11111111, %v651_v52  ;;  %v450_v41 = vrot.slane %v77_v50, 2  ;;  %v452_v61 = vrot.slane %v76_v46, 2  ;;  %v453_v62 = vrot.slane %v78_v51, 2 }
  0x2d   :  { %800 = vst.msk [vmem:[%s1217_s2 + $0x10] sm:$0xff] %vm900_vm4, %v781_v56  ;;  %v684_v0 = vmul.f32 0.11111111, %v652_v57  ;;  %v250_v1 = vsel %vm211_vm0, %v248_v53, %v249_v58  ;;  %v253_v2 = vsel %vm211_vm0, %v251_v54, %v252_v59  ;;  %v621_v6 = vadd.f32 %v583_v44, %v581_v10 }
  0x2e   :  { %v721_v8 = vadd.f32 %v874_v4, %v683_v60  ;;  %v384_v9 = vadd.f32 %v250_v1, %v75_v45  ;;  %v385_v11 = vadd.f32 %v253_v2, %v76_v46  ;;  %v451_v12 = vsel %vm412_vm1, %v449_v55, %v450_v41  ;;  %v28_v46 = vld [vmem:[%s1215_s0 + $0x88] sm:$0x11] }
  0x2f   :  { %v722_v14 = vadd.f32 %v878_v7, %v684_v0  ;;  %v454_v15 = vsel %vm412_vm1, %v452_v61, %v453_v62  ;;  %v622_v16 = vadd.f32 %v947_v49, %v925_v3  ;;  %v79_v17 = vunpack.c.l.bf16 %v25_v63  ;;  %v27_v3 = vld [vmem:[%s1215_s0 + $0x80] sm:$0xff] }
  0x30   :  { %v753_v18 = vmax.f32 %v721_v8, 0.0  ;;  %v585_v10 = vadd.f32 %v451_v12, %v384_v9  ;;  %v586_v19 = vadd.f32 %v454_v15, %v385_v11  ;;  %v80_v20 = vunpack.c.h.bf16 %v25_v63  ;;  %v29_v63 = vld [vmem:[%s1215_s0 + $0x90] sm:$0xff] }
  0x31   :  { %v754_v21 = vmax.f32 %v722_v14, 0.0  ;;  %v81_v22 = vunpack.c.l.bf16 %v26_v13  ;;  %v82_v23 = vunpack.c.h.bf16 %v26_v13  ;;  %v254_v24 = vrot.slane %v79_v17, 1 }
  0x32   :  { %v653_v25 = vadd.f32 %v621_v6, %v585_v10  ;;  %v654_v26 = vadd.f32 %v622_v16, %v586_v19  ;;  %v257_v27 = vrot.slane %v80_v20, 1  ;;  %v455_v5 = vrot.slane %v79_v17, 2  ;;  %v30_v6 = vld [vmem:[%s1215_s0 + $0x98] sm:$0x11] }
  0x33   :  { %v782_v28 = vpack.c.bf16 %v754_v21, %v753_v18  ;;  %v255_v29 = vrot.slane %v81_v22, 1  ;;  %v258_v30 = vrot.slane %v82_v23, 1  ;;  %v456_v31 = vrot.slane %v81_v22, 2 }
  0x34   :  { %v685_v32 = vmul.f32 0.11111111, %v653_v25  ;;  %v686_v33 = vmul.f32 0.11111111, %v654_v26  ;;  %v458_v34 = vrot.slane %v80_v20, 2  ;;  %v459_v35 = vrot.slane %v82_v23, 2 }
  0x35   :  { %801 = vst.msk [vmem:[%s1217_s2 + $0x18] sm:$0xff] %vm900_vm4, %v782_v28  ;;  %v256_v36 = vsel %vm211_vm0, %v254_v24, %v255_v29  ;;  %v259_v37 = vsel %vm211_vm0, %v257_v27, %v258_v30  ;;  %v457_v38 = vsel %vm412_vm1, %v455_v5, %v456_v31  ;;  %v623_v39 = vadd.f32 %v585_v10, %v583_v44 }
  0x36   :  { %v723_v40 = vadd.f32 %v874_v4, %v685_v32  ;;  %v724_v42 = vadd.f32 %v878_v7, %v686_v33  ;;  %v386_v43 = vadd.f32 %v256_v36, %v79_v17  ;;  %v387_v45 = vadd.f32 %v259_v37, %v80_v20 }
  0x37   :  { %v460_v48 = vsel %vm412_vm1, %v458_v34, %v459_v35  ;;  %v624_v50 = vadd.f32 %v586_v19, %v947_v49  ;;  %v83_v51 = vunpack.c.l.bf16 %v27_v3  ;;  %v84_v52 = vunpack.c.h.bf16 %v27_v3 }
  0x38   :  { %v755_v53 = vmax.f32 %v723_v40, 0.0  ;;  %v756_v54 = vmax.f32 %v724_v42, 0.0  ;;  %v587_v55 = vadd.f32 %v457_v38, %v386_v43  ;;  %v588_v44 = vadd.f32 %v460_v48, %v387_v45  ;;  %v31_v38 = vld [vmem:[%s1215_s0 + $0xa0] sm:$0xff] }
  0x39   :  { %v85_v56 = vunpack.c.l.bf16 %v28_v46  ;;  %v86_v57 = vunpack.c.h.bf16 %v28_v46  ;;  %v260_v58 = vrot.slane %v83_v51, 1  ;;  %v263_v59 = vrot.slane %v84_v52, 1 }
  0x3a   :  { %v783_v60 = vpack.c.bf16 %v756_v54, %v755_v53  ;;  %v655_v41 = vadd.f32 %v623_v39, %v587_v55  ;;  %v656_v61 = vadd.f32 %v624_v50, %v588_v44  ;;  %v461_v62 = vrot.slane %v83_v51, 2  ;;  %v1011_v39 = vld [vmem:[%s1215_s0 + $0xa8] sm:$0x11] }
  0x3b   :  { %v261_v0 = vrot.slane %v85_v56, 1  ;;  %v264_v49 = vrot.slane %v86_v57, 1  ;;  %v462_v1 = vrot.slane %v85_v56, 2  ;;  %v464_v2 = vrot.slane %v84_v52, 2 }
  0x3c   :  { %802 = vst.msk [vmem:[%s1217_s2 + $0x20] sm:$0xff] %vm900_vm4, %v783_v60  ;;  %v687_v8 = vmul.f32 0.11111111, %v655_v41  ;;  %v688_v9 = vmul.f32 0.11111111, %v656_v61  ;;  %v465_v11 = vrot.slane %v86_v57, 2  ;;  %v625_v12 = vadd.f32 %v587_v55, %v585_v10 }
  0x3d   :  { %v262_v13 = vsel %vm211_vm0, %v260_v58, %v261_v0  ;;  %v265_v14 = vsel %vm211_vm0, %v263_v59, %v264_v49  ;;  %v463_v15 = vsel %vm412_vm1, %v461_v62, %v462_v1  ;;  %v626_v16 = vadd.f32 %v588_v44, %v586_v19  ;;  %v33_v57 = vld [vmem:[%s1215_s0 + $0xb0] sm:$0xff]  ;;  %v1029_v58 = vld [vmem:[%s1215_s0 + $0xb8] sm:$0x11]  ;;  %v1040_v0 = vld [vmem:[%s1215_s0 + $0xc8] sm:$0x11] }
  0x3e   :  { %v725_v17 = vadd.f32 %v874_v4, %v687_v8  ;;  %v726_v18 = vadd.f32 %v878_v7, %v688_v9  ;;  %v388_v20 = vadd.f32 %v262_v13, %v83_v51  ;;  %v389_v21 = vadd.f32 %v265_v14, %v84_v52 }
  0x3f   :  { %v466_v22 = vsel %vm412_vm1, %v464_v2, %v465_v11  ;;  %v87_v23 = vunpack.c.l.bf16 %v29_v63  ;;  %v88_v24 = vunpack.c.h.bf16 %v29_v63  ;;  %v89_v25 = vunpack.c.l.bf16 %v30_v6 }
  0x40   :  { %v757_v26 = vmax.f32 %v725_v17, 0.0  ;;  %v758_v10 = vmax.f32 %v726_v18, 0.0  ;;  %v589_v27 = vadd.f32 %v463_v15, %v388_v20  ;;  %v590_v5 = vadd.f32 %v466_v22, %v389_v21 }
  0x41   :  { %v90_v28 = vunpack.c.h.bf16 %v30_v6  ;;  %v266_v29 = vrot.slane %v87_v23, 1  ;;  %v267_v30 = vrot.slane %v89_v25, 1  ;;  %v269_v31 = vrot.slane %v88_v24, 1 }
  0x42   :  { %v784_v19 = vpack.c.bf16 %v758_v10, %v757_v26  ;;  %v657_v3 = vadd.f32 %v625_v12, %v589_v27  ;;  %v658_v32 = vadd.f32 %v626_v16, %v590_v5  ;;  %v467_v33 = vrot.slane %v87_v23, 2 }
  0x43   :  { %v268_v34 = vsel %vm211_vm0, %v266_v29, %v267_v30  ;;  %v270_v35 = vrot.slane %v90_v28, 1  ;;  %v468_v36 = vrot.slane %v89_v25, 2  ;;  %v470_v37 = vrot.slane %v88_v24, 2 }
  0x44   :  { %803 = vst.msk [vmem:[%s1217_s2 + $0x28] sm:$0xff] %vm900_vm4, %v784_v19  ;;  %v689_v40 = vmul.f32 0.11111111, %v657_v3  ;;  %v690_v42 = vmul.f32 0.11111111, %v658_v32  ;;  %v390_v43 = vadd.f32 %v268_v34, %v87_v23  ;;  %v471_v45 = vrot.slane %v90_v28, 2 }
  0x45   :  { %v271_v46 = vsel %vm211_vm0, %v269_v31, %v270_v35  ;;  %v469_v48 = vsel %vm412_vm1, %v467_v33, %v468_v36  ;;  %v627_v50 = vadd.f32 %v589_v27, %v587_v55  ;;  %v628_v51 = vadd.f32 %v590_v5, %v588_v44  ;;  %v35_v55 = vld [vmem:[%s1215_s0 + $0xc0] sm:$0xff] }
  0x46   :  { %v727_v52 = vadd.f32 %v874_v4, %v689_v40  ;;  %v728_v53 = vadd.f32 %v878_v7, %v690_v42  ;;  %v391_v54 = vadd.f32 %v271_v46, %v88_v24  ;;  %v472_v56 = vsel %vm412_vm1, %v470_v37, %v471_v45 }
  0x47   :  { %v591_v59 = vadd.f32 %v469_v48, %v390_v43  ;;  %v91_v44 = vunpack.c.l.bf16 %v31_v38  ;;  %v1034_v60 = vunpack.c.h.bf16 %v31_v38  ;;  %v93_v41 = vunpack.c.l.bf16 %v1011_v39 }
  0x48   :  { %v759_v61 = vmax.f32 %v727_v52, 0.0  ;;  %v760_v62 = vmax.f32 %v728_v53, 0.0  ;;  %v592_v63 = vadd.f32 %v472_v56, %v391_v54  ;;  %v94_v49 = vunpack.c.h.bf16 %v1011_v39 }
  0x49   :  { %v659_v1 = vadd.f32 %v627_v50, %v591_v59  ;;  %v95_v2 = vunpack.c.l.bf16 %v33_v57  ;;  %v96_v6 = vunpack.c.h.bf16 %v33_v57  ;;  %v97_v8 = vunpack.c.l.bf16 %v1029_v58 }
  0x4a   :  { %v785_v9 = vpack.c.bf16 %v760_v62, %v759_v61  ;;  %v660_v11 = vadd.f32 %v628_v51, %v592_v63  ;;  %v98_v12 = vunpack.c.h.bf16 %v1029_v58  ;;  %v99_v13 = vunpack.c.l.bf16 %v35_v55  ;;  %v38_v62 = vld [vmem:[%s1215_s0 + $0xd8] sm:$0x11] }
  0x4b   :  { %v691_v14 = vmul.f32 0.11111111, %v659_v1  ;;  %v100_v15 = vunpack.c.h.bf16 %v35_v55  ;;  %v101_v16 = vunpack.c.l.bf16 %v1040_v0  ;;  %v102_v17 = vunpack.c.h.bf16 %v1040_v0  ;;  %v37_v55 = vld [vmem:[%s1215_s0 + $0xd0] sm:$0xff] }
  0x4c   :  { %804 = vst.msk [vmem:[%s1217_s2 + $0x30] sm:$0xff] %vm900_vm4, %v785_v9  ;;  %v692_v18 = vmul.f32 0.11111111, %v660_v11  ;;  %v272_v20 = vrot.slane %v91_v44, 1  ;;  %v273_v21 = vrot.slane %v93_v41, 1  ;;  %v275_v22 = vrot.slane %v1034_v60, 1 }
  0x4d   :  { %v729_v23 = vadd.f32 %v874_v4, %v691_v14  ;;  %v276_v24 = vrot.slane %v94_v49, 1  ;;  %v278_v25 = vrot.slane %v95_v2, 1  ;;  %v279_v26 = vrot.slane %v97_v8, 1 }
  0x4e   :  { %v730_v10 = vadd.f32 %v878_v7, %v692_v18  ;;  %v274_v27 = vsel %vm211_vm0, %v272_v20, %v273_v21  ;;  %v281_v5 = vrot.slane %v96_v6, 1  ;;  %v282_v28 = vrot.slane %v98_v12, 1 }
  0x4f   :  { %v761_v29 = vmax.f32 %v729_v23, 0.0  ;;  %v277_v30 = vsel %vm211_vm0, %v275_v22, %v276_v24  ;;  %v280_v31 = vsel %vm211_vm0, %v278_v25, %v279_v26  ;;  %v284_v19 = vrot.slane %v99_v13, 1 }
  0x50   :  { %v762_v3 = vmax.f32 %v730_v10, 0.0  ;;  %v283_v32 = vsel %vm211_vm0, %v281_v5, %v282_v28  ;;  %v285_v33 = vrot.slane %v101_v16, 1  ;;  %v287_v34 = vrot.slane %v100_v15, 1 }
  0x51   :  { %v288_v35 = vrot.slane %v102_v17, 1  ;;  %v392_v36 = vadd.f32 %v274_v27, %v91_v44  ;;  %v393_v37 = vadd.f32 %v277_v30, %v1034_v60  ;;  %v394_v38 = vadd.f32 %v280_v31, %v95_v2  ;;  %v39_v30 = vld [vmem:[%s1215_s0 + $0xe0] sm:$0xff] }
  0x52   :  { %v786_v39 = vpack.c.bf16 %v762_v3, %v761_v29  ;;  %v286_v40 = vsel %vm211_vm0, %v284_v19, %v285_v33  ;;  %v395_v42 = vadd.f32 %v283_v32, %v96_v6  ;;  %v473_v43 = vrot.slane %v91_v44, 2  ;;  %v40_v33 = vld [vmem:[%s1215_s0 + $0xe8] sm:$0x11] }
  0x53   :  { %v289_v45 = vsel %vm211_vm0, %v287_v34, %v288_v35  ;;  %v396_v46 = vadd.f32 %v286_v40, %v99_v13  ;;  %v474_v48 = vrot.slane %v93_v41, 2  ;;  %v476_v50 = vrot.slane %v1034_v60, 2 }
  0x54   :  { %805 = vst.msk [vmem:[%s1217_s2 + $0x38] sm:$0xff] %vm900_vm4, %v786_v39  ;;  %v397_v51 = vadd.f32 %v289_v45, %v100_v15  ;;  %v477_v52 = vrot.slane %v94_v49, 2  ;;  %v479_v53 = vrot.slane %v95_v2, 2  ;;  %v480_v54 = vrot.slane %v97_v8, 2 }
  0x55   :  { %v475_v56 = vsel %vm412_vm1, %v473_v43, %v474_v48  ;;  %v482_v57 = vrot.slane %v96_v6, 2  ;;  %v483_v58 = vrot.slane %v98_v12, 2  ;;  %v485_v59 = vrot.slane %v99_v13, 2 }
  0x56   :  { %v478_v44 = vsel %vm412_vm1, %v476_v50, %v477_v52  ;;  %v481_v60 = vsel %vm412_vm1, %v479_v53, %v480_v54  ;;  %v486_v41 = vrot.slane %v101_v16, 2  ;;  %v488_v61 = vrot.slane %v100_v15, 2 }
  0x57   :  { %v484_v63 = vsel %vm412_vm1, %v482_v57, %v483_v58  ;;  %v489_v0 = vrot.slane %v102_v17, 2  ;;  %v593_v49 = vadd.f32 %v475_v56, %v392_v36  ;;  %v594_v1 = vadd.f32 %v478_v44, %v393_v37 }
  0x58   :  { %v487_v2 = vsel %vm412_vm1, %v485_v59, %v486_v41  ;;  %v595_v6 = vadd.f32 %v481_v60, %v394_v38  ;;  %v596_v8 = vadd.f32 %v484_v63, %v395_v42  ;;  %v103_v9 = vunpack.c.l.bf16 %v37_v55 }
  0x59   :  { %v490_v11 = vsel %vm412_vm1, %v488_v61, %v489_v0  ;;  %v597_v12 = vadd.f32 %v487_v2, %v396_v46  ;;  %v104_v13 = vunpack.c.h.bf16 %v37_v55  ;;  %v105_v14 = vunpack.c.l.bf16 %v38_v62  ;;  %v41_v0 = vld [vmem:[%s1215_s0 + $0xf0] sm:$0xff] }
  0x5a   :  { %v598_v15 = vadd.f32 %v490_v11, %v397_v51  ;;  %v629_v16 = vadd.f32 %v595_v6, %v593_v49  ;;  %v630_v18 = vadd.f32 %v596_v8, %v594_v1  ;;  %v106_v20 = vunpack.c.h.bf16 %v38_v62 }
  0x5b   :  { %v290_v21 = vrot.slane %v103_v9, 1  ;;  %v291_v22 = vrot.slane %v105_v14, 1  ;;  %v293_v23 = vrot.slane %v104_v13, 1  ;;  %v491_v17 = vrot.slane %v103_v9, 2 }
  0x5c   :  { %v661_v24 = vadd.f32 %v629_v16, %v597_v12  ;;  %v662_v25 = vadd.f32 %v630_v18, %v598_v15  ;;  %v294_v26 = vrot.slane %v106_v20, 1  ;;  %v492_v10 = vrot.slane %v105_v14, 2 }
  0x5d   :  { %v292_v27 = vsel %vm211_vm0, %v290_v21, %v291_v22  ;;  %v494_v5 = vrot.slane %v104_v13, 2  ;;  %v495_v28 = vrot.slane %v106_v20, 2  ;;  %v631_v29 = vadd.f32 %v597_v12, %v595_v6 }
  0x5e   :  { %v693_v31 = vmul.f32 0.11111111, %v661_v24  ;;  %v694_v19 = vmul.f32 0.11111111, %v662_v25  ;;  %v295_v3 = vsel %vm211_vm0, %v293_v23, %v294_v26  ;;  %v398_v32 = vadd.f32 %v292_v27, %v103_v9 }
  0x5f   :  { %v399_v34 = vadd.f32 %v295_v3, %v104_v13  ;;  %v493_v35 = vsel %vm412_vm1, %v491_v17, %v492_v10  ;;  %v496_v36 = vsel %vm412_vm1, %v494_v5, %v495_v28  ;;  %v632_v37 = vadd.f32 %v598_v15, %v596_v8  ;;  %v42_v8 = vld [vmem:[%s1215_s0 + $0xf8] sm:$0x11]  ;;  %v43_v3 = vld [vmem:[%s1215_s0 + $0x100] sm:$0xff] }
  0x60   :  { %v731_v38 = vadd.f32 %v874_v4, %v693_v31  ;;  %v732_v39 = vadd.f32 %v878_v7, %v694_v19  ;;  %v599_v40 = vadd.f32 %v493_v35, %v398_v32  ;;  %v107_v42 = vunpack.c.l.bf16 %v39_v30 }
  0x61   :  { %v1092_v43 = vadd.f32 %v496_v36, %v399_v34  ;;  %v108_v45 = vunpack.c.h.bf16 %v39_v30  ;;  %v109_v46 = vunpack.c.l.bf16 %v40_v33  ;;  %v110_v48 = vunpack.c.h.bf16 %v40_v33 }
  0x62   :  { %v763_v50 = vmax.f32 %v731_v38, 0.0  ;;  %v764_v51 = vmax.f32 %v732_v39, 0.0  ;;  %v663_v52 = vadd.f32 %v631_v29, %v599_v40  ;;  %v296_v53 = vrot.slane %v107_v42, 1 }
  0x63   :  { %v664_v54 = vadd.f32 %v632_v37, %v1092_v43  ;;  %v297_v56 = vrot.slane %v109_v46, 1  ;;  %v299_v57 = vrot.slane %v108_v45, 1  ;;  %v300_v58 = vrot.slane %v110_v48, 1 }
  0x64   :  { %v787_v59 = vpack.c.bf16 %v764_v51, %v763_v50  ;;  %v695_v55 = vmul.f32 0.11111111, %v663_v52  ;;  %v497_v44 = vrot.slane %v107_v42, 2  ;;  %v498_v60 = vrot.slane %v109_v46, 2 }
  0x65   :  { %v696_v41 = vmul.f32 0.11111111, %v664_v54  ;;  %v298_v61 = vsel %vm211_vm0, %v296_v53, %v297_v56  ;;  %v301_v62 = vsel %vm211_vm0, %v299_v57, %v300_v58  ;;  %v500_v63 = vrot.slane %v108_v45, 2 }
  0x66   :  { %806 = vst.msk [vmem:[%s1217_s2 + $0x40] sm:$0xff] %vm900_vm4, %v787_v59  ;;  %v733_v49 = vadd.f32 %v874_v4, %v695_v55  ;;  %v400_v1 = vadd.f32 %v298_v61, %v107_v42  ;;  %v401_v2 = vadd.f32 %v301_v62, %v108_v45  ;;  %v499_v6 = vsel %vm412_vm1, %v497_v44, %v498_v60  ;;  %v44_v42 = vld [vmem:[%s1215_s0 + $0x108] sm:$0x11] }
  0x67   :  { %v734_v9 = vadd.f32 %v878_v7, %v696_v41  ;;  %v501_v11 = vrot.slane %v110_v48, 2  ;;  %v633_v13 = vadd.f32 %v599_v40, %v597_v12  ;;  %v634_v14 = vadd.f32 %v1092_v43, %v598_v15 }
  0x68   :  { %v765_v16 = vmax.f32 %v733_v49, 0.0  ;;  %v1112_v18 = vadd.f32 %v499_v6, %v400_v1  ;;  %v111_v20 = vunpack.c.l.bf16 %v41_v0  ;;  %v112_v21 = vunpack.c.h.bf16 %v41_v0 }
  0x69   :  { %v766_v22 = vmax.f32 %v734_v9, 0.0  ;;  %v502_v23 = vsel %vm412_vm1, %v500_v63, %v501_v11  ;;  %v113_v17 = vunpack.c.l.bf16 %v42_v8  ;;  %v114_v24 = vunpack.c.h.bf16 %v42_v8 }
  0x6a   :  { %v602_v25 = vadd.f32 %v502_v23, %v401_v2  ;;  %v665_v26 = vadd.f32 %v633_v13, %v1112_v18  ;;  %v302_v10 = vrot.slane %v111_v20, 1  ;;  %v305_v27 = vrot.slane %v112_v21, 1  ;;  %v45_v2 = vld [vmem:[%s1215_s0 + $0x110] sm:$0xff] }
  0x6b   :  { %v788_v5 = vpack.c.bf16 %v766_v22, %v765_v16  ;;  %v303_v28 = vrot.slane %v113_v17, 1  ;;  %v306_v12 = vrot.slane %v114_v24, 1  ;;  %v503_v29 = vrot.slane %v111_v20, 2 }
  0x6c   :  { %v666_v15 = vadd.f32 %v634_v14, %v602_v25  ;;  %v697_v30 = vmul.f32 0.11111111, %v665_v26  ;;  %v504_v31 = vrot.slane %v113_v17, 2  ;;  %v506_v19 = vrot.slane %v112_v21, 2 }
  0x6d   :  { %807 = vst.msk [vmem:[%s1217_s2 + $0x48] sm:$0xff] %vm900_vm4, %v788_v5  ;;  %v304_v32 = vsel %vm211_vm0, %v302_v10, %v303_v28  ;;  %v307_v33 = vsel %vm211_vm0, %v305_v27, %v306_v12  ;;  %v507_v34 = vrot.slane %v114_v24, 2  ;;  %v635_v35 = vadd.f32 %v1112_v18, %v599_v40 }
  0x6e   :  { %v698_v36 = vmul.f32 0.11111111, %v666_v15  ;;  %v735_v37 = vadd.f32 %v874_v4, %v697_v30  ;;  %v402_v38 = vadd.f32 %v304_v32, %v111_v20  ;;  %v403_v39 = vadd.f32 %v307_v33, %v112_v21  ;;  %v46_v21 = vld [vmem:[%s1215_s0 + $0x118] sm:$0x11] }
  0x6f   :  { %v505_v45 = vsel %vm412_vm1, %v503_v29, %v504_v31  ;;  %v508_v46 = vsel %vm412_vm1, %v506_v19, %v507_v34  ;;  %v636_v48 = vadd.f32 %v602_v25, %v1092_v43  ;;  %v115_v50 = vunpack.c.l.bf16 %v43_v3 }
  0x70   :  { %v736_v51 = vadd.f32 %v878_v7, %v698_v36  ;;  %v767_v52 = vmax.f32 %v735_v37, 0.0  ;;  %v603_v40 = vadd.f32 %v505_v45, %v402_v38  ;;  %v1135_v53 = vadd.f32 %v508_v46, %v403_v39 }
  0x71   :  { %v116_v54 = vunpack.c.h.bf16 %v43_v3  ;;  %v117_v56 = vunpack.c.l.bf16 %v44_v42  ;;  %v118_v57 = vunpack.c.h.bf16 %v44_v42  ;;  %v308_v58 = vrot.slane %v115_v50, 1 }
  0x72   :  { %v768_v59 = vmax.f32 %v736_v51, 0.0  ;;  %v667_v55 = vadd.f32 %v635_v35, %v603_v40  ;;  %v668_v44 = vadd.f32 %v636_v48, %v1135_v53  ;;  %v509_v60 = vrot.slane %v115_v50, 2 }
  0x73   :  { %v309_v41 = vrot.slane %v117_v56, 1  ;;  %v311_v61 = vrot.slane %v116_v54, 1  ;;  %v312_v62 = vrot.slane %v118_v57, 1  ;;  %v510_v43 = vrot.slane %v117_v56, 2 }
  0x74   :  { %v789_v63 = vpack.c.bf16 %v768_v59, %v767_v52  ;;  %v699_v0 = vmul.f32 0.11111111, %v667_v55  ;;  %v700_v49 = vmul.f32 0.11111111, %v668_v44  ;;  %v512_v1 = vrot.slane %v116_v54, 2 }
  0x75   :  { %v310_v6 = vsel %vm211_vm0, %v308_v58, %v309_v41  ;;  %v313_v8 = vsel %vm211_vm0, %v311_v61, %v312_v62  ;;  %v511_v9 = vsel %vm412_vm1, %v509_v60, %v510_v43  ;;  %v513_v11 = vrot.slane %v118_v57, 2 }
  0x76   :  { %808 = vst.msk [vmem:[%s1217_s2 + $0x50] sm:$0xff] %vm900_vm4, %v789_v63  ;;  %v737_v13 = vadd.f32 %v874_v4, %v699_v0  ;;  %v738_v14 = vadd.f32 %v878_v7, %v700_v49  ;;  %v404_v16 = vadd.f32 %v310_v6, %v115_v50  ;;  %v405_v20 = vadd.f32 %v313_v8, %v116_v54  ;;  %v48_v54 = vld [vmem:[%s1215_s0 + $0x128] sm:$0x11] }
  0x77   :  { %v514_v22 = vsel %vm412_vm1, %v512_v1, %v513_v11  ;;  %v637_v23 = vadd.f32 %v603_v40, %v1112_v18  ;;  %v638_v17 = vadd.f32 %v1135_v53, %v602_v25  ;;  %v119_v24 = vunpack.c.l.bf16 %v45_v2  ;;  %v47_v18 = vld [vmem:[%s1215_s0 + $0x120] sm:$0xff]  ;;  %v50_v11 = vld [vmem:[%s1215_s0 + $0x138] sm:$0x11] }
  0x78   :  { %v769_v26 = vmax.f32 %v737_v13, 0.0  ;;  %v770_v10 = vmax.f32 %v738_v14, 0.0  ;;  %v605_v27 = vadd.f32 %v511_v9, %v404_v16  ;;  %v606_v5 = vadd.f32 %v514_v22, %v405_v20 }
  0x79   :  { %v120_v28 = vunpack.c.h.bf16 %v45_v2  ;;  %v121_v12 = vunpack.c.l.bf16 %v46_v21  ;;  %v122_v29 = vunpack.c.h.bf16 %v46_v21  ;;  %v314_v15 = vrot.slane %v119_v24, 1  ;;  %v49_v2 = vld [vmem:[%s1215_s0 + $0x130] sm:$0xff] }
  0x7a   :  { %v790_v30 = vpack.c.bf16 %v770_v10, %v769_v26  ;;  %v669_v31 = vadd.f32 %v637_v23, %v605_v27  ;;  %v670_v19 = vadd.f32 %v638_v17, %v606_v5  ;;  %v515_v3 = vrot.slane %v119_v24, 2 }
  0x7b   :  { %v315_v32 = vrot.slane %v121_v12, 1  ;;  %v317_v33 = vrot.slane %v120_v28, 1  ;;  %v318_v34 = vrot.slane %v122_v29, 1  ;;  %v516_v35 = vrot.slane %v121_v12, 2 }
  0x7c   :  { %809 = vst.msk [vmem:[%s1217_s2 + $0x58] sm:$0xff] %vm900_vm4, %v790_v30  ;;  %v701_v25 = vmul.f32 0.11111111, %v669_v31  ;;  %v702_v36 = vmul.f32 0.11111111, %v670_v19  ;;  %v518_v37 = vrot.slane %v120_v28, 2  ;;  %v639_v38 = vadd.f32 %v605_v27, %v603_v40 }
  0x7d   :  { %v316_v39 = vsel %vm211_vm0, %v314_v15, %v315_v32  ;;  %v319_v42 = vsel %vm211_vm0, %v317_v33, %v318_v34  ;;  %v517_v45 = vsel %vm412_vm1, %v515_v3, %v516_v35  ;;  %v519_v46 = vrot.slane %v122_v29, 2 }
  0x7e   :  { %v739_v48 = vadd.f32 %v874_v4, %v701_v25  ;;  %v740_v50 = vadd.f32 %v878_v7, %v702_v36  ;;  %v406_v51 = vadd.f32 %v316_v39, %v119_v24  ;;  %v407_v52 = vadd.f32 %v319_v42, %v120_v28 }
  0x7f   :  { %v520_v56 = vsel %vm412_vm1, %v518_v37, %v519_v46  ;;  %v640_v40 = vadd.f32 %v606_v5, %v1135_v53  ;;  %v123_v57 = vunpack.c.l.bf16 %v47_v18  ;;  %v124_v58 = vunpack.c.h.bf16 %v47_v18 }
  0x80   :  { %v771_v59 = vmax.f32 %v739_v48, 0.0  ;;  %v772_v55 = vmax.f32 %v740_v50, 0.0  ;;  %v607_v44 = vadd.f32 %v517_v45, %v406_v51  ;;  %v608_v60 = vadd.f32 %v520_v56, %v407_v52 }
  0x81   :  { %v125_v41 = vunpack.c.l.bf16 %v48_v54  ;;  %v126_v61 = vunpack.c.h.bf16 %v48_v54  ;;  %v320_v62 = vrot.slane %v123_v57, 1  ;;  %v323_v43 = vrot.slane %v124_v58, 1 }
  0x82   :  { %v791_v63 = vpack.c.bf16 %v772_v55, %v771_v59  ;;  %v671_v0 = vadd.f32 %v639_v38, %v607_v44  ;;  %v672_v49 = vadd.f32 %v640_v40, %v608_v60  ;;  %v521_v1 = vrot.slane %v123_v57, 2 }
  0x83   :  { %v321_v6 = vrot.slane %v125_v41, 1  ;;  %v324_v53 = vrot.slane %v126_v61, 1  ;;  %v522_v8 = vrot.slane %v125_v41, 2  ;;  %v524_v9 = vrot.slane %v124_v58, 2 }
  0x84   :  { %810 = vst.msk [vmem:[%s1217_s2 + $0x60] sm:$0xff] %vm900_vm4, %v791_v63  ;;  %v703_v13 = vmul.f32 0.11111111, %v671_v0  ;;  %v704_v14 = vmul.f32 0.11111111, %v672_v49  ;;  %v525_v16 = vrot.slane %v126_v61, 2  ;;  %v641_v20 = vadd.f32 %v607_v44, %v605_v27 }
  0x85   :  { %v322_v21 = vsel %vm211_vm0, %v320_v62, %v321_v6  ;;  %v325_v22 = vsel %vm211_vm0, %v323_v43, %v324_v53  ;;  %v523_v23 = vsel %vm412_vm1, %v521_v1, %v522_v8  ;;  %v642_v17 = vadd.f32 %v608_v60, %v606_v5 }
  0x86   :  { %v741_v24 = vadd.f32 %v874_v4, %v703_v13  ;;  %v742_v26 = vadd.f32 %v878_v7, %v704_v14  ;;  %v408_v10 = vadd.f32 %v322_v21, %v123_v57  ;;  %v409_v28 = vadd.f32 %v325_v22, %v124_v58 }
  0x87   :  { %v526_v12 = vsel %vm412_vm1, %v524_v9, %v525_v16  ;;  %v127_v29 = vunpack.c.l.bf16 %v49_v2  ;;  %v128_v15 = vunpack.c.h.bf16 %v49_v2  ;;  %v129_v30 = vunpack.c.l.bf16 %v50_v11 }
  0x88   :  { %v773_v31 = vmax.f32 %v741_v24, 0.0  ;;  %v774_v27 = vmax.f32 %v742_v26, 0.0  ;;  %v609_v19 = vadd.f32 %v523_v23, %v408_v10  ;;  %v610_v3 = vadd.f32 %v526_v12, %v409_v28 }
  0x89   :  { %v130_v32 = vunpack.c.h.bf16 %v50_v11  ;;  %v326_v33 = vrot.slane %v127_v29, 1  ;;  %v327_v34 = vrot.slane %v129_v30, 1  ;;  %v329_v35 = vrot.slane %v128_v15, 1 }
  0x8a   :  { %v792_v5 = vpack.c.bf16 %v774_v27, %v773_v31  ;;  %v673_v18 = vadd.f32 %v641_v20, %v609_v19  ;;  %v674_v25 = vadd.f32 %v642_v17, %v610_v3  ;;  %v527_v36 = vrot.slane %v127_v29, 2 }
  0x8b   :  { %v328_v37 = vsel %vm211_vm0, %v326_v33, %v327_v34  ;;  %v330_v38 = vrot.slane %v130_v32, 1  ;;  %v528_v39 = vrot.slane %v129_v30, 2  ;;  %v530_v42 = vrot.slane %v128_v15, 2 }
  0x8c   :  { %811 = vst.msk [vmem:[%s1217_s2 + $0x68] sm:$0xff] %vm900_vm4, %v792_v5  ;;  %v705_v45 = vmul.f32 0.11111111, %v673_v18  ;;  %v706_v46 = vmul.f32 0.11111111, %v674_v25  ;;  %v410_v48 = vadd.f32 %v328_v37, %v127_v29  ;;  %v531_v50 = vrot.slane %v130_v32, 2 }
  0x8d   :  { %v331_v51 = vsel %vm211_vm0, %v329_v35, %v330_v38  ;;  %v529_v52 = vsel %vm412_vm1, %v527_v36, %v528_v39  ;;  %v643_v54 = vadd.f32 %v609_v19, %v607_v44  ;;  %v644_v56 = vadd.f32 %v610_v3, %v608_v60 }
  0x8e   :  { %v743_v40 = vadd.f32 %v874_v4, %v705_v45  ;;  %v744_v57 = vadd.f32 %v878_v7, %v706_v46  ;;  %v411_v58 = vadd.f32 %v331_v51, %v128_v15  ;;  %v532_v59 = vsel %vm412_vm1, %v530_v42, %v531_v50 }
  0x8f   :  { %v611_v55 = vadd.f32 %v529_v52, %v410_v48 }
  0x90   :  { %v775_v41 = vmax.f32 %v743_v40, 0.0  ;;  %v776_v61 = vmax.f32 %v744_v57, 0.0  ;;  %v612_v62 = vadd.f32 %v532_v59, %v411_v58 }
  0x91   :  { %v675_v43 = vadd.f32 %v643_v54, %v611_v55 }
  0x92   :  { %v793_v63 = vpack.c.bf16 %v776_v61, %v775_v41  ;;  %v676_v0 = vadd.f32 %v644_v56, %v612_v62 }
  0x93   :  { %v707_v49 = vmul.f32 0.11111111, %v675_v43 }
  0x94   :  { %812 = vst.msk [vmem:[%s1217_s2 + $0x70] sm:$0xff] %vm900_vm4, %v793_v63  ;;  %v708_v44 = vmul.f32 0.11111111, %v676_v0 }
  0x95   :  { %v745_v60 = vadd.f32 %v874_v4, %v707_v49 }
  0x96   :  { %v746_v1 = vadd.f32 %v878_v7, %v708_v44 }
  0x97   :  { %v777_v2 = vmax.f32 %v745_v60, 0.0 }
  0x98   :  { %v778_v6 = vmax.f32 %v746_v1, 0.0 }
  0x9a   :  { %v794_v53 = vpack.c.bf16 %v778_v6, %v777_v2 }
  0x9c   :  { %813 = vst.msk [vmem:[%s1217_s2 + $0x78] sm:$0xff] %vm900_vm4, %v794_v53 }

// kernel: inception_c_forward.5
= control target key start
LH: loop header
LB: loop body
LE: loop exit
PB: predicated region body
PF: predicated region fallthrough
CT: control target
= control target key end

     0   :  { %s2334_s18 = smov 0   ;;  %s3280_s0 = inlined_call_operand.vmem [shape: bf16[2,8,14,16], index: 0, kind: input, shape index: {}]   ;;  %s3281_s1 = inlined_call_operand.vmem [shape: bf16[7,16,16], index: 1, kind: input, shape index: {}]   ;;  %s3282_s2 = inlined_call_operand.vmem [shape: f32[1,16], index: 2, kind: input, shape index: {}]   ;;  %s3283_s3 = inlined_call_operand.vmem [shape: bf16[7,16,192], index: 3, kind: input, shape index: {}]   ;;  %s3284_s4 = inlined_call_operand.vmem [shape: f32[1,192], index: 4, kind: input, shape index: {}]   ;;  %s3285_s5 = inlined_call_operand.vmem [shape: bf16[2,8,8,192], index: 5, kind: output, shape index: {}]  }
   0x1 LB: > { %s1936_s19 = sadd.s32 4294967295, %s2301_s18   ;;  %p1940_p0 = scmp.ge.s32.totalorder %s2301_s18, 1  ;;  %s2301_s18 = sphi %s2334_s18, %s15_s18  }
   0x2   : > { %p187_p1 = scmp.lt.s32.totalorder %s2301_s18, 3 }
   0x4   : > { %p188_p2 = pnand %p1940_p0, %p187_p1 }
   0x6   : > { %191 = sbr.rel (%p188_p2) target bundleno = 644 (0x284), region = 40 }
   0xb   : > { %v2186_v0 = vld [vmem:[%s3281_s1 + $0x8] sm:$0xff]  ;;  %p215_p3 = scmp.lt.s32.totalorder %s1936_s19, 1  ;;  %v2187_v1 = vld [vmem:[%s3281_s1 + $0x10] sm:$0xff]  ;;  %v2185_v2 = vld [vmem:[%s3281_s1] sm:$0xff]  ;;  %vm244_vm0 = vsmask.f32 3328 }
   0xc   : > { %2270 = vmatpush.bf16.msra.mxu1 %v2186_v0  ;;  %2271 = vmatpush.bf16.msra.mxu2 %v2186_v0  ;;  %v2188_v3 = vld [vmem:[%s3281_s1 + $0x18] sm:$0xff]  ;;  %vm245_vm1 = vsmask.f32 7440  ;;  %vm380_vm2 = vcmask 130048   ;;  %vm497_vm4 = vcmask 1042432   ;;  %vm498_vm5 = vcmask 1046532  }
   0xd   : > { %s3331_s19 = smov (!%p215_p3, %s1936_s19), 1  ;;  %2272 = vmatpush.bf16.msra.mxu3 %v2186_v0  ;;  %400 = vmatpush.bf16.msra.mxu0 %v2186_v0  ;;  %vm2432_vm3 = vmor %vm244_vm0, %vm245_vm1  ;;  %vm602_vm7 = vsmask.f32 2304  ;;  %vm603_vm8 = vsmask.f32 6416  ;;  %vm755_vm10 = vcmask 1041408  }
   0xe   : > { %s2179_s28 = sshll.u32 %s3331_s19, 6  ;;  %vm2536_vm6 = vmor %vm497_vm4, %vm498_vm5  ;;  %vm756_vm11 = vcmask 1045508   ;;  %vm860_vm13 = vsmask.f32 1280  ;;  %vm861_vm14 = vsmask.f32 5392 }
   0xf   : > { %s2362_s6 = scalar_lea.vmem %s3280_s0, %s2179_s28  ;;  %vm2571_vm9 = vmor %vm602_vm7, %vm603_vm8  ;;  %vm997_vm0 = vcmask 1040384   ;;  %vm998_vm1 = vcmask 1044484   ;;  %vm1130_vm4 = vcmask 125952   ;;  %vm1871_vm5 = vcmask 523268   ;;  %s3201_s9 = scalar_lea.vmem %s3285_s5, %s2179_s28 }
  0x10   : > { %572 = vmatpush.bf16.msrb.mxu2 %v2187_v1  ;;  %467 = vmatpush.bf16.msrb.mxu1 %v2185_v2  ;;  %v2365_v4 = vld [vmem:[%s2362_s6 + $0x10] sm:$0xf]  ;;  %v2368_v5 = vld [vmem:[%s2362_s6 + $0x14] sm:$0x7]  ;;  %v2371_v6 = vld [vmem:[%s2362_s6 + $0x18] sm:$0xf] }
  0x11   : > { %725 = vmatpush.bf16.msrb.mxu3 %v2188_v3  ;;  %v2374_v7 = vld [vmem:[%s2362_s6 + $0x1c] sm:$0x7]  ;;  %v2377_v8 = vshrl.u32 %v2365_v4, 16  ;;  %v2380_v9 = vshll.u32 %v2365_v4, 16  ;;  %v2383_v10 = vshll.u32 %v2368_v5, 16  ;;  %v2386_v11 = vshrl.u32 %v2371_v6, 16  ;;  %vm2579_vm12 = vmor %vm755_vm10, %vm756_vm11 }
  0x12   : > { %v2389_v12 = vshll.u32 %v2371_v6, 16  ;;  %v2392_v13 = vshll.u32 %v2374_v7, 16  ;;  %v2395_v14 = vld [vmem:[%s2362_s6 + $0x20] sm:$0xf]  ;;  %v2398_v15 = vld [vmem:[%s2362_s6 + $0x24] sm:$0x7]  ;;  %vm2696_vm15 = vmor %vm860_vm13, %vm861_vm14 }
  0x13   : > { %3297 = vst [vmem:[#allocation3_spill] sm:$0xff] %v2383_v10  ;;  %v278_v16 = vrot.slane %v2377_v8, 4  ;;  %v281_v17 = vrot.slane %v2380_v9, 5  ;;  %v287_v18 = vrot.slane %v2383_v10, 5  ;;  %v292_v19 = vrot.slane %v2386_v11, 4  ;;  %v2190_v1 = vld [vmem:[%s3281_s1 + $0x28] sm:$0xff] }
  0x14   : > { %3298 = vst [vmem:[#allocation4_spill] sm:$0xff] %v2386_v11  ;;  %v2405_v20 = vld [vmem:[%s2362_s6 + $0x28] sm:$0xf]  ;;  %v295_v21 = vrot.slane %v2389_v12, 5  ;;  %v301_v22 = vrot.slane %v2392_v13, 5  ;;  %v2413_v24 = vshrl.u32 %v2395_v14, 16 }
  0x15   : > { %3299 = vst [vmem:[#allocation5_spill] sm:$0xff] %v2389_v12  ;;  %v2410_v23 = vld [vmem:[%s2362_s6 + $0x2c] sm:$0x7]  ;;  %v2416_v25 = vshll.u32 %v2395_v14, 16  ;;  %v282_v26 = vor.u32 %v281_v17, %v278_v16  ;;  %v2419_v27 = vshll.u32 %v2398_v15, 16  ;;  %v2422_v28 = vshrl.u32 %v2405_v20, 16 }
  0x16   : > { %3300 = vst [vmem:[#allocation6_spill] sm:$0xff] %v2392_v13  ;;  %v2425_v29 = vshll.u32 %v2405_v20, 16  ;;  %v2428_v30 = vld [vmem:[%s2362_s6 + $0x30] sm:$0xf]  ;;  %v296_v32 = vor.u32 %v295_v21, %v292_v19  ;;  %v306_v33 = vrot.slane %v2413_v24, 4  ;;  %v2439_v35 = vshll.u32 %v2410_v23, 16 }
  0x17   : > { %3301 = vst [vmem:[#allocation7_spill] sm:$0xff] %v2419_v27  ;;  %v309_v34 = vrot.slane %v2416_v25, 5  ;;  %v2442_v36 = vld [vmem:[%s2362_s6 + $0x34] sm:$0x7]  ;;  %v283_v37 = vrot.slane %v282_v26, 4  ;;  %v315_v38 = vrot.slane %v2419_v27, 5 }
  0x18   : > { %3304 = vst [vmem:[#allocation8_spill] sm:$0xff] %v2439_v35  ;;  %v320_v39 = vrot.slane %v2422_v28, 4  ;;  %v323_v40 = vrot.slane %v2425_v29, 5  ;;  %v297_v41 = vrot.slane %v296_v32, 4  ;;  %v329_v43 = vrot.slane %v2439_v35, 5  ;;  %v2189_v2 = vld [vmem:[%s3281_s1 + $0x20] sm:$0xff] }
  0x19   : > { %v310_v42 = vor.u32 %v309_v34, %v306_v33  ;;  %v2449_v44 = vshrl.u32 %v2428_v30, 16  ;;  %v288_v45 = vsel %vm2432_vm3, %v283_v37, %v287_v18  ;;  %v2454_v47 = vld [vmem:[%s2362_s6 + $0x38] sm:$0xf]  ;;  %v2457_v48 = vld [vmem:[%s2362_s6 + $0x3c] sm:$0x7]  ;;  %v2460_v49 = vshll.u32 %v2428_v30, 16  ;;  %830 = vmatpush.bf16.msrb.mxu0 %v2189_v2 }
  0x1a   : > { %v324_v46 = vor.u32 %v323_v40, %v320_v39  ;;  %v2463_v50 = vshll.u32 %v2442_v36, 16  ;;  %v302_v51 = vsel %vm2432_vm3, %v297_v41, %v301_v22  ;;  %v364_v52 = vunpack.c.l.b16 %v288_v45  ;;  %v2469_v55 = vld [vmem:[%s2362_s6] sm:$0xf]  ;;  %v2474_v60 = vld [vmem:[%s2362_s6 + $0x4] sm:$0x7]  ;;  %v2191_v39 = vld [vmem:[%s3281_s1 + $0x30] sm:$0xff] }
  0x1b   : > { %v311_v53 = vrot.slane %v310_v42, 4  ;;  %v334_v54 = vrot.slane %v2449_v44, 4  ;;  %v365_v56 = vunpack.c.l.b16 %v302_v51  ;;  %v337_v58 = vrot.slane %v2460_v49, 5  ;;  %v2496_v19 = vld [vmem:[%s2362_s6 + $0x8] sm:$0xf] }
  0x1c   : > { %v325_v57 = vrot.slane %v324_v46, 4  ;;  %v343_v59 = vrot.slane %v2463_v50, 5  ;;  %v2479_v62 = vshrl.u32 %v2454_v47, 16  ;;  %v2482_v63 = vshll.u32 %v2454_v47, 16  ;;  %v2515_v42 = vld [vmem:[%s2362_s6 + $0xc] sm:$0x7] }
  0x1d   : > { %v316_v61 = vsel %vm2432_vm3, %v311_v53, %v315_v38  ;;  %v2485_v0 = vshll.u32 %v2457_v48, 16  ;;  %v371_v3 = vpack.c.b16 %v365_v56, %v364_v52  ;;  %v338_v18 = vor.u32 %v337_v58, %v334_v54 }
  0x1e   : > { %v330_v16 = vsel %vm2432_vm3, %v325_v57, %v329_v43  ;;  %v366_v17 = vunpack.c.l.b16 %v316_v61  ;;  %v348_v22 = vrot.slane %v2479_v62, 4  ;;  %v351_v26 = vrot.slane %v2482_v63, 5 }
  0x1f   : > { %v367_v21 = vunpack.c.l.b16 %v330_v16  ;;  %v357_v32 = vrot.slane %v2485_v0, 5  ;;  %1952 = vmatmul.msk.bf16.vlgmr.msra.gmra.mxu1 %vm380_vm2, %v371_v3  ;;  %v339_v33 = vrot.slane %v338_v18, 4  ;;  %v2503_v34 = vshrl.u32 %v2469_v55, 16 }
  0x20   : > { %v2506_v37 = vshll.u32 %v2469_v55, 16  ;;  %v2509_v38 = vshll.u32 %v2474_v60, 16  ;;  %v352_v41 = vor.u32 %v351_v26, %v348_v22  ;;  %v2518_v43 = vshrl.u32 %v2496_v19, 16  ;;  %967 = vmatpush.bf16.msra.mxu1 %v2190_v1 }
  0x21   : > { %v372_v40 = vpack.c.b16 %v367_v21, %v366_v17  ;;  %v2521_v45 = vshll.u32 %v2496_v19, 16  ;;  %v344_v46 = vsel %vm2432_vm3, %v339_v33, %v343_v59  ;;  %v250_v51 = vrot.slane %v2503_v34, 4 }
  0x22   : > { %v253_v52 = vrot.slane %v2506_v37, 5  ;;  %v353_v53 = vrot.slane %v352_v41, 4  ;;  %v264_v54 = vrot.slane %v2518_v43, 4  ;;  %v368_v57 = vunpack.c.l.b16 %v344_v46 }
  0x23   : > { %1953 = vmatmul.msk.bf16.vlgmr.msra.gmra.mxu2 %vm380_vm2, %v372_v40  ;;  %v267_v56 = vrot.slane %v2521_v45, 5  ;;  %v259_v61 = vrot.slane %v2509_v38, 5  ;;  %v2532_v1 = vshll.u32 %v2515_v42, 16  ;;  %v1979_v16 = vrot.slane %v2469_v55, 9 }
  0x24   : > { %v254_v58 = vor.u32 %v253_v52, %v250_v51  ;;  %1072 = vmatpush.bf16.msra.mxu2 %v2191_v39  ;;  %v358_v2 = vsel %vm2432_vm3, %v353_v53, %v357_v32  ;;  %v502_v17 = vrot.slane %v2474_v60, 5  ;;  %v1980_v39 = vrot.slane %v2496_v19, 9  ;;  %v1957_v53 = vld [vmem:[%s2362_s6] sm:$0xf] }
  0x25   : > { %v268_v3 = vor.u32 %v267_v56, %v264_v54  ;;  %v369_v18 = vunpack.c.l.b16 %v358_v2  ;;  %v273_v22 = vrot.slane %v2532_v1, 5  ;;  %v506_v40 = vrot.slane %v2515_v42, 5  ;;  %v2181_v54 = vld [vmem:[%s2362_s6 + $0x4] sm:$0xf0] }
  0x26   : > { %v255_v21 = vrot.slane %v254_v58, 4  ;;  %v503_v33 = vsel %vm2536_vm6, %v1979_v16, %v502_v17  ;;  %v612_v31 = vrot.slane %v2509_v38, 6  ;;  %v615_v16 = vrot.slane %v2518_v43, 5 }
  0x27   : > { %v269_v26 = vrot.slane %v268_v3, 4  ;;  %v373_v32 = vpack.c.b16 %v369_v18, %v368_v57  ;;  %v535_v46 = vunpack.c.l.b16 %v503_v33  ;;  %v507_v56 = vsel %vm2536_vm6, %v1980_v39, %v506_v40 }
  0x28   : > { %v260_v41 = vsel %vm2432_vm3, %v255_v21, %v259_v61  ;;  %v536_v2 = vunpack.c.l.b16 %v507_v56  ;;  %v605_v57 = vrot.slane %v2503_v34, 5  ;;  %v606_v61 = vrot.slane %v2506_v37, 6 }
  0x29   : > { %v274_v51 = vsel %vm2432_vm3, %v269_v26, %v273_v22  ;;  %v362_v52 = vunpack.c.l.b16 %v260_v41  ;;  %1954 = vmatmul.msk.bf16.vlgmr.msra.gmra.mxu3 %vm380_vm2, %v373_v32  ;;  %v3287_v3 = vshrl.u32 %v2474_v60, 16  ;;  %v616_v17 = vrot.slane %v2521_v45, 6  ;;  %vm2700_vm3 = vmor %vm997_vm0, %vm998_vm1 }
  0x2a   : > { %v363_v58 = vunpack.c.l.b16 %v274_v51  ;;  %v1958_v21 = vor.u32 %v2181_v54, %v1957_v53  ;;  %v607_v22 = vor.u32 %v606_v61, %v605_v57  ;;  %v3286_v26 = vshrl.u32 %v2515_v42, 16 }
  0x2b   : > { %v611_v33 = vrot.slane %v3287_v3, 5  ;;  %v617_v39 = vor.u32 %v616_v17, %v615_v16  ;;  %v622_v40 = vrot.slane %v2532_v1, 6  ;;  %v543_v32 = vpack.c.b16 %v536_v2, %v535_v46  ;;  %v1961_v3 = vld [vmem:[%s2362_s6 + $0x10] sm:$0xf] }
  0x2c   : > { %v370_v18 = vpack.c.b16 %v363_v58, %v362_v52  ;;  %v608_v51 = vrot.slane %v607_v22, 4  ;;  %v621_v52 = vrot.slane %v3286_v26, 5  ;;  %v2007_v56 = vrot.slane %v2469_v55, 10 }
  0x2d   : > { %v613_v53 = vor.u32 %v612_v31, %v611_v33  ;;  %v618_v54 = vrot.slane %v617_v39, 4  ;;  %v760_v2 = vrot.slane %v2474_v60, 6  ;;  %v2008_v57 = vrot.slane %v2496_v19, 10 }
  0x2e   : > { %1951 = vmatmul.msk.bf16.vlgmr.msra.gmra.mxu0 %vm380_vm2, %v370_v18  ;;  %v623_v58 = vor.u32 %v622_v40, %v621_v52  ;;  %v764_v61 = vrot.slane %v2515_v42, 6  ;;  %v1981_v16 = vrot.slane %v2365_v4, 9  ;;  %v510_v17 = vrot.slane %v2368_v5, 5 }
  0x2f   : > { %1975 = vmatmul.msk.bf16.vlgmr.msrb.gmra.mxu1 %vm380_vm2, %v1958_v21  ;;  %v614_v31 = vsel %vm2571_vm9, %v608_v51, %v613_v53  ;;  %v761_v22 = vsel %vm2579_vm12, %v2007_v56, %v760_v2  ;;  %v1982_v51 = vrot.slane %v2371_v6, 9  ;;  %v514_v52 = vrot.slane %v2374_v7, 5 }
  0x30   : > { %v624_v18 = vsel %vm2571_vm9, %v618_v54, %v623_v58  ;;  %v688_v21 = vunpack.c.l.b16 %v614_v31  ;;  %v765_v33 = vsel %vm2579_vm12, %v2008_v57, %v764_v61  ;;  %v793_v40 = vunpack.c.l.b16 %v761_v22 }
  0x31   : > { %v689_v39 = vunpack.c.l.b16 %v624_v18  ;;  %v625_v53 = vrot.slane %v2377_v8, 5  ;;  %v794_v54 = vunpack.c.l.b16 %v765_v33  ;;  %v511_v58 = vsel %vm2536_vm6, %v1981_v16, %v510_v17 }
  0x32   : > { %v626_v56 = vrot.slane %v2380_v9, 6  ;;  %v3291_v2 = vshrl.u32 %v2368_v5, 16  ;;  %v635_v61 = vrot.slane %v2386_v11, 5  ;;  %v636_v31 = vrot.slane %v2389_v12, 6 }
  0x33   : > { %1993 = vmatmul.msk.bf16.vlgmr.msrb.gmra.mxu2 %vm380_vm2, %v543_v32  ;;  %v696_v57 = vpack.c.b16 %v689_v39, %v688_v21  ;;  %v632_v32 = vrot.slane %v2383_v10, 6  ;;  %v515_v18 = vsel %vm2536_vm6, %v1982_v51, %v514_v52  ;;  %v3294_v16 = vshrl.u32 %v2374_v7, 16  ;;  %v2182_v21 = vld [vmem:[%s2362_s6 + $0x14] sm:$0xf0] }
  0x34   : > { %v627_v22 = vor.u32 %v626_v56, %v625_v53  ;;  %v631_v33 = vrot.slane %v3291_v2, 5  ;;  %v637_v17 = vor.u32 %v636_v31, %v635_v61  ;;  %v642_v26 = vrot.slane %v2392_v13, 6 }
  0x35   : > { %v641_v11 = vrot.slane %v3294_v16, 5  ;;  %v801_v12 = vpack.c.b16 %v794_v54, %v793_v40  ;;  %v537_v51 = vunpack.c.l.b16 %v511_v58  ;;  %v538_v52 = vunpack.c.l.b16 %v515_v18 }
  0x36   : > { %v628_v39 = vrot.slane %v627_v22, 4  ;;  %v633_v10 = vor.u32 %v632_v32, %v631_v33  ;;  %v638_v53 = vrot.slane %v637_v17, 4  ;;  %v2009_v2 = vrot.slane %v2365_v4, 10 }
  0x37   : > { %v643_v56 = vor.u32 %v642_v26, %v641_v11  ;;  %v768_v61 = vrot.slane %v2368_v5, 6  ;;  %v1962_v31 = vor.u32 %v2182_v21, %v1961_v3  ;;  %v2010_v13 = vrot.slane %v2371_v6, 10 }
  0x38   : > { %v772_v22 = vrot.slane %v2374_v7, 6  ;;  %v634_v32 = vsel %vm2571_vm9, %v628_v39, %v633_v10  ;;  %v645_v40 = vrot.slane %v2413_v24, 5  ;;  %v646_v54 = vrot.slane %v2416_v25, 6 }
  0x39   : > { %2003 = vmatmul.msk.bf16.vlgmr.msrb.gmra.mxu3 %vm380_vm2, %v696_v57  ;;  %v544_v58 = vpack.c.b16 %v538_v52, %v537_v51  ;;  %v644_v11 = vsel %vm2571_vm9, %v638_v53, %v643_v56  ;;  %v769_v3 = vsel %vm2579_vm12, %v2009_v2, %v768_v61  ;;  %v3293_v26 = vshrl.u32 %v2398_v15, 16 }
  0x3a   : > { %v690_v57 = vunpack.c.l.b16 %v634_v32  ;;  %v773_v10 = vsel %vm2579_vm12, %v2010_v13, %v772_v22  ;;  %v652_v18 = vrot.slane %v2419_v27, 6  ;;  %v655_v17 = vrot.slane %v2422_v28, 5 }
  0x3b   : > { %v651_v33 = vrot.slane %v3293_v26, 5  ;;  %v656_v21 = vrot.slane %v2425_v29, 6  ;;  %v659_v2 = vshrl.u32 %v2410_v23, 16  ;;  %v691_v39 = vunpack.c.l.b16 %v644_v11 }
  0x3c   : > { %v1983_v51 = vrot.slane %v2395_v14, 9  ;;  %v518_v52 = vrot.slane %v2398_v15, 5  ;;  %v662_v53 = vrot.slane %v2439_v35, 6  ;;  %v1984_v13 = vrot.slane %v2405_v20, 9 }
  0x3d   : > { %v522_v56 = vrot.slane %v2410_v23, 5  ;;  %v657_v61 = vor.u32 %v656_v21, %v655_v17  ;;  %v653_v32 = vor.u32 %v652_v18, %v651_v33  ;;  %v697_v11 = vpack.c.b16 %v691_v39, %v690_v57  ;;  %v1965_v18 = vld [vmem:[%s2362_s6 + $0x20] sm:$0xf]  ;;  %v2183_v33 = vld [vmem:[%s2362_s6 + $0x24] sm:$0xf0] }
  0x3e   : > { %2021 = vmatmul.msk.bf16.vlgmr.msrb.gmra.mxu0 %vm380_vm2, %v801_v12  ;;  %v647_v12 = vor.u32 %v646_v54, %v645_v40  ;;  %v795_v26 = vunpack.c.l.b16 %v769_v3  ;;  %v796_v16 = vunpack.c.l.b16 %v773_v10  ;;  %v2011_v27 = vrot.slane %v2395_v14, 10 }
  0x3f   : > { %1976 = vmatmul.msk.bf16.gmra.mxu1 %vm380_vm2, %v1962_v31  ;;  %v661_v31 = vrot.slane %v659_v2, 5  ;;  %v658_v40 = vrot.slane %v657_v61, 4  ;;  %v523_v35 = vsel %vm2536_vm6, %v1984_v13, %v522_v56  ;;  %v776_v17 = vrot.slane %v2398_v15, 6 }
  0x40   : > { %v648_v22 = vrot.slane %v647_v12, 4  ;;  %v2012_v21 = vrot.slane %v2405_v20, 10  ;;  %v780_v12 = vrot.slane %v2410_v23, 6  ;;  %v802_v10 = vpack.c.b16 %v796_v16, %v795_v26 }
  0x41   : > { %v663_v54 = vor.u32 %v662_v53, %v661_v31  ;;  %v777_v53 = vsel %vm2579_vm12, %v2011_v27, %v776_v17  ;;  %v526_v13 = vrot.slane %v2442_v36, 5  ;;  %v1986_v56 = vrot.slane %v2454_v47, 9 }
  0x42   : > { %v654_v3 = vsel %vm2571_vm9, %v648_v22, %v653_v32  ;;  %v530_v61 = vrot.slane %v2457_v48, 5  ;;  %v1966_v31 = vor.u32 %v2183_v33, %v1965_v18  ;;  %v868_v16 = vrot.slane %v2509_v38, 7 }
  0x43   : > { %1994 = vmatmul.msk.bf16.gmra.mxu2 %vm380_vm2, %v544_v58  ;;  %v519_v58 = vsel %vm2536_vm6, %v1983_v51, %v518_v52  ;;  %v664_v57 = vsel %vm2571_vm9, %v658_v40, %v663_v54  ;;  %v540_v51 = vunpack.c.l.b16 %v523_v35  ;;  %v1985_v52 = vrot.slane %v2428_v30, 9 }
  0x44   : > { %v539_v39 = vunpack.c.l.b16 %v519_v58  ;;  %v692_v22 = vunpack.c.l.b16 %v654_v3  ;;  %v693_v32 = vunpack.c.l.b16 %v664_v57  ;;  %v781_v40 = vsel %vm2579_vm12, %v2012_v21, %v780_v12 }
  0x45   : > { %v876_v35 = vrot.slane %v2532_v1, 7  ;;  %v665_v26 = vrot.slane %v2449_v44, 5  ;;  %v666_v27 = vrot.slane %v2460_v49, 6  ;;  %v3311_v54 = vshrl.u32 %v2474_v60, 16 }
  0x46   : > { %v3312_v58 = vshrl.u32 %v2515_v42, 16  ;;  %v545_v18 = vpack.c.b16 %v540_v51, %v539_v39  ;;  %v797_v33 = vunpack.c.l.b16 %v777_v53  ;;  %v798_v3 = vunpack.c.l.b16 %v781_v40 }
  0x47   : > { %v527_v38 = vsel %vm2536_vm6, %v1985_v52, %v526_v13  ;;  %v531_v1 = vsel %vm2536_vm6, %v1986_v56, %v530_v61  ;;  %v669_v21 = vshrl.u32 %v2442_v36, 16  ;;  %v698_v12 = vpack.c.b16 %v693_v32, %v692_v22  ;;  %v2195_v22 = vld [vmem:[%s3283_s3 + $0x14] sm:$0xf0] }
  0x48   : > { %v875_v17 = vrot.slane %v3312_v58, 6  ;;  %v863_v57 = vrot.slane %v2503_v34, 6  ;;  %v675_v39 = vrot.slane %v2479_v62, 5  ;;  %v864_v51 = vrot.slane %v2506_v37, 7 }
  0x49   : > { %2004 = vmatmul.msk.bf16.gmra.mxu3 %vm380_vm2, %v697_v11  ;;  %v867_v11 = vrot.slane %v3311_v54, 6  ;;  %v667_v54 = vor.u32 %v666_v27, %v665_v26  ;;  %v676_v52 = vrot.slane %v2482_v63, 6  ;;  %v679_v59 = vshrl.u32 %v2457_v48, 16 }
  0x4a   : > { %v871_v53 = vrot.slane %v2518_v43, 6  ;;  %v872_v13 = vrot.slane %v2521_v45, 7  ;;  %v865_v34 = vor.u32 %v864_v51, %v863_v57  ;;  %v877_v37 = vor.u32 %v876_v35, %v875_v17  ;;  %v1969_v51 = vld [vmem:[%s2362_s6 + $0x30] sm:$0xf] }
  0x4b   : > { %v869_v61 = vor.u32 %v868_v16, %v867_v11  ;;  %v2035_v43 = vrot.slane %v2469_v55, 11  ;;  %v1002_v45 = vrot.slane %v2474_v60, 7  ;;  %v671_v32 = vrot.slane %v669_v21, 5 }
  0x4c   : > { %v866_v40 = vrot.slane %v865_v34, 4  ;;  %v2036_v16 = vrot.slane %v2496_v19, 11  ;;  %v1006_v26 = vrot.slane %v2515_v42, 7  ;;  %v677_v27 = vor.u32 %v676_v52, %v675_v39  ;;  %v2184_v52 = vld [vmem:[%s2362_s6 + $0x34] sm:$0xf0] }
  0x4d   : > { %v682_v35 = vrot.slane %v2485_v0, 6  ;;  %v1003_v58 = vsel %vm2700_vm3, %v2035_v43, %v1002_v45  ;;  %v681_v55 = vrot.slane %v679_v59, 5  ;;  %v803_v39 = vpack.c.b16 %v798_v3, %v797_v33 }
  0x4e   : > { %2022 = vmatmul.msk.bf16.gmra.mxu0 %vm380_vm2, %v802_v10  ;;  %v672_v10 = vrot.slane %v2463_v50, 6  ;;  %v870_v60 = vsel %vm2696_vm15, %v866_v40, %v869_v61  ;;  %v1007_v17 = vsel %vm2700_vm3, %v2036_v16, %v1006_v26  ;;  %v542_v34 = vunpack.c.l.b16 %v531_v1 }
  0x4f   : > { %1977 = vmatmul.msk.bf16.gmra.mxu1 %vm380_vm2, %v1966_v31  ;;  %v873_v31 = vor.u32 %v872_v13, %v871_v53  ;;  %v930_v42 = vunpack.c.l.b16 %v870_v60  ;;  %v1036_v57 = vunpack.c.l.b16 %v1007_v17  ;;  %v541_v13 = vunpack.c.l.b16 %v527_v38  ;;  %v3317_v17 = vld [vmem:[#allocation4_spill] sm:$0xff] }
  0x50   : > { %v673_v61 = vor.u32 %v672_v10, %v671_v32  ;;  %v678_v45 = vrot.slane %v677_v27, 4  ;;  %v683_v40 = vor.u32 %v682_v35, %v681_v55  ;;  %v1970_v26 = vor.u32 %v2184_v52, %v1969_v51  ;;  %v3320_v52 = vld [vmem:[#allocation3_spill] sm:$0xff] }
  0x51   : > { %v874_v11 = vrot.slane %v873_v31, 4  ;;  %v668_v31 = vrot.slane %v667_v54, 4  ;;  %v784_v33 = vrot.slane %v2442_v36, 6  ;;  %v2014_v1 = vrot.slane %v2454_v47, 10 }
  0x52   : > { %v684_v38 = vsel %vm2571_vm9, %v678_v45, %v683_v40  ;;  %v879_v55 = vrot.slane %v2377_v8, 6  ;;  %v880_v60 = vrot.slane %v2380_v9, 7  ;;  %v884_v46 = vrot.slane %v3320_v52, 7  ;;  %v3322_v8 = vld [vmem:[#allocation6_spill] sm:$0xff] }
  0x53   : > { %1995 = vmatmul.msk.bf16.gmra.mxu2 %vm380_vm2, %v545_v18  ;;  %v1035_v18 = vunpack.c.l.b16 %v1003_v58  ;;  %v878_v19 = vsel %vm2696_vm15, %v874_v11, %v877_v37  ;;  %v546_v37 = vpack.c.b16 %v542_v34, %v541_v13  ;;  %v2013_v11 = vrot.slane %v2428_v30, 10 }
  0x54   : > { %v931_v53 = vunpack.c.l.b16 %v878_v19  ;;  %v674_v3 = vsel %vm2571_vm9, %v668_v31, %v673_v61  ;;  %v695_v10 = vunpack.c.l.b16 %v684_v38  ;;  %v3318_v19 = vld [vmem:[#allocation5_spill] sm:$0xff]  ;;  %v3321_v34 = vshrl.u32 %v2374_v7, 16 }
  0x55   : > { %v1043_v43 = vpack.c.b16 %v1036_v57, %v1035_v18  ;;  %v694_v54 = vunpack.c.l.b16 %v674_v3  ;;  %v785_v32 = vsel %vm2579_vm12, %v2013_v11, %v784_v33  ;;  %v887_v18 = vrot.slane %v3317_v17, 6 }
  0x56   : > { %v938_v16 = vpack.c.b16 %v931_v53, %v930_v42  ;;  %v799_v58 = vunpack.c.l.b16 %v785_v32  ;;  %v888_v42 = vrot.slane %v3318_v19, 7  ;;  %v881_v53 = vor.u32 %v880_v60, %v879_v55 }
  0x57   : > { %v699_v35 = vpack.c.b16 %v695_v10, %v694_v54  ;;  %v891_v31 = vrot.slane %v3321_v34, 6  ;;  %v892_v61 = vrot.slane %v3322_v8, 7  ;;  %v1010_v11 = vrot.slane %v2368_v5, 7 }
  0x58   : > { %v889_v13 = vor.u32 %v888_v42, %v887_v18  ;;  %v882_v9 = vrot.slane %v881_v53, 4  ;;  %v2038_v33 = vrot.slane %v2371_v6, 11  ;;  %v1014_v3 = vrot.slane %v2374_v7, 7 }
  0x59   : > { %2005 = vmatmul.msk.bf16.gmra.mxu3 %vm380_vm2, %v698_v12  ;;  %v788_v12 = vrot.slane %v2457_v48, 6  ;;  %v896_v6 = vrot.slane %v2416_v25, 7  ;;  %v903_v7 = vrot.slane %v2422_v28, 6  ;;  %v907_v18 = vrot.slane %v659_v2, 6 }
  0x5a   : > { %v890_v40 = vrot.slane %v889_v13, 4  ;;  %v2040_v52 = vrot.slane %v2405_v20, 11  ;;  %v912_v20 = vrot.slane %v2460_v49, 7  ;;  %v920_v8 = vrot.slane %v2482_v63, 7 }
  0x5b   : > { %v789_v27 = vsel %vm2579_vm12, %v2014_v1, %v788_v12 }
  0x5c   : > { %v800_v41 = vunpack.c.l.b16 %v789_v27 }
  0x5e   : > { %2023 = vmatmul.msk.bf16.gmra.mxu0 %vm380_vm2, %v803_v39  ;;  %v804_v57 = vpack.c.b16 %v800_v41, %v799_v58  ;;  %v3319_v39 = vshrl.u32 %v2368_v5, 16  ;;  %v895_v5 = vrot.slane %v2413_v24, 6  ;;  %v3324_v41 = vld [vmem:[#allocation7_spill] sm:$0xff]  ;;  %v3325_v24 = vld [vmem:[#allocation8_spill] sm:$0xff] }
  0x5f   : > { %1978 = vmatmul.msk.bf16.gmra.mxu1 %vm380_vm2, %v1970_v26  ;;  %v893_v26 = vor.u32 %v892_v61, %v891_v31  ;;  %v900_v55 = vrot.slane %v3324_v41, 7  ;;  %v908_v19 = vrot.slane %v3325_v24, 7 }
  0x60   : > { %v883_v51 = vrot.slane %v3319_v39, 6  ;;  %v897_v60 = vor.u32 %v896_v6, %v895_v5  ;;  %v2039_v39 = vrot.slane %v2395_v14, 11 }
  0x62   : > { %v885_v45 = vor.u32 %v884_v46, %v883_v51  ;;  %v898_v28 = vrot.slane %v897_v60, 4  ;;  %v1018_v51 = vrot.slane %v2398_v15, 7  ;;  %v1022_v46 = vrot.slane %v2410_v23, 7 }
  0x63   : > { %1996 = vmatmul.msk.bf16.gmra.mxu2 %vm380_vm2, %v546_v37  ;;  %v2037_v37 = vrot.slane %v2365_v4, 11  ;;  %v1015_v4 = vsel %vm2700_vm3, %v2038_v33, %v1014_v3  ;;  %v919_v23 = vrot.slane %v2479_v62, 6  ;;  %v923_v33 = vrot.slane %v679_v59, 6 }
  0x64   : > { %v886_v38 = vsel %vm2696_vm15, %v882_v9, %v885_v45  ;;  %v1038_v32 = vunpack.c.l.b16 %v1015_v4  ;;  %v1019_v31 = vsel %vm2700_vm3, %v2039_v39, %v1018_v51  ;;  %v1023_v14 = vsel %vm2700_vm3, %v2040_v52, %v1022_v46  ;;  %v2073_v46 = vld [vmem:[%s3283_s3] sm:$0xf] }
  0x65   : > { %v932_v1 = vunpack.c.l.b16 %v886_v38  ;;  %v1011_v54 = vsel %vm2700_vm3, %v2037_v37, %v1010_v11  ;;  %v1039_v61 = vunpack.c.l.b16 %v1019_v31  ;;  %v1040_v9 = vunpack.c.l.b16 %v1023_v14 }
  0x66   : > { %v1037_v10 = vunpack.c.l.b16 %v1011_v54  ;;  %v921_v11 = vor.u32 %v920_v8, %v919_v23  ;;  %v2303_v39 = vmov 0  }
  0x67   : > { %v1045_v49 = vpack.c.b16 %v1040_v9, %v1039_v61  ;;  %1134 = vst.msk [vmem:[#allocation2 + $0xc] sm:$0xf] %vm1130_vm4, %v2303_v39 }
  0x68   : > { %v1044_v25 = vpack.c.b16 %v1038_v32, %v1037_v10  ;;  %v922_v3 = vrot.slane %v921_v11, 4  ;;  %v2194_v32 = vld [vmem:[%s3283_s3 + $0x14] sm:$0xf]  ;;  %1131 = vst.msk [vmem:[#allocation2] sm:$0xf] %vm1130_vm4, %v2303_v39 }
  0x69   : > { %2006 = vmatmul.msk.bf16.gmra.mxu3 %vm380_vm2, %v699_v35  ;;  %v3323_v35 = vshrl.u32 %v2398_v15, 16  ;;  %v911_v15 = vrot.slane %v2449_v44, 6  ;;  %v924_v44 = vrot.slane %v2485_v0, 7  ;;  %1132 = vst.msk [vmem:[#allocation2 + $0x4] sm:$0xf] %vm1130_vm4, %v2303_v39 }
  0x6a   : > { %1133 = vst.msk [vmem:[#allocation2 + $0x8] sm:$0xf] %vm1130_vm4, %v2303_v39  ;;  %v2197_v11 = vld [vmem:[%s3283_s3 + $0x24] sm:$0xf0] }
  0x6b   : > { %v899_v58 = vrot.slane %v3323_v35, 6  ;;  %v913_v37 = vor.u32 %v912_v20, %v911_v15  ;;  %v925_v38 = vor.u32 %v924_v44, %v923_v33  ;;  %1135 = vst.msk [vmem:[#allocation2 + $0x10] sm:$0xf] %vm1130_vm4, %v2303_v39 }
  0x6c   : > { %1136 = vst.msk [vmem:[#allocation2 + $0x14] sm:$0xf] %vm1130_vm4, %v2303_v39 }
  0x6d   : > { %v914_v62 = vrot.slane %v913_v37, 4  ;;  %v926_v59 = vsel %vm2696_vm15, %v922_v3, %v925_v38  ;;  %1137 = vst.msk [vmem:[#allocation2 + $0x18] sm:$0xf] %vm1130_vm4, %v2303_v39  ;;  %v2091_v37 = vld [vmem:[%s3283_s3 + $0x20] sm:$0xf] }
  0x6e   : > { %2024 = vmatmul.msk.bf16.gmra.mxu0 %vm380_vm2, %v804_v57  ;;  %v909_v57 = vor.u32 %v908_v19, %v907_v18  ;;  %v937_v54 = vunpack.c.l.b16 %v926_v59  ;;  %1138 = vst.msk [vmem:[#allocation2 + $0x1c] sm:$0xf] %vm1130_vm4, %v2303_v39  ;;  %v2092_v44 = vor.u32 %v2197_v11, %v2091_v37 }
  0x6f   : > { %2031 = vmatmul.msk.bf16.vlgmr.msra.gmra.mxu1 %vm380_vm2, %v938_v16  ;;  %v894_v16 = vsel %vm2696_vm15, %v890_v40, %v893_v26  ;;  %v915_v40 = vrot.slane %v669_v21, 6  ;;  %v916_v26 = vrot.slane %v2463_v50, 7  ;;  %v2041_v21 = vrot.slane %v2428_v30, 11  ;;  %1139 = vst.msk [vmem:[#allocation2 + $0x20] sm:$0xf] %vm1130_vm4, %v2303_v39 }
  0x70   : > { %v933_v12 = vunpack.c.l.b16 %v894_v16  ;;  %v1026_v50 = vrot.slane %v2442_v36, 7  ;;  %v2042_v16 = vrot.slane %v2454_v47, 11  ;;  %1140 = vst.msk [vmem:[#allocation2 + $0x24] sm:$0xf] %vm1130_vm4, %v2303_v39  ;;  %v2207_v8 = vld [vmem:[#allocation2] sm:$0xff]  }
  0x71   : > { %v917_v63 = vor.u32 %v916_v26, %v915_v40  ;;  %1141 = vst.msk [vmem:[#allocation2 + $0x28] sm:$0xf] %vm1130_vm4, %v2303_v39  ;;  %v2275_v61 = vld [vmem:[#allocation2 + $0x4] sm:$0xff]  }
  0x72   : > { %v939_v27 = vpack.c.b16 %v933_v12, %v932_v1  ;;  %v1030_v1 = vrot.slane %v2457_v48, 7  ;;  %v1027_v4 = vsel %vm2700_vm3, %v2041_v21, %v1026_v50  ;;  %1142 = vst.msk [vmem:[#allocation2 + $0x2c] sm:$0xf] %vm1130_vm4, %v2303_v39  ;;  %v2196_v21 = vld [vmem:[%s3283_s3 + $0x24] sm:$0xf] }
  0x73   : > { %2049 = vmatmul.msk.bf16.vlgmr.msra.gmra.mxu2 %vm380_vm2, %v1043_v43  ;;  %v904_v43 = vrot.slane %v2425_v29, 7  ;;  %v901_v29 = vor.u32 %v900_v55, %v899_v58  ;;  %v918_v0 = vsel %vm2696_vm15, %v914_v62, %v917_v63  ;;  %v1041_v5 = vunpack.c.l.b16 %v1027_v4  ;;  %1143 = vst.msk [vmem:[#allocation2 + $0x30] sm:$0xf] %vm1130_vm4, %v2303_v39  ;;  %v2093_v50 = vld [vmem:[%s3283_s3 + $0x28] sm:$0xf0] }
  0x74   : > { %v936_v12 = vunpack.c.l.b16 %v918_v0  ;;  %v1031_v30 = vsel %vm2700_vm3, %v2042_v16, %v1030_v1  ;;  %1144 = vst.msk [vmem:[#allocation2 + $0x34] sm:$0xf] %vm1130_vm4, %v2303_v39  ;;  %v2096_v16 = vor.u32 %v2196_v21, %v2093_v50  ;;  %v2914_v4 = vld [vmem:[%s3282_s2] ss:$0 sm:$0xff] }
  0x75   : > { %v905_v17 = vor.u32 %v904_v43, %v903_v7  ;;  %v902_v2 = vsel %vm2696_vm15, %v898_v28, %v901_v29  ;;  %v1042_v36 = vunpack.c.l.b16 %v1031_v30  ;;  %v2057_v43 = vld [vmem:[%s3283_s3 + $0x10] sm:$0xf] }
  0x76   : > { %v934_v13 = vunpack.c.l.b16 %v902_v2  ;;  %v941_v6 = vpack.c.b16 %v937_v54, %v936_v12  ;;  %v2058_v10 = vor.u32 %v2195_v22, %v2057_v43  ;;  %v2193_v2 = vld [vmem:[%s3283_s3 + $0x4] sm:$0xf0] }
  0x77   : > { %v906_v42 = vrot.slane %v905_v17, 4  ;;  %v1046_v48 = vpack.c.b16 %v1042_v36, %v1041_v5 }
  0x78   : > { %1222 = vmatpush.bf16.msra.mxu3 %v2058_v10 }
  0x79   : > { %v910_v53 = vsel %vm2696_vm15, %v906_v42, %v909_v57 }
  0x7a   : > { %v935_v34 = vunpack.c.l.b16 %v910_v53  ;;  %v2192_v53 = vld [vmem:[%s3283_s3 + $0x4] sm:$0xf] }
  0x7b   : > { %2063 = vmatmul.msk.bf16.vlgmr.msra.gmra.mxu3 %vm380_vm2, %v2275_v61 }
  0x7c   : > { %v940_v45 = vpack.c.b16 %v935_v34, %v934_v13  ;;  %v2074_v13 = vor.u32 %v2193_v2, %v2073_v46  ;;  %v2075_v34 = vld [vmem:[%s3283_s3 + $0x8] sm:$0xf0]  ;;  %1385 = vmatpush.bf16.msrb.mxu3 %v2092_v44 }
  0x7d   : > { %v2078_v14 = vor.u32 %v2192_v53, %v2075_v34 }
  0x7e   : > { %1308 = vmatpush.bf16.msrb.mxu1 %v2074_v13 }
  0x7f   : > { %2032 = vmatmul.msk.bf16.gmra.mxu1 %vm380_vm2, %v939_v27  ;;  %v2059_v27 = vld [vmem:[%s3283_s3 + $0x18] sm:$0xf0]  ;;  %1337 = vmatpush.bf16.msrb.mxu2 %v2078_v14 }
  0x80   : > { %v2062_v35 = vor.u32 %v2194_v32, %v2059_v27 }
  0x82   : > { %1251 = vmatpush.bf16.msra.mxu0 %v2062_v35 }
  0x83   : > { %2050 = vmatmul.msk.bf16.gmra.mxu2 %vm380_vm2, %v1044_v25 }
  0x85   : > { %2067 = vmatmul.msk.bf16.vlgmr.msra.gmra.mxu0 %vm380_vm2, %v2275_v61 }
  0x86   : > { %1414 = vmatpush.bf16.msrb.mxu0 %v2096_v16 }
  0x8f   : > { %2033 = vmatmul.msk.bf16.gmra.mxu1 %vm380_vm2, %v940_v45 }
  0x93   : > { %2051 = vmatmul.msk.bf16.gmra.mxu2 %vm380_vm2, %v1045_v49 }
  0x9c   : > { %v2813_v47 = vpop.f32.mrf.mxu1 }
  0x9f   : > { %2034 = vmatmul.msk.bf16.gmra.mxu1 %vm380_vm2, %v941_v6 }
  0xa3   : > { %2052 = vmatmul.msk.bf16.gmra.mxu2 %vm380_vm2, %v1046_v48 }
  0xa4   : > { %v2817_v56 = vpop.f32.mrf.mxu1 }
  0xa6   : > { %v2819_v7 = vpop.f32.mrf.mxu2 }
  0xab   : > { %v402_v29 = vpop.f32.mrf.mxu0 }
  0xac   : > { %v469_v58 = vpop.f32.mrf.mxu1  ;;  %v2845_v25 = vpop.f32.mrf.mxu3 }
  0xad   : > { %v470_v26 = vadd.f32 %v469_v58, %v402_v29 }
  0xae   : > { %v2833_v41 = vpop.f32.mrf.mxu2 }
  0xaf   : > { %2079 = vmatmul.msk.bf16.vlgmr.msrb.gmra.mxu1 %vm380_vm2, %v2207_v8 }
  0xb3   : > { %v404_v31 = vpop.f32.mrf.mxu0  ;;  %2083 = vmatmul.msk.bf16.vlgmr.msrb.gmra.mxu2 %vm380_vm2, %v2207_v8 }
  0xb4   : > { %v2835_v55 = vpop.f32.mrf.mxu1  ;;  %v2851_v57 = vpop.f32.mrf.mxu3 }
  0xb5   : > { %v472_v1 = vadd.f32 %v2835_v55, %v404_v31 }
  0xb6   : > { %v574_v60 = vpop.f32.mrf.mxu2 }
  0xb7   : > { %v594_v49 = vadd.f32 %v574_v60, %v470_v26 }
  0xbb   : > { %v832_v9 = vpop.f32.mrf.mxu0 }
  0xbc   : > { %v2837_v17 = vpop.f32.mrf.mxu1  ;;  %v727_v20 = vpop.f32.mrf.mxu3 }
  0xbd   : > { %v747_v38 = vadd.f32 %v727_v20, %v594_v49  ;;  %v475_v43 = vadd.f32 %v2837_v17, %v2813_v47 }
  0xbe   : > { %v2839_v18 = vpop.f32.mrf.mxu2 }
  0xbf   : > { %v852_v59 = vadd.f32 %v832_v9, %v747_v38  ;;  %v595_v12 = vadd.f32 %v2839_v18, %v472_v1 }
  0xc3   : > { %v834_v62 = vpop.f32.mrf.mxu0 }
  0xc4   : > { %v2841_v24 = vpop.f32.mrf.mxu1  ;;  %v729_v33 = vpop.f32.mrf.mxu3 }
  0xc5   : > { %v748_v6 = vadd.f32 %v729_v33, %v595_v12  ;;  %v477_v2 = vadd.f32 %v2841_v24, %v2817_v56 }
  0xc6   : > { %v2843_v19 = vpop.f32.mrf.mxu2 }
  0xc7   : > { %v853_v10 = vadd.f32 %v834_v62, %v748_v6  ;;  %v596_v32 = vadd.f32 %v2843_v19, %v475_v43  ;;  %v2111_v43 = vld [vmem:[%s3283_s3 + $0x38] sm:$0xf0] }
  0xcb   : > { %v837_v5 = vpop.f32.mrf.mxu0 }
  0xcc   : > { %v2847_v28 = vpop.f32.mrf.mxu1  ;;  %v732_v0 = vpop.f32.mrf.mxu3 }
  0xcd   : > { %v749_v29 = vadd.f32 %v732_v0, %v596_v32  ;;  %v480_v56 = vadd.f32 %v2847_v28, %v2819_v7 }
  0xce   : > { %v2849_v42 = vpop.f32.mrf.mxu2 }
  0xcf   : > { %v854_v17 = vadd.f32 %v837_v5, %v749_v29  ;;  %v597_v53 = vadd.f32 %v2849_v42, %v477_v2 }
  0xd3   : > { %v839_v46 = vpop.f32.mrf.mxu0 }
  0xd4   : > { %v2854_v51 = vpop.f32.mrf.mxu1  ;;  %v734_v35 = vpop.f32.mrf.mxu3 }
  0xd5   : > { %v750_v61 = vadd.f32 %v734_v35, %v597_v53  ;;  %v482_v7 = vadd.f32 %v2854_v51, %v2833_v41  ;;  %v2199_v41 = vld [vmem:[%s3283_s3 + $0x34] sm:$0xf0] }
  0xd6   : > { %v2857_v52 = vpop.f32.mrf.mxu2 }
  0xd7   : > { %v855_v26 = vadd.f32 %v839_v46, %v750_v61  ;;  %v598_v37 = vadd.f32 %v2857_v52, %v480_v56 }
  0xdb   : > { %v842_v42 = vpop.f32.mrf.mxu0 }
  0xdc   : > { %v2877_v15 = vpop.f32.mrf.mxu1  ;;  %v737_v14 = vpop.f32.mrf.mxu3 }
  0xdd   : > { %v751_v38 = vadd.f32 %v737_v14, %v598_v37 }
  0xde   : > { %v2880_v23 = vpop.f32.mrf.mxu2 }
  0xdf   : > { %v856_v52 = vadd.f32 %v842_v42, %v751_v38  ;;  %v599_v16 = vadd.f32 %v2880_v23, %v482_v7 }
  0xe3   : > { %v844_v0 = vpop.f32.mrf.mxu0 }
  0xe4   : > { %v2891_v45 = vpop.f32.mrf.mxu1  ;;  %v739_v50 = vpop.f32.mrf.mxu3 }
  0xe5   : > { %v752_v51 = vadd.f32 %v739_v50, %v599_v16 }
  0xe6   : > { %v2893_v40 = vpop.f32.mrf.mxu2 }
  0xe7   : > { %v857_v35 = vadd.f32 %v844_v0, %v752_v51 }
  0xeb   : > { %v847_v29 = vpop.f32.mrf.mxu0 }
  0xec   : > { %v969_v63 = vpop.f32.mrf.mxu1 }
  0xed   : > { %v989_v54 = vadd.f32 %v969_v63, %v852_v59 }
  0xee   : > { %v2901_v3 = vpop.f32.mrf.mxu2 }
  0xf4   : > { %v971_v30 = vpop.f32.mrf.mxu1 }
  0xf5   : > { %v990_v55 = vadd.f32 %v971_v30, %v853_v10  ;;  %v485_v10 = vadd.f32 %v2877_v15, %v2845_v25  ;;  %v2127_v15 = vld [vmem:[%s3283_s3 + $0x40] sm:$0xf] }
  0xf6   : > { %v1074_v36 = vpop.f32.mrf.mxu2 }
  0xf7   : > { %v1094_v48 = vadd.f32 %v1074_v36, %v989_v54  ;;  %v2109_v36 = vld [vmem:[%s3283_s3 + $0x30] sm:$0xf] }
  0xf8   : > { %v2110_v6 = vor.u32 %v2199_v41, %v2109_v36 }
  0xf9   : > { %v1106_v22 = vadd.f32 %v2914_v4, %v1094_v48  ;;  %v2198_v48 = vld [vmem:[%s3283_s3 + $0x34] sm:$0xf] }
  0xfa   : > { %1478 = vmatpush.bf16.msra.mxu1 %v2110_v6 }
  0xfb   : > { %v1114_v27 = vmax.f32 %v1106_v22, 0.0  ;;  %v2114_v22 = vor.u32 %v2198_v48, %v2111_v43  ;;  %v2204_v43 = vld [vmem:[%s3283_s3 + $0x64] sm:$0xf] }
  0xfc   : > { %v974_v60 = vpop.f32.mrf.mxu1 }
  0xfd   : > { %v1122_v58 = vpack.c.bf16 %v1114_v27, %v1114_v27  ;;  %v991_v34 = vadd.f32 %v974_v60, %v854_v17  ;;  %v742_v27 = vpop.f32.mrf.mxu3  ;;  %1507 = vmatpush.bf16.msra.mxu2 %v2114_v22  ;;  %v487_v17 = vadd.f32 %v2891_v45, %v2851_v57  ;;  %v2200_v57 = vld [vmem:[%s3283_s3 + $0x44] sm:$0xf]  ;;  %v2129_v45 = vld [vmem:[%s3283_s3 + $0x48] sm:$0xf0] }
  0xfe   : > { %v1076_v18 = vpop.f32.mrf.mxu2  ;;  %v2165_v22 = vld [vmem:[%s3283_s3 + $0x68] sm:$0xf0] }
  0xff   : > { %1146 = vst.msk [vmem:[#allocation2 + $0xc] sm:$0xf] %vm1130_vm4, %v1122_v58  ;;  %v1095_v39 = vadd.f32 %v1076_v18, %v990_v55  ;;  %v600_v58 = vadd.f32 %v2893_v40, %v485_v10  ;;  %v2201_v40 = vld [vmem:[%s3283_s3 + $0x44] sm:$0xf0]  ;;  %v2168_v10 = vor.u32 %v2204_v43, %v2165_v22 }
 0x101   : > { %v1107_v47 = vadd.f32 %v2914_v4, %v1095_v39  ;;  %v753_v2 = vadd.f32 %v742_v27, %v600_v58 }
 0x103   : > { %v1115_v19 = vmax.f32 %v1107_v47, 0.0 }
 0x104   : > { %v976_v31 = vpop.f32.mrf.mxu1 }
 0x105   : > { %v1123_v13 = vpack.c.bf16 %v1115_v19, %v1115_v19  ;;  %v992_v44 = vadd.f32 %v976_v31, %v855_v26  ;;  %v2128_v19 = vor.u32 %v2201_v40, %v2127_v15  ;;  %v744_v14 = vpop.f32.mrf.mxu3  ;;  %v2132_v26 = vor.u32 %v2200_v57, %v2129_v45 }
 0x106   : > { %v1079_v20 = vpop.f32.mrf.mxu2  ;;  %v2925_v8 = vld [vmem:[#allocation2 + $0x8] sm:$0xff]  }
 0x107   : > { %1147 = vst.msk [vmem:[#allocation2 + $0x10] sm:$0xf] %vm1130_vm4, %v1123_v13  ;;  %v1096_v9 = vadd.f32 %v1079_v20, %v991_v34  ;;  %2080 = vmatmul.msk.bf16.gmra.mxu1 %vm380_vm2, %v2925_v8  ;;  %2084 = vmatmul.msk.bf16.gmra.mxu2 %vm380_vm2, %v2925_v8  ;;  %v858_v13 = vadd.f32 %v847_v29, %v753_v2 }
 0x108   : > { %v601_v34 = vadd.f32 %v2901_v3, %v487_v17  ;;  %1571 = vmatpush.bf16.msra.mxu3 %v2128_v19  ;;  %v849_v3 = vpop.f32.mrf.mxu0  ;;  %1600 = vmatpush.bf16.msra.mxu0 %v2132_v26 }
 0x109   : > { %v1108_v24 = vadd.f32 %v2914_v4, %v1096_v9 }
 0x10b   : > { %v1116_v11 = vmax.f32 %v1108_v24, 0.0  ;;  %v754_v24 = vadd.f32 %v744_v14, %v601_v34 }
 0x10c   : > { %v979_v49 = vpop.f32.mrf.mxu1 }
 0x10d   : > { %v1124_v33 = vpack.c.bf16 %v1116_v11, %v1116_v11  ;;  %v993_v12 = vadd.f32 %v979_v49, %v856_v52 }
 0x10e   : > { %v1081_v62 = vpop.f32.mrf.mxu2  ;;  %v2936_v63 = vld [vmem:[#allocation2 + $0xc] sm:$0xff]  }
 0x10f   : > { %1148 = vst.msk [vmem:[#allocation2 + $0x14] sm:$0xf] %vm1130_vm4, %v1124_v33  ;;  %v1097_v21 = vadd.f32 %v1081_v62, %v992_v44  ;;  %2064 = vmatmul.msk.bf16.gmra.mxu3 %vm380_vm2, %v2936_v63  ;;  %2068 = vmatmul.msk.bf16.gmra.mxu0 %vm380_vm2, %v2936_v63  ;;  %v859_v33 = vadd.f32 %v849_v3, %v754_v24 }
 0x110   : > { %v1253_v36 = vpop.f32.mrf.mxu0 }
 0x111   : > { %v1109_v28 = vadd.f32 %v2914_v4, %v1097_v21 }
 0x113   : > { %v1117_v1 = vmax.f32 %v1109_v28, 0.0 }
 0x114   : > { %v981_v5 = vpop.f32.mrf.mxu1 }
 0x115   : > { %v1125_v59 = vpack.c.bf16 %v1117_v1, %v1117_v1  ;;  %v994_v18 = vadd.f32 %v981_v5, %v857_v35  ;;  %v2147_v1 = vld [vmem:[%s3283_s3 + $0x58] sm:$0xf0] }
 0x116   : > { %v1084_v54 = vpop.f32.mrf.mxu2  ;;  %v2947_v30 = vld [vmem:[#allocation2 + $0x10] sm:$0xff]  }
 0x117   : > { %1149 = vst.msk [vmem:[#allocation2 + $0x18] sm:$0xf] %vm1130_vm4, %v1125_v59  ;;  %v1098_v23 = vadd.f32 %v1084_v54, %v993_v12  ;;  %2081 = vmatmul.msk.bf16.gmra.mxu1 %vm380_vm2, %v2947_v30  ;;  %2085 = vmatmul.msk.bf16.gmra.mxu2 %vm380_vm2, %v2947_v30  ;;  %v2163_v59 = vld [vmem:[%s3283_s3 + $0x60] sm:$0xf]  ;;  %v2205_v12 = vld [vmem:[%s3283_s3 + $0x64] sm:$0xf0] }
 0x118   : > { %v2164_v54 = vor.u32 %v2205_v12, %v2163_v59  ;;  %v1255_v58 = vpop.f32.mrf.mxu0 }
 0x119   : > { %v1110_v32 = vadd.f32 %v2914_v4, %v1098_v23  ;;  %v1224_v23 = vpop.f32.mrf.mxu3 }
 0x11b   : > { %v1118_v55 = vmax.f32 %v1110_v32, 0.0 }
 0x11c   : > { %v984_v25 = vpop.f32.mrf.mxu1 }
 0x11d   : > { %v1126_v60 = vpack.c.bf16 %v1118_v55, %v1118_v55  ;;  %v995_v61 = vadd.f32 %v984_v25, %v858_v13 }
 0x11e   : > { %v1086_v39 = vpop.f32.mrf.mxu2  ;;  %v2970_v46 = vld [vmem:[#allocation2 + $0x14] sm:$0xff]  }
 0x11f   : > { %1150 = vst.msk [vmem:[#allocation2 + $0x1c] sm:$0xf] %vm1130_vm4, %v1126_v60  ;;  %v1099_v47 = vadd.f32 %v1086_v39, %v994_v18  ;;  %2065 = vmatmul.msk.bf16.gmra.mxu3 %vm380_vm2, %v2970_v46  ;;  %2069 = vmatmul.msk.bf16.gmra.mxu0 %vm380_vm2, %v2970_v46 }
 0x121   : > { %v1111_v53 = vadd.f32 %v2914_v4, %v1099_v47  ;;  %v1226_v18 = vpop.f32.mrf.mxu3 }
 0x123   : > { %v1119_v31 = vmax.f32 %v1111_v53, 0.0 }
 0x124   : > { %v986_v11 = vpop.f32.mrf.mxu1 }
 0x125   : > { %v1127_v20 = vpack.c.bf16 %v1119_v31, %v1119_v31  ;;  %v996_v62 = vadd.f32 %v986_v11, %v859_v33 }
 0x126   : > { %v1089_v9 = vpop.f32.mrf.mxu2  ;;  %v2987_v56 = vld [vmem:[#allocation2 + $0x18] sm:$0xff]  }
 0x127   : > { %1151 = vst.msk [vmem:[#allocation2 + $0x20] sm:$0xf] %vm1130_vm4, %v1127_v20  ;;  %v1100_v42 = vadd.f32 %v1089_v9, %v995_v61  ;;  %2082 = vmatmul.msk.bf16.gmra.mxu1 %vm380_vm2, %v2987_v56  ;;  %2086 = vmatmul.msk.bf16.gmra.mxu2 %vm380_vm2, %v2987_v56  ;;  %v2284_v20 = vld [vmem:[#allocation2 + $0x2c] sm:$0xff]  }
 0x129   : > { %v1112_v37 = vadd.f32 %v2914_v4, %v1100_v42 }
 0x12b   : > { %v1120_v44 = vmax.f32 %v1112_v37, 0.0 }
 0x12c   : > { %v1310_v51 = vpop.f32.mrf.mxu1 }
 0x12d   : > { %v1128_v49 = vpack.c.bf16 %v1120_v44, %v1120_v44  ;;  %v3048_v48 = vadd.f32 %v1310_v51, %v1224_v23 }
 0x12e   : > { %v1091_v38 = vpop.f32.mrf.mxu2  ;;  %v2281_v21 = vld [vmem:[#allocation2 + $0x1c] sm:$0xff]  }
 0x12f   : > { %1152 = vst.msk [vmem:[#allocation2 + $0x24] sm:$0xf] %vm1130_vm4, %v1128_v49  ;;  %v1101_v50 = vadd.f32 %v1091_v38, %v996_v62  ;;  %2066 = vmatmul.msk.bf16.gmra.mxu3 %vm380_vm2, %v2281_v21  ;;  %2070 = vmatmul.msk.bf16.gmra.mxu0 %vm380_vm2, %v2281_v21 }
 0x131   : > { %v1113_v7 = vadd.f32 %v2914_v4, %v1101_v50  ;;  %v2145_v4 = vld [vmem:[%s3283_s3 + $0x50] sm:$0xf] }
 0x133   : > { %v1121_v28 = vmax.f32 %v1113_v7, 0.0 }
 0x134   : > { %v3068_v27 = vpop.f32.mrf.mxu1 }
 0x135   : > { %v1129_v52 = vpack.c.bf16 %v1121_v28, %v1121_v28  ;;  %v1313_v59 = vadd.f32 %v3068_v27, %v1226_v18 }
 0x136   : > { %v1339_v5 = vpop.f32.mrf.mxu2  ;;  %v3058_v32 = vld [vmem:[#allocation2 + $0x20] sm:$0xff]  }
 0x137   : > { %1153 = vst.msk [vmem:[#allocation2 + $0x28] sm:$0xf] %vm1130_vm4, %v1129_v52  ;;  %2115 = vmatmul.msk.bf16.vlgmr.msra.gmra.mxu1 %vm380_vm2, %v2936_v63  ;;  %2119 = vmatmul.msk.bf16.vlgmr.msra.gmra.mxu2 %vm380_vm2, %v2936_v63  ;;  %v2202_v63 = vld [vmem:[%s3283_s3 + $0x54] sm:$0xf]  ;;  %v3046_v41 = vadd.f32 %v1339_v5, %v1253_v36 }
 0x138   : > { %v2150_v0 = vor.u32 %v2202_v63, %v2147_v1 }
 0x13a   : > { %1693 = vmatpush.bf16.msrb.mxu2 %v2150_v0 }
 0x13e   : > { %v2283_v6 = vld [vmem:[#allocation2 + $0x24] sm:$0xff]   ;;  %v1341_v35 = vpop.f32.mrf.mxu2 }
 0x13f   : > { %2097 = vmatmul.msk.bf16.vlgmr.msrb.gmra.mxu3 %vm380_vm2, %v2925_v8  ;;  %2101 = vmatmul.msk.bf16.vlgmr.msrb.gmra.mxu0 %vm380_vm2, %v2925_v8  ;;  %v2203_v8 = vld [vmem:[%s3283_s3 + $0x54] sm:$0xf0]  ;;  %v2238_v11 = vld [vmem:[#allocation2 + $0x28] sm:$0xff]   ;;  %v1342_v63 = vadd.f32 %v1341_v35, %v1255_v58 }
 0x140   : > { %v2146_v16 = vor.u32 %v2203_v8, %v2145_v4  ;;  %1757 = vmatpush.bf16.msrb.mxu3 %v2164_v54  ;;  %1786 = vmatpush.bf16.msrb.mxu0 %v2168_v10 }
 0x142   : > { %1664 = vmatpush.bf16.msrb.mxu1 %v2146_v16 }
 0x147   : > { %2116 = vmatmul.msk.bf16.gmra.mxu1 %vm380_vm2, %v2970_v46  ;;  %2120 = vmatmul.msk.bf16.gmra.mxu2 %vm380_vm2, %v2970_v46 }
 0x14f   : > { %2098 = vmatmul.msk.bf16.gmra.mxu3 %vm380_vm2, %v2947_v30  ;;  %2102 = vmatmul.msk.bf16.gmra.mxu0 %vm380_vm2, %v2947_v30 }
 0x157   : > { %2117 = vmatmul.msk.bf16.gmra.mxu1 %vm380_vm2, %v2281_v21  ;;  %2121 = vmatmul.msk.bf16.gmra.mxu2 %vm380_vm2, %v2281_v21 }
 0x15f   : > { %2099 = vmatmul.msk.bf16.gmra.mxu3 %vm380_vm2, %v2987_v56  ;;  %2103 = vmatmul.msk.bf16.gmra.mxu0 %vm380_vm2, %v2987_v56 }
 0x167   : > { %2118 = vmatmul.msk.bf16.gmra.mxu1 %vm380_vm2, %v2283_v6  ;;  %2122 = vmatmul.msk.bf16.gmra.mxu2 %vm380_vm2, %v2283_v6 }
 0x16f   : > { %2100 = vmatmul.msk.bf16.gmra.mxu3 %vm380_vm2, %v3058_v32  ;;  %2104 = vmatmul.msk.bf16.gmra.mxu0 %vm380_vm2, %v3058_v32 }
 0x177   : > { %2151 = vmatmul.msk.bf16.vlgmr.msrb.gmra.mxu1 %vm380_vm2, %v2970_v46  ;;  %2155 = vmatmul.msk.bf16.vlgmr.msrb.gmra.mxu2 %vm380_vm2, %v2970_v46 }
 0x17f   : > { %2133 = vmatmul.msk.bf16.vlgmr.msra.gmra.mxu3 %vm380_vm2, %v2947_v30  ;;  %2137 = vmatmul.msk.bf16.vlgmr.msra.gmra.mxu0 %vm380_vm2, %v2947_v30 }
 0x184   : > { %v1315_v55 = vpop.f32.mrf.mxu1 }
 0x187   : > { %2152 = vmatmul.msk.bf16.gmra.mxu1 %vm380_vm2, %v2281_v21  ;;  %2156 = vmatmul.msk.bf16.gmra.mxu2 %vm380_vm2, %v2281_v21 }
 0x18a   : > { %v1344_v60 = vpop.f32.mrf.mxu2 }
 0x18c   : > { %v1258_v29 = vpop.f32.mrf.mxu0  ;;  %v1317_v2 = vpop.f32.mrf.mxu1 }
 0x18d   : > { %v1345_v39 = vadd.f32 %v1344_v60, %v1258_v29 }
 0x18f   : > { %2134 = vmatmul.msk.bf16.gmra.mxu3 %vm380_vm2, %v2987_v56  ;;  %2138 = vmatmul.msk.bf16.gmra.mxu0 %vm380_vm2, %v2987_v56 }
 0x192   : > { %v1346_v46 = vpop.f32.mrf.mxu2  ;;  %v1229_v30 = vpop.f32.mrf.mxu3 }
 0x193   : > { %v1316_v47 = vadd.f32 %v1315_v55, %v1229_v30 }
 0x194   : > { %v1260_v25 = vpop.f32.mrf.mxu0  ;;  %v1320_v19 = vpop.f32.mrf.mxu1 }
 0x195   : > { %v1347_v15 = vadd.f32 %v1346_v46, %v1260_v25 }
 0x197   : > { %2153 = vmatmul.msk.bf16.gmra.mxu1 %vm380_vm2, %v2283_v6  ;;  %2157 = vmatmul.msk.bf16.gmra.mxu2 %vm380_vm2, %v2283_v6 }
 0x19a   : > { %v1349_v40 = vpop.f32.mrf.mxu2  ;;  %v1231_v17 = vpop.f32.mrf.mxu3 }
 0x19b   : > { %v1318_v53 = vadd.f32 %v1317_v2, %v1231_v17  ;;  %v2239_v2 = vld [vmem:[#allocation2 + $0x30] sm:$0xff]  }
 0x19c   : > { %v1263_v13 = vpop.f32.mrf.mxu0  ;;  %v1322_v42 = vpop.f32.mrf.mxu1 }
 0x19d   : > { %v1350_v34 = vadd.f32 %v1349_v40, %v1263_v13 }
 0x19f   : > { %2135 = vmatmul.msk.bf16.gmra.mxu3 %vm380_vm2, %v3058_v32  ;;  %2139 = vmatmul.msk.bf16.gmra.mxu0 %vm380_vm2, %v3058_v32 }
 0x1a2   : > { %v1351_v31 = vpop.f32.mrf.mxu2  ;;  %v1234_v14 = vpop.f32.mrf.mxu3 }
 0x1a3   : > { %v1321_v61 = vadd.f32 %v1320_v19, %v1234_v14 }
 0x1a4   : > { %v1265_v9 = vpop.f32.mrf.mxu0  ;;  %v1325_v33 = vpop.f32.mrf.mxu1 }
 0x1a5   : > { %v1352_v24 = vadd.f32 %v1351_v31, %v1265_v9 }
 0x1a7   : > { %2158 = vmatmul.msk.bf16.gmra.mxu2 %vm380_vm2, %v2284_v20  ;;  %2154 = vmatmul.msk.bf16.gmra.mxu1 %vm380_vm2, %v2284_v20 }
 0x1aa   : > { %v1354_v57 = vpop.f32.mrf.mxu2  ;;  %v1236_v45 = vpop.f32.mrf.mxu3 }
 0x1ab   : > { %v1323_v3 = vadd.f32 %v1322_v42, %v1236_v45 }
 0x1ac   : > { %v1268_v26 = vpop.f32.mrf.mxu0  ;;  %v1327_v50 = vpop.f32.mrf.mxu1 }
 0x1ad   : > { %v1355_v37 = vadd.f32 %v1354_v57, %v1268_v26 }
 0x1af   : > { %2136 = vmatmul.msk.bf16.gmra.mxu3 %vm380_vm2, %v2238_v11  ;;  %2140 = vmatmul.msk.bf16.gmra.mxu0 %vm380_vm2, %v2238_v11 }
 0x1b2   : > { %v1239_v44 = vpop.f32.mrf.mxu3  ;;  %v1356_v62 = vpop.f32.mrf.mxu2 }
 0x1b3   : > { %v1326_v49 = vadd.f32 %v1325_v33, %v1239_v44 }
 0x1b4   : > { %v1270_v38 = vpop.f32.mrf.mxu0  ;;  %v1480_v27 = vpop.f32.mrf.mxu1 }
 0x1b5   : > { %v1357_v21 = vadd.f32 %v1356_v62, %v1270_v38 }
 0x1ba   : > { %v1241_v7 = vpop.f32.mrf.mxu3  ;;  %v1509_v10 = vpop.f32.mrf.mxu2 }
 0x1bb   : > { %v1328_v28 = vadd.f32 %v1327_v50, %v1241_v7 }
 0x1bc   : > { %v1416_v52 = vpop.f32.mrf.mxu0 }
 0x1bd   : > { %v3091_v4 = vadd.f32 %v1416_v52, %v3046_v41 }
 0x1bf   : > { %2169 = vmatmul.msk.bf16.vlgmr.msrb.gmra.mxu3 %vm380_vm2, %v2987_v56  ;;  %2173 = vmatmul.msk.bf16.vlgmr.msrb.gmra.mxu0 %vm380_vm2, %v2987_v56 }
 0x1c2   : > { %v1387_v8 = vpop.f32.mrf.mxu3  ;;  %v1511_v60 = vpop.f32.mrf.mxu2 }
 0x1c3   : > { %v3098_v16 = vadd.f32 %v1387_v8, %v3048_v48 }
 0x1c4   : > { %v1418_v1 = vpop.f32.mrf.mxu0 }
 0x1c5   : > { %v3100_v0 = vadd.f32 %v1418_v1, %v1342_v63 }
 0x1ca   : > { %v1389_v12 = vpop.f32.mrf.mxu3 }
 0x1cb   : > { %v3103_v54 = vadd.f32 %v1389_v12, %v1313_v59  ;;  %v1530_v59 = vadd.f32 %v1509_v10, %v3091_v4 }
 0x1cc   : > { %v1421_v5 = vpop.f32.mrf.mxu0 }
 0x1cd   : > { %v3105_v36 = vadd.f32 %v1421_v5, %v1345_v39  ;;  %v1482_v39 = vpop.f32.mrf.mxu1 }
 0x1cf   : > { %2170 = vmatmul.msk.bf16.gmra.mxu3 %vm380_vm2, %v3058_v32  ;;  %2174 = vmatmul.msk.bf16.gmra.mxu0 %vm380_vm2, %v3058_v32 }
 0x1d2   : > { %v1392_v56 = vpop.f32.mrf.mxu3 }
 0x1d3   : > { %v3111_v41 = vadd.f32 %v1392_v56, %v1316_v47  ;;  %v3131_v47 = vpop.f32.mrf.mxu2 }
 0x1d4   : > { %v1423_v51 = vpop.f32.mrf.mxu0 }
 0x1d5   : > { %v3113_v23 = vadd.f32 %v1423_v51, %v1347_v15  ;;  %v1529_v51 = vadd.f32 %v1480_v27, %v3098_v16  ;;  %v1531_v27 = vadd.f32 %v1482_v39, %v3103_v54 }
 0x1da   : > { %v1394_v6 = vpop.f32.mrf.mxu3 }
 0x1db   : > { %v3115_v48 = vadd.f32 %v1394_v6, %v1318_v53  ;;  %v3137_v53 = vpop.f32.mrf.mxu1 }
 0x1dc   : > { %v1426_v43 = vpop.f32.mrf.mxu0 }
 0x1dd   : > { %v3117_v22 = vadd.f32 %v1426_v43, %v1350_v34  ;;  %v3141_v34 = vpop.f32.mrf.mxu2 }
 0x1df   : > { %2171 = vmatmul.msk.bf16.gmra.mxu3 %vm380_vm2, %v2238_v11  ;;  %2175 = vmatmul.msk.bf16.gmra.mxu0 %vm380_vm2, %v2238_v11 }
 0x1e2   : > { %v1397_v35 = vpop.f32.mrf.mxu3 }
 0x1e3   : > { %v3121_v32 = vadd.f32 %v1397_v35, %v1321_v61  ;;  %v3143_v14 = vpop.f32.mrf.mxu1  ;;  %v1824_v35 = vld [vmem:[%s3284_s4] sm:$0x3] }
 0x1e4   : > { %v1428_v58 = vpop.f32.mrf.mxu0 }
 0x1e5   : > { %v3123_v55 = vadd.f32 %v1428_v58, %v1352_v24  ;;  %v3145_v9 = vpop.f32.mrf.mxu2 }
 0x1ea   : > { %v1399_v18 = vpop.f32.mrf.mxu3 }
 0x1eb   : > { %v3125_v29 = vadd.f32 %v1399_v18, %v1323_v3  ;;  %v3147_v24 = vpop.f32.mrf.mxu1 }
 0x1ec   : > { %v1431_v46 = vpop.f32.mrf.mxu0 }
 0x1ed   : > { %v3127_v30 = vadd.f32 %v1431_v46, %v1355_v37  ;;  %v3149_v45 = vpop.f32.mrf.mxu2  ;;  %v1532_v46 = vadd.f32 %v1511_v60, %v3100_v0 }
 0x1ef   : > { %2172 = vmatmul.msk.bf16.gmra.mxu3 %vm380_vm2, %v2239_v2  ;;  %2176 = vmatmul.msk.bf16.gmra.mxu0 %vm380_vm2, %v2239_v2  ;;  %vm1870_vm2 = vcmask 1043456  }
 0x1f0   : > { %vm3203_vm6 = vmor %vm1871_vm5, %vm1870_vm2 }
 0x1f2   : > { %v1402_v25 = vpop.f32.mrf.mxu3 }
 0x1f3   : > { %v3133_v15 = vadd.f32 %v1402_v25, %v1326_v49  ;;  %v3151_v26 = vpop.f32.mrf.mxu1  ;;  %v3187_v25 = vperm.slane %v1824_v35, 1 }
 0x1f4   : > { %v1433_v40 = vpop.f32.mrf.mxu0 }
 0x1f5   : > { %v3135_v17 = vadd.f32 %v1433_v40, %v1357_v21  ;;  %v3155_v11 = vpop.f32.mrf.mxu2  ;;  %v3189_v40 = vperm.slane %v1824_v35, 0 }
 0x1fa   : > { %v1404_v19 = vpop.f32.mrf.mxu3 }
 0x1fb   : > { %v3139_v13 = vadd.f32 %v1404_v19, %v1328_v28  ;;  %v3161_v49 = vpop.f32.mrf.mxu1 }
 0x1fc   : > { %v1602_v31 = vpop.f32.mrf.mxu0 }
 0x1fd   : > { %v3165_v38 = vpop.f32.mrf.mxu2  ;;  %v1623_v5 = vadd.f32 %v1602_v31, %v1530_v59 }
 0x202   : > { %v1573_v20 = vpop.f32.mrf.mxu3 }
 0x203   : > { %v3169_v50 = vpop.f32.mrf.mxu1  ;;  %v1622_v58 = vadd.f32 %v1573_v20, %v1529_v51 }
 0x204   : > { %v1604_v61 = vpop.f32.mrf.mxu0 }
 0x205   : > { %v1695_v52 = vpop.f32.mrf.mxu2  ;;  %v1625_v4 = vadd.f32 %v1604_v61, %v1532_v46  ;;  %v1534_v61 = vadd.f32 %v3131_v47, %v3105_v36  ;;  %v1533_v36 = vadd.f32 %v3137_v53, %v3111_v41 }
 0x206   : > { %v1716_v18 = vadd.f32 %v1695_v52, %v1623_v5 }
 0x20a   : > { %v1575_v42 = vpop.f32.mrf.mxu3 }
 0x20b   : > { %v1666_v8 = vpop.f32.mrf.mxu1  ;;  %v1624_v52 = vadd.f32 %v1575_v42, %v1531_v27 }
 0x20c   : > { %v1607_v57 = vpop.f32.mrf.mxu0  ;;  %v1715_v10 = vadd.f32 %v1666_v8, %v1622_v58 }
 0x20d   : > { %v1697_v12 = vpop.f32.mrf.mxu2  ;;  %v1627_v39 = vadd.f32 %v1607_v57, %v1534_v61  ;;  %v1536_v57 = vadd.f32 %v3141_v34, %v3113_v23 }
 0x212   : > { %v1578_v3 = vpop.f32.mrf.mxu3 }
 0x213   : > { %v1668_v6 = vpop.f32.mrf.mxu1 }
 0x214   : > { %v3153_v37 = vpop.f32.mrf.mxu0 }
 0x215   : > { %v1700_v19 = vpop.f32.mrf.mxu2  ;;  %v1629_v53 = vadd.f32 %v3153_v37, %v1536_v57 }
 0x21a   : > { %v3157_v33 = vpop.f32.mrf.mxu3 }
 0x21b   : > { %v1671_v60 = vpop.f32.mrf.mxu1 }
 0x21c   : > { %v3159_v44 = vpop.f32.mrf.mxu0 }
 0x21d   : > { %v1702_v35 = vpop.f32.mrf.mxu2 }
 0x222   : > { %v3163_v62 = vpop.f32.mrf.mxu3 }
 0x223   : > { %v1673_v41 = vpop.f32.mrf.mxu1 }
 0x224   : > { %v3167_v21 = vpop.f32.mrf.mxu0 }
 0x225   : > { %v1705_v37 = vpop.f32.mrf.mxu2 }
 0x22a   : > { %v3171_v7 = vpop.f32.mrf.mxu3 }
 0x22c   : > { %v3173_v28 = vpop.f32.mrf.mxu0 }
 0x232   : > { %v3175_v63 = vpop.f32.mrf.mxu3 }
 0x234   : > { %v3177_v1 = vpop.f32.mrf.mxu0 }
 0x23a   : > { %v3180_v56 = vpop.f32.mrf.mxu3 }
 0x23b   : > { %3326 = vst [vmem:[#allocation4_spill] sm:$0xff] %v3180_v56  ;;  %v1718_v56 = vadd.f32 %v1697_v12, %v1625_v4  ;;  %v1717_v12 = vadd.f32 %v1668_v6, %v1624_v52  ;;  %v1722_v52 = vadd.f32 %v1702_v35, %v1629_v53 }
 0x23c   : > { %v1788_v43 = vpop.f32.mrf.mxu0 }
 0x23d   : > { %v1809_v2 = vadd.f32 %v1788_v43, %v1716_v18  ;;  %v1626_v18 = vadd.f32 %v1578_v3, %v1533_v36  ;;  %v1540_v36 = vadd.f32 %v3149_v45, %v3123_v55 }
 0x23f   : > { %v1831_v31 = vadd.f32 %v3187_v25, %v1809_v2  ;;  %v1720_v2 = vadd.f32 %v1700_v19, %v1627_v39  ;;  %v1719_v27 = vadd.f32 %v1671_v60, %v1626_v18 }
 0x241   : > { %v1847_v8 = vmax.f32 %v1831_v31, 0.0 }
 0x242   : > { %v1759_v16 = vpop.f32.mrf.mxu3 }
 0x243   : > { %v1808_v59 = vadd.f32 %v1759_v16, %v1715_v10 }
 0x244   : > { %v1790_v20 = vpop.f32.mrf.mxu0 }
 0x245   : > { %v1830_v0 = vadd.f32 %v3189_v40, %v1808_v59  ;;  %v1811_v51 = vadd.f32 %v1790_v20, %v1718_v56  ;;  %v1535_v59 = vadd.f32 %v3143_v14, %v3115_v48 }
 0x247   : > { %v1846_v5 = vmax.f32 %v1830_v0, 0.0  ;;  %v1833_v47 = vadd.f32 %v3187_v25, %v1811_v51  ;;  %v1628_v34 = vadd.f32 %v3157_v33, %v1535_v59  ;;  %v1538_v0 = vadd.f32 %v3145_v9, %v3117_v22  ;;  %v1676_v51 = vpop.f32.mrf.mxu1 }
 0x249   : > { %v1862_v42 = vpack.c.bf16 %v1847_v8, %v1846_v5  ;;  %v1849_v6 = vmax.f32 %v1833_v47, 0.0  ;;  %v1631_v14 = vadd.f32 %v3159_v44, %v1538_v0  ;;  %v1721_v5 = vadd.f32 %v1673_v41, %v1628_v34 }
 0x24a   : > { %v1761_v43 = vpop.f32.mrf.mxu3 }
 0x24b   : > { %1873 = vst.msk [vmem:[%s3201_s9] sm:$0xff] %vm3203_vm6, %v1862_v42  ;;  %v1810_v56 = vadd.f32 %v1761_v43, %v1717_v12  ;;  %v1537_v42 = vadd.f32 %v3147_v24, %v3121_v32  ;;  %v1724_v44 = vadd.f32 %v1705_v37, %v1631_v14  ;;  %v1707_v32 = vpop.f32.mrf.mxu2  ;;  %v1633_v24 = vadd.f32 %v3167_v21, %v1540_v36 }
 0x24c   : > { %v1793_v58 = vpop.f32.mrf.mxu0  ;;  %v1543_v14 = vadd.f32 %v3169_v50, %v3139_v13 }
 0x24d   : > { %v1832_v46 = vadd.f32 %v3189_v40, %v1810_v56  ;;  %v1813_v10 = vadd.f32 %v1793_v58, %v1720_v2  ;;  %v1630_v9 = vadd.f32 %v3163_v62, %v1537_v42  ;;  %v1539_v2 = vadd.f32 %v3151_v26, %v3125_v29 }
 0x24e   : > { %v1726_v21 = vadd.f32 %v1707_v32, %v1633_v24 }
 0x24f   : > { %v1848_v4 = vmax.f32 %v1832_v46, 0.0  ;;  %v1835_v3 = vadd.f32 %v3187_v25, %v1813_v10  ;;  %v1723_v18 = vadd.f32 %v1676_v51, %v1630_v9  ;;  %v1678_v55 = vpop.f32.mrf.mxu1  ;;  %v1542_v10 = vadd.f32 %v3155_v11, %v3127_v30 }
 0x251   : > { %v1863_v16 = vpack.c.bf16 %v1849_v6, %v1848_v4  ;;  %v1851_v60 = vmax.f32 %v1835_v3, 0.0  ;;  %v1632_v6 = vadd.f32 %v3171_v7, %v1539_v2  ;;  %v1541_v3 = vadd.f32 %v3161_v49, %v3133_v15 }
 0x252   : > { %v1764_v31 = vpop.f32.mrf.mxu3 }
 0x253   : > { %1874 = vst.msk [vmem:[%s3201_s9 + $0x8] sm:$0xff] %vm3203_vm6, %v1863_v16  ;;  %v1812_v19 = vadd.f32 %v1764_v31, %v1719_v27  ;;  %v1710_v26 = vpop.f32.mrf.mxu2  ;;  %v1635_v16 = vadd.f32 %v3173_v28, %v1542_v10  ;;  %v1725_v31 = vadd.f32 %v1678_v55, %v1632_v6  ;;  %v1634_v34 = vadd.f32 %v3175_v63, %v1541_v3 }
 0x254   : > { %v1795_v23 = vpop.f32.mrf.mxu0 }
 0x255   : > { %v1834_v20 = vadd.f32 %v3189_v40, %v1812_v19  ;;  %v1815_v48 = vadd.f32 %v1795_v23, %v1722_v52  ;;  %v1728_v23 = vadd.f32 %v1710_v26, %v1635_v16 }
 0x257   : > { %v1850_v61 = vmax.f32 %v1834_v20, 0.0  ;;  %v1837_v33 = vadd.f32 %v3187_v25, %v1815_v48  ;;  %v1681_v30 = vpop.f32.mrf.mxu1  ;;  %v1544_v20 = vadd.f32 %v3165_v38, %v3135_v17 }
 0x258   : > { %v1727_v0 = vadd.f32 %v1681_v30, %v1634_v34 }
 0x259   : > { %v1864_v8 = vpack.c.bf16 %v1851_v60, %v1850_v61  ;;  %v1853_v47 = vmax.f32 %v1837_v33, 0.0  ;;  %v1637_v49 = vadd.f32 %v3177_v1, %v1544_v20 }
 0x25a   : > { %v1766_v39 = vpop.f32.mrf.mxu3 }
 0x25b   : > { %1875 = vst.msk [vmem:[%s3201_s9 + $0x10] sm:$0xff] %vm3203_vm6, %v1864_v8  ;;  %v1814_v12 = vadd.f32 %v1766_v39, %v1721_v5  ;;  %v1712_v61 = vpop.f32.mrf.mxu2  ;;  %v3329_v5 = vld [vmem:[#allocation4_spill] sm:$0xff] }
 0x25c   : > { %v1798_v22 = vpop.f32.mrf.mxu0  ;;  %v1730_v38 = vadd.f32 %v1712_v61, %v1637_v49  ;;  %v1636_v51 = vadd.f32 %v3329_v5, %v1543_v14 }
 0x25d   : > { %v1836_v43 = vadd.f32 %v3189_v40, %v1814_v12  ;;  %v1817_v35 = vadd.f32 %v1798_v22, %v1724_v44 }
 0x25f   : > { %v1852_v56 = vmax.f32 %v1836_v43, 0.0  ;;  %v1839_v62 = vadd.f32 %v3187_v25, %v1817_v35  ;;  %v1683_v39 = vpop.f32.mrf.mxu1 }
 0x260   : > { %v1729_v22 = vadd.f32 %v1683_v39, %v1636_v51 }
 0x261   : > { %v1865_v58 = vpack.c.bf16 %v1853_v47, %v1852_v56  ;;  %v1855_v41 = vmax.f32 %v1839_v62, 0.0 }
 0x262   : > { %v1769_v46 = vpop.f32.mrf.mxu3 }
 0x263   : > { %1876 = vst.msk [vmem:[%s3201_s9 + $0x18] sm:$0xff] %vm3203_vm6, %v1865_v58  ;;  %v1816_v57 = vadd.f32 %v1769_v46, %v1723_v18 }
 0x264   : > { %v1800_v45 = vpop.f32.mrf.mxu0 }
 0x265   : > { %v1838_v4 = vadd.f32 %v3189_v40, %v1816_v57  ;;  %v1819_v29 = vadd.f32 %v1800_v45, %v1726_v21 }
 0x267   : > { %v1854_v53 = vmax.f32 %v1838_v4, 0.0  ;;  %v1841_v7 = vadd.f32 %v3187_v25, %v1819_v29 }
 0x269   : > { %v1866_v27 = vpack.c.bf16 %v1855_v41, %v1854_v53  ;;  %v1857_v52 = vmax.f32 %v1841_v7, 0.0 }
 0x26a   : > { %v1771_v59 = vpop.f32.mrf.mxu3 }
 0x26b   : > { %1877 = vst.msk [vmem:[%s3201_s9 + $0x20] sm:$0xff] %vm3203_vm6, %v1866_v27  ;;  %v1818_v19 = vadd.f32 %v1771_v59, %v1725_v31 }
 0x26c   : > { %v1803_v11 = vpop.f32.mrf.mxu0 }
 0x26d   : > { %v1840_v28 = vadd.f32 %v3189_v40, %v1818_v19  ;;  %v1821_v15 = vadd.f32 %v1803_v11, %v1728_v23 }
 0x26f   : > { %v1856_v37 = vmax.f32 %v1840_v28, 0.0  ;;  %v1843_v63 = vadd.f32 %v3187_v25, %v1821_v15 }
 0x271   : > { %v1867_v60 = vpack.c.bf16 %v1857_v52, %v1856_v37  ;;  %v1859_v42 = vmax.f32 %v1843_v63, 0.0 }
 0x272   : > { %v1774_v48 = vpop.f32.mrf.mxu3 }
 0x273   : > { %1878 = vst.msk [vmem:[%s3201_s9 + $0x28] sm:$0xff] %vm3203_vm6, %v1867_v60  ;;  %v1820_v8 = vadd.f32 %v1774_v48, %v1727_v0 }
 0x274   : > { %v1805_v17 = vpop.f32.mrf.mxu0 }
 0x275   : > { %v1842_v1 = vadd.f32 %v3189_v40, %v1820_v8  ;;  %v1823_v12 = vadd.f32 %v1805_v17, %v1730_v38 }
 0x277   : > { %v1858_v33 = vmax.f32 %v1842_v1, 0.0  ;;  %v1845_v50 = vadd.f32 %v3187_v25, %v1823_v12 }
 0x279   : > { %v1868_v9 = vpack.c.bf16 %v1859_v42, %v1858_v33  ;;  %v1861_v36 = vmax.f32 %v1845_v50, 0.0 }
 0x27a   : > { %v1776_v13 = vpop.f32.mrf.mxu3 }
 0x27b   : > { %1879 = vst.msk [vmem:[%s3201_s9 + $0x30] sm:$0xff] %vm3203_vm6, %v1868_v9  ;;  %v1822_v43 = vadd.f32 %v1776_v13, %v1729_v22 }
 0x27d   : > { %v1844_v44 = vadd.f32 %v3189_v40, %v1822_v43 }
 0x27f   : > { %v1860_v47 = vmax.f32 %v1844_v44, 0.0 }
 0x281   : > { %v1869_v56 = vpack.c.bf16 %v1861_v36, %v1860_v47 }
 0x283   : > { %1880 = vst.msk [vmem:[%s3201_s9 + $0x38] sm:$0xff] %vm3203_vm6, %v1869_v56 }
 0x284 PF: > { %s15_s18 = sadd.s32 1, %s2301_s18  }
 0x285   : > { %p12_p4 = scmp.ge.s32.totalorder %s15_s18, 4  }
 0x287   :  { %14 = sbr.rel (!%p12_p4) target bundleno = 1 (0x1), region = 83 }

// kernel: inception_c_forward.6
= control target key start
LH: loop header
LB: loop body
LE: loop exit
PB: predicated region body
PF: predicated region fallthrough
CT: control target
= control target key end

     0   :  { %s4227_s30 = smov 0   ;;  %s5923_s0 = inlined_call_operand.vmem [shape: bf16[2,8,14,16], index: 0, kind: input, shape index: {}]   ;;  %s5924_s1 = inlined_call_operand.vmem [shape: bf16[7,16,16], index: 1, kind: input, shape index: {}]   ;;  %s5925_s2 = inlined_call_operand.vmem [shape: f32[1,16], index: 2, kind: input, shape index: {}]   ;;  %s5926_s3 = inlined_call_operand.vmem [shape: bf16[7,16,16], index: 3, kind: input, shape index: {}]   ;;  %s5927_s4 = inlined_call_operand.vmem [shape: f32[1,16], index: 4, kind: input, shape index: {}]   ;;  %s5928_s5 = inlined_call_operand.vmem [shape: bf16[7,16,16], index: 5, kind: input, shape index: {}]   ;;  %s5929_s6 = inlined_call_operand.vmem [shape: f32[1,16], index: 6, kind: input, shape index: {}]   ;;  %s5930_s7 = inlined_call_operand.vmem [shape: bf16[7,16,192], index: 7, kind: input, shape index: {}]   ;;  %s5931_s8 = inlined_call_operand.vmem [shape: f32[1,192], index: 8, kind: input, shape index: {}]   ;;  %s5932_s9 = inlined_call_operand.vmem [shape: bf16[2,8,8,192], index: 9, kind: output, shape index: {}]  }
   0x1 LB: > { %s3537_s10 = sadd.s32 4294967295, %s4174_s30   ;;  %p3541_p0 = scmp.ge.s32.totalorder %s4174_s30, 1  ;;  %s4174_s30 = sphi %s4227_s30, %s19_s30  }
   0x2   : > { %p287_p1 = scmp.lt.s32.totalorder %s4174_s30, 3 }
   0x4   : > { %p288_p2 = pnand %p3541_p0, %p287_p1 }
   0x6   : > { %291 = sbr.rel (%p288_p2) target bundleno = 1082 (0x43a), region = 56 }
   0xb   : > { %v4238_v0 = vld [vmem:[%s5924_s1 + $0x10] sm:$0xff]  ;;  %v3963_v1 = vld [vmem:[%s5924_s1 + $0x8] sm:$0xff]  ;;  %p323_p3 = scmp.lt.s32.totalorder %s3537_s10, 1  ;;  %v3962_v2 = vld [vmem:[%s5924_s1] sm:$0xff]  ;;  %vm605_vm0 = vcmask 1042432   ;;  %vm606_vm1 = vcmask 1046532  }
   0xc   : > { %v3965_v3 = vld [vmem:[%s5924_s1 + $0x18] sm:$0xff]  ;;  %4131 = vmatpush.bf16.msra.mxu2 %v4238_v0  ;;  %508 = vmatpush.bf16.msra.mxu0 %v3963_v1  ;;  %v3968_v4 = vld [vmem:[%s5924_s1 + $0x30] sm:$0xff]  ;;  %v3967_v5 = vld [vmem:[%s5924_s1 + $0x28] sm:$0xff]  ;;  %vm488_vm2 = vcmask 130048   ;;  %vm352_vm4 = vsmask.f32 3328 }
   0xd   : > { %s5994_s10 = smov (!%p323_p3, %s3537_s10), 1  ;;  %4129 = vmatpush.bf16.msra.mxu3 %v3963_v1  ;;  %4130 = vmatpush.bf16.msra.mxu1 %v3962_v2  ;;  %vm4266_vm3 = vmor %vm605_vm0, %vm606_vm1  ;;  %vm353_vm5 = vsmask.f32 7440  ;;  %vm1105_vm7 = vcmask 1040384   ;;  %vm1106_vm8 = vcmask 1044484   ;;  %vm863_vm13 = vcmask 1041408  }
   0xe   : > { %s3956_s23 = sshll.u32 %s5994_s10, 6  ;;  %vm4337_vm6 = vmor %vm352_vm4, %vm353_vm5  ;;  %vm710_vm10 = vsmask.f32 2304  ;;  %vm711_vm11 = vsmask.f32 6416  ;;  %vm864_vm14 = vcmask 1045508  }
   0xf   : > { %s4264_s26 = scalar_lea.vmem %s5923_s0, %s3956_s23  ;;  %vm4499_vm9 = vmor %vm1105_vm7, %vm1106_vm8  ;;  %vm968_vm0 = vsmask.f32 1280  ;;  %vm969_vm1 = vsmask.f32 5392  ;;  %vm1238_vm5 = vcmask 125952   ;;  %vm1690_vm7 = vcmask 124928   ;;  %s5844_s14 = scalar_lea.vmem %s5932_s9, %s3956_s23 }
  0x10   : > { %1180 = vmatpush.bf16.msrb.mxu2 %v3968_v4  ;;  %575 = vmatpush.bf16.msrb.mxu0 %v3962_v2  ;;  %v4271_v7 = vld [vmem:[%s4264_s26 + $0x10] sm:$0xf]  ;;  %v4274_v8 = vld [vmem:[%s4264_s26 + $0x14] sm:$0x7]  ;;  %v4277_v9 = vld [vmem:[%s4264_s26 + $0x18] sm:$0xf] }
  0x11   : > { %833 = vmatpush.bf16.msrb.mxu3 %v3965_v3  ;;  %1075 = vmatpush.bf16.msrb.mxu1 %v3967_v5  ;;  %v4280_v10 = vld [vmem:[%s4264_s26 + $0x1c] sm:$0x7]  ;;  %v3582_v11 = vrot.slane %v4271_v7, 9  ;;  %v618_v12 = vrot.slane %v4274_v8, 5  ;;  %v3583_v13 = vrot.slane %v4277_v9, 9  ;;  %v4286_v14 = vshrl.u32 %v4271_v7, 16  ;;  %vm4532_vm12 = vmor %vm710_vm10, %vm711_vm11 }
  0x12   : > { %v622_v15 = vrot.slane %v4280_v10, 5  ;;  %v4290_v16 = vld [vmem:[%s4264_s26] sm:$0xf]  ;;  %v4293_v17 = vld [vmem:[%s4264_s26 + $0x4] sm:$0x7]  ;;  %v4296_v18 = vshll.u32 %v4271_v7, 16  ;;  %vm4537_vm15 = vmor %vm863_vm13, %vm864_vm14 }
  0x13   : > { %v619_v19 = vsel %vm4266_vm3, %v3582_v11, %v618_v12  ;;  %v4301_v20 = vld [vmem:[%s4264_s26 + $0x8] sm:$0xf]  ;;  %v4304_v21 = vld [vmem:[%s4264_s26 + $0xc] sm:$0x7]  ;;  %v4307_v22 = vshrl.u32 %v4290_v16, 16  ;;  %v4310_v23 = vshll.u32 %v4290_v16, 16  ;;  %vm4571_vm4 = vmor %vm968_vm0, %vm969_vm1 }
  0x14   : > { %v623_v24 = vsel %vm4266_vm3, %v3583_v13, %v622_v15  ;;  %v645_v25 = vunpack.c.l.b16 %v619_v19  ;;  %v4315_v26 = vshll.u32 %v4293_v17, 16  ;;  %v4318_v27 = vshrl.u32 %v4301_v20, 16  ;;  %v3562_v40 = vld [vmem:[%s4264_s26 + $0x10] sm:$0xf]  ;;  %v3959_v41 = vld [vmem:[%s4264_s26 + $0x14] sm:$0xf0] }
  0x15   : > { %v646_v28 = vunpack.c.l.b16 %v623_v24  ;;  %v358_v29 = vrot.slane %v4307_v22, 4  ;;  %v361_v30 = vrot.slane %v4310_v23, 5  ;;  %v4323_v31 = vshll.u32 %v4301_v20, 16  ;;  %v4356_v51 = vld [vmem:[%s4264_s26 + $0x24] sm:$0x7] }
  0x16   : > { %v367_v32 = vrot.slane %v4315_v26, 5  ;;  %v372_v33 = vrot.slane %v4318_v27, 4  ;;  %v4328_v34 = vshll.u32 %v4304_v21, 16  ;;  %v386_v35 = vrot.slane %v4286_v14, 4  ;;  %v4362_v56 = vld [vmem:[%s4264_s26 + $0x2c] sm:$0x7] }
  0x17   : > { %v652_v36 = vpack.c.b16 %v646_v28, %v645_v25  ;;  %v362_v37 = vor.u32 %v361_v30, %v358_v29  ;;  %v375_v38 = vrot.slane %v4323_v31, 5  ;;  %v389_v39 = vrot.slane %v4296_v18, 5  ;;  %v4368_v61 = vld [vmem:[%s4264_s26 + $0x20] sm:$0xf]  ;;  %v4372_v1 = vld [vmem:[%s4264_s26 + $0x28] sm:$0xf] }
  0x18   : > { %v381_v43 = vrot.slane %v4328_v34, 5  ;;  %v4343_v44 = vshll.u32 %v4274_v8, 16  ;;  %v4346_v45 = vshrl.u32 %v4277_v9, 16  ;;  %v4349_v46 = vshll.u32 %v4277_v9, 16 }
  0x19   : > { %3595 = vmatmul.msk.bf16.vlgmr.msra.gmra.mxu2 %vm488_vm2, %v652_v36  ;;  %v363_v47 = vrot.slane %v362_v37, 4  ;;  %v376_v48 = vor.u32 %v375_v38, %v372_v33  ;;  %v390_v49 = vor.u32 %v389_v39, %v386_v35  ;;  %v4353_v50 = vshll.u32 %v4280_v10, 16  ;;  %v4396_v33 = vld [vmem:[%s4264_s26 + $0x4] sm:$0xf0]  ;;  %v3566_v39 = vld [vmem:[%s4264_s26 + $0x20] sm:$0xf] }
  0x1a   : > { %v395_v52 = vrot.slane %v4343_v44, 5  ;;  %v400_v53 = vrot.slane %v4346_v45, 4  ;;  %v403_v54 = vrot.slane %v4349_v46, 5  ;;  %v3563_v55 = vor.u32 %v3959_v41, %v3562_v40  ;;  %v3960_v40 = vld [vmem:[%s4264_s26 + $0x24] sm:$0xf0] }
  0x1b   : > { %v368_v57 = vsel %vm4337_vm6, %v363_v47, %v367_v32  ;;  %v377_v58 = vrot.slane %v376_v48, 4  ;;  %v391_v59 = vrot.slane %v390_v49, 4  ;;  %v409_v60 = vrot.slane %v4353_v50, 5  ;;  %v4393_v32 = vld [vmem:[%s4264_s26] sm:$0xf] }
  0x1c   : > { %v470_v62 = vunpack.c.l.b16 %v368_v57  ;;  %v404_v63 = vor.u32 %v403_v54, %v400_v53  ;;  %3577 = vmatmul.msk.bf16.vlgmr.msra.gmra.mxu1 %vm488_vm2, %v3563_v55  ;;  %v3584_v2 = vrot.slane %v4368_v61, 9  ;;  %v626_v3 = vrot.slane %v4356_v51, 5  ;;  %v4411_v49 = vld [vmem:[%s4264_s26 + $0x34] sm:$0x7]  ;;  %v4422_v57 = vld [vmem:[%s4264_s26 + $0x3c] sm:$0x7] }
  0x1d   : > { %v382_v4 = vsel %vm4337_vm6, %v377_v58, %v381_v43  ;;  %v396_v5 = vsel %vm4337_vm6, %v391_v59, %v395_v52  ;;  %v3585_v11 = vrot.slane %v4372_v1, 9  ;;  %v630_v12 = vrot.slane %v4362_v56, 5 }
  0x1e   : > { %v471_v13 = vunpack.c.l.b16 %v382_v4  ;;  %v405_v15 = vrot.slane %v404_v63, 4  ;;  %v472_v19 = vunpack.c.l.b16 %v396_v5  ;;  %v627_v24 = vsel %vm4266_vm3, %v3584_v2, %v626_v3  ;;  %v4429_v63 = vld [vmem:[%s4264_s26 + $0x30] sm:$0xf]  ;;  %v4434_v5 = vld [vmem:[%s4264_s26 + $0x38] sm:$0xf] }
  0x1f   : > { %v631_v25 = vsel %vm4266_vm3, %v3585_v11, %v630_v12  ;;  %v647_v28 = vunpack.c.l.b16 %v627_v24  ;;  %v4387_v29 = vshrl.u32 %v4368_v61, 16  ;;  %v4390_v30 = vshll.u32 %v4368_v61, 16  ;;  %5954 = vst [vmem:[#allocation5_spill] sm:$0xff] %v4429_v63 }
  0x20   : > { %v478_v35 = vpack.c.b16 %v471_v13, %v470_v62  ;;  %v410_v36 = vsel %vm4337_vm6, %v405_v15, %v409_v60  ;;  %v648_v37 = vunpack.c.l.b16 %v631_v25  ;;  %v4401_v38 = vshll.u32 %v4356_v51, 16  ;;  %5955 = vst [vmem:[#allocation6_spill] sm:$0xff] %v4434_v5 }
  0x21   : > { %v473_v41 = vunpack.c.l.b16 %v410_v36  ;;  %v414_v43 = vrot.slane %v4387_v29, 4  ;;  %v417_v47 = vrot.slane %v4390_v30, 5  ;;  %v4408_v48 = vshrl.u32 %v4372_v1, 16 }
  0x22   : > { %3552 = vmatmul.msk.bf16.vlgmr.msra.gmra.mxu0 %vm488_vm2, %v478_v35  ;;  %v653_v52 = vpack.c.b16 %v648_v37, %v647_v28  ;;  %v423_v53 = vrot.slane %v4401_v38, 5  ;;  %v4416_v54 = vshll.u32 %v4372_v1, 16  ;;  %v4419_v55 = vshll.u32 %v4362_v56, 16 }
  0x23   : > { %v479_v58 = vpack.c.b16 %v473_v41, %v472_v19  ;;  %v418_v59 = vor.u32 %v417_v47, %v414_v43  ;;  %v428_v60 = vrot.slane %v4408_v48, 4  ;;  %680 = vmatpush.bf16.msra.mxu0 %v4238_v0  ;;  %v3567_v4 = vor.u32 %v3960_v40, %v3566_v39 }
  0x24   : > { %v431_v2 = vrot.slane %v4416_v54, 5  ;;  %v437_v3 = vrot.slane %v4419_v55, 5  ;;  %v3586_v11 = vrot.slane %v4429_v63, 9  ;;  %v634_v13 = vrot.slane %v4411_v49, 5 }
  0x25   : > { %3553 = vmatmul.msk.bf16.vlgmr.msra.gmra.mxu3 %vm488_vm2, %v479_v58  ;;  %v419_v12 = vrot.slane %v418_v59, 4  ;;  %v3587_v15 = vrot.slane %v4434_v5, 9  ;;  %v638_v0 = vrot.slane %v4422_v57, 5  ;;  %v4442_v24 = vshrl.u32 %v4429_v63, 16 }
  0x26   : > { %v432_v19 = vor.u32 %v431_v2, %v428_v60  ;;  %v4445_v25 = vshll.u32 %v4429_v63, 16  ;;  %v4448_v28 = vshll.u32 %v4411_v49, 16  ;;  %v635_v36 = vsel %vm4266_vm3, %v3586_v11, %v634_v13 }
  0x27   : > { %v424_v35 = vsel %vm4337_vm6, %v419_v12, %v423_v53  ;;  %v639_v37 = vsel %vm4266_vm3, %v3587_v15, %v638_v0  ;;  %v4457_v39 = vshrl.u32 %v4434_v5, 16  ;;  %v649_v43 = vunpack.c.l.b16 %v635_v36  ;;  %v4478_v15 = vld [vmem:[%s4264_s26 + $0x34] sm:$0xf0] }
  0x28   : > { %v433_v40 = vrot.slane %v432_v19, 4  ;;  %v474_v41 = vunpack.c.l.b16 %v424_v35  ;;  %v650_v47 = vunpack.c.l.b16 %v639_v37  ;;  %v442_v58 = vrot.slane %v4442_v24, 4 }
  0x29   : > { %3596 = vmatmul.msk.bf16.gmra.mxu2 %vm488_vm2, %v653_v52  ;;  %v445_v53 = vrot.slane %v4445_v25, 5  ;;  %v451_v59 = vrot.slane %v4448_v28, 5  ;;  %v456_v60 = vrot.slane %v4457_v39, 4  ;;  %v4469_v12 = vshll.u32 %v4434_v5, 16  ;;  %v4475_v52 = vld [vmem:[%s4264_s26 + $0x30] sm:$0xf] }
  0x2a   : > { %v438_v2 = vsel %vm4337_vm6, %v433_v40, %v437_v3  ;;  %v4466_v11 = vpack.c.b16 %v650_v47, %v649_v43  ;;  %v4472_v13 = vshll.u32 %v4422_v57, 16  ;;  %v3580_v35 = vrot.slane %v4290_v16, 9 }
  0x2b   : > { %v475_v0 = vunpack.c.l.b16 %v438_v2  ;;  %v446_v19 = vor.u32 %v445_v53, %v442_v58  ;;  %v610_v36 = vrot.slane %v4293_v17, 5  ;;  %v459_v3 = vrot.slane %v4469_v12, 5 }
  0x2c   : > { %5956 = vst [vmem:[#allocation7_spill] sm:$0xff] %v4472_v13  ;;  %3578 = vmatmul.msk.bf16.gmra.mxu1 %vm488_vm2, %v3567_v4  ;;  %v465_v37 = vrot.slane %v4472_v13, 5  ;;  %v3581_v40 = vrot.slane %v4301_v20, 9  ;;  %v614_v43 = vrot.slane %v4304_v21, 5  ;;  %v720_v58 = vrot.slane %v4315_v26, 6 }
  0x2d   : > { %v480_v47 = vpack.c.b16 %v475_v0, %v474_v41  ;;  %v447_v62 = vrot.slane %v446_v19, 4  ;;  %v611_v2 = vsel %vm4266_vm3, %v3580_v35, %v610_v36  ;;  %v460_v53 = vor.u32 %v459_v3, %v456_v60  ;;  %v3966_v41 = vld [vmem:[%s5924_s1 + $0x20] sm:$0xff] }
  0x2e   : > { %v615_v4 = vsel %vm4266_vm3, %v3581_v40, %v614_v43  ;;  %v643_v5 = vunpack.c.l.b16 %v611_v2  ;;  %v3636_v0 = vrot.slane %v4290_v16, 11  ;;  %v1110_v36 = vrot.slane %v4293_v17, 7 }
  0x2f   : > { %v452_v63 = vsel %vm4337_vm6, %v447_v62, %v451_v59  ;;  %v644_v13 = vunpack.c.l.b16 %v615_v4  ;;  %v461_v19 = vrot.slane %v460_v53, 4  ;;  %v3637_v3 = vrot.slane %v4301_v20, 11 }
  0x30   : > { %v476_v35 = vunpack.c.l.b16 %v452_v63  ;;  %v1114_v62 = vrot.slane %v4304_v21, 7  ;;  %v5959_v59 = vor.u32 %v4396_v33, %v4393_v32  ;;  %v1111_v43 = vsel %vm4499_vm9, %v3636_v0, %v1110_v36 }
  0x31   : > { %v4505_v40 = vpack.c.b16 %v644_v13, %v643_v5  ;;  %v466_v63 = vsel %vm4337_vm6, %v461_v19, %v465_v37  ;;  %v713_v2 = vrot.slane %v4307_v22, 5  ;;  %v714_v5 = vrot.slane %v4310_v23, 6 }
  0x32   : > { %3576 = vmatmul.msk.bf16.vlgmr.msrb.gmra.mxu0 %vm488_vm2, %v5959_v59  ;;  %v477_v13 = vunpack.c.l.b16 %v466_v63  ;;  %v1115_v53 = vsel %vm4499_vm9, %v3637_v3, %v1114_v62  ;;  %v1143_v4 = vunpack.c.l.b16 %v1111_v43  ;;  %v717_v32 = vshrl.u32 %v4293_v17, 16 }
  0x33   : > { %938 = vmatpush.bf16.msrb.mxu0 %v3966_v41  ;;  %v1144_v33 = vunpack.c.l.b16 %v1115_v53  ;;  %v715_v59 = vor.u32 %v714_v5, %v713_v2  ;;  %v723_v37 = vrot.slane %v4318_v27, 5  ;;  %v724_v36 = vrot.slane %v4323_v31, 6 }
  0x34   : > { %v4524_v0 = vpack.c.b16 %v477_v13, %v476_v35  ;;  %v719_v19 = vrot.slane %v717_v32, 5  ;;  %v727_v41 = vshrl.u32 %v4304_v21, 16  ;;  %v730_v43 = vrot.slane %v4328_v34, 6 }
  0x35   : > { %3554 = vmatmul.msk.bf16.gmra.mxu3 %vm488_vm2, %v480_v47  ;;  %v4528_v63 = vpack.c.b16 %v1144_v33, %v1143_v4  ;;  %v716_v62 = vrot.slane %v715_v59, 4  ;;  %v725_v35 = vor.u32 %v724_v36, %v723_v37  ;;  %v3608_v13 = vrot.slane %v4290_v16, 10 }
  0x36   : > { %v721_v47 = vor.u32 %v720_v58, %v719_v19  ;;  %v729_v2 = vrot.slane %v727_v41, 5  ;;  %v868_v53 = vrot.slane %v4293_v17, 6  ;;  %v3609_v4 = vrot.slane %v4301_v20, 10 }
  0x37   : > { %v872_v33 = vrot.slane %v4304_v21, 6  ;;  %v726_v59 = vrot.slane %v725_v35, 4  ;;  %v975_v35 = vrot.slane %v717_v32, 6  ;;  %vm1794_vm8 = vcmask 125953  }
  0x38   : > { %v722_v58 = vsel %vm4532_vm12, %v716_v62, %v721_v47  ;;  %v731_v37 = vor.u32 %v730_v43, %v729_v2  ;;  %v869_v36 = vsel %vm4537_vm15, %v3608_v13, %v868_v53  ;;  %v5964_v62 = vor.u32 %v4478_v15, %v4475_v52 }
  0x39   : > { %3597 = vmatmul.msk.bf16.gmra.mxu2 %vm488_vm2, %v4466_v11  ;;  %v796_v19 = vunpack.c.l.b16 %v722_v58  ;;  %v873_v16 = vsel %vm4537_vm15, %v3609_v4, %v872_v33  ;;  %v901_v20 = vunpack.c.l.b16 %v869_v36  ;;  %v971_v11 = vrot.slane %v4307_v22, 6 }
  0x3a   : > { %v732_v17 = vsel %vm4532_vm12, %v726_v59, %v731_v37  ;;  %v902_v21 = vunpack.c.l.b16 %v873_v16  ;;  %v972_v47 = vrot.slane %v4310_v23, 7  ;;  %v976_v2 = vrot.slane %v4315_v26, 7  ;;  %v3836_v23 = vld [vmem:[%s5930_s7 + $0x18] sm:$0xf0] }
  0x3b   : > { %v797_v43 = vunpack.c.l.b16 %v732_v17  ;;  %v979_v53 = vrot.slane %v4318_v27, 6  ;;  %v980_v4 = vrot.slane %v4323_v31, 7  ;;  %v983_v33 = vrot.slane %v727_v41, 6 }
  0x3c   : > { %3579 = vmatmul.msk.bf16.gmra.mxu1 %vm488_vm2, %v5964_v62  ;;  %v4562_v13 = vpack.c.b16 %v902_v21, %v901_v20  ;;  %v973_v22 = vor.u32 %v972_v47, %v971_v11  ;;  %v977_v59 = vor.u32 %v976_v2, %v975_v35  ;;  %v984_v52 = vrot.slane %v4328_v34, 7 }
  0x3d   : > { %v4566_v58 = vpack.c.b16 %v797_v43, %v796_v19  ;;  %v981_v26 = vor.u32 %v980_v4, %v979_v53  ;;  %v3638_v15 = vrot.slane %v4271_v7, 11  ;;  %v1118_v27 = vrot.slane %v4274_v8, 7 }
  0x3e   : > { %v3639_v31 = vrot.slane %v4277_v9, 11  ;;  %v974_v32 = vrot.slane %v973_v22, 4  ;;  %v985_v41 = vor.u32 %v984_v52, %v983_v33  ;;  %v1122_v37 = vrot.slane %v4280_v10, 7 }
  0x3f   : > { %v733_v19 = vrot.slane %v4286_v14, 5  ;;  %v982_v34 = vrot.slane %v981_v26, 4  ;;  %v1119_v36 = vsel %vm4499_vm9, %v3638_v15, %v1118_v27  ;;  %v734_v16 = vrot.slane %v4296_v18, 6 }
  0x40   : > { %v737_v17 = vshrl.u32 %v4274_v8, 16  ;;  %v978_v20 = vsel %vm4571_vm4, %v974_v32, %v977_v59  ;;  %v1123_v21 = vsel %vm4499_vm9, %v3639_v31, %v1122_v37  ;;  %v1145_v11 = vunpack.c.l.b16 %v1119_v36 }
  0x41   : > { %v740_v62 = vrot.slane %v4343_v44, 6  ;;  %v986_v43 = vsel %vm4571_vm4, %v982_v34, %v985_v41  ;;  %v1038_v47 = vunpack.c.l.b16 %v978_v20  ;;  %v1146_v35 = vunpack.c.l.b16 %v1123_v21 }
  0x42   : > { %3594 = vmatmul.msk.bf16.vlgmr.msra.gmra.mxu0 %vm488_vm2, %v4505_v40  ;;  %v735_v2 = vor.u32 %v734_v16, %v733_v19  ;;  %v1039_v53 = vunpack.c.l.b16 %v986_v43  ;;  %v739_v4 = vrot.slane %v737_v17, 5  ;;  %v743_v33 = vrot.slane %v4346_v45, 5 }
  0x43   : > { %v744_v40 = vrot.slane %v4349_v46, 6  ;;  %v4597_v22 = vpack.c.b16 %v1146_v35, %v1145_v11  ;;  %v747_v52 = vshrl.u32 %v4280_v10, 16  ;;  %v750_v26 = vrot.slane %v4353_v50, 6 }
  0x44   : > { %v736_v59 = vrot.slane %v735_v2, 4  ;;  %v1046_v15 = vpack.c.b16 %v1039_v53, %v1038_v47  ;;  %v741_v27 = vor.u32 %v740_v62, %v739_v4  ;;  %v3610_v32 = vrot.slane %v4271_v7, 10 }
  0x45   : > { %3555 = vmatmul.msk.bf16.gmra.mxu3 %vm488_vm2, %v4524_v0  ;;  %v745_v31 = vor.u32 %v744_v40, %v743_v33  ;;  %v749_v41 = vrot.slane %v747_v52, 5  ;;  %v876_v37 = vrot.slane %v4274_v8, 6  ;;  %v3611_v19 = vrot.slane %v4277_v9, 10 }
  0x46   : > { %v880_v34 = vrot.slane %v4280_v10, 6  ;;  %v742_v0 = vsel %vm4532_vm12, %v736_v59, %v741_v27  ;;  %v987_v16 = vrot.slane %v4286_v14, 6  ;;  %v988_v20 = vrot.slane %v4296_v18, 7 }
  0x47   : > { %v746_v36 = vrot.slane %v745_v31, 4  ;;  %v751_v21 = vor.u32 %v750_v26, %v749_v41  ;;  %v798_v7 = vunpack.c.l.b16 %v742_v0  ;;  %v877_v8 = vsel %vm4537_vm15, %v3610_v32, %v876_v37 }
  0x48   : > { %v881_v9 = vsel %vm4537_vm15, %v3611_v19, %v880_v34  ;;  %v903_v10 = vunpack.c.l.b16 %v877_v8  ;;  %v989_v62 = vor.u32 %v988_v20, %v987_v16  ;;  %v991_v43 = vrot.slane %v737_v17, 6 }
  0x49   : > { %3650 = vmatmul.msk.bf16.vlgmr.msrb.gmra.mxu2 %vm488_vm2, %v4528_v63  ;;  %v904_v11 = vunpack.c.l.b16 %v881_v9  ;;  %v752_v14 = vsel %vm4532_vm12, %v746_v36, %v751_v21  ;;  %v992_v18 = vrot.slane %v4343_v44, 7  ;;  %v995_v47 = vrot.slane %v4346_v45, 6 }
  0x4a   : > { %v996_v63 = vrot.slane %v4349_v46, 7  ;;  %v799_v35 = vunpack.c.l.b16 %v752_v14  ;;  %v990_v53 = vrot.slane %v989_v62, 4  ;;  %v999_v4 = vrot.slane %v747_v52, 6 }
  0x4b   : > { %v4621_v2 = vpack.c.b16 %v904_v11, %v903_v10  ;;  %v993_v33 = vor.u32 %v992_v18, %v991_v43  ;;  %v1000_v17 = vrot.slane %v4353_v50, 7  ;;  %v3640_v59 = vrot.slane %v4368_v61, 11 }
  0x4c   : > { %3632 = vmatmul.msk.bf16.vlgmr.msrb.gmra.mxu1 %vm488_vm2, %v1046_v15  ;;  %v997_v40 = vor.u32 %v996_v63, %v995_v47  ;;  %v4625_v26 = vpack.c.b16 %v799_v35, %v798_v7  ;;  %v1126_v44 = vrot.slane %v4356_v51, 7  ;;  %v3641_v45 = vrot.slane %v4372_v1, 11 }
  0x4d   : > { %v1130_v46 = vrot.slane %v4362_v56, 7  ;;  %v994_v15 = vsel %vm4571_vm4, %v990_v53, %v993_v33  ;;  %v1001_v31 = vor.u32 %v1000_v17, %v999_v4  ;;  %v753_v52 = vrot.slane %v4387_v29, 5 }
  0x4e   : > { %v998_v27 = vrot.slane %v997_v40, 4  ;;  %v1040_v32 = vunpack.c.l.b16 %v994_v15  ;;  %v1127_v50 = vsel %vm4499_vm9, %v3640_v59, %v1126_v44  ;;  %v754_v37 = vrot.slane %v4390_v30, 6 }
  0x4f   : > { %v1131_v41 = vsel %vm4499_vm9, %v3641_v45, %v1130_v46  ;;  %v1147_v34 = vunpack.c.l.b16 %v1127_v50  ;;  %v757_v36 = vshrl.u32 %v4356_v51, 16  ;;  %v760_v21 = vrot.slane %v4401_v38, 6 }
  0x50   : > { %v1002_v19 = vsel %vm4571_vm4, %v998_v27, %v1001_v31  ;;  %v1148_v0 = vunpack.c.l.b16 %v1131_v41  ;;  %v755_v20 = vor.u32 %v754_v37, %v753_v52  ;;  %v763_v7 = vrot.slane %v4408_v48, 5 }
  0x51   : > { %v1041_v16 = vunpack.c.l.b16 %v1002_v19  ;;  %v759_v9 = vrot.slane %v757_v36, 5  ;;  %v764_v10 = vrot.slane %v4416_v54, 6  ;;  %v767_v11 = vshrl.u32 %v4362_v56, 16 }
  0x52   : > { %3622 = vmatmul.msk.bf16.vlgmr.msrb.gmra.mxu0 %vm488_vm2, %v4562_v13  ;;  %v4645_v8 = vpack.c.b16 %v1148_v0, %v1147_v34  ;;  %v756_v43 = vrot.slane %v755_v20, 4  ;;  %v770_v14 = vrot.slane %v4419_v55, 6  ;;  %v3612_v18 = vrot.slane %v4368_v61, 10 }
  0x53   : > { %v1047_v62 = vpack.c.b16 %v1041_v16, %v1040_v32  ;;  %v761_v13 = vor.u32 %v760_v21, %v759_v9  ;;  %v765_v47 = vor.u32 %v764_v10, %v763_v7  ;;  %v769_v63 = vrot.slane %v767_v11, 5 }
  0x54   : > { %v884_v35 = vrot.slane %v4356_v51, 6  ;;  %v3613_v53 = vrot.slane %v4372_v1, 10  ;;  %v888_v4 = vrot.slane %v4362_v56, 6  ;;  %v1003_v33 = vrot.slane %v4387_v29, 6 }
  0x55   : > { %3604 = vmatmul.msk.bf16.vlgmr.msrb.gmra.mxu3 %vm488_vm2, %v4566_v58  ;;  %v1004_v40 = vrot.slane %v4390_v30, 7  ;;  %v762_v17 = vsel %vm4532_vm12, %v756_v43, %v761_v13  ;;  %v766_v61 = vrot.slane %v765_v47, 4  ;;  %v771_v59 = vor.u32 %v770_v14, %v769_v63 }
  0x56   : > { %v885_v58 = vsel %vm4537_vm15, %v3612_v18, %v884_v35  ;;  %v800_v44 = vunpack.c.l.b16 %v762_v17  ;;  %v889_v51 = vsel %vm4537_vm15, %v3613_v53, %v888_v4  ;;  %v1007_v30 = vrot.slane %v757_v36, 6  ;;  %v5968_v18 = vld [vmem:[#allocation5_spill] sm:$0xff] }
  0x57   : > { %v905_v45 = vunpack.c.l.b16 %v885_v58  ;;  %v1005_v1 = vor.u32 %v1004_v40, %v1003_v33  ;;  %v772_v56 = vsel %vm4532_vm12, %v766_v61, %v771_v59  ;;  %v906_v29 = vunpack.c.l.b16 %v889_v51  ;;  %v5969_v40 = vld [vmem:[#allocation6_spill] sm:$0xff] }
  0x58   : > { %v1008_v46 = vrot.slane %v4401_v38, 7  ;;  %v801_v15 = vunpack.c.l.b16 %v772_v56  ;;  %v1011_v31 = vrot.slane %v4408_v48, 6  ;;  %v1012_v52 = vrot.slane %v4416_v54, 7 }
  0x59   : > { %3651 = vmatmul.msk.bf16.gmra.mxu2 %vm488_vm2, %v4597_v22  ;;  %v1006_v27 = vrot.slane %v1005_v1, 4  ;;  %v4671_v32 = vpack.c.b16 %v906_v29, %v905_v45  ;;  %v1015_v41 = vrot.slane %v767_v11, 6  ;;  %v1016_v37 = vrot.slane %v4419_v55, 7  ;;  %v5967_v11 = vld [vmem:[#allocation7_spill] sm:$0xff] }
  0x5a   : > { %v1009_v50 = vor.u32 %v1008_v46, %v1007_v30  ;;  %v4675_v22 = vpack.c.b16 %v801_v15, %v800_v44  ;;  %v1013_v19 = vor.u32 %v1012_v52, %v1011_v31  ;;  %v773_v34 = vrot.slane %v4442_v24, 5 }
  0x5b   : > { %v774_v38 = vrot.slane %v4445_v25, 6  ;;  %v1017_v0 = vor.u32 %v1016_v37, %v1015_v41  ;;  %v777_v54 = vshrl.u32 %v4411_v49, 16  ;;  %v780_v36 = vrot.slane %v4448_v28, 6 }
  0x5c   : > { %3633 = vmatmul.msk.bf16.gmra.mxu1 %vm488_vm2, %v1047_v62  ;;  %v1010_v48 = vsel %vm4571_vm4, %v1006_v27, %v1009_v50  ;;  %v1014_v16 = vrot.slane %v1013_v19, 4  ;;  %v783_v21 = vrot.slane %v4457_v39, 5  ;;  %v784_v9 = vrot.slane %v4469_v12, 6 }
  0x5d   : > { %v1042_v20 = vunpack.c.l.b16 %v1010_v48  ;;  %v775_v55 = vor.u32 %v774_v38, %v773_v34  ;;  %v779_v7 = vrot.slane %v777_v54, 5  ;;  %v787_v10 = vshrl.u32 %v4422_v57, 16 }
  0x5e   : > { %v790_v62 = vrot.slane %v5967_v11, 6  ;;  %v1018_v43 = vsel %vm4571_vm4, %v1014_v16, %v1017_v0  ;;  %v3642_v13 = vrot.slane %v5968_v18, 11  ;;  %v1134_v47 = vrot.slane %v4411_v49, 7 }
  0x5f   : > { %v776_v14 = vrot.slane %v775_v55, 4  ;;  %v1043_v63 = vunpack.c.l.b16 %v1018_v43  ;;  %v781_v35 = vor.u32 %v780_v36, %v779_v7  ;;  %v785_v53 = vor.u32 %v784_v9, %v783_v21 }
  0x60   : > { %v789_v4 = vrot.slane %v787_v10, 5  ;;  %v1135_v33 = vsel %vm4499_vm9, %v3642_v13, %v1134_v47  ;;  %v3643_v17 = vrot.slane %v5969_v40, 11  ;;  %v1138_v61 = vrot.slane %v4422_v57, 7 }
  0x61   : > { %v3614_v59 = vrot.slane %v5968_v18, 10  ;;  %v1048_v58 = vpack.c.b16 %v1043_v63, %v1042_v20  ;;  %v782_v44 = vsel %vm4532_vm12, %v776_v14, %v781_v35  ;;  %v786_v51 = vrot.slane %v785_v53, 4 }
  0x62   : > { %3623 = vmatmul.msk.bf16.gmra.mxu0 %vm488_vm2, %v4621_v2  ;;  %v791_v45 = vor.u32 %v790_v62, %v789_v4  ;;  %v802_v1 = vunpack.c.l.b16 %v782_v44  ;;  %v1139_v56 = vsel %vm4499_vm9, %v3643_v17, %v1138_v61  ;;  %v1149_v2 = vunpack.c.l.b16 %v1135_v33 }
  0x63   : > { %v892_v29 = vrot.slane %v4411_v49, 6  ;;  %v1150_v46 = vunpack.c.l.b16 %v1139_v56  ;;  %v3615_v15 = vrot.slane %v5969_v40, 10  ;;  %v896_v27 = vrot.slane %v4422_v57, 6 }
  0x64   : > { %v792_v30 = vsel %vm4532_vm12, %v786_v51, %v791_v45  ;;  %v1019_v50 = vrot.slane %v4442_v24, 6  ;;  %v1020_v41 = vrot.slane %v4445_v25, 7  ;;  %v1023_v19 = vrot.slane %v777_v54, 6 }
  0x65   : > { %3605 = vmatmul.msk.bf16.gmra.mxu3 %vm488_vm2, %v4625_v26  ;;  %v803_v31 = vunpack.c.l.b16 %v792_v30  ;;  %v893_v52 = vsel %vm4537_vm15, %v3614_v59, %v892_v29  ;;  %v1154_v49 = vpack.c.b16 %v1150_v46, %v1149_v2  ;;  %v897_v26 = vsel %vm4537_vm15, %v3615_v15, %v896_v27  ;;  %v3972_v27 = vld [vmem:[%s5926_s3 + $0x18] sm:$0xff] }
  0x66   : > { %v907_v37 = vunpack.c.l.b16 %v893_v52  ;;  %v908_v38 = vunpack.c.l.b16 %v897_v26  ;;  %v1021_v48 = vor.u32 %v1020_v41, %v1019_v50  ;;  %v1024_v0 = vrot.slane %v4448_v28, 7  ;;  %1475 = vmatpush.bf16.msra.mxu2 %v3972_v27  ;;  %v3973_v26 = vld [vmem:[%s5926_s3 + $0x20] sm:$0xff] }
  0x67   : > { %v807_v34 = vpack.c.b16 %v803_v31, %v802_v1  ;;  %v1027_v57 = vrot.slane %v4457_v39, 6  ;;  %v1028_v24 = vrot.slane %v4469_v12, 7  ;;  %v1031_v36 = vrot.slane %v787_v10, 6  ;;  %v3970_v10 = vld [vmem:[%s5926_s3 + $0x8] sm:$0xff] }
  0x68   : > { %v1032_v25 = vrot.slane %v5967_v11, 7  ;;  %v912_v16 = vpack.c.b16 %v908_v38, %v907_v37  ;;  %v1022_v54 = vrot.slane %v1021_v48, 4  ;;  %v1025_v55 = vor.u32 %v1024_v0, %v1023_v19  ;;  %1326 = vmatpush.bf16.msra.mxu3 %v3970_v10 }
  0x69   : > { %3652 = vmatmul.msk.bf16.gmra.mxu2 %vm488_vm2, %v4645_v8  ;;  %v1029_v20 = vor.u32 %v1028_v24, %v1027_v57  ;;  %v4176_v61 = vmov 0   ;;  %vm1795_vm10 = vsmask.f32 7942  ;;  %vm1800_vm11 = vcmask 123904  }
  0x6a   : > { %v1033_v7 = vor.u32 %v1032_v25, %v1031_v36  ;;  %v1026_v28 = vsel %vm4571_vm4, %v1022_v54, %v1025_v55  ;;  %1242 = vst.msk [vmem:[#allocation2 + $0xc] sm:$0xf] %vm1238_vm5, %v4176_v61  ;;  %v4871_v36 = vld [vmem:[%s5925_s2] ss:$0 sm:$0xff]  ;;  %v3975_v54 = vld [vmem:[%s5926_s3 + $0x30] sm:$0xff]  ;;  %vm5007_vm13 = vmand %vm1794_vm8, %vm1795_vm10 }
  0x6b   : > { %v1030_v21 = vrot.slane %v1029_v20, 4  ;;  %v1044_v39 = vunpack.c.l.b16 %v1026_v28  ;;  %1239 = vst.msk [vmem:[#allocation2] sm:$0xf] %vm1238_vm5, %v4176_v61  ;;  %v3974_v20 = vld [vmem:[%s5926_s3 + $0x28] sm:$0xff]  ;;  %vm5012_vm14 = vmand %vm1800_vm11, %vm968_vm0 }
  0x6c   : > { %3634 = vmatmul.msk.bf16.gmra.mxu1 %vm488_vm2, %v1048_v58  ;;  %1240 = vst.msk [vmem:[#allocation2 + $0x4] sm:$0xf] %vm1238_vm5, %v4176_v61  ;;  %1527 = vmatpush.bf16.msrb.mxu3 %v3973_v26 }
  0x6d   : > { %v1034_v8 = vsel %vm4571_vm4, %v1030_v21, %v1033_v7  ;;  %1241 = vst.msk [vmem:[#allocation2 + $0x8] sm:$0xf] %vm1238_vm5, %v4176_v61 }
  0x6e   : > { %v1045_v12 = vunpack.c.l.b16 %v1034_v8  ;;  %1243 = vst.msk [vmem:[#allocation2 + $0x10] sm:$0xf] %vm1238_vm5, %v4176_v61 }
  0x6f   : > { %1244 = vst.msk [vmem:[#allocation2 + $0x14] sm:$0xf] %vm1238_vm5, %v4176_v61 }
  0x70   : > { %v1049_v9 = vpack.c.b16 %v1045_v12, %v1044_v39  ;;  %1245 = vst.msk [vmem:[#allocation2 + $0x18] sm:$0xf] %vm1238_vm5, %v4176_v61 }
  0x71   : > { %1246 = vst.msk [vmem:[#allocation2 + $0x1c] sm:$0xf] %vm1238_vm5, %v4176_v61 }
  0x72   : > { %3624 = vmatmul.msk.bf16.gmra.mxu0 %vm488_vm2, %v4671_v32  ;;  %v3969_v32 = vld [vmem:[%s5926_s3] sm:$0xff]  ;;  %1247 = vst.msk [vmem:[#allocation2 + $0x20] sm:$0xf] %vm1238_vm5, %v4176_v61 }
  0x73   : > { %1379 = vmatpush.bf16.msra.mxu0 %v3969_v32  ;;  %1248 = vst.msk [vmem:[#allocation2 + $0x24] sm:$0xf] %vm1238_vm5, %v4176_v61  ;;  %v4002_v1 = vld [vmem:[#allocation2] sm:$0xff]  }
  0x74   : > { %1249 = vst.msk [vmem:[#allocation2 + $0x28] sm:$0xf] %vm1238_vm5, %v4176_v61  ;;  %v4134_v56 = vld [vmem:[#allocation2 + $0x4] sm:$0xff]  }
  0x75   : > { %3606 = vmatmul.msk.bf16.gmra.mxu3 %vm488_vm2, %v4675_v22  ;;  %v3971_v22 = vld [vmem:[%s5926_s3 + $0x10] sm:$0xff]  ;;  %1250 = vst.msk [vmem:[#allocation2 + $0x2c] sm:$0xf] %vm1238_vm5, %v4176_v61 }
  0x76   : > { %1423 = vmatpush.bf16.msra.mxu1 %v3971_v22  ;;  %1251 = vst.msk [vmem:[#allocation2 + $0x30] sm:$0xf] %vm1238_vm5, %v4176_v61 }
  0x77   : > { %1252 = vst.msk [vmem:[#allocation2 + $0x34] sm:$0xf] %vm1238_vm5, %v4176_v61  ;;  %1579 = vmatpush.bf16.msrb.mxu0 %v3974_v20 }
  0x78   : > { %1689 = vst.msk [vmem:[#allocation3] sm:$0xf] %vm1238_vm5, %v4176_v61 }
  0x79   : > { %3653 = vmatmul.msk.bf16.gmra.mxu2 %vm488_vm2, %v1154_v49  ;;  %1692 = vst.msk [vmem:[#allocation3 + $0x8] sm:$0xf] %vm1238_vm5, %v4176_v61 }
  0x7a   : > { %1694 = vst.msk [vmem:[#allocation3 + $0x10] sm:$0xf] %vm1238_vm5, %v4176_v61  ;;  %1631 = vmatpush.bf16.msrb.mxu1 %v3975_v54 }
  0x7b   : > { %1696 = vst.msk [vmem:[#allocation3 + $0x18] sm:$0xf] %vm1238_vm5, %v4176_v61 }
  0x7c   : > { %3635 = vmatmul.msk.bf16.gmra.mxu1 %vm488_vm2, %v1049_v9  ;;  %1698 = vst.msk [vmem:[#allocation3 + $0x20] sm:$0xf] %vm1238_vm5, %v4176_v61 }
  0x7d   : > { %1700 = vst.msk [vmem:[#allocation3 + $0x28] sm:$0xf] %vm1238_vm5, %v4176_v61 }
  0x7e   : > { %1702 = vst.msk [vmem:[#allocation3 + $0x30] sm:$0xf] %vm1238_vm5, %v4176_v61 }
  0x7f   : > { %1704 = vst.msk [vmem:[#allocation3 + $0x38] sm:$0xf] %vm1238_vm5, %v4176_v61 }
  0x80   : > { %2732 = vst.msk [vmem:[#allocation4] sm:$0xf] %vm1238_vm5, %v4176_v61 }
  0x81   : > { %2733 = vst.msk [vmem:[#allocation4 + $0x4] sm:$0xf] %vm1238_vm5, %v4176_v61 }
  0x82   : > { %3625 = vmatmul.msk.bf16.gmra.mxu0 %vm488_vm2, %v912_v16  ;;  %2734 = vst.msk [vmem:[#allocation4 + $0x8] sm:$0xf] %vm1238_vm5, %v4176_v61 }
  0x83   : > { %2735 = vst.msk [vmem:[#allocation4 + $0xc] sm:$0xf] %vm1238_vm5, %v4176_v61 }
  0x84   : > { %2736 = vst.msk [vmem:[#allocation4 + $0x10] sm:$0xf] %vm1238_vm5, %v4176_v61 }
  0x85   : > { %3607 = vmatmul.msk.bf16.gmra.mxu3 %vm488_vm2, %v807_v34  ;;  %2737 = vst.msk [vmem:[#allocation4 + $0x14] sm:$0xf] %vm1238_vm5, %v4176_v61 }
  0x86   : > { %2738 = vst.msk [vmem:[#allocation4 + $0x18] sm:$0xf] %vm1238_vm5, %v4176_v61 }
  0x87   : > { %2739 = vst.msk [vmem:[#allocation4 + $0x1c] sm:$0xf] %vm1238_vm5, %v4176_v61 }
  0x88   : > { %2740 = vst.msk [vmem:[#allocation4 + $0x20] sm:$0xf] %vm1238_vm5, %v4176_v61 }
  0x89   : > { %2741 = vst.msk [vmem:[#allocation4 + $0x24] sm:$0xf] %vm1238_vm5, %v4176_v61 }
  0x8a   : > { %2742 = vst.msk [vmem:[#allocation4 + $0x28] sm:$0xf] %vm1238_vm5, %v4176_v61 }
  0x8b   : > { %2743 = vst.msk [vmem:[#allocation4 + $0x2c] sm:$0xf] %vm1238_vm5, %v4176_v61 }
  0x8c   : > { %2744 = vst.msk [vmem:[#allocation4 + $0x30] sm:$0xf] %vm1238_vm5, %v4176_v61 }
  0x8d   : > { %2745 = vst.msk [vmem:[#allocation4 + $0x34] sm:$0xf] %vm1238_vm5, %v4176_v61 }
  0x8e   : > { %1691 = vst.msk [vmem:[#allocation3 + $0x4] sm:$0x7] %vm1690_vm7, %v4176_v61 }
  0x8f   : > { %1693 = vst.msk [vmem:[#allocation3 + $0xc] sm:$0x7] %vm1690_vm7, %v4176_v61 }
  0x90   : > { %1695 = vst.msk [vmem:[#allocation3 + $0x14] sm:$0x7] %vm1690_vm7, %v4176_v61 }
  0x91   : > { %1697 = vst.msk [vmem:[#allocation3 + $0x1c] sm:$0x7] %vm1690_vm7, %v4176_v61 }
  0x92   : > { %3668 = vmatmul.msk.bf16.vlgmr.msra.gmra.mxu0 %vm488_vm2, %v4002_v1  ;;  %1699 = vst.msk [vmem:[#allocation3 + $0x24] sm:$0x7] %vm1690_vm7, %v4176_v61 }
  0x93   : > { %1701 = vst.msk [vmem:[#allocation3 + $0x2c] sm:$0x7] %vm1690_vm7, %v4176_v61 }
  0x94   : > { %1703 = vst.msk [vmem:[#allocation3 + $0x34] sm:$0x7] %vm1690_vm7, %v4176_v61 }
  0x95   : > { %3660 = vmatmul.msk.bf16.vlgmr.msra.gmra.mxu3 %vm488_vm2, %v4134_v56  ;;  %1705 = vst.msk [vmem:[#allocation3 + $0x3c] sm:$0x7] %vm1690_vm7, %v4176_v61  ;;  %v4998_v61 = vld [vmem:[%s5927_s4] ss:$0 sm:$0xff] }
  0x99   : > { %v4743_v11 = vpop.f32.mrf.mxu1 }
  0x9c   : > { %v4745_v62 = vpop.f32.mrf.mxu2 }
  0x9f   : > { %v4747_v43 = vpop.f32.mrf.mxu0 }
  0xa1   : > { %v4749_v14 = vpop.f32.mrf.mxu1 }
  0xa4   : > { %v4751_v18 = vpop.f32.mrf.mxu2 }
  0xa7   : > { %v4753_v13 = vpop.f32.mrf.mxu0 }
  0xa8   : > { %v4755_v47 = vpop.f32.mrf.mxu3 }
  0xa9   : > { %v4757_v63 = vpop.f32.mrf.mxu1  ;;  %v583_v8 = vadd.f32 %v4743_v11, %v4755_v47 }
  0xac   : > { %v4759_v35 = vpop.f32.mrf.mxu2 }
  0xaf   : > { %v577_v53 = vpop.f32.mrf.mxu0 }
  0xb0   : > { %v4761_v4 = vpop.f32.mrf.mxu3  ;;  %v578_v41 = vadd.f32 %v577_v53, %v4747_v43 }
  0xb1   : > { %v4763_v33 = vpop.f32.mrf.mxu1  ;;  %v585_v1 = vadd.f32 %v4749_v14, %v4761_v4 }
  0xb4   : > { %v4765_v40 = vpop.f32.mrf.mxu2 }
  0xb7   : > { %v4767_v17 = vpop.f32.mrf.mxu0 }
  0xb8   : > { %v4771_v59 = vpop.f32.mrf.mxu3  ;;  %v580_v57 = vadd.f32 %v4767_v17, %v4753_v13  ;;  %v704_v13 = vadd.f32 %v4745_v62, %v583_v8  ;;  %v705_v62 = vadd.f32 %v4751_v18, %v585_v1 }
  0xb9   : > { %v4781_v58 = vpop.f32.mrf.mxu1  ;;  %v588_v26 = vadd.f32 %v4757_v63, %v4771_v59 }
  0xbc   : > { %v4787_v44 = vpop.f32.mrf.mxu2 }
  0xbf   : > { %v682_v51 = vpop.f32.mrf.mxu0 }
  0xc0   : > { %v4793_v45 = vpop.f32.mrf.mxu3  ;;  %v702_v49 = vadd.f32 %v682_v51, %v578_v41 }
  0xc1   : > { %v4809_v2 = vpop.f32.mrf.mxu1  ;;  %v590_v20 = vadd.f32 %v4763_v33, %v4793_v45 }
  0xc3   : > { %v707_v8 = vadd.f32 %v4765_v40, %v590_v20 }
  0xc4   : > { %v4817_v46 = vpop.f32.mrf.mxu2 }
  0xc7   : > { %v684_v29 = vpop.f32.mrf.mxu0 }
  0xc8   : > { %v4815_v30 = vpop.f32.mrf.mxu3  ;;  %v703_v25 = vadd.f32 %v684_v29, %v580_v57 }
  0xc9   : > { %v1077_v52 = vpop.f32.mrf.mxu1 }
  0xcc   : > { %v1182_v50 = vpop.f32.mrf.mxu2 }
  0xcf   : > { %v940_v15 = vpop.f32.mrf.mxu0 }
  0xd0   : > { %v4838_v31 = vpop.f32.mrf.mxu3 }
  0xd1   : > { %v1079_v38 = vpop.f32.mrf.mxu1 }
  0xd4   : > { %v1184_v0 = vpop.f32.mrf.mxu2 }
  0xd7   : > { %v942_v19 = vpop.f32.mrf.mxu0 }
  0xd8   : > { %v835_v37 = vpop.f32.mrf.mxu3 }
  0xd9   : > { %v855_v34 = vadd.f32 %v835_v37, %v702_v49  ;;  %v1082_v9 = vpop.f32.mrf.mxu1 }
  0xdb   : > { %v960_v48 = vadd.f32 %v940_v15, %v855_v34 }
  0xdc   : > { %v1187_v22 = vpop.f32.mrf.mxu2 }
  0xdd   : > { %v1097_v24 = vadd.f32 %v1077_v52, %v960_v48 }
  0xdf   : > { %v1202_v16 = vadd.f32 %v1182_v50, %v1097_v24  ;;  %v945_v28 = vpop.f32.mrf.mxu0  ;;  %v706_v24 = vadd.f32 %v4759_v35, %v588_v26 }
  0xe0   : > { %v837_v55 = vpop.f32.mrf.mxu3 }
  0xe1   : > { %v1214_v21 = vadd.f32 %v4871_v36, %v1202_v16  ;;  %v856_v7 = vadd.f32 %v837_v55, %v703_v25  ;;  %v1084_v27 = vpop.f32.mrf.mxu1 }
  0xe3   : > { %v1222_v39 = vmax.f32 %v1214_v21, 0.0  ;;  %v961_v12 = vadd.f32 %v942_v19, %v856_v7 }
  0xe4   : > { %v1189_v41 = vpop.f32.mrf.mxu2 }
  0xe5   : > { %v1230_v10 = vpack.c.bf16 %v1222_v39, %v1222_v39  ;;  %v1098_v32 = vadd.f32 %v1079_v38, %v961_v12 }
  0xe7   : > { %1254 = vst.msk [vmem:[#allocation2 + $0xc] sm:$0xf] %vm1238_vm5, %v1230_v10  ;;  %v1203_v43 = vadd.f32 %v1184_v0, %v1098_v32  ;;  %v947_v47 = vpop.f32.mrf.mxu0  ;;  %v593_v10 = vadd.f32 %v4781_v58, %v4815_v30 }
  0xe8   : > { %v840_v53 = vpop.f32.mrf.mxu3 }
  0xe9   : > { %v1215_v17 = vadd.f32 %v4871_v36, %v1203_v43  ;;  %v857_v51 = vadd.f32 %v840_v53, %v704_v13  ;;  %v1087_v18 = vpop.f32.mrf.mxu1  ;;  %v708_v40 = vadd.f32 %v4787_v44, %v593_v10 }
  0xeb   : > { %v1223_v56 = vmax.f32 %v1215_v17, 0.0  ;;  %v962_v11 = vadd.f32 %v945_v28, %v857_v51 }
  0xec   : > { %v1192_v59 = vpop.f32.mrf.mxu2 }
  0xed   : > { %v1231_v29 = vpack.c.bf16 %v1223_v56, %v1223_v56  ;;  %v1099_v15 = vadd.f32 %v1082_v9, %v962_v11 }
  0xee   : > { %v4057_v52 = vld [vmem:[#allocation2 + $0x8] sm:$0xff]  }
  0xef   : > { %1255 = vst.msk [vmem:[#allocation2 + $0x10] sm:$0xf] %vm1238_vm5, %v1231_v29  ;;  %v1204_v50 = vadd.f32 %v1187_v22, %v1099_v15  ;;  %3669 = vmatmul.msk.bf16.gmra.mxu0 %vm488_vm2, %v4057_v52  ;;  %3678 = vmatmul.msk.bf16.vlgmr.msra.gmra.mxu1 %vm488_vm2, %v4057_v52  ;;  %v950_v48 = vpop.f32.mrf.mxu0 }
  0xf0   : > { %v842_v49 = vpop.f32.mrf.mxu3 }
  0xf1   : > { %v1216_v14 = vadd.f32 %v4871_v36, %v1204_v50  ;;  %v858_v4 = vadd.f32 %v842_v49, %v705_v62  ;;  %v1089_v9 = vpop.f32.mrf.mxu1 }
  0xf3   : > { %v1224_v37 = vmax.f32 %v1216_v14, 0.0  ;;  %v963_v19 = vadd.f32 %v947_v47, %v858_v4  ;;  %v595_v47 = vadd.f32 %v4809_v2, %v4838_v31 }
  0xf4   : > { %v1194_v43 = vpop.f32.mrf.mxu2 }
  0xf5   : > { %v1232_v34 = vpack.c.bf16 %v1224_v37, %v1224_v37  ;;  %v1100_v38 = vadd.f32 %v1084_v27, %v963_v19 }
  0xf6   : > { %v4136_v0 = vld [vmem:[#allocation2 + $0xc] sm:$0xff]  }
  0xf7   : > { %1256 = vst.msk [vmem:[#allocation2 + $0x14] sm:$0xf] %vm1238_vm5, %v1232_v34  ;;  %v1205_v57 = vadd.f32 %v1189_v41, %v1100_v38  ;;  %3661 = vmatmul.msk.bf16.gmra.mxu3 %vm488_vm2, %v4136_v0  ;;  %3688 = vmatmul.msk.bf16.vlgmr.msra.gmra.mxu2 %vm488_vm2, %v4136_v0  ;;  %v952_v39 = vpop.f32.mrf.mxu0  ;;  %v709_v41 = vadd.f32 %v4817_v46, %v595_v47 }
  0xf8   : > { %v845_v25 = vpop.f32.mrf.mxu3 }
  0xf9   : > { %v1217_v16 = vadd.f32 %v4871_v36, %v1205_v57  ;;  %v859_v63 = vadd.f32 %v845_v25, %v706_v24  ;;  %v1092_v30 = vpop.f32.mrf.mxu1 }
  0xfb   : > { %v1225_v54 = vmax.f32 %v1217_v16, 0.0  ;;  %v964_v55 = vadd.f32 %v950_v48, %v859_v63 }
  0xfc   : > { %v1197_v27 = vpop.f32.mrf.mxu2 }
  0xfd   : > { %v1233_v21 = vpack.c.bf16 %v1225_v54, %v1225_v54  ;;  %v1101_v7 = vadd.f32 %v1087_v18, %v964_v55 }
  0xfe   : > { %v4901_v28 = vld [vmem:[#allocation2 + $0x10] sm:$0xff]  }
  0xff   : > { %1257 = vst.msk [vmem:[#allocation2 + $0x18] sm:$0xf] %vm1238_vm5, %v1233_v21  ;;  %v1206_v35 = vadd.f32 %v1192_v59, %v1101_v7  ;;  %3670 = vmatmul.msk.bf16.gmra.mxu0 %vm488_vm2, %v4901_v28  ;;  %3679 = vmatmul.msk.bf16.gmra.mxu1 %vm488_vm2, %v4901_v28  ;;  %v955_v1 = vpop.f32.mrf.mxu0  ;;  %v4062_v59 = vld [vmem:[#allocation2 + $0x30] sm:$0xff]  }
 0x100   : > { %v847_v12 = vpop.f32.mrf.mxu3 }
 0x101   : > { %v1218_v33 = vadd.f32 %v4871_v36, %v1206_v35  ;;  %v860_v45 = vadd.f32 %v847_v12, %v707_v8  ;;  %v1094_v37 = vpop.f32.mrf.mxu1 }
 0x103   : > { %v1226_v32 = vmax.f32 %v1218_v33, 0.0  ;;  %v965_v22 = vadd.f32 %v952_v39, %v860_v45  ;;  %v3981_v33 = vld [vmem:[%s5928_s5 + $0x8] sm:$0xff]  ;;  %v3980_v45 = vld [vmem:[%s5928_s5] sm:$0xff] }
 0x104   : > { %v1199_v38 = vpop.f32.mrf.mxu2  ;;  %2017 = vmatpush.bf16.msrb.mxu2 %v3981_v33  ;;  %2084 = vmatpush.bf16.msra.mxu3 %v3980_v45  ;;  %v1797_v33 = vld [vmem:[#allocation3] sm:$0xe] }
 0x105   : > { %v1234_v13 = vpack.c.bf16 %v1226_v32, %v1226_v32  ;;  %v1102_v53 = vadd.f32 %v1089_v9, %v965_v22 }
 0x106   : > { %v4138_v17 = vld [vmem:[#allocation2 + $0x14] sm:$0xff]  }
 0x107   : > { %1258 = vst.msk [vmem:[#allocation2 + $0x1c] sm:$0xf] %vm1238_vm5, %v1234_v13  ;;  %v1207_v51 = vadd.f32 %v1194_v43, %v1102_v53  ;;  %3662 = vmatmul.msk.bf16.gmra.mxu3 %vm488_vm2, %v4138_v17  ;;  %3689 = vmatmul.msk.bf16.gmra.mxu2 %vm488_vm2, %v4138_v17  ;;  %v957_v2 = vpop.f32.mrf.mxu0  ;;  %v3982_v43 = vld [vmem:[%s5928_s5 + $0x10] sm:$0xff] }
 0x108   : > { %v850_v56 = vpop.f32.mrf.mxu3  ;;  %2186 = vmatpush.bf16.msra.mxu0 %v3982_v43 }
 0x109   : > { %v1219_v11 = vadd.f32 %v4871_v36, %v1207_v51  ;;  %v861_v58 = vadd.f32 %v850_v56, %v708_v40 }
 0x10b   : > { %v1227_v29 = vmax.f32 %v1219_v11, 0.0  ;;  %v966_v15 = vadd.f32 %v955_v1, %v861_v58 }
 0x10d   : > { %v1235_v52 = vpack.c.bf16 %v1227_v29, %v1227_v29  ;;  %v1103_v50 = vadd.f32 %v1092_v30, %v966_v15 }
 0x10e   : > { %v4059_v62 = vld [vmem:[#allocation2 + $0x18] sm:$0xff]  }
 0x10f   : > { %1259 = vst.msk [vmem:[#allocation2 + $0x20] sm:$0xf] %vm1238_vm5, %v1235_v52  ;;  %v1208_v44 = vadd.f32 %v1197_v27, %v1103_v50  ;;  %3671 = vmatmul.msk.bf16.gmra.mxu0 %vm488_vm2, %v4059_v62  ;;  %3680 = vmatmul.msk.bf16.gmra.mxu1 %vm488_vm2, %v4059_v62  ;;  %v1381_v63 = vpop.f32.mrf.mxu0 }
 0x110   : > { %v852_v49 = vpop.f32.mrf.mxu3 }
 0x111   : > { %v1220_v14 = vadd.f32 %v4871_v36, %v1208_v44  ;;  %v862_v4 = vadd.f32 %v852_v49, %v709_v41 }
 0x113   : > { %v1228_v31 = vmax.f32 %v1220_v14, 0.0  ;;  %v967_v26 = vadd.f32 %v957_v2, %v862_v4 }
 0x115   : > { %v1236_v19 = vpack.c.bf16 %v1228_v31, %v1228_v31  ;;  %v1104_v34 = vadd.f32 %v1094_v37, %v967_v26 }
 0x116   : > { %v4140_v48 = vld [vmem:[#allocation2 + $0x1c] sm:$0xff]  }
 0x117   : > { %1260 = vst.msk [vmem:[#allocation2 + $0x24] sm:$0xf] %vm1238_vm5, %v1236_v19  ;;  %v1209_v0 = vadd.f32 %v1199_v38, %v1104_v34  ;;  %3663 = vmatmul.msk.bf16.gmra.mxu3 %vm488_vm2, %v4140_v48  ;;  %3690 = vmatmul.msk.bf16.gmra.mxu2 %vm488_vm2, %v4140_v48  ;;  %v1383_v20 = vpop.f32.mrf.mxu0 }
 0x118   : > { %v1328_v54 = vpop.f32.mrf.mxu3 }
 0x119   : > { %v1221_v46 = vadd.f32 %v4871_v36, %v1209_v0  ;;  %v4143_v36 = vld [vmem:[#allocation2 + $0x2c] sm:$0xff]   ;;  %v1382_v27 = vadd.f32 %v1381_v63, %v1328_v54  ;;  %v3983_v54 = vld [vmem:[%s5928_s5 + $0x18] sm:$0xff] }
 0x11a   : > { %2336 = vmatpush.bf16.msra.mxu1 %v3983_v54 }
 0x11b   : > { %v1229_v57 = vmax.f32 %v1221_v46, 0.0 }
 0x11d   : > { %v1237_v24 = vpack.c.bf16 %v1229_v57, %v1229_v57 }
 0x11e   : > { %v4060_v18 = vld [vmem:[#allocation2 + $0x20] sm:$0xff]  }
 0x11f   : > { %1261 = vst.msk [vmem:[#allocation2 + $0x28] sm:$0xf] %vm1238_vm5, %v1237_v24  ;;  %3681 = vmatmul.msk.bf16.gmra.mxu1 %vm488_vm2, %v4060_v18  ;;  %3708 = vmatmul.msk.bf16.vlgmr.msrb.gmra.mxu0 %vm488_vm2, %v4138_v17 }
 0x120   : > { %v1330_v7 = vpop.f32.mrf.mxu3 }
 0x121   : > { %v1384_v2 = vadd.f32 %v1383_v20, %v1330_v7 }
 0x126   : > { %v4142_v25 = vld [vmem:[#allocation2 + $0x24] sm:$0xff]  }
 0x127   : > { %3691 = vmatmul.msk.bf16.gmra.mxu2 %vm488_vm2, %v4142_v25  ;;  %3698 = vmatmul.msk.bf16.vlgmr.msrb.gmra.mxu3 %vm488_vm2, %v4901_v28  ;;  %v4061_v16 = vld [vmem:[#allocation2 + $0x28] sm:$0xff]  }
 0x12f   : > { %3709 = vmatmul.msk.bf16.gmra.mxu0 %vm488_vm2, %v4140_v48  ;;  %3718 = vmatmul.msk.bf16.vlgmr.msrb.gmra.mxu1 %vm488_vm2, %v4059_v62 }
 0x137   : > { %3699 = vmatmul.msk.bf16.gmra.mxu3 %vm488_vm2, %v4059_v62 }
 0x13f   : > { %3710 = vmatmul.msk.bf16.gmra.mxu0 %vm488_vm2, %v4142_v25  ;;  %3719 = vmatmul.msk.bf16.gmra.mxu1 %vm488_vm2, %v4060_v18 }
 0x147   : > { %3700 = vmatmul.msk.bf16.gmra.mxu3 %vm488_vm2, %v4060_v18 }
 0x14f   : > { %3720 = vmatmul.msk.bf16.gmra.mxu1 %vm488_vm2, %v4061_v16  ;;  %3711 = vmatmul.msk.bf16.gmra.mxu0 %vm488_vm2, %v4143_v36 }
 0x157   : > { %3701 = vmatmul.msk.bf16.gmra.mxu3 %vm488_vm2, %v4061_v16 }
 0x15f   : > { %3721 = vmatmul.msk.bf16.gmra.mxu1 %vm488_vm2, %v4062_v59 }
 0x16c   : > { %v1386_v55 = vpop.f32.mrf.mxu0  ;;  %v1425_v21 = vpop.f32.mrf.mxu1 }
 0x16d   : > { %v1445_v50 = vadd.f32 %v1425_v21, %v1382_v27  ;;  %v1802_v27 = vld [vmem:[#allocation3 + $0x4] sm:$0x3] }
 0x174   : > { %v4944_v28 = vpop.f32.mrf.mxu0  ;;  %v1427_v35 = vpop.f32.mrf.mxu1 }
 0x175   : > { %v1446_v26 = vadd.f32 %v1427_v35, %v1384_v2 }
 0x17a   : > { %v1333_v8 = vpop.f32.mrf.mxu3  ;;  %v1477_v9 = vpop.f32.mrf.mxu2 }
 0x17b   : > { %v1497_v62 = vadd.f32 %v1477_v9, %v1445_v50  ;;  %v1387_v38 = vadd.f32 %v1386_v55, %v1333_v8 }
 0x17c   : > { %v4946_v39 = vpop.f32.mrf.mxu0  ;;  %v1430_v12 = vpop.f32.mrf.mxu1 }
 0x17d   : > { %v1447_v16 = vadd.f32 %v1430_v12, %v1387_v38 }
 0x182   : > { %v4954_v10 = vpop.f32.mrf.mxu3  ;;  %v1479_v53 = vpop.f32.mrf.mxu2 }
 0x183   : > { %v1498_v19 = vadd.f32 %v1479_v53, %v1446_v26  ;;  %v1389_v8 = vadd.f32 %v4944_v28, %v4954_v10 }
 0x184   : > { %v4956_v32 = vpop.f32.mrf.mxu0  ;;  %v4958_v22 = vpop.f32.mrf.mxu1 }
 0x18a   : > { %v4963_v13 = vpop.f32.mrf.mxu3  ;;  %v1482_v56 = vpop.f32.mrf.mxu2 }
 0x18b   : > { %v1499_v21 = vadd.f32 %v1482_v56, %v1447_v16  ;;  %v1808_v16 = vld [vmem:[#allocation3 + $0xc] sm:$0x3] }
 0x18c   : > { %v4965_v17 = vpop.f32.mrf.mxu1  ;;  %v4967_v51 = vpop.f32.mrf.mxu0 }
 0x192   : > { %v4969_v40 = vpop.f32.mrf.mxu3  ;;  %v4987_v47 = vpop.f32.mrf.mxu2 }
 0x194   : > { %v4971_v1 = vpop.f32.mrf.mxu1  ;;  %v4973_v11 = vpop.f32.mrf.mxu0 }
 0x19a   : > { %v4979_v58 = vpop.f32.mrf.mxu3  ;;  %v4993_v44 = vpop.f32.mrf.mxu2 }
 0x19c   : > { %v4982_v30 = vpop.f32.mrf.mxu1  ;;  %v1581_v29 = vpop.f32.mrf.mxu0 }
 0x1a2   : > { %v4989_v15 = vpop.f32.mrf.mxu3  ;;  %v1489_v0 = vpop.f32.mrf.mxu2 }
 0x1a4   : > { %v4991_v52 = vpop.f32.mrf.mxu1  ;;  %v1583_v41 = vpop.f32.mrf.mxu0 }
 0x1aa   : > { %v1529_v49 = vpop.f32.mrf.mxu3  ;;  %v1492_v50 = vpop.f32.mrf.mxu2 }
 0x1ab   : > { %v1549_v14 = vadd.f32 %v1529_v49, %v1497_v62  ;;  %v1448_v49 = vadd.f32 %v4958_v22, %v1389_v8 }
 0x1ac   : > { %v1633_v4 = vpop.f32.mrf.mxu1  ;;  %v1586_v18 = vpop.f32.mrf.mxu0 }
 0x1ad   : > { %v1601_v31 = vadd.f32 %v1581_v29, %v1549_v14  ;;  %v1392_v14 = vadd.f32 %v4946_v39, %v4963_v13  ;;  %v1500_v22 = vadd.f32 %v4987_v47, %v1448_v49 }
 0x1af   : > { %v1653_v37 = vadd.f32 %v1633_v4, %v1601_v31  ;;  %v1394_v4 = vadd.f32 %v4956_v32, %v4969_v40  ;;  %v1449_v32 = vadd.f32 %v4965_v17, %v1392_v14  ;;  %v1399_v40 = vadd.f32 %v4973_v11, %v4989_v15 }
 0x1b1   : > { %v1665_v34 = vadd.f32 %v4998_v61, %v1653_v37  ;;  %v1450_v13 = vadd.f32 %v4971_v1, %v1394_v4  ;;  %v1501_v47 = vadd.f32 %v4993_v44, %v1449_v32  ;;  %v1452_v15 = vadd.f32 %v4991_v52, %v1399_v40 }
 0x1b2   : > { %v1531_v48 = vpop.f32.mrf.mxu3 }
 0x1b3   : > { %v1673_v46 = vmax.f32 %v1665_v34, 0.0  ;;  %v1550_v57 = vadd.f32 %v1531_v48, %v1498_v19  ;;  %v1397_v34 = vadd.f32 %v4967_v51, %v4979_v58 }
 0x1b4   : > { %v1635_v24 = vpop.f32.mrf.mxu1  ;;  %v1588_v2 = vpop.f32.mrf.mxu0 }
 0x1b5   : > { %v1681_v25 = vpack.c.bf16 %v1673_v46, %v1673_v46  ;;  %v1602_v36 = vadd.f32 %v1583_v41, %v1550_v57  ;;  %v1805_v46 = vld [vmem:[#allocation3 + $0x8] sm:$0xe]  ;;  %v1451_v58 = vadd.f32 %v4982_v30, %v1397_v34 }
 0x1b7   : > { %v1707_v63 = vshrl.u32 %v1681_v25, 16  ;;  %v1710_v59 = vshll.u32 %v1681_v25, 16  ;;  %v1654_v20 = vadd.f32 %v1635_v24, %v1602_v36  ;;  %v5035_v36 = vadd.f32 %v1489_v0, %v1450_v13  ;;  %v1494_v0 = vpop.f32.mrf.mxu2 }
 0x1b9   : > { %v1709_v55 = vrot.slane %v1707_v63, 6  ;;  %v1712_v7 = vrot.slane %v1710_v59, 7  ;;  %v1666_v35 = vadd.f32 %v4998_v61, %v1654_v20  ;;  %v5042_v20 = vadd.f32 %v1492_v50, %v1451_v58 }
 0x1ba   : > { %v1534_v45 = vpop.f32.mrf.mxu3  ;;  %v5062_v50 = vadd.f32 %v1494_v0, %v1452_v15  ;;  %v3984_v0 = vld [vmem:[%s5928_s5 + $0x20] sm:$0xff] }
 0x1bb   : > { %v1713_v9 = vor.u32 %v1712_v7, %v1709_v55  ;;  %v1674_v43 = vmax.f32 %v1666_v35, 0.0  ;;  %v1551_v53 = vadd.f32 %v1534_v45, %v1499_v21  ;;  %2438 = vmatpush.bf16.msra.mxu2 %v3984_v0 }
 0x1bc   : > { %v1638_v29 = vpop.f32.mrf.mxu1  ;;  %v1591_v8 = vpop.f32.mrf.mxu0 }
 0x1bd   : > { %v1714_v62 = vrot.slane %v1713_v9, 4  ;;  %v1798_v28 = vsel %vm5007_vm13, %v1713_v9, %v1797_v33  ;;  %v1682_v10 = vpack.c.bf16 %v1674_v43, %v1674_v43  ;;  %v1603_v41 = vadd.f32 %v1586_v18, %v1551_v53 }
 0x1be   : > { %1799 = vst [vmem:[#allocation3] sm:$0xe] %v1798_v28 }
 0x1bf   : > { %v1803_v31 = vsel %vm5012_vm14, %v1714_v62, %v1802_v27  ;;  %v1716_v26 = vshrl.u32 %v1682_v10, 16  ;;  %v1719_v37 = vshll.u32 %v1682_v10, 16  ;;  %v1655_v19 = vadd.f32 %v1638_v29, %v1603_v41  ;;  %v1811_v62 = vld [vmem:[#allocation3 + $0x10] sm:$0xe] }
 0x1c0   : > { %1804 = vst [vmem:[#allocation3 + $0x4] sm:$0x3] %v1803_v31 }
 0x1c1   : > { %v1718_v38 = vrot.slane %v1716_v26, 6  ;;  %v1721_v48 = vrot.slane %v1719_v37, 7  ;;  %v1667_v39 = vadd.f32 %v4998_v61, %v1655_v19  ;;  %v1814_v37 = vld [vmem:[#allocation3 + $0x14] sm:$0x3] }
 0x1c2   : > { %v1536_v57 = vpop.f32.mrf.mxu3 }
 0x1c3   : > { %v1722_v24 = vor.u32 %v1721_v48, %v1718_v38  ;;  %v1675_v18 = vmax.f32 %v1667_v39, 0.0  ;;  %v1552_v25 = vadd.f32 %v1536_v57, %v1500_v22 }
 0x1c4   : > { %v1640_v51 = vpop.f32.mrf.mxu1 }
 0x1c5   : > { %v1723_v63 = vrot.slane %v1722_v24, 4  ;;  %v1806_v17 = vsel %vm5007_vm13, %v1722_v24, %v1805_v46  ;;  %v1683_v1 = vpack.c.bf16 %v1675_v18, %v1675_v18  ;;  %v1604_v59 = vadd.f32 %v1588_v2, %v1552_v25  ;;  %v5039_v11 = vld [vmem:[#allocation3] sm:$0xf] }
 0x1c6   : > { %1807 = vst [vmem:[#allocation3 + $0x8] sm:$0xe] %v1806_v17  ;;  %v3756_v30 = vrot.slane %v5039_v11, 9  ;;  %v5046_v44 = vshrl.u32 %v5039_v11, 16  ;;  %v5055_v45 = vshll.u32 %v5039_v11, 16 }
 0x1c7   : > { %v1809_v54 = vsel %vm5012_vm14, %v1723_v63, %v1808_v16  ;;  %v1725_v21 = vshrl.u32 %v1683_v1, 16  ;;  %v1728_v55 = vshll.u32 %v1683_v1, 16  ;;  %v1656_v7 = vadd.f32 %v1640_v51, %v1604_v59  ;;  %v5050_v35 = vld [vmem:[#allocation3 + $0x4] sm:$0x7]  ;;  %v3734_v19 = vld [vmem:[#allocation3] sm:$0xf] }
 0x1c8   : > { %1810 = vst [vmem:[#allocation3 + $0xc] sm:$0x3] %v1809_v54  ;;  %v2116_v52 = vrot.slane %v5050_v35, 5  ;;  %v1868_v33 = vrot.slane %v5046_v44, 4  ;;  %v5058_v9 = vshll.u32 %v5050_v35, 16  ;;  %v2216_v27 = vrot.slane %v5046_v44, 5 }
 0x1c9   : > { %v1727_v43 = vrot.slane %v1725_v21, 6  ;;  %v1730_v53 = vrot.slane %v1728_v55, 7  ;;  %v1668_v29 = vadd.f32 %v4998_v61, %v1656_v7  ;;  %v1871_v41 = vrot.slane %v5055_v45, 5 }
 0x1ca   : > { %v1539_v28 = vpop.f32.mrf.mxu3  ;;  %v5066_v10 = vsel %vm4266_vm3, %v3756_v30, %v2116_v52  ;;  %v2217_v49 = vrot.slane %v5055_v45, 6  ;;  %v1877_v26 = vrot.slane %v5058_v9, 5  ;;  %v5944_v48 = vshrl.u32 %v5050_v35, 16  ;;  %v1593_v52 = vpop.f32.mrf.mxu0 }
 0x1cb   : > { %v1731_v14 = vor.u32 %v1730_v53, %v1727_v43  ;;  %v1676_v4 = vmax.f32 %v1668_v29, 0.0  ;;  %v1553_v2 = vadd.f32 %v1539_v28, %v1501_v47  ;;  %v2149_v34 = vunpack.c.l.b16 %v5066_v10 }
 0x1cc   : > { %v1643_v31 = vpop.f32.mrf.mxu1  ;;  %v1872_v22 = vor.u32 %v1871_v41, %v1868_v33  ;;  %v5072_v38 = vor.u32 %v2217_v49, %v2216_v27  ;;  %v2223_v51 = vrot.slane %v5058_v9, 6  ;;  %v1817_v33 = vld [vmem:[#allocation3 + $0x18] sm:$0xe] }
 0x1cd   : > { %v1732_v39 = vrot.slane %v1731_v14, 4  ;;  %v1812_v32 = vsel %vm5007_vm13, %v1731_v14, %v1811_v62  ;;  %v1684_v13 = vpack.c.bf16 %v1676_v4, %v1676_v4  ;;  %v1605_v40 = vadd.f32 %v1591_v8, %v1553_v2  ;;  %v3976_v46 = vld [vmem:[#allocation3 + $0x4] sm:$0xf0]  ;;  %v3985_v8 = vld [vmem:[%s5928_s5 + $0x28] sm:$0xff]  ;;  %v1820_v4 = vld [vmem:[#allocation3 + $0x1c] sm:$0x3] }
 0x1ce   : > { %v5077_v57 = vld [vmem:[#allocation3 + $0x8] sm:$0xf]  ;;  %1813 = vst [vmem:[#allocation3 + $0x10] sm:$0xe] %v1812_v32  ;;  %v3735_v24 = vor.u32 %v3976_v46, %v3734_v19  ;;  %v1873_v25 = vrot.slane %v1872_v22, 4  ;;  %2572 = vmatpush.bf16.msrb.mxu3 %v3985_v8 }
 0x1cf   : > { %v3757_v18 = vrot.slane %v5077_v57, 9  ;;  %v1815_v58 = vsel %vm5012_vm14, %v1732_v39, %v1814_v37  ;;  %v1734_v47 = vshrl.u32 %v1684_v13, 16  ;;  %v1737_v16 = vshll.u32 %v1684_v13, 16  ;;  %v5083_v17 = vld [vmem:[#allocation3 + $0xc] sm:$0x7] }
 0x1d0   : > { %v1657_v63 = vadd.f32 %v1643_v31, %v1605_v40  ;;  %1816 = vst [vmem:[#allocation3 + $0x14] sm:$0x3] %v1815_v58  ;;  %3752 = vmatmul.msk.bf16.vlgmr.msra.gmra.mxu3 %vm488_vm2, %v3735_v24  ;;  %v2120_v1 = vrot.slane %v5083_v17, 5  ;;  %v5089_v59 = vsel %vm4337_vm6, %v1873_v25, %v1877_v26  ;;  %v5092_v15 = vshrl.u32 %v5077_v57, 16 }
 0x1d1   : > { %v5095_v30 = vshll.u32 %v5077_v57, 16  ;;  %v1736_v54 = vrot.slane %v1734_v47, 6  ;;  %v1739_v21 = vrot.slane %v1737_v16, 7  ;;  %v5102_v7 = vshll.u32 %v5083_v17, 16  ;;  %v3986_v16 = vld [vmem:[%s5928_s5 + $0x30] sm:$0xff] }
 0x1d2   : > { %v1669_v55 = vadd.f32 %v4998_v61, %v1657_v63  ;;  %v1541_v43 = vpop.f32.mrf.mxu3  ;;  %v2121_v53 = vsel %vm4266_vm3, %v3757_v18, %v2120_v1  ;;  %v1882_v29 = vrot.slane %v5092_v15, 4  ;;  %v1980_v62 = vunpack.c.l.b16 %v5089_v59  ;;  %v1596_v8 = vpop.f32.mrf.mxu0  ;;  %2674 = vmatpush.bf16.msrb.mxu0 %v3986_v16 }
 0x1d3   : > { %v1885_v27 = vrot.slane %v5095_v30, 5  ;;  %v1740_v28 = vor.u32 %v1739_v21, %v1736_v54  ;;  %v1554_v41 = vadd.f32 %v1541_v43, %v5035_v36  ;;  %v2150_v14 = vunpack.c.l.b16 %v2121_v53 }
 0x1d4   : > { %v1677_v10 = vmax.f32 %v1669_v55, 0.0  ;;  %v1645_v49 = vpop.f32.mrf.mxu1  ;;  %v1891_v31 = vrot.slane %v5102_v7, 5  ;;  %v2219_v26 = vrot.slane %v5072_v38, 4  ;;  %v2222_v37 = vrot.slane %v5944_v48, 5  ;;  %v1823_v55 = vld [vmem:[#allocation3 + $0x20] sm:$0xe] }
 0x1d5   : > { %v1886_v2 = vor.u32 %v1885_v27, %v1882_v29  ;;  %v1741_v19 = vrot.slane %v1740_v28, 4  ;;  %v1818_v22 = vsel %vm5007_vm13, %v1740_v28, %v1817_v33  ;;  %v1606_v32 = vadd.f32 %v1593_v52, %v1554_v41  ;;  %v5133_v54 = vld [vmem:[#allocation3 + $0x10] sm:$0xf]  ;;  %v1826_v28 = vld [vmem:[#allocation3 + $0x24] sm:$0x3] }
 0x1d6   : > { %v1685_v39 = vpack.c.bf16 %v1677_v10, %v1677_v10  ;;  %1819 = vst [vmem:[#allocation3 + $0x18] sm:$0xe] %v1818_v22  ;;  %v2157_v36 = vpack.c.b16 %v2150_v14, %v2149_v34  ;;  %v2224_v40 = vor.u32 %v2223_v51, %v2222_v37  ;;  %v2226_v46 = vrot.slane %v5092_v15, 5 }
 0x1d7   : > { %v1887_v13 = vrot.slane %v1886_v2, 4  ;;  %v1821_v24 = vsel %vm5012_vm14, %v1741_v19, %v1820_v4  ;;  %v1658_v25 = vadd.f32 %v1645_v49, %v1606_v32  ;;  %v2227_v34 = vrot.slane %v5095_v30, 6  ;;  %v5135_v21 = vld [vmem:[#allocation3 + $0x14] sm:$0x7] }
 0x1d8   : > { %v1743_v18 = vshrl.u32 %v1685_v39, 16  ;;  %v1746_v38 = vshll.u32 %v1685_v39, 16  ;;  %1822 = vst [vmem:[#allocation3 + $0x1c] sm:$0x3] %v1821_v24  ;;  %3770 = vmatmul.msk.bf16.vlgmr.msra.gmra.mxu0 %vm488_vm2, %v2157_v36  ;;  %v2225_v47 = vsel %vm4532_vm12, %v2219_v26, %v2224_v40  ;;  %v5943_v51 = vshrl.u32 %v5083_v17, 16 }
 0x1d9   : > { %v1892_v58 = vsel %vm4337_vm6, %v1887_v13, %v1891_v31  ;;  %v1670_v59 = vadd.f32 %v4998_v61, %v1658_v25  ;;  %v2228_v33 = vor.u32 %v2227_v34, %v2226_v46  ;;  %v2233_v53 = vrot.slane %v5102_v7, 6  ;;  %v3738_v31 = vld [vmem:[#allocation3 + $0x10] sm:$0xf] }
 0x1da   : > { %v1745_v63 = vrot.slane %v1743_v18, 6  ;;  %v1748_v1 = vrot.slane %v1746_v38, 7  ;;  %v1981_v0 = vunpack.c.l.b16 %v1892_v58  ;;  %v1544_v52 = vpop.f32.mrf.mxu3  ;;  %v2232_v43 = vrot.slane %v5943_v51, 5 }
 0x1db   : > { %v2299_v29 = vunpack.c.l.b16 %v2225_v47  ;;  %v1678_v10 = vmax.f32 %v1670_v59, 0.0  ;;  %v1555_v41 = vadd.f32 %v1544_v52, %v5042_v20  ;;  %v2229_v4 = vrot.slane %v2228_v33, 4 }
 0x1dc   : > { %v1749_v27 = vor.u32 %v1748_v1, %v1745_v63  ;;  %v1988_v49 = vpack.c.b16 %v1981_v0, %v1980_v62  ;;  %v1648_v14 = vpop.f32.mrf.mxu1  ;;  %v2234_v2 = vor.u32 %v2233_v53, %v2232_v43  ;;  %v3758_v26 = vrot.slane %v5133_v54, 9 }
 0x1dd   : > { %v2124_v37 = vrot.slane %v5135_v21, 5  ;;  %v1686_v39 = vpack.c.bf16 %v1678_v10, %v1678_v10  ;;  %v1607_v32 = vadd.f32 %v1596_v8, %v1555_v41  ;;  %v3977_v36 = vld [vmem:[#allocation3 + $0x14] sm:$0xf0]  ;;  %v5160_v63 = vshrl.u32 %v5133_v54, 16  ;;  %v1829_v8 = vld [vmem:[#allocation3 + $0x28] sm:$0xe] }
 0x1de   : > { %v1750_v19 = vrot.slane %v1749_v27, 4  ;;  %v1824_v22 = vsel %vm5007_vm13, %v1749_v27, %v1823_v55  ;;  %3728 = vmatmul.msk.bf16.vlgmr.msrb.gmra.mxu2 %vm488_vm2, %v1988_v49  ;;  %v5146_v13 = vld [vmem:[#allocation3 + $0x18] sm:$0xf]  ;;  %v2235_v20 = vsel %vm4532_vm12, %v2229_v4, %v2234_v2  ;;  %v3739_v62 = vor.u32 %v3977_v36, %v3738_v31  ;;  %v1598_v4 = vpop.f32.mrf.mxu0 }
 0x1df   : > { %1825 = vst [vmem:[#allocation3 + $0x20] sm:$0xe] %v1824_v22  ;;  %v2125_v40 = vsel %vm4266_vm3, %v3758_v26, %v2124_v37  ;;  %v3759_v46 = vrot.slane %v5146_v13, 9  ;;  %v1752_v18 = vshrl.u32 %v1686_v39, 16  ;;  %v1755_v38 = vshll.u32 %v1686_v39, 16 }
 0x1e0   : > { %v1827_v24 = vsel %vm5012_vm14, %v1750_v19, %v1826_v28  ;;  %v1659_v25 = vadd.f32 %v1648_v14, %v1607_v32  ;;  %v5155_v58 = vld [vmem:[#allocation3 + $0x1c] sm:$0x7]  ;;  %v2300_v47 = vunpack.c.l.b16 %v2235_v20  ;;  %3753 = vmatmul.msk.bf16.gmra.mxu3 %vm488_vm2, %v3739_v62  ;;  %v2151_v16 = vunpack.c.l.b16 %v2125_v40  ;;  %v1832_v14 = vld [vmem:[#allocation3 + $0x2c] sm:$0x3] }
 0x1e1   : > { %1828 = vst [vmem:[#allocation3 + $0x24] sm:$0x3] %v1827_v24  ;;  %v2128_v34 = vrot.slane %v5155_v58, 5  ;;  %v1754_v1 = vrot.slane %v1752_v18, 6  ;;  %v1757_v59 = vrot.slane %v1755_v38, 7  ;;  %v5164_v55 = vshll.u32 %v5133_v54, 16 }
 0x1e2   : > { %v1671_v0 = vadd.f32 %v4998_v61, %v1659_v25  ;;  %v2307_v52 = vpack.c.b16 %v2300_v47, %v2299_v29  ;;  %v1546_v33 = vpop.f32.mrf.mxu3  ;;  %v1896_v53 = vrot.slane %v5160_v63, 4  ;;  %v5170_v27 = vshll.u32 %v5135_v21, 16 }
 0x1e3   : > { %v2129_v43 = vsel %vm4266_vm3, %v3759_v46, %v2128_v34  ;;  %v1758_v28 = vor.u32 %v1757_v59, %v1754_v1  ;;  %v1556_v41 = vadd.f32 %v1546_v33, %v5062_v50  ;;  %v1899_v29 = vrot.slane %v5164_v55, 5 }
 0x1e4   : > { %v1679_v10 = vmax.f32 %v1671_v0, 0.0  ;;  %v2152_v49 = vunpack.c.l.b16 %v2129_v43  ;;  %3780 = vmatmul.msk.bf16.vlgmr.msra.gmra.mxu1 %vm488_vm2, %v2307_v52  ;;  %v1905_v2 = vrot.slane %v5170_v27, 5  ;;  %v5177_v31 = vshrl.u32 %v5146_v13, 16  ;;  %v1650_v39 = vpop.f32.mrf.mxu1 }
 0x1e5   : > { %v5180_v26 = vshll.u32 %v5146_v13, 16  ;;  %v1759_v37 = vrot.slane %v1758_v28, 4  ;;  %v1830_v19 = vsel %vm5007_vm13, %v1758_v28, %v1829_v8  ;;  %v1608_v22 = vadd.f32 %v1598_v4, %v1556_v41  ;;  %v1835_v8 = vld [vmem:[#allocation3 + $0x30] sm:$0xe] }
 0x1e6   : > { %v1687_v50 = vpack.c.bf16 %v1679_v10, %v1679_v10  ;;  %1831 = vst [vmem:[#allocation3 + $0x28] sm:$0xe] %v1830_v19  ;;  %v2158_v32 = vpack.c.b16 %v2152_v49, %v2151_v16  ;;  %v1900_v36 = vor.u32 %v1899_v29, %v1896_v53  ;;  %v1910_v20 = vrot.slane %v5177_v31, 4 }
 0x1e7   : > { %v1913_v62 = vrot.slane %v5180_v26, 5  ;;  %v1833_v40 = vsel %vm5012_vm14, %v1759_v37, %v1832_v14  ;;  %v1660_v18 = vadd.f32 %v1650_v39, %v1608_v22  ;;  %v5190_v47 = vshll.u32 %v5155_v58, 16  ;;  %v1838_v14 = vld [vmem:[#allocation3 + $0x34] sm:$0x3] }
 0x1e8   : > { %v1761_v46 = vshrl.u32 %v1687_v50, 16  ;;  %v1764_v24 = vshll.u32 %v1687_v50, 16  ;;  %1834 = vst [vmem:[#allocation3 + $0x2c] sm:$0x3] %v1833_v40  ;;  %3771 = vmatmul.msk.bf16.gmra.mxu0 %vm488_vm2, %v2158_v32  ;;  %v1901_v38 = vrot.slane %v1900_v36, 4  ;;  %v2236_v34 = vrot.slane %v5160_v63, 5 }
 0x1e9   : > { %v1914_v25 = vor.u32 %v1913_v62, %v1910_v20  ;;  %v1672_v59 = vadd.f32 %v4998_v61, %v1660_v18  ;;  %v2237_v0 = vrot.slane %v5164_v55, 6  ;;  %v1919_v43 = vrot.slane %v5190_v47, 5  ;;  %v5207_v32 = vld [vmem:[#allocation3 + $0x20] sm:$0xf] }
 0x1ea   : > { %v1763_v16 = vrot.slane %v1761_v46, 6  ;;  %v1766_v1 = vrot.slane %v1764_v24, 7  ;;  %v1906_v52 = vsel %vm4337_vm6, %v1901_v38, %v1905_v2  ;;  %v5941_v53 = vshrl.u32 %v5135_v21, 16  ;;  %v3742_v46 = vld [vmem:[#allocation3 + $0x20] sm:$0xf] }
 0x1eb   : > { %v1915_v33 = vrot.slane %v1914_v25, 4  ;;  %v1680_v10 = vmax.f32 %v1672_v59, 0.0  ;;  %v1982_v41 = vunpack.c.l.b16 %v1906_v52  ;;  %v2238_v49 = vor.u32 %v2237_v0, %v2236_v34  ;;  %v5213_v34 = vld [vmem:[#allocation3 + $0x24] sm:$0x7] }
 0x1ec   : > { %v1767_v28 = vor.u32 %v1766_v1, %v1763_v16  ;;  %v2242_v61 = vrot.slane %v5941_v53, 5  ;;  %v2243_v29 = vrot.slane %v5170_v27, 6  ;;  %v2246_v2 = vrot.slane %v5177_v31, 5 }
 0x1ed   : > { %v1920_v4 = vsel %vm4337_vm6, %v1915_v33, %v1919_v43  ;;  %v1688_v50 = vpack.c.bf16 %v1680_v10, %v1680_v10  ;;  %v3978_v39 = vld [vmem:[#allocation3 + $0x24] sm:$0xf0]  ;;  %v2239_v36 = vrot.slane %v2238_v49, 4  ;;  %v2247_v62 = vrot.slane %v5180_v26, 6 }
 0x1ee   : > { %v1768_v37 = vrot.slane %v1767_v28, 4  ;;  %v1836_v19 = vsel %vm5007_vm13, %v1767_v28, %v1835_v8  ;;  %v1983_v22 = vunpack.c.l.b16 %v1920_v4  ;;  %v2244_v20 = vor.u32 %v2243_v29, %v2242_v61  ;;  %v5215_v16 = vld [vmem:[#allocation3 + $0x28] sm:$0xf] }
 0x1ef   : > { %1837 = vst [vmem:[#allocation3 + $0x30] sm:$0xe] %v1836_v19  ;;  %v5940_v40 = vshrl.u32 %v5155_v58, 16  ;;  %v1770_v18 = vshrl.u32 %v1688_v50, 16  ;;  %v1773_v38 = vshll.u32 %v1688_v50, 16  ;;  %v2248_v59 = vor.u32 %v2247_v62, %v2246_v2 }
 0x1f0   : > { %v1839_v24 = vsel %vm5012_vm14, %v1768_v37, %v1838_v14  ;;  %v1989_v25 = vpack.c.b16 %v1983_v22, %v1982_v41  ;;  %v2245_v1 = vsel %vm4532_vm12, %v2239_v36, %v2244_v20  ;;  %v2253_v8 = vrot.slane %v5190_v47, 6  ;;  %v5222_v52 = vld [vmem:[#allocation3 + $0x2c] sm:$0x7]  ;;  %v1841_v41 = vld [vmem:[#allocation3 + $0x38] sm:$0xe] }
 0x1f1   : > { %1840 = vst [vmem:[#allocation3 + $0x34] sm:$0x3] %v1839_v24  ;;  %v2252_v0 = vrot.slane %v5940_v40, 5  ;;  %v1772_v33 = vrot.slane %v1770_v18, 6  ;;  %v1775_v43 = vrot.slane %v1773_v38, 7  ;;  %v2301_v28 = vunpack.c.l.b16 %v2245_v1 }
 0x1f2   : > { %3729 = vmatmul.msk.bf16.gmra.mxu2 %vm488_vm2, %v1989_v25  ;;  %v3743_v10 = vor.u32 %v3978_v39, %v3742_v46  ;;  %v2249_v49 = vrot.slane %v2248_v59, 4  ;;  %v3760_v4 = vrot.slane %v5207_v32, 9  ;;  %v2132_v61 = vrot.slane %v5213_v34, 5  ;;  %v1844_v50 = vld [vmem:[#allocation3 + $0x3c] sm:$0x3] }
 0x1f3   : > { %v2254_v14 = vor.u32 %v2253_v8, %v2252_v0  ;;  %v1776_v29 = vor.u32 %v1775_v43, %v1772_v33  ;;  %v3761_v2 = vrot.slane %v5215_v16, 9  ;;  %v2136_v37 = vrot.slane %v5222_v52, 5 }
 0x1f4   : > { %3754 = vmatmul.msk.bf16.gmra.mxu3 %vm488_vm2, %v3743_v10  ;;  %v5231_v19 = vshrl.u32 %v5207_v32, 16  ;;  %v2133_v39 = vsel %vm4266_vm3, %v3760_v4, %v2132_v61  ;;  %v5238_v36 = vshll.u32 %v5207_v32, 16  ;;  %v5241_v20 = vshll.u32 %v5213_v34, 16 }
 0x1f5   : > { %v2255_v22 = vsel %vm4532_vm12, %v2249_v49, %v2254_v14  ;;  %v1777_v62 = vrot.slane %v1776_v29, 4  ;;  %v1842_v46 = vsel %vm5007_vm13, %v1776_v29, %v1841_v41  ;;  %v2137_v18 = vsel %vm4266_vm3, %v3761_v2, %v2136_v37 }
 0x1f6   : > { %v2302_v24 = vunpack.c.l.b16 %v2255_v22  ;;  %1843 = vst [vmem:[#allocation3 + $0x38] sm:$0xe] %v1842_v46  ;;  %v2153_v38 = vunpack.c.l.b16 %v2133_v39  ;;  %v2154_v25 = vunpack.c.l.b16 %v2137_v18  ;;  %v1924_v1 = vrot.slane %v5231_v19, 4  ;;  %v5274_v46 = vld [vmem:[#allocation3 + $0x30] sm:$0xf] }
 0x1f7   : > { %v1927_v59 = vrot.slane %v5238_v36, 5  ;;  %v1845_v0 = vsel %vm5012_vm14, %v1777_v62, %v1844_v50  ;;  %v1933_v33 = vrot.slane %v5241_v20, 5  ;;  %v5253_v12 = vshrl.u32 %v5215_v16, 16 }
 0x1f8   : > { %v2308_v8 = vpack.c.b16 %v2302_v24, %v2301_v28  ;;  %1846 = vst [vmem:[#allocation3 + $0x3c] sm:$0x3] %v1845_v0  ;;  %v2159_v43 = vpack.c.b16 %v2154_v25, %v2153_v38  ;;  %v5256_v41 = vshll.u32 %v5215_v16, 16  ;;  %v5259_v49 = vshll.u32 %v5222_v52, 16 }
 0x1f9   : > { %v1928_v10 = vor.u32 %v1927_v59, %v1924_v1  ;;  %v1938_v56 = vrot.slane %v5253_v12, 4  ;;  %v2256_v28 = vrot.slane %v5231_v19, 5  ;;  %v2257_v14 = vrot.slane %v5238_v36, 6  ;;  %v3746_v1 = vld [vmem:[#allocation3 + $0x30] sm:$0xf] }
 0x1fa   : > { %3781 = vmatmul.msk.bf16.gmra.mxu1 %vm488_vm2, %v2308_v8  ;;  %v5939_v4 = vshrl.u32 %v5213_v34, 16  ;;  %3772 = vmatmul.msk.bf16.gmra.mxu0 %vm488_vm2, %v2159_v43  ;;  %v1941_v29 = vrot.slane %v5256_v41, 5  ;;  %v1947_v2 = vrot.slane %v5259_v49, 5  ;;  %v2263_v37 = vrot.slane %v5241_v20, 6  ;;  %v5280_v59 = vld [vmem:[#allocation3 + $0x34] sm:$0x7] }
 0x1fb   : > { %v1929_v61 = vrot.slane %v1928_v10, 4  ;;  %v2258_v50 = vor.u32 %v2257_v14, %v2256_v28  ;;  %v2266_v39 = vrot.slane %v5253_v12, 5  ;;  %v2267_v62 = vrot.slane %v5256_v41, 6 }
 0x1fc   : > { %v2262_v22 = vrot.slane %v5939_v4, 5  ;;  %v1942_v18 = vor.u32 %v1941_v29, %v1938_v56  ;;  %v5942_v38 = vshrl.u32 %v5222_v52, 16  ;;  %v2273_v25 = vrot.slane %v5259_v49, 6 }
 0x1fd   : > { %v1934_v24 = vsel %vm4337_vm6, %v1929_v61, %v1933_v33  ;;  %v2259_v8 = vrot.slane %v2258_v50, 4  ;;  %v2268_v10 = vor.u32 %v2267_v62, %v2266_v39  ;;  %v3979_v28 = vld [vmem:[#allocation3 + $0x34] sm:$0xf0]  ;;  %v3762_v56 = vrot.slane %v5274_v46, 9 }
 0x1fe   : > { %v1984_v0 = vunpack.c.l.b16 %v1934_v24  ;;  %v2264_v43 = vor.u32 %v2263_v37, %v2262_v22  ;;  %v5282_v14 = vld [vmem:[#allocation3 + $0x38] sm:$0xf]  ;;  %v1943_v4 = vrot.slane %v1942_v18, 4  ;;  %v2272_v40 = vrot.slane %v5942_v38, 5 }
 0x1ff   : > { %v3747_v33 = vor.u32 %v3979_v28, %v3746_v1  ;;  %v2269_v29 = vrot.slane %v2268_v10, 4  ;;  %v5289_v53 = vld [vmem:[#allocation3 + $0x3c] sm:$0x7]  ;;  %v2140_v50 = vrot.slane %v5280_v59, 5  ;;  %v3763_v37 = vrot.slane %v5282_v14, 9 }
 0x200   : > { %v2265_v61 = vsel %vm4532_vm12, %v2259_v8, %v2264_v43  ;;  %v1948_v22 = vsel %vm4337_vm6, %v1943_v4, %v1947_v2  ;;  %v2274_v39 = vor.u32 %v2273_v25, %v2272_v40  ;;  %v2144_v24 = vrot.slane %v5289_v53, 5 }
 0x201   : > { %v2303_v62 = vunpack.c.l.b16 %v2265_v61  ;;  %v1985_v18 = vunpack.c.l.b16 %v1948_v22  ;;  %v2141_v1 = vsel %vm4266_vm3, %v3762_v56, %v2140_v50  ;;  %v5299_v8 = vshrl.u32 %v5274_v46, 16 }
 0x202   : > { %v5302_v43 = vshll.u32 %v5274_v46, 16  ;;  %v2275_v10 = vsel %vm4532_vm12, %v2269_v29, %v2274_v39  ;;  %v2145_v4 = vsel %vm4266_vm3, %v3763_v37, %v2144_v24  ;;  %v2155_v40 = vunpack.c.l.b16 %v2141_v1 }
 0x203   : > { %5974 = vst [vmem:[#allocation7_spill] sm:$0xff] %v5299_v8  ;;  %v5309_v2 = vshll.u32 %v5280_v59, 16  ;;  %v1990_v25 = vpack.c.b16 %v1985_v18, %v1984_v0  ;;  %v2304_v28 = vunpack.c.l.b16 %v2275_v10  ;;  %v2156_v56 = vunpack.c.l.b16 %v2145_v4 }
 0x204   : > { %5975 = vst [vmem:[#allocation5_spill] sm:$0xff] %v5302_v43  ;;  %3755 = vmatmul.msk.bf16.gmra.mxu3 %vm488_vm2, %v3747_v33  ;;  %v1952_v61 = vrot.slane %v5299_v8, 4  ;;  %v1955_v50 = vrot.slane %v5302_v43, 5  ;;  %v5315_v22 = vshrl.u32 %v5282_v14, 16  ;;  %v5318_v29 = vshll.u32 %v5282_v14, 16 }
 0x205   : > { %5976 = vst [vmem:[#allocation6_spill] sm:$0xff] %v5309_v2  ;;  %3730 = vmatmul.msk.bf16.gmra.mxu2 %vm488_vm2, %v1990_v25  ;;  %v2309_v6 = vpack.c.b16 %v2304_v28, %v2303_v62  ;;  %v2160_v37 = vpack.c.b16 %v2156_v56, %v2155_v40  ;;  %v5322_v0 = vshll.u32 %v5289_v53, 16  ;;  %v2276_v33 = vrot.slane %v5299_v8, 5 }
 0x206   : > { %v1956_v39 = vor.u32 %v1955_v50, %v1952_v61  ;;  %v1966_v24 = vrot.slane %v5315_v22, 4  ;;  %v1969_v18 = vrot.slane %v5318_v29, 5  ;;  %v2277_v1 = vrot.slane %v5302_v43, 6 }
 0x207   : > { %5977 = vst [vmem:[#allocation8_spill] sm:$0xff] %v5322_v0  ;;  %v1961_v10 = vrot.slane %v5309_v2, 5  ;;  %v5945_v4 = vshrl.u32 %v5280_v59, 16  ;;  %v2283_v25 = vrot.slane %v5309_v2, 6  ;;  %v2286_v62 = vrot.slane %v5315_v22, 5 }
 0x208   : > { %v1957_v40 = vrot.slane %v1956_v39, 4  ;;  %v1970_v28 = vor.u32 %v1969_v18, %v1966_v24  ;;  %v2278_v56 = vor.u32 %v2277_v1, %v2276_v33  ;;  %v2287_v38 = vrot.slane %v5318_v29, 6 }
 0x209   : > { %v2282_v61 = vrot.slane %v5945_v4, 5  ;;  %v2290_v50 = vshrl.u32 %v5289_v53, 16  ;;  %v2293_v51 = vrot.slane %v5322_v0, 6  ;;  %v2468_v48 = vrot.slane %v5046_v44, 6 }
 0x20a   : > { %3782 = vmatmul.msk.bf16.gmra.mxu1 %vm488_vm2, %v2309_v6  ;;  %3773 = vmatmul.msk.bf16.gmra.mxu0 %vm488_vm2, %v2160_v37  ;;  %v1962_v39 = vsel %vm4337_vm6, %v1957_v40, %v1961_v10  ;;  %v1971_v24 = vrot.slane %v1970_v28, 4  ;;  %v1975_v33 = vrot.slane %v5322_v0, 5  ;;  %v2288_v18 = vor.u32 %v2287_v38, %v2286_v62 }
 0x20b   : > { %v2279_v1 = vrot.slane %v2278_v56, 4  ;;  %v2284_v6 = vor.u32 %v2283_v25, %v2282_v61  ;;  %v2292_v4 = vrot.slane %v2290_v50, 5  ;;  %v2469_v2 = vrot.slane %v5055_v45, 7 }
 0x20c   : > { %v1976_v43 = vsel %vm4337_vm6, %v1971_v24, %v1975_v33  ;;  %v2289_v44 = vrot.slane %v2288_v18, 4  ;;  %v5978_v37 = vshrl.u32 %v5050_v35, 16  ;;  %v2473_v10 = vrot.slane %v5058_v9, 7 }
 0x20d   : > { %v1987_v40 = vunpack.c.l.b16 %v1976_v43  ;;  %v2294_v28 = vor.u32 %v2293_v51, %v2292_v4  ;;  %v2470_v0 = vor.u32 %v2469_v2, %v2468_v48  ;;  %v1986_v38 = vunpack.c.l.b16 %v1962_v39 }
 0x20e   : > { %v2472_v8 = vrot.slane %v5978_v37, 6  ;;  %v2476_v25 = vrot.slane %v5092_v15, 6  ;;  %v2477_v56 = vrot.slane %v5095_v30, 7  ;;  %v2285_v45 = vsel %vm4532_vm12, %v2279_v1, %v2284_v6 }
 0x20f   : > { %v2295_v42 = vsel %vm4532_vm12, %v2289_v44, %v2294_v28  ;;  %v2471_v61 = vrot.slane %v2470_v0, 4  ;;  %v5979_v24 = vshrl.u32 %v5083_v17, 16  ;;  %v1991_v9 = vpack.c.b16 %v1987_v40, %v1986_v38 }
 0x210   : > { %v2474_v62 = vor.u32 %v2473_v10, %v2472_v8  ;;  %v2306_v43 = vunpack.c.l.b16 %v2295_v42  ;;  %v2478_v51 = vor.u32 %v2477_v56, %v2476_v25  ;;  %v2481_v48 = vrot.slane %v5102_v7, 7 }
 0x211   : > { %v2480_v33 = vrot.slane %v5979_v24, 6  ;;  %v3812_v8 = vrot.slane %v5039_v11, 11  ;;  %v2604_v15 = vrot.slane %v5050_v35, 7  ;;  %v3813_v30 = vrot.slane %v5077_v57, 11 }
 0x212   : > { %v2608_v2 = vrot.slane %v5083_v17, 7  ;;  %v2475_v3 = vsel %vm4571_vm4, %v2471_v61, %v2474_v62  ;;  %v2479_v0 = vrot.slane %v2478_v51, 4  ;;  %v2305_v39 = vunpack.c.l.b16 %v2285_v45 }
 0x213   : > { %v2482_v4 = vor.u32 %v2481_v48, %v2480_v33  ;;  %v2605_v18 = vsel %vm4499_vm9, %v3812_v8, %v2604_v15  ;;  %v2535_v37 = vunpack.c.l.b16 %v2475_v3  ;;  %v2484_v40 = vrot.slane %v5160_v63, 6 }
 0x214   : > { %v2609_v7 = vsel %vm4499_vm9, %v3813_v30, %v2608_v2  ;;  %v2310_v44 = vpack.c.b16 %v2306_v43, %v2305_v39  ;;  %v2637_v28 = vunpack.c.l.b16 %v2605_v18  ;;  %v3784_v38 = vrot.slane %v5039_v11, 10 }
 0x215   : > { %v2483_v1 = vsel %vm4571_vm4, %v2479_v0, %v2482_v4  ;;  %v2638_v6 = vunpack.c.l.b16 %v2609_v7  ;;  %3731 = vmatmul.msk.bf16.gmra.mxu2 %vm488_vm2, %v1991_v9  ;;  %v2485_v62 = vrot.slane %v5164_v55, 7  ;;  %v5980_v25 = vshrl.u32 %v5135_v21, 16 }
 0x216   : > { %v2536_v10 = vunpack.c.l.b16 %v2483_v1  ;;  %v2372_v42 = vrot.slane %v5083_v17, 6  ;;  %v2489_v61 = vrot.slane %v5170_v27, 7  ;;  %v2492_v24 = vrot.slane %v5177_v31, 6 }
 0x217   : > { %v2488_v56 = vrot.slane %v5980_v25, 6  ;;  %v2645_v33 = vpack.c.b16 %v2638_v6, %v2637_v28  ;;  %v2486_v9 = vor.u32 %v2485_v62, %v2484_v40  ;;  %v2493_v43 = vrot.slane %v5180_v26, 7 }
 0x218   : > { %v2543_v45 = vpack.c.b16 %v2536_v10, %v2535_v37  ;;  %v5981_v63 = vshrl.u32 %v5155_v58, 16  ;;  %v2368_v11 = vrot.slane %v5050_v35, 6  ;;  %v2497_v55 = vrot.slane %v5190_v47, 7 }
 0x219   : > { %v3814_v17 = vrot.slane %v5133_v54, 11  ;;  %v2612_v27 = vrot.slane %v5135_v21, 7  ;;  %v3785_v31 = vrot.slane %v5077_v57, 10  ;;  %v2487_v26 = vrot.slane %v2486_v9, 4 }
 0x21a   : > { %v2496_v51 = vrot.slane %v5981_v63, 6  ;;  %3783 = vmatmul.msk.bf16.gmra.mxu1 %vm488_vm2, %v2310_v44  ;;  %3808 = vmatmul.msk.bf16.vlgmr.msrb.gmra.mxu3 %vm488_vm2, %v2543_v45  ;;  %v2490_v48 = vor.u32 %v2489_v61, %v2488_v56  ;;  %v2494_v8 = vor.u32 %v2493_v43, %v2492_v24  ;;  %v3815_v2 = vrot.slane %v5146_v13, 11 }
 0x21b   : > { %3826 = vmatmul.msk.bf16.vlgmr.msrb.gmra.mxu0 %vm488_vm2, %v2645_v33  ;;  %v2613_v30 = vsel %vm4499_vm9, %v3814_v17, %v2612_v27  ;;  %v2616_v35 = vrot.slane %v5155_v58, 7  ;;  %v2373_v47 = vsel %vm4537_vm15, %v3785_v31, %v2372_v42  ;;  %v3786_v0 = vrot.slane %v5133_v54, 10 }
 0x21c   : > { %v2498_v15 = vor.u32 %v2497_v55, %v2496_v51  ;;  %v2495_v3 = vrot.slane %v2494_v8, 4  ;;  %v2376_v4 = vrot.slane %v5135_v21, 6  ;;  %v2369_v57 = vsel %vm4537_vm15, %v3784_v38, %v2368_v11 }
 0x21d   : > { %v2617_v39 = vsel %vm4499_vm9, %v3815_v2, %v2616_v35  ;;  %v3787_v18 = vrot.slane %v5146_v13, 10  ;;  %v2380_v7 = vrot.slane %v5155_v58, 6  ;;  %v2639_v6 = vunpack.c.l.b16 %v2613_v30 }
 0x21e   : > { %v2499_v1 = vsel %vm4571_vm4, %v2495_v3, %v2498_v15  ;;  %v2640_v44 = vunpack.c.l.b16 %v2617_v39  ;;  %v2377_v54 = vsel %vm4537_vm15, %v3786_v0, %v2376_v4  ;;  %v2402_v37 = vunpack.c.l.b16 %v2373_v47 }
 0x21f   : > { %v2491_v21 = vsel %vm4571_vm4, %v2487_v26, %v2490_v48  ;;  %v2381_v10 = vsel %vm4537_vm15, %v3787_v18, %v2380_v7  ;;  %v2538_v40 = vunpack.c.l.b16 %v2499_v1  ;;  %v2403_v13 = vunpack.c.l.b16 %v2377_v54 }
 0x220   : > { %v2646_v28 = vpack.c.b16 %v2640_v44, %v2639_v6  ;;  %v2404_v38 = vunpack.c.l.b16 %v2381_v10  ;;  %v2401_v58 = vunpack.c.l.b16 %v2369_v57  ;;  %v2537_v62 = vunpack.c.l.b16 %v2491_v21 }
 0x221   : > { %v2508_v56 = vrot.slane %v5253_v12, 6  ;;  %v2509_v45 = vrot.slane %v5256_v41, 7  ;;  %v2500_v61 = vrot.slane %v5231_v19, 6  ;;  %v3816_v24 = vrot.slane %v5207_v32, 11 }
 0x222   : > { %v2410_v25 = vpack.c.b16 %v2404_v38, %v2403_v13  ;;  %v2409_v42 = vpack.c.b16 %v2402_v37, %v2401_v58  ;;  %v2620_v33 = vrot.slane %v5213_v34, 7  ;;  %v2544_v9 = vpack.c.b16 %v2538_v40, %v2537_v62 }
 0x223   : > { %v2501_v43 = vrot.slane %v5238_v36, 7  ;;  %v3817_v63 = vrot.slane %v5215_v16, 11  ;;  %v2624_v51 = vrot.slane %v5222_v52, 7  ;;  %v5982_v12 = vshrl.u32 %v5222_v52, 16 }
 0x224   : > { %v2621_v41 = vsel %vm4499_vm9, %v3816_v24, %v2620_v33  ;;  %v3788_v19 = vrot.slane %v5207_v32, 10  ;;  %v2384_v55 = vrot.slane %v5213_v34, 6  ;;  %v2510_v17 = vor.u32 %v2509_v45, %v2508_v56  ;;  %v5984_v24 = vld [vmem:[#allocation7_spill] sm:$0xff] }
 0x225   : > { %3798 = vmatmul.msk.bf16.vlgmr.msra.gmra.mxu2 %vm488_vm2, %v2409_v42  ;;  %v2512_v11 = vrot.slane %v5982_v12, 6  ;;  %v2513_v27 = vrot.slane %v5259_v49, 7  ;;  %v2625_v36 = vsel %vm4499_vm9, %v3817_v63, %v2624_v51  ;;  %v2641_v31 = vunpack.c.l.b16 %v2621_v41  ;;  %v5986_v12 = vld [vmem:[#allocation8_spill] sm:$0xff]  ;;  %v5988_v41 = vld [vmem:[#allocation6_spill] sm:$0xff] }
 0x226   : > { %v2642_v26 = vunpack.c.l.b16 %v2625_v36  ;;  %v2385_v48 = vsel %vm4537_vm15, %v3788_v19, %v2384_v55  ;;  %v3789_v8 = vrot.slane %v5215_v16, 10  ;;  %v2388_v15 = vrot.slane %v5222_v52, 6 }
 0x227   : > { %v5983_v32 = vshrl.u32 %v5213_v34, 16  ;;  %v2505_v2 = vrot.slane %v5241_v20, 7  ;;  %v2502_v47 = vor.u32 %v2501_v43, %v2500_v61  ;;  %v2405_v3 = vunpack.c.l.b16 %v2385_v48 }
 0x228   : > { %v2647_v49 = vpack.c.b16 %v2642_v26, %v2641_v31  ;;  %v2389_v35 = vsel %vm4537_vm15, %v3789_v8, %v2388_v15  ;;  %v2511_v4 = vrot.slane %v2510_v17, 4  ;;  %v2514_v16 = vor.u32 %v2513_v27, %v2512_v11  ;;  %v3989_v15 = vld [vmem:[%s5930_s7 + $0x14] sm:$0xf] }
 0x229   : > { %v2504_v30 = vrot.slane %v5983_v32, 6  ;;  %v2406_v0 = vunpack.c.l.b16 %v2389_v35  ;;  %v3818_v52 = vrot.slane %v5274_v46, 11  ;;  %v2628_v39 = vrot.slane %v5280_v59, 7  ;;  %v3990_v35 = vld [vmem:[%s5930_s7 + $0x14] sm:$0xf0] }
 0x22a   : > { %3809 = vmatmul.msk.bf16.gmra.mxu3 %vm488_vm2, %v2544_v9  ;;  %v3819_v18 = vrot.slane %v5282_v14, 11  ;;  %v2632_v20 = vrot.slane %v5289_v53, 7  ;;  %v2503_v7 = vrot.slane %v2502_v47, 4  ;;  %v3790_v6 = vrot.slane %v5274_v46, 10  ;;  %v5985_v9 = vld [vmem:[#allocation5_spill] sm:$0xff] }
 0x22b   : > { %3827 = vmatmul.msk.bf16.gmra.mxu0 %vm488_vm2, %v2646_v28  ;;  %v2411_v57 = vpack.c.b16 %v2406_v0, %v2405_v3  ;;  %v2506_v34 = vor.u32 %v2505_v2, %v2504_v30  ;;  %v2629_v1 = vsel %vm4499_vm9, %v3818_v52, %v2628_v39  ;;  %v2392_v44 = vrot.slane %v5280_v59, 6 }
 0x22c   : > { %v2515_v54 = vsel %vm4571_vm4, %v2511_v4, %v2514_v16  ;;  %v2633_v37 = vsel %vm4499_vm9, %v3819_v18, %v2632_v20  ;;  %v2643_v21 = vunpack.c.l.b16 %v2629_v1  ;;  %v3791_v28 = vrot.slane %v5282_v14, 10 }
 0x22d   : > { %v2644_v10 = vunpack.c.l.b16 %v2633_v37  ;;  %v2393_v40 = vsel %vm4537_vm15, %v3790_v6, %v2392_v44  ;;  %v2396_v13 = vrot.slane %v5289_v53, 6  ;;  %v2507_v46 = vsel %vm4571_vm4, %v2503_v7, %v2506_v34 }
 0x22e   : > { %v2540_v62 = vunpack.c.l.b16 %v2515_v54  ;;  %v2407_v56 = vunpack.c.l.b16 %v2393_v40  ;;  %v2524_v45 = vrot.slane %v5315_v22, 6  ;;  %v2525_v42 = vrot.slane %v5318_v29, 7  ;;  %v3850_v40 = vld [vmem:[%s5930_s7] sm:$0xf] }
 0x22f   : > { %v2648_v38 = vpack.c.b16 %v2644_v10, %v2643_v21  ;;  %v2397_v58 = vsel %vm4537_vm15, %v3791_v28, %v2396_v13  ;;  %v2539_v61 = vunpack.c.l.b16 %v2507_v46  ;;  %v2516_v33 = vrot.slane %v5984_v24, 6  ;;  %v3988_v28 = vld [vmem:[%s5930_s7 + $0x4] sm:$0xf0]  ;;  %v3987_v13 = vld [vmem:[%s5930_s7 + $0x4] sm:$0xf] }
 0x230   : > { %v2408_v60 = vunpack.c.l.b16 %v2397_v58  ;;  %v2517_v43 = vrot.slane %v5985_v9, 7  ;;  %v2526_v51 = vor.u32 %v2525_v42, %v2524_v45  ;;  %v2528_v5 = vrot.slane %v2290_v50, 6  ;;  %v4146_v58 = vld [vmem:[#allocation4 + $0x4] sm:$0xff]  }
 0x231   : > { %v2545_v63 = vpack.c.b16 %v2540_v62, %v2539_v61  ;;  %v2529_v11 = vrot.slane %v5986_v12, 7  ;;  %v5987_v29 = vshrl.u32 %v5280_v59, 16  ;;  %v2521_v19 = vrot.slane %v5988_v41, 7  ;;  %v4030_v45 = vld [vmem:[#allocation4] sm:$0xff]   ;;  %v3991_v61 = vld [vmem:[%s5930_s7 + $0x24] sm:$0xf] }
 0x232   : > { %v2412_v14 = vpack.c.b16 %v2408_v60, %v2407_v56  ;;  %v2518_v22 = vor.u32 %v2517_v43, %v2516_v33  ;;  %v2527_v55 = vrot.slane %v2526_v51, 4  ;;  %v3839_v32 = vor.u32 %v3989_v15, %v3836_v23  ;;  %v3992_v12 = vld [vmem:[%s5930_s7 + $0x24] sm:$0xf0] }
 0x233   : > { %v2530_v17 = vor.u32 %v2529_v11, %v2528_v5  ;;  %v3851_v46 = vor.u32 %v3988_v28, %v3850_v40  ;;  %v3868_v5 = vld [vmem:[%s5930_s7 + $0x20] sm:$0xf]  ;;  %vm3472_vm3 = vcmask 523268  }
 0x234   : > { %v2519_v27 = vrot.slane %v2518_v22, 4  ;;  %2852 = vmatpush.bf16.msrb.mxu2 %v3839_v32  ;;  %v3869_v22 = vor.u32 %v3992_v12, %v3868_v5 }
 0x235   : > { %3799 = vmatmul.msk.bf16.gmra.mxu2 %vm488_vm2, %v2410_v25  ;;  %v2520_v25 = vrot.slane %v5987_v29, 6  ;;  %v2531_v53 = vsel %vm4571_vm4, %v2527_v55, %v2530_v17  ;;  %2909 = vmatpush.bf16.msra.mxu3 %v3851_v46 }
 0x236   : > { %v2542_v31 = vunpack.c.l.b16 %v2531_v53 }
 0x237   : > { %v2522_v36 = vor.u32 %v2521_v19, %v2520_v25 }
 0x239   : > { %v2523_v50 = vsel %vm4571_vm4, %v2519_v27, %v2522_v36  ;;  %v5559_v36 = vld [vmem:[%s5929_s6] ss:$0 sm:$0xff] }
 0x23a   : > { %3810 = vmatmul.msk.bf16.gmra.mxu3 %vm488_vm2, %v2545_v63  ;;  %v2541_v26 = vunpack.c.l.b16 %v2523_v50 }
 0x23b   : > { %3828 = vmatmul.msk.bf16.gmra.mxu0 %vm488_vm2, %v2647_v49  ;;  %v3834_v49 = vld [vmem:[%s5930_s7 + $0x10] sm:$0xf] }
 0x23c   : > { %v2546_v48 = vpack.c.b16 %v2542_v31, %v2541_v26  ;;  %v3835_v47 = vor.u32 %v3990_v35, %v3834_v49 }
 0x23e   : > { %2823 = vmatpush.bf16.msrb.mxu1 %v3835_v47 }
 0x241   : > { %3840 = vmatmul.msk.bf16.vlgmr.msrb.gmra.mxu1 %vm488_vm2, %v4146_v58 }
 0x242   : > { %2986 = vmatpush.bf16.msra.mxu1 %v3869_v22 }
 0x245   : > { %3800 = vmatmul.msk.bf16.gmra.mxu2 %vm488_vm2, %v2411_v57 }
 0x24a   : > { %3811 = vmatmul.msk.bf16.gmra.mxu3 %vm488_vm2, %v2546_v48 }
 0x24b   : > { %3829 = vmatmul.msk.bf16.gmra.mxu0 %vm488_vm2, %v2648_v38  ;;  %v3852_v38 = vld [vmem:[%s5930_s7 + $0x8] sm:$0xf0] }
 0x24c   : > { %v3855_v62 = vor.u32 %v3987_v13, %v3852_v38 }
 0x24e   : > { %2938 = vmatpush.bf16.msra.mxu0 %v3855_v62 }
 0x253   : > { %v2086_v59 = vpop.f32.mrf.mxu3 }
 0x255   : > { %3801 = vmatmul.msk.bf16.gmra.mxu2 %vm488_vm2, %v2412_v14  ;;  %v2188_v8 = vpop.f32.mrf.mxu0  ;;  %v3870_v14 = vld [vmem:[%s5930_s7 + $0x28] sm:$0xf0] }
 0x256   : > { %v3873_v33 = vor.u32 %v3991_v61, %v3870_v14 }
 0x258   : > { %3015 = vmatpush.bf16.msra.mxu2 %v3873_v33 }
 0x25a   : > { %3856 = vmatmul.msk.bf16.vlgmr.msra.gmra.mxu3 %vm488_vm2, %v4030_v45 }
 0x25b   : > { %v2088_v30 = vpop.f32.mrf.mxu3  ;;  %3860 = vmatmul.msk.bf16.vlgmr.msra.gmra.mxu0 %vm488_vm2, %v4030_v45 }
 0x25d   : > { %v2190_v2 = vpop.f32.mrf.mxu0 }
 0x261   : > { %v2019_v3 = vpop.f32.mrf.mxu2  ;;  %v2338_v56 = vpop.f32.mrf.mxu1 }
 0x262   : > { %v2087_v9 = vadd.f32 %v2086_v59, %v2019_v3 }
 0x263   : > { %v2091_v0 = vpop.f32.mrf.mxu3 }
 0x264   : > { %v2208_v51 = vadd.f32 %v2188_v8, %v2087_v9 }
 0x265   : > { %v5496_v4 = vpop.f32.mrf.mxu0  ;;  %3844 = vmatmul.msk.bf16.vlgmr.msrb.gmra.mxu2 %vm488_vm2, %v4146_v58 }
 0x266   : > { %v2358_v25 = vadd.f32 %v2338_v56, %v2208_v51 }
 0x269   : > { %v2021_v16 = vpop.f32.mrf.mxu2  ;;  %v2340_v63 = vpop.f32.mrf.mxu1 }
 0x26a   : > { %v2089_v29 = vadd.f32 %v2088_v30, %v2021_v16 }
 0x26b   : > { %v5498_v57 = vpop.f32.mrf.mxu3 }
 0x26c   : > { %v2209_v17 = vadd.f32 %v2190_v2, %v2089_v29 }
 0x26d   : > { %v5500_v52 = vpop.f32.mrf.mxu0 }
 0x26e   : > { %v2359_v48 = vadd.f32 %v2340_v63, %v2209_v17 }
 0x275   : > { %v2024_v39 = vpop.f32.mrf.mxu2 }
 0x276   : > { %v2092_v31 = vadd.f32 %v2091_v0, %v2024_v39 }
 0x277   : > { %v5502_v34 = vpop.f32.mrf.mxu3  ;;  %v5504_v18 = vpop.f32.mrf.mxu0 }
 0x278   : > { %v2343_v53 = vpop.f32.mrf.mxu1  ;;  %v2210_v30 = vadd.f32 %v5496_v4, %v2092_v31  ;;  %v3888_v31 = vld [vmem:[%s5930_s7 + $0x38] sm:$0xf0] }
 0x27a   : > { %v2360_v16 = vadd.f32 %v2343_v53, %v2210_v30 }
 0x27d   : > { %v5506_v20 = vpop.f32.mrf.mxu2 }
 0x27e   : > { %v2094_v3 = vadd.f32 %v5498_v57, %v5506_v20 }
 0x27f   : > { %v5508_v7 = vpop.f32.mrf.mxu3  ;;  %v5510_v1 = vpop.f32.mrf.mxu0 }
 0x280   : > { %v2345_v47 = vpop.f32.mrf.mxu1  ;;  %v2211_v46 = vadd.f32 %v5500_v52, %v2094_v3 }
 0x282   : > { %v2361_v52 = vadd.f32 %v2345_v47, %v2211_v46 }
 0x287   : > { %v5514_v44 = vpop.f32.mrf.mxu3  ;;  %v5516_v54 = vpop.f32.mrf.mxu0 }
 0x288   : > { %v5512_v6 = vpop.f32.mrf.mxu2  ;;  %v2348_v45 = vpop.f32.mrf.mxu1 }
 0x289   : > { %v2097_v57 = vadd.f32 %v5502_v34, %v5512_v6 }
 0x28f   : > { %v5520_v21 = vpop.f32.mrf.mxu3  ;;  %v5522_v10 = vpop.f32.mrf.mxu0 }
 0x290   : > { %v5518_v37 = vpop.f32.mrf.mxu2 }
 0x291   : > { %v2099_v34 = vadd.f32 %v5508_v7, %v5518_v37  ;;  %v3886_v7 = vld [vmem:[%s5930_s7 + $0x30] sm:$0xf] }
 0x298   : > { %v5536_v60 = vpop.f32.mrf.mxu2  ;;  %v2676_v24 = vpop.f32.mrf.mxu0 }
 0x29d   : > { %v2574_v42 = vpop.f32.mrf.mxu3 }
 0x2a0   : > { %v5548_v43 = vpop.f32.mrf.mxu2  ;;  %v2678_v41 = vpop.f32.mrf.mxu0 }
 0x2a5   : > { %v2576_v11 = vpop.f32.mrf.mxu3 }
 0x2a8   : > { %v2440_v19 = vpop.f32.mrf.mxu2  ;;  %v2681_v32 = vpop.f32.mrf.mxu0 }
 0x2a9   : > { %v2460_v55 = vadd.f32 %v2440_v19, %v2358_v25  ;;  %v2350_v25 = vpop.f32.mrf.mxu1 }
 0x2ab   : > { %v2594_v27 = vadd.f32 %v2574_v42, %v2460_v55 }
 0x2ad   : > { %v2696_v50 = vadd.f32 %v2676_v24, %v2594_v27  ;;  %v2579_v59 = vpop.f32.mrf.mxu3  ;;  %v2212_v24 = vadd.f32 %v5504_v18, %v2097_v57 }
 0x2af   : > { %v2708_v26 = vadd.f32 %v5559_v36, %v2696_v50  ;;  %v2362_v6 = vadd.f32 %v2348_v45, %v2212_v24  ;;  %v3993_v50 = vld [vmem:[%s5930_s7 + $0x34] sm:$0xf] }
 0x2b0   : > { %v2442_v8 = vpop.f32.mrf.mxu2  ;;  %v2683_v58 = vpop.f32.mrf.mxu0 }
 0x2b1   : > { %v2716_v15 = vmax.f32 %v2708_v26, 0.0  ;;  %v2461_v23 = vadd.f32 %v2442_v8, %v2359_v48  ;;  %v2102_v26 = vadd.f32 %v5514_v44, %v5536_v60  ;;  %v3891_v8 = vor.u32 %v3993_v50, %v3888_v31  ;;  %v2353_v47 = vpop.f32.mrf.mxu1  ;;  %v3995_v60 = vld [vmem:[%s5930_s7 + $0x44] sm:$0xf]  ;;  %v3940_v50 = vld [vmem:[%s5930_s7 + $0x60] sm:$0xf] }
 0x2b2   : > { %v4000_v31 = vld [vmem:[%s5930_s7 + $0x64] sm:$0xf0] }
 0x2b3   : > { %v2724_v2 = vpack.c.bf16 %v2716_v15, %v2716_v15  ;;  %v2595_v49 = vadd.f32 %v2576_v11, %v2461_v23  ;;  %3108 = vmatpush.bf16.msrb.mxu0 %v3891_v8 }
 0x2b5   : > { %2747 = vst.msk [vmem:[#allocation4 + $0xc] sm:$0xf] %vm1238_vm5, %v2724_v2  ;;  %v2697_v35 = vadd.f32 %v2678_v41, %v2595_v49  ;;  %v2581_v13 = vpop.f32.mrf.mxu3  ;;  %v2213_v41 = vadd.f32 %v5510_v1, %v2099_v34  ;;  %v3994_v1 = vld [vmem:[%s5930_s7 + $0x34] sm:$0xf0]  ;;  %v2214_v2 = vadd.f32 %v5516_v54, %v2102_v26  ;;  %v3906_v54 = vld [vmem:[%s5930_s7 + $0x48] sm:$0xf0] }
 0x2b6   : > { %v3887_v53 = vor.u32 %v3994_v1, %v3886_v7 }
 0x2b7   : > { %v2709_v0 = vadd.f32 %v5559_v36, %v2697_v35 }
 0x2b8   : > { %v2445_v39 = vpop.f32.mrf.mxu2  ;;  %v2686_v12 = vpop.f32.mrf.mxu0  ;;  %3079 = vmatpush.bf16.msrb.mxu3 %v3887_v53 }
 0x2b9   : > { %v2717_v40 = vmax.f32 %v2709_v0, 0.0  ;;  %v2462_v28 = vadd.f32 %v2445_v39, %v2360_v16  ;;  %v2104_v0 = vadd.f32 %v5520_v21, %v5548_v43  ;;  %v2364_v39 = vadd.f32 %v2353_v47, %v2214_v2  ;;  %v3904_v21 = vld [vmem:[%s5930_s7 + $0x40] sm:$0xf]  ;;  %v2355_v43 = vpop.f32.mrf.mxu1 }
 0x2bb   : > { %v2725_v38 = vpack.c.bf16 %v2717_v40, %v2717_v40  ;;  %v2596_v4 = vadd.f32 %v2579_v59, %v2462_v28  ;;  %v2363_v59 = vadd.f32 %v2350_v25, %v2213_v41  ;;  %v3909_v40 = vor.u32 %v3995_v60, %v3906_v54  ;;  %v3924_v25 = vld [vmem:[%s5930_s7 + $0x58] sm:$0xf0] }
 0x2bc   : > { %v5568_v62 = vld [vmem:[#allocation4 + $0x8] sm:$0xff]  }
 0x2bd   : > { %2748 = vst.msk [vmem:[#allocation4 + $0x10] sm:$0xf] %vm1238_vm5, %v2725_v38  ;;  %v2698_v56 = vadd.f32 %v2681_v32, %v2596_v4  ;;  %3857 = vmatmul.msk.bf16.gmra.mxu3 %vm488_vm2, %v5568_v62  ;;  %3861 = vmatmul.msk.bf16.gmra.mxu0 %vm488_vm2, %v5568_v62  ;;  %v2584_v63 = vpop.f32.mrf.mxu3 }
 0x2be   : > { %3201 = vmatpush.bf16.msrb.mxu2 %v3909_v40 }
 0x2bf   : > { %v2710_v20 = vadd.f32 %v5559_v36, %v2698_v56 }
 0x2c0   : > { %v2447_v42 = vpop.f32.mrf.mxu2  ;;  %v2688_v15 = vpop.f32.mrf.mxu0 }
 0x2c1   : > { %v2718_v61 = vmax.f32 %v2710_v20, 0.0  ;;  %v2463_v14 = vadd.f32 %v2447_v42, %v2361_v52 }
 0x2c3   : > { %v2726_v33 = vpack.c.bf16 %v2718_v61, %v2718_v61  ;;  %v2597_v9 = vadd.f32 %v2581_v13, %v2463_v14 }
 0x2c4   : > { %v5579_v51 = vld [vmem:[#allocation4 + $0xc] sm:$0xff]  }
 0x2c5   : > { %2749 = vst.msk [vmem:[#allocation4 + $0x14] sm:$0xf] %vm1238_vm5, %v2726_v33  ;;  %v2699_v5 = vadd.f32 %v2683_v58, %v2597_v9  ;;  %3841 = vmatmul.msk.bf16.gmra.mxu1 %vm488_vm2, %v5579_v51  ;;  %3845 = vmatmul.msk.bf16.gmra.mxu2 %vm488_vm2, %v5579_v51  ;;  %v2586_v37 = vpop.f32.mrf.mxu3  ;;  %v2215_v58 = vadd.f32 %v5522_v10, %v2104_v0  ;;  %v3996_v10 = vld [vmem:[%s5930_s7 + $0x44] sm:$0xf0] }
 0x2c6   : > { %v3905_v45 = vor.u32 %v3996_v10, %v3904_v21 }
 0x2c7   : > { %v2711_v18 = vadd.f32 %v5559_v36, %v2699_v5  ;;  %v2365_v61 = vadd.f32 %v2355_v43, %v2215_v58 }
 0x2c8   : > { %v2450_v11 = vpop.f32.mrf.mxu2  ;;  %v2691_v4 = vpop.f32.mrf.mxu0  ;;  %3172 = vmatpush.bf16.msrb.mxu1 %v3905_v45 }
 0x2c9   : > { %v2719_v22 = vmax.f32 %v2711_v18, 0.0  ;;  %v2464_v29 = vadd.f32 %v2450_v11, %v2362_v6 }
 0x2cb   : > { %v2727_v19 = vpack.c.bf16 %v2719_v22, %v2719_v22  ;;  %v2598_v55 = vadd.f32 %v2584_v63, %v2464_v29 }
 0x2cc   : > { %v5590_v17 = vld [vmem:[#allocation4 + $0x10] sm:$0xff]  }
 0x2cd   : > { %2750 = vst.msk [vmem:[#allocation4 + $0x18] sm:$0xf] %vm1238_vm5, %v2727_v19  ;;  %v2700_v27 = vadd.f32 %v2686_v12, %v2598_v55  ;;  %3858 = vmatmul.msk.bf16.gmra.mxu3 %vm488_vm2, %v5590_v17  ;;  %3862 = vmatmul.msk.bf16.gmra.mxu0 %vm488_vm2, %v5590_v17  ;;  %v2589_v28 = vpop.f32.mrf.mxu3  ;;  %v3999_v19 = vld [vmem:[%s5930_s7 + $0x64] sm:$0xf]  ;;  %v3942_v55 = vld [vmem:[%s5930_s7 + $0x68] sm:$0xf0] }
 0x2cf   : > { %v2712_v48 = vadd.f32 %v5559_v36, %v2700_v27  ;;  %v3945_v27 = vor.u32 %v3999_v19, %v3942_v55 }
 0x2d0   : > { %v2452_v23 = vpop.f32.mrf.mxu2  ;;  %v2693_v12 = vpop.f32.mrf.mxu0 }
 0x2d1   : > { %v2720_v32 = vmax.f32 %v2712_v48, 0.0  ;;  %v2465_v30 = vadd.f32 %v2452_v23, %v2363_v59  ;;  %v2825_v48 = vpop.f32.mrf.mxu1  ;;  %v3941_v59 = vor.u32 %v4000_v31, %v3940_v50 }
 0x2d3   : > { %v2728_v49 = vpack.c.bf16 %v2720_v32, %v2720_v32  ;;  %v2599_v35 = vadd.f32 %v2586_v37, %v2465_v30 }
 0x2d4   : > { %v5613_v3 = vld [vmem:[#allocation4 + $0x14] sm:$0xff]  }
 0x2d5   : > { %2751 = vst.msk [vmem:[#allocation4 + $0x1c] sm:$0xf] %vm1238_vm5, %v2728_v49  ;;  %v2701_v44 = vadd.f32 %v2688_v15, %v2599_v35  ;;  %3842 = vmatmul.msk.bf16.gmra.mxu1 %vm488_vm2, %v5613_v3  ;;  %3846 = vmatmul.msk.bf16.gmra.mxu2 %vm488_vm2, %v5613_v3  ;;  %v2591_v9 = vpop.f32.mrf.mxu3 }
 0x2d7   : > { %v2713_v16 = vadd.f32 %v5559_v36, %v2701_v44 }
 0x2d8   : > { %v2455_v13 = vpop.f32.mrf.mxu2  ;;  %v2940_v1 = vpop.f32.mrf.mxu0 }
 0x2d9   : > { %v2721_v46 = vmax.f32 %v2713_v16, 0.0  ;;  %v2466_v38 = vadd.f32 %v2455_v13, %v2364_v39  ;;  %v2827_v30 = vpop.f32.mrf.mxu1 }
 0x2db   : > { %v2729_v56 = vpack.c.bf16 %v2721_v46, %v2721_v46  ;;  %v2600_v57 = vadd.f32 %v2589_v28, %v2466_v38 }
 0x2dc   : > { %v5630_v20 = vld [vmem:[#allocation4 + $0x18] sm:$0xff]  }
 0x2dd   : > { %2752 = vst.msk [vmem:[#allocation4 + $0x20] sm:$0xf] %vm1238_vm5, %v2729_v56  ;;  %v2702_v52 = vadd.f32 %v2691_v4, %v2600_v57  ;;  %3859 = vmatmul.msk.bf16.gmra.mxu3 %vm488_vm2, %v5630_v20  ;;  %3863 = vmatmul.msk.bf16.gmra.mxu0 %vm488_vm2, %v5630_v20  ;;  %v2911_v26 = vpop.f32.mrf.mxu3  ;;  %v4155_v56 = vld [vmem:[#allocation4 + $0x2c] sm:$0xff]  }
 0x2de   : > { %v5699_v8 = vadd.f32 %v2911_v26, %v2825_v48 }
 0x2df   : > { %v2714_v42 = vadd.f32 %v5559_v36, %v2702_v52 }
 0x2e0   : > { %v2457_v14 = vpop.f32.mrf.mxu2  ;;  %v5711_v23 = vpop.f32.mrf.mxu0 }
 0x2e1   : > { %v2722_v24 = vmax.f32 %v2714_v42, 0.0  ;;  %v2467_v33 = vadd.f32 %v2457_v14, %v2365_v61 }
 0x2e3   : > { %v2730_v63 = vpack.c.bf16 %v2722_v24, %v2722_v24  ;;  %v2601_v5 = vadd.f32 %v2591_v9, %v2467_v33 }
 0x2e4   : > { %v4152_v34 = vld [vmem:[#allocation4 + $0x1c] sm:$0xff]  }
 0x2e5   : > { %2753 = vst.msk [vmem:[#allocation4 + $0x24] sm:$0xf] %vm1238_vm5, %v2730_v63  ;;  %v2703_v18 = vadd.f32 %v2693_v12, %v2601_v5  ;;  %3843 = vmatmul.msk.bf16.gmra.mxu1 %vm488_vm2, %v4152_v34  ;;  %3847 = vmatmul.msk.bf16.gmra.mxu2 %vm488_vm2, %v4152_v34  ;;  %v2913_v32 = vpop.f32.mrf.mxu3 }
 0x2e7   : > { %v2715_v6 = vadd.f32 %v5559_v36, %v2703_v18  ;;  %v3922_v36 = vld [vmem:[%s5930_s7 + $0x50] sm:$0xf] }
 0x2e8   : > { %v2854_v37 = vpop.f32.mrf.mxu2 }
 0x2e9   : > { %v2723_v11 = vmax.f32 %v2715_v6, 0.0  ;;  %v5689_v53 = vadd.f32 %v2940_v1, %v2854_v37 }
 0x2eb   : > { %v2731_v22 = vpack.c.bf16 %v2723_v11, %v2723_v11 }
 0x2ec   : > { %v5701_v15 = vld [vmem:[#allocation4 + $0x20] sm:$0xff]  }
 0x2ed   : > { %2754 = vst.msk [vmem:[#allocation4 + $0x28] sm:$0xf] %vm1238_vm5, %v2731_v22  ;;  %3892 = vmatmul.msk.bf16.vlgmr.msrb.gmra.mxu3 %vm488_vm2, %v5579_v51  ;;  %3896 = vmatmul.msk.bf16.vlgmr.msrb.gmra.mxu0 %vm488_vm2, %v5579_v51  ;;  %v3997_v51 = vld [vmem:[%s5930_s7 + $0x54] sm:$0xf] }
 0x2ee   : > { %v3927_v41 = vor.u32 %v3997_v51, %v3924_v25  ;;  %v2914_v51 = vadd.f32 %v2913_v32, %v2827_v30 }
 0x2f0   : > { %3294 = vmatpush.bf16.msra.mxu0 %v3927_v41  ;;  %v2856_v35 = vpop.f32.mrf.mxu2 }
 0x2f1   : > { %v2943_v19 = vadd.f32 %v5711_v23, %v2856_v35 }
 0x2f4   : > { %v4154_v7 = vld [vmem:[#allocation4 + $0x24] sm:$0xff]  }
 0x2f5   : > { %3874 = vmatmul.msk.bf16.vlgmr.msra.gmra.mxu1 %vm488_vm2, %v5568_v62  ;;  %3878 = vmatmul.msk.bf16.vlgmr.msra.gmra.mxu2 %vm488_vm2, %v5568_v62  ;;  %v3998_v62 = vld [vmem:[%s5930_s7 + $0x54] sm:$0xf0]  ;;  %v4067_v24 = vld [vmem:[#allocation4 + $0x28] sm:$0xff]  }
 0x2f6   : > { %v3923_v29 = vor.u32 %v3998_v62, %v3922_v36  ;;  %3387 = vmatpush.bf16.msra.mxu2 %v3945_v27  ;;  %3358 = vmatpush.bf16.msra.mxu1 %v3941_v59 }
 0x2f8   : > { %3265 = vmatpush.bf16.msra.mxu3 %v3923_v29 }
 0x2fd   : > { %3893 = vmatmul.msk.bf16.gmra.mxu3 %vm488_vm2, %v5613_v3  ;;  %3897 = vmatmul.msk.bf16.gmra.mxu0 %vm488_vm2, %v5613_v3 }
 0x305   : > { %3875 = vmatmul.msk.bf16.gmra.mxu1 %vm488_vm2, %v5590_v17  ;;  %3879 = vmatmul.msk.bf16.gmra.mxu2 %vm488_vm2, %v5590_v17 }
 0x30d   : > { %3894 = vmatmul.msk.bf16.gmra.mxu3 %vm488_vm2, %v4152_v34  ;;  %3898 = vmatmul.msk.bf16.gmra.mxu0 %vm488_vm2, %v4152_v34 }
 0x315   : > { %3876 = vmatmul.msk.bf16.gmra.mxu1 %vm488_vm2, %v5630_v20  ;;  %3880 = vmatmul.msk.bf16.gmra.mxu2 %vm488_vm2, %v5630_v20 }
 0x31d   : > { %3895 = vmatmul.msk.bf16.gmra.mxu3 %vm488_vm2, %v4154_v7  ;;  %3899 = vmatmul.msk.bf16.gmra.mxu0 %vm488_vm2, %v4154_v7 }
 0x325   : > { %3877 = vmatmul.msk.bf16.gmra.mxu1 %vm488_vm2, %v5701_v15  ;;  %3881 = vmatmul.msk.bf16.gmra.mxu2 %vm488_vm2, %v5701_v15 }
 0x32d   : > { %3928 = vmatmul.msk.bf16.vlgmr.msra.gmra.mxu3 %vm488_vm2, %v5613_v3  ;;  %3932 = vmatmul.msk.bf16.vlgmr.msra.gmra.mxu0 %vm488_vm2, %v5613_v3 }
 0x335   : > { %3910 = vmatmul.msk.bf16.vlgmr.msrb.gmra.mxu1 %vm488_vm2, %v5590_v17  ;;  %3914 = vmatmul.msk.bf16.vlgmr.msrb.gmra.mxu2 %vm488_vm2, %v5590_v17 }
 0x33a   : > { %v2945_v2 = vpop.f32.mrf.mxu0 }
 0x33d   : > { %3929 = vmatmul.msk.bf16.gmra.mxu3 %vm488_vm2, %v4152_v34  ;;  %3933 = vmatmul.msk.bf16.gmra.mxu0 %vm488_vm2, %v4152_v34 }
 0x340   : > { %v2916_v49 = vpop.f32.mrf.mxu3 }
 0x342   : > { %v2830_v47 = vpop.f32.mrf.mxu1  ;;  %v2947_v60 = vpop.f32.mrf.mxu0 }
 0x343   : > { %v2917_v44 = vadd.f32 %v2916_v49, %v2830_v47 }
 0x345   : > { %3911 = vmatmul.msk.bf16.gmra.mxu1 %vm488_vm2, %v5630_v20  ;;  %3915 = vmatmul.msk.bf16.gmra.mxu2 %vm488_vm2, %v5630_v20 }
 0x348   : > { %v2918_v3 = vpop.f32.mrf.mxu3  ;;  %v2859_v17 = vpop.f32.mrf.mxu2 }
 0x349   : > { %v2946_v54 = vadd.f32 %v2945_v2, %v2859_v17 }
 0x34a   : > { %v2832_v0 = vpop.f32.mrf.mxu1  ;;  %v2950_v13 = vpop.f32.mrf.mxu0 }
 0x34b   : > { %v2919_v16 = vadd.f32 %v2918_v3, %v2832_v0 }
 0x34d   : > { %3930 = vmatmul.msk.bf16.gmra.mxu3 %vm488_vm2, %v4154_v7  ;;  %3934 = vmatmul.msk.bf16.gmra.mxu0 %vm488_vm2, %v4154_v7 }
 0x350   : > { %v2921_v39 = vpop.f32.mrf.mxu3  ;;  %v2861_v40 = vpop.f32.mrf.mxu2 }
 0x351   : > { %v2948_v28 = vadd.f32 %v2947_v60, %v2861_v40  ;;  %v4068_v60 = vld [vmem:[#allocation4 + $0x30] sm:$0xff]  }
 0x352   : > { %v2835_v46 = vpop.f32.mrf.mxu1  ;;  %v2952_v10 = vpop.f32.mrf.mxu0 }
 0x353   : > { %v2922_v38 = vadd.f32 %v2921_v39, %v2835_v46 }
 0x355   : > { %3912 = vmatmul.msk.bf16.gmra.mxu1 %vm488_vm2, %v5701_v15  ;;  %3916 = vmatmul.msk.bf16.gmra.mxu2 %vm488_vm2, %v5701_v15 }
 0x358   : > { %v2923_v4 = vpop.f32.mrf.mxu3  ;;  %v2864_v58 = vpop.f32.mrf.mxu2 }
 0x359   : > { %v2951_v57 = vadd.f32 %v2950_v13, %v2864_v58 }
 0x35a   : > { %v2837_v52 = vpop.f32.mrf.mxu1  ;;  %v2955_v33 = vpop.f32.mrf.mxu0 }
 0x35b   : > { %v2924_v21 = vadd.f32 %v2923_v4, %v2837_v52 }
 0x35d   : > { %3931 = vmatmul.msk.bf16.gmra.mxu3 %vm488_vm2, %v4155_v56  ;;  %3935 = vmatmul.msk.bf16.gmra.mxu0 %vm488_vm2, %v4155_v56 }
 0x360   : > { %v2926_v43 = vpop.f32.mrf.mxu3  ;;  %v2866_v45 = vpop.f32.mrf.mxu2 }
 0x361   : > { %v2953_v42 = vadd.f32 %v2952_v10, %v2866_v45 }
 0x362   : > { %v2840_v61 = vpop.f32.mrf.mxu1  ;;  %v2957_v18 = vpop.f32.mrf.mxu0 }
 0x363   : > { %v2927_v14 = vadd.f32 %v2926_v43, %v2840_v61 }
 0x365   : > { %3913 = vmatmul.msk.bf16.gmra.mxu1 %vm488_vm2, %v4067_v24  ;;  %3917 = vmatmul.msk.bf16.gmra.mxu2 %vm488_vm2, %v4067_v24 }
 0x368   : > { %v2869_v9 = vpop.f32.mrf.mxu2  ;;  %v2928_v5 = vpop.f32.mrf.mxu3 }
 0x369   : > { %v2956_v63 = vadd.f32 %v2955_v33, %v2869_v9 }
 0x36a   : > { %v2842_v12 = vpop.f32.mrf.mxu1  ;;  %v3110_v23 = vpop.f32.mrf.mxu0 }
 0x36b   : > { %v2929_v34 = vadd.f32 %v2928_v5, %v2842_v12 }
 0x370   : > { %v2871_v6 = vpop.f32.mrf.mxu2 }
 0x371   : > { %v2958_v11 = vadd.f32 %v2957_v18, %v2871_v6 }
 0x372   : > { %v2988_v22 = vpop.f32.mrf.mxu1 }
 0x373   : > { %v5734_v36 = vadd.f32 %v2988_v22, %v5699_v8  ;;  %v3081_v8 = vpop.f32.mrf.mxu3 }
 0x375   : > { %3946 = vmatmul.msk.bf16.vlgmr.msra.gmra.mxu1 %vm488_vm2, %v5630_v20  ;;  %3950 = vmatmul.msk.bf16.vlgmr.msra.gmra.mxu2 %vm488_vm2, %v5630_v20 }
 0x378   : > { %v3017_v62 = vpop.f32.mrf.mxu2 }
 0x379   : > { %v5741_v29 = vadd.f32 %v3017_v62, %v5689_v53 }
 0x37a   : > { %v2990_v25 = vpop.f32.mrf.mxu1 }
 0x37b   : > { %v5743_v41 = vadd.f32 %v2990_v25, %v2914_v51  ;;  %v3083_v49 = vpop.f32.mrf.mxu3 }
 0x380   : > { %v3019_v55 = vpop.f32.mrf.mxu2 }
 0x381   : > { %v5746_v27 = vadd.f32 %v3019_v55, %v2943_v19  ;;  %v3130_v19 = vadd.f32 %v3081_v8, %v5734_v36 }
 0x382   : > { %v2993_v7 = vpop.f32.mrf.mxu1 }
 0x383   : > { %v5748_v1 = vadd.f32 %v2993_v7, %v2917_v44  ;;  %v3112_v44 = vpop.f32.mrf.mxu0 }
 0x385   : > { %3947 = vmatmul.msk.bf16.gmra.mxu1 %vm488_vm2, %v5701_v15  ;;  %3951 = vmatmul.msk.bf16.gmra.mxu2 %vm488_vm2, %v5701_v15 }
 0x388   : > { %v3022_v20 = vpop.f32.mrf.mxu2 }
 0x389   : > { %v5754_v37 = vadd.f32 %v3022_v20, %v2946_v54  ;;  %v5774_v54 = vpop.f32.mrf.mxu3 }
 0x38a   : > { %v2995_v53 = vpop.f32.mrf.mxu1 }
 0x38b   : > { %v5756_v50 = vadd.f32 %v2995_v53, %v2919_v16  ;;  %v3131_v53 = vadd.f32 %v3110_v23, %v5741_v29  ;;  %v3133_v29 = vadd.f32 %v3112_v44, %v5746_v27 }
 0x390   : > { %v3024_v31 = vpop.f32.mrf.mxu2 }
 0x391   : > { %v5758_v26 = vadd.f32 %v3024_v31, %v2948_v28  ;;  %v5780_v28 = vpop.f32.mrf.mxu0 }
 0x392   : > { %v2998_v48 = vpop.f32.mrf.mxu1 }
 0x393   : > { %v5760_v59 = vadd.f32 %v2998_v48, %v2922_v38  ;;  %v5784_v38 = vpop.f32.mrf.mxu3 }
 0x395   : > { %3948 = vmatmul.msk.bf16.gmra.mxu1 %vm488_vm2, %v4067_v24  ;;  %3952 = vmatmul.msk.bf16.gmra.mxu2 %vm488_vm2, %v4067_v24 }
 0x398   : > { %v3027_v32 = vpop.f32.mrf.mxu2 }
 0x399   : > { %v5764_v15 = vadd.f32 %v3027_v32, %v2951_v57  ;;  %v5786_v58 = vpop.f32.mrf.mxu0  ;;  %v3425_v32 = vld [vmem:[%s5931_s8] sm:$0x3] }
 0x39a   : > { %v3000_v30 = vpop.f32.mrf.mxu1 }
 0x39b   : > { %v5766_v2 = vadd.f32 %v3000_v30, %v2924_v21  ;;  %v5788_v52 = vpop.f32.mrf.mxu3 }
 0x3a0   : > { %v3029_v35 = vpop.f32.mrf.mxu2 }
 0x3a1   : > { %v5768_v47 = vadd.f32 %v3029_v35, %v2953_v42  ;;  %v5790_v21 = vpop.f32.mrf.mxu0 }
 0x3a2   : > { %v3003_v3 = vpop.f32.mrf.mxu1 }
 0x3a3   : > { %v5770_v17 = vadd.f32 %v3003_v3, %v2927_v14  ;;  %v5792_v45 = vpop.f32.mrf.mxu3  ;;  %v3132_v3 = vadd.f32 %v3083_v49, %v5743_v41 }
 0x3a5   : > { %3949 = vmatmul.msk.bf16.gmra.mxu1 %vm488_vm2, %v4068_v60  ;;  %3953 = vmatmul.msk.bf16.gmra.mxu2 %vm488_vm2, %v4068_v60  ;;  %vm3471_vm2 = vcmask 1043456  }
 0x3a6   : > { %vm5846_vm6 = vmor %vm3472_vm3, %vm3471_vm2 }
 0x3a8   : > { %v3032_v0 = vpop.f32.mrf.mxu2 }
 0x3a9   : > { %v5776_v16 = vadd.f32 %v3032_v0, %v2956_v63  ;;  %v5794_v61 = vpop.f32.mrf.mxu0  ;;  %v5830_v0 = vperm.slane %v3425_v32, 0 }
 0x3aa   : > { %v3005_v39 = vpop.f32.mrf.mxu1 }
 0x3ab   : > { %v5778_v40 = vadd.f32 %v3005_v39, %v2929_v34  ;;  %v5798_v24 = vpop.f32.mrf.mxu3  ;;  %v5832_v39 = vperm.slane %v3425_v32, 1 }
 0x3b0   : > { %v3034_v13 = vpop.f32.mrf.mxu2 }
 0x3b1   : > { %v5782_v46 = vadd.f32 %v3034_v13, %v2958_v11  ;;  %v5804_v63 = vpop.f32.mrf.mxu0 }
 0x3b2   : > { %v3174_v4 = vpop.f32.mrf.mxu1 }
 0x3b3   : > { %v5808_v12 = vpop.f32.mrf.mxu3  ;;  %v3223_v7 = vadd.f32 %v3174_v4, %v3130_v19 }
 0x3b8   : > { %v3203_v56 = vpop.f32.mrf.mxu2 }
 0x3b9   : > { %v5812_v18 = vpop.f32.mrf.mxu0  ;;  %v3224_v30 = vadd.f32 %v3203_v56, %v3131_v53 }
 0x3ba   : > { %v3176_v57 = vpop.f32.mrf.mxu1 }
 0x3bb   : > { %v3267_v22 = vpop.f32.mrf.mxu3  ;;  %v3225_v36 = vadd.f32 %v3176_v57, %v3132_v3  ;;  %v3134_v57 = vadd.f32 %v5774_v54, %v5748_v1  ;;  %v3135_v1 = vadd.f32 %v5780_v28, %v5754_v37 }
 0x3bc   : > { %v3316_v35 = vadd.f32 %v3267_v22, %v3223_v7 }
 0x3c0   : > { %v3205_v10 = vpop.f32.mrf.mxu2 }
 0x3c1   : > { %v3296_v62 = vpop.f32.mrf.mxu0 }
 0x3c2   : > { %v3179_v43 = vpop.f32.mrf.mxu1  ;;  %v3317_v8 = vadd.f32 %v3296_v62, %v3224_v30 }
 0x3c3   : > { %v3269_v55 = vpop.f32.mrf.mxu3  ;;  %v3227_v44 = vadd.f32 %v3179_v43, %v3134_v57  ;;  %v3136_v43 = vadd.f32 %v5784_v38, %v5756_v50 }
 0x3c4   : > { %v3318_v41 = vadd.f32 %v3269_v55, %v3225_v36 }
 0x3c8   : > { %v3208_v42 = vpop.f32.mrf.mxu2 }
 0x3c9   : > { %v3298_v31 = vpop.f32.mrf.mxu0  ;;  %v3228_v3 = vadd.f32 %v3208_v42, %v3135_v1  ;;  %v3140_v1 = vadd.f32 %v5792_v45, %v5766_v2 }
 0x3ca   : > { %v5796_v14 = vpop.f32.mrf.mxu1 }
 0x3cb   : > { %v3272_v13 = vpop.f32.mrf.mxu3  ;;  %v3229_v28 = vadd.f32 %v5796_v14, %v3136_v43 }
 0x3cc   : > { %v3320_v36 = vadd.f32 %v3272_v13, %v3227_v44 }
 0x3d0   : > { %v5800_v33 = vpop.f32.mrf.mxu2 }
 0x3d1   : > { %v3301_v49 = vpop.f32.mrf.mxu0 }
 0x3d2   : > { %v5802_v9 = vpop.f32.mrf.mxu1 }
 0x3d3   : > { %v3274_v30 = vpop.f32.mrf.mxu3 }
 0x3d8   : > { %v5806_v5 = vpop.f32.mrf.mxu2 }
 0x3d9   : > { %v3303_v37 = vpop.f32.mrf.mxu0 }
 0x3da   : > { %v5810_v34 = vpop.f32.mrf.mxu1 }
 0x3db   : > { %v3277_v14 = vpop.f32.mrf.mxu3 }
 0x3e0   : > { %v5814_v6 = vpop.f32.mrf.mxu2 }
 0x3e2   : > { %v5816_v11 = vpop.f32.mrf.mxu1 }
 0x3e8   : > { %v5818_v51 = vpop.f32.mrf.mxu2 }
 0x3ea   : > { %v5820_v25 = vpop.f32.mrf.mxu1 }
 0x3f0   : > { %v5823_v20 = vpop.f32.mrf.mxu2 }
 0x3f1   : > { %5989 = vst [vmem:[#allocation7_spill] sm:$0xff] %v5823_v20  ;;  %v3226_v20 = vadd.f32 %v3205_v10, %v3133_v29 }
 0x3f2   : > { %v3360_v48 = vpop.f32.mrf.mxu1 }
 0x3f3   : > { %v3409_v60 = vadd.f32 %v3360_v48, %v3316_v35  ;;  %v3319_v55 = vadd.f32 %v3298_v31, %v3226_v20 }
 0x3f5   : > { %v3431_v4 = vadd.f32 %v5830_v0, %v3409_v60 }
 0x3f7   : > { %v3447_v62 = vmax.f32 %v3431_v4, 0.0 }
 0x3f8   : > { %v3389_v23 = vpop.f32.mrf.mxu2 }
 0x3f9   : > { %v3410_v19 = vadd.f32 %v3389_v23, %v3317_v8  ;;  %v3321_v23 = vadd.f32 %v3301_v49, %v3228_v3 }
 0x3fa   : > { %v3362_v56 = vpop.f32.mrf.mxu1 }
 0x3fb   : > { %v3432_v22 = vadd.f32 %v5832_v39, %v3410_v19  ;;  %v3411_v53 = vadd.f32 %v3362_v56, %v3318_v41  ;;  %v3137_v19 = vadd.f32 %v5786_v58, %v5758_v26  ;;  %v3138_v41 = vadd.f32 %v5788_v52, %v5760_v59 }
 0x3fd   : > { %v3448_v7 = vmax.f32 %v3432_v22, 0.0  ;;  %v3433_v54 = vadd.f32 %v5830_v0, %v3411_v53  ;;  %v3230_v38 = vadd.f32 %v5800_v33, %v3137_v19  ;;  %v3322_v22 = vadd.f32 %v3274_v30, %v3229_v28  ;;  %v3306_v53 = vpop.f32.mrf.mxu0 }
 0x3fe   : > { %v3231_v58 = vadd.f32 %v5802_v9, %v3138_v41 }
 0x3ff   : > { %v3463_v10 = vpack.c.bf16 %v3448_v7, %v3447_v62  ;;  %v3449_v20 = vmax.f32 %v3433_v54, 0.0  ;;  %v3323_v7 = vadd.f32 %v3303_v37, %v3230_v38 }
 0x400   : > { %v3391_v48 = vpop.f32.mrf.mxu2  ;;  %v3324_v9 = vadd.f32 %v3277_v14, %v3231_v58  ;;  %v3145_v58 = vadd.f32 %v5812_v18, %v5782_v46 }
 0x401   : > { %3474 = vst.msk [vmem:[%s5844_s14] sm:$0xff] %vm5846_vm6, %v3463_v10  ;;  %v3412_v32 = vadd.f32 %v3391_v48, %v3319_v55  ;;  %v3139_v10 = vadd.f32 %v5790_v21, %v5764_v15  ;;  %v3279_v15 = vpop.f32.mrf.mxu3  ;;  %v3233_v21 = vadd.f32 %v5810_v34, %v3140_v1 }
 0x402   : > { %v3365_v35 = vpop.f32.mrf.mxu1 }
 0x403   : > { %v3434_v60 = vadd.f32 %v5832_v39, %v3412_v32  ;;  %v3413_v8 = vadd.f32 %v3365_v35, %v3320_v36  ;;  %v3232_v52 = vadd.f32 %v5806_v5, %v3139_v10  ;;  %v3141_v36 = vadd.f32 %v5794_v61, %v5768_v47 }
 0x404   : > { %v3326_v34 = vadd.f32 %v3279_v15, %v3233_v21 }
 0x405   : > { %v3450_v31 = vmax.f32 %v3434_v60, 0.0  ;;  %v3435_v42 = vadd.f32 %v5830_v0, %v3413_v8  ;;  %v3325_v3 = vadd.f32 %v3306_v53, %v3232_v52  ;;  %v3308_v2 = vpop.f32.mrf.mxu0  ;;  %v3142_v8 = vadd.f32 %v5798_v24, %v5770_v17 }
 0x407   : > { %v3464_v29 = vpack.c.bf16 %v3450_v31, %v3449_v20  ;;  %v3451_v49 = vmax.f32 %v3435_v42, 0.0  ;;  %v3234_v20 = vadd.f32 %v5814_v6, %v3141_v36  ;;  %v3143_v42 = vadd.f32 %v5804_v63, %v5776_v16 }
 0x408   : > { %v3394_v4 = vpop.f32.mrf.mxu2 }
 0x409   : > { %3475 = vst.msk [vmem:[%s5844_s14 + $0x8] sm:$0xff] %vm5846_vm6, %v3464_v29  ;;  %v3414_v13 = vadd.f32 %v3394_v4, %v3321_v23  ;;  %v3282_v61 = vpop.f32.mrf.mxu3  ;;  %v3235_v29 = vadd.f32 %v5816_v11, %v3142_v8  ;;  %v3327_v4 = vadd.f32 %v3308_v2, %v3234_v20  ;;  %v3236_v38 = vadd.f32 %v5818_v51, %v3143_v42 }
 0x40a   : > { %v3367_v50 = vpop.f32.mrf.mxu1 }
 0x40b   : > { %v3436_v56 = vadd.f32 %v5832_v39, %v3414_v13  ;;  %v3415_v26 = vadd.f32 %v3367_v50, %v3322_v22  ;;  %v3328_v50 = vadd.f32 %v3282_v61, %v3235_v29 }
 0x40d   : > { %v3452_v57 = vmax.f32 %v3436_v56, 0.0  ;;  %v3437_v33 = vadd.f32 %v5830_v0, %v3415_v26  ;;  %v3311_v17 = vpop.f32.mrf.mxu0  ;;  %v3144_v56 = vadd.f32 %v5808_v12, %v5778_v40 }
 0x40e   : > { %v3329_v41 = vadd.f32 %v3311_v17, %v3236_v38 }
 0x40f   : > { %v3465_v62 = vpack.c.bf16 %v3452_v57, %v3451_v49  ;;  %v3453_v54 = vmax.f32 %v3437_v33, 0.0  ;;  %v3237_v63 = vadd.f32 %v5820_v25, %v3144_v56 }
 0x410   : > { %v3396_v44 = vpop.f32.mrf.mxu2 }
 0x411   : > { %3476 = vst.msk [vmem:[%s5844_s14 + $0x10] sm:$0xff] %vm5846_vm6, %v3465_v62  ;;  %v3416_v55 = vadd.f32 %v3396_v44, %v3323_v7  ;;  %v3284_v57 = vpop.f32.mrf.mxu3  ;;  %v5992_v7 = vld [vmem:[#allocation7_spill] sm:$0xff] }
 0x412   : > { %v3370_v59 = vpop.f32.mrf.mxu1  ;;  %v3330_v12 = vadd.f32 %v3284_v57, %v3237_v63  ;;  %v3238_v53 = vadd.f32 %v5992_v7, %v3145_v58 }
 0x413   : > { %v3438_v48 = vadd.f32 %v5832_v39, %v3416_v55  ;;  %v3417_v30 = vadd.f32 %v3370_v59, %v3324_v9 }
 0x415   : > { %v3454_v32 = vmax.f32 %v3438_v48, 0.0  ;;  %v3439_v5 = vadd.f32 %v5830_v0, %v3417_v30  ;;  %v3313_v44 = vpop.f32.mrf.mxu0 }
 0x416   : > { %v3331_v59 = vadd.f32 %v3313_v44, %v3238_v53 }
 0x417   : > { %v3466_v35 = vpack.c.bf16 %v3454_v32, %v3453_v54  ;;  %v3455_v37 = vmax.f32 %v3439_v5, 0.0 }
 0x418   : > { %v3399_v60 = vpop.f32.mrf.mxu2 }
 0x419   : > { %3477 = vst.msk [vmem:[%s5844_s14 + $0x18] sm:$0xff] %vm5846_vm6, %v3466_v35  ;;  %v3418_v43 = vadd.f32 %v3399_v60, %v3325_v3 }
 0x41a   : > { %v3372_v45 = vpop.f32.mrf.mxu1 }
 0x41b   : > { %v3440_v31 = vadd.f32 %v5832_v39, %v3418_v43  ;;  %v3419_v47 = vadd.f32 %v3372_v45, %v3326_v34 }
 0x41d   : > { %v3456_v28 = vmax.f32 %v3440_v31, 0.0  ;;  %v3441_v6 = vadd.f32 %v5830_v0, %v3419_v47 }
 0x41f   : > { %v3467_v23 = vpack.c.bf16 %v3456_v28, %v3455_v37  ;;  %v3457_v22 = vmax.f32 %v3441_v6, 0.0 }
 0x420   : > { %v3401_v19 = vpop.f32.mrf.mxu2 }
 0x421   : > { %3478 = vst.msk [vmem:[%s5844_s14 + $0x20] sm:$0xff] %vm5846_vm6, %v3467_v23  ;;  %v3420_v13 = vadd.f32 %v3401_v19, %v3327_v4 }
 0x422   : > { %v3375_v24 = vpop.f32.mrf.mxu1 }
 0x423   : > { %v3442_v11 = vadd.f32 %v5832_v39, %v3420_v13  ;;  %v3421_v16 = vadd.f32 %v3375_v24, %v3328_v50 }
 0x425   : > { %v3458_v14 = vmax.f32 %v3442_v11, 0.0  ;;  %v3443_v51 = vadd.f32 %v5830_v0, %v3421_v16 }
 0x427   : > { %v3468_v49 = vpack.c.bf16 %v3458_v14, %v3457_v22  ;;  %v3459_v10 = vmax.f32 %v3443_v51, 0.0 }
 0x428   : > { %v3404_v26 = vpop.f32.mrf.mxu2 }
 0x429   : > { %3479 = vst.msk [vmem:[%s5844_s14 + $0x28] sm:$0xff] %vm5846_vm6, %v3468_v49  ;;  %v3422_v62 = vadd.f32 %v3404_v26, %v3329_v41 }
 0x42a   : > { %v3377_v40 = vpop.f32.mrf.mxu1 }
 0x42b   : > { %v3444_v25 = vadd.f32 %v5832_v39, %v3422_v62  ;;  %v3423_v55 = vadd.f32 %v3377_v40, %v3330_v12 }
 0x42d   : > { %v3460_v33 = vmax.f32 %v3444_v25, 0.0  ;;  %v3445_v18 = vadd.f32 %v5830_v0, %v3423_v55 }
 0x42f   : > { %v3469_v52 = vpack.c.bf16 %v3460_v33, %v3459_v10  ;;  %v3461_v1 = vmax.f32 %v3445_v18, 0.0 }
 0x430   : > { %v3406_v46 = vpop.f32.mrf.mxu2 }
 0x431   : > { %3480 = vst.msk [vmem:[%s5844_s14 + $0x30] sm:$0xff] %vm5846_vm6, %v3469_v52  ;;  %v3424_v48 = vadd.f32 %v3406_v46, %v3331_v59 }
 0x433   : > { %v3446_v9 = vadd.f32 %v5832_v39, %v3424_v48 }
 0x435   : > { %v3462_v54 = vmax.f32 %v3446_v9, 0.0 }
 0x437   : > { %v3470_v32 = vpack.c.bf16 %v3462_v54, %v3461_v1 }
 0x439   : > { %3481 = vst.msk [vmem:[%s5844_s14 + $0x38] sm:$0xff] %vm5846_vm6, %v3470_v32 }
 0x43a PF: > { %s19_s30 = sadd.s32 1, %s4174_s30  }
 0x43b   : > { %p16_p4 = scmp.ge.s32.totalorder %s19_s30, 4  }
 0x43d   :  { %18 = sbr.rel (!%p16_p4) target bundleno = 1 (0x1), region = 112 }

</bundles_post_ra>
